<compile_context>
chip_gen: v7x
topology: tpu7x:2x2x1
jax: 0.10.0
libtpu: 0.0.40
codegen_flags: <defaults>
</compile_context>

<pallas_src>
import functools

import jax
import jax.numpy as jnp
from jax import lax
from jax.experimental import pallas as pl
from jax.experimental.pallas import tpu as pltpu


def mlp_kernel(xT_ref, w1_ref, b1_ref, w2_ref, b2_ref, w3_ref, b3_ref, o_ref,
               *, mxu_small, mm_precision):
    """Fused 3-layer MLP forward on one batch tile, batch mapped to the lane axis.

    Shapes inside the kernel (TB = batch tile):
      xT_ref: (K1, TB) f32            w1_ref: (H1, K1)   f32 or bf16    b1_ref: (H1, 1) f32
      w2_ref: (H2, H1) bf16 (or f32)  b2_ref: (H2, 1)    f32
      w3_ref: (d_out, H2) [MXU head]  or (H2, 1) [VPU head, d_out==1]   b3_ref: (d_out, 1) f32
      o_ref : (d_out, TB) f32
    """
    d_in = xT_ref.shape[0]
    d_out = o_ref.shape[0]

    xT = xT_ref[...]                                    # (K1, TB)
    b1 = b1_ref[...]                                    # (H1, 1)

    # ---- layer 1 -------------------------------------------------------------------
    if mxu_small:
        # v6e/v7x: VALU is the binding slot, MXU has slack -> bf16 MXU matmul
        # (K1 already zero-padded to a multiple of 8 in the wrapper).
        h1 = jnp.dot(w1_ref[...], xT.astype(w1_ref.dtype),
                     preferred_element_type=jnp.float32) + b1
    elif d_in <= 8:
        # v5e / unknown: tiny K -> VPU broadcast-FMAs, keep it off the MXU.
        w1 = w1_ref[...]                                # (H1, d_in)
        acc = w1[:, 0:1] * xT[0:1, :]                   # (H1,1)*(1,TB) -> (H1, TB)
        for k in range(1, d_in):                        # static, tiny unroll
            acc = acc + w1[:, k:k + 1] * xT[k:k + 1, :]
        h1 = acc + b1
    else:
        h1 = jnp.dot(w1_ref[...], xT, preferred_element_type=jnp.float32,
                     precision=mm_precision) + b1
    h1 = jnp.maximum(h1, 0.0)                           # (H1, TB) f32

    # ---- layer 2: the real matmul -> MXU, f32 accumulation --------------------------
    h2 = jnp.dot(w2_ref[...], h1.astype(w2_ref.dtype),
                 preferred_element_type=jnp.float32,
                 precision=mm_precision) + b2_ref[...]
    h2 = jnp.maximum(h2, 0.0)                           # (H2, TB) f32

    # ---- layer 3: d_out == 1 head --------------------------------------------------
    if mxu_small:
        # (1, H2) @ (H2, TB) on the MXU (M=1 pads internally; MXU has slack here).
        y = jnp.dot(w3_ref[...], h2.astype(w3_ref.dtype),
                    preferred_element_type=jnp.float32) + b3_ref[...]
    elif d_out == 1:
        # VPU multiply + sublane reduction straight into the lane-dense output row.
        y = jnp.sum(w3_ref[...] * h2, axis=0, keepdims=True) + b3_ref[...]
    else:
        y = jnp.dot(w3_ref[...], h2, preferred_element_type=jnp.float32,
                    precision=mm_precision) + b3_ref[...]

    o_ref[...] = y.astype(o_ref.dtype)                  # (d_out, TB), lane-dense store


def _tpu_generation():
    """Best-effort TPU generation (0 if unknown)."""
    try:
        kind = jax.devices()[0].device_kind.lower()
    except Exception:
        return 0
    for g in (7, 6, 5, 4, 3, 2):
        if f"v{g}" in kind:
            return g
    return 0


def _pick_tile_b(B, target):
    """Largest 256-multiple batch tile <= target, capped so the grid keeps >=2 steps
    (v7x megacore only shards a 'parallel' axis across both TCs if there are >=2 steps)."""
    b_min = pl.cdiv(B, 256) * 256
    tb = min(target, b_min)
    if b_min > 256:
        half = pl.cdiv(b_min // 2, 256) * 256
        tb = min(tb, max(256, half))
    return max(256, tb)


@functools.partial(jax.jit, static_argnames=("tile_b", "high_precision"))
def net_forward(x, w1, b1, w2, b2, w3, b3, *, tile_b=None, high_precision=False):
    """x: (B, d_in) f32; weights in torch orientation (out, in); biases (out,).

    tile_b: optional override for the batch tile (lane axis), multiple of 256.
            Default: auto-picked per generation (2048 on <=v5, 4096 on v6e/v7x),
            capped so the grid has >=2 steps and the batch fits.
    high_precision: run all matmuls in f32 (lax.Precision.HIGHEST) for f32 parity with
            the PyTorch reference; default (False) uses bf16 MXU inputs + f32 accumulation
            (a deliberate precision trade, see test tolerances).
    Batch is zero-padded up to a tile multiple; padding is sliced off on return.
    """
    B, d_in = x.shape
    h1_dim = w1.shape[0]
    h2_dim = w2.shape[0]
    d_out = w3.shape[0]

    gen = _tpu_generation()
    # v6e/v7x: offload layers 1 & 3 to the idle MXU; v5e/unknown: keep them on the VPU.
    mxu_small = (gen >= 6) and (not high_precision)
    if tile_b is None:
        tile_b = _pick_tile_b(B, 4096 if gen >= 6 else 2048)
    B_pad = pl.cdiv(B, tile_b) * tile_b

    mm_precision = lax.Precision.HIGHEST if high_precision else None

    # One-time wrapper-side reshapes / casts (cheap XLA ops, outside the kernel).
    b1c = b1.reshape(h1_dim, 1)
    b2c = b2.reshape(h2_dim, 1)
    b3c = b3.reshape(d_out, 1)
    w2c = w2 if high_precision else w2.astype(jnp.bfloat16)   # bf16 MXU path, f32 acc

    if mxu_small:
        # Pad the tiny contraction dim up to 8 so the layer-1 matmul is MXU-friendly
        # (zero padding contributes nothing); x stays f32 in HBM, cast in-kernel.
        k_pad = pl.cdiv(d_in, 8) * 8
        xT = jnp.pad(x, ((0, B_pad - B), (0, k_pad - d_in))).T      # (k_pad, B_pad)
        w1c = jnp.pad(w1, ((0, 0), (0, k_pad - d_in))).astype(jnp.bfloat16)
        w3c = w3.astype(jnp.bfloat16)                               # (d_out, H2) MXU head
    else:
        xT = jnp.pad(x, ((0, B_pad - B), (0, 0))).T                 # (d_in, B_pad)
        w1c = w1
        w3c = w3.T if d_out == 1 else w3                            # (H2, 1) VPU head

    grid = (B_pad // tile_b,)
    full = lambda i: (0, 0)                  # weights/biases VMEM-resident across steps

    kernel = functools.partial(mlp_kernel, mxu_small=mxu_small, mm_precision=mm_precision)

    yT = pl.pallas_call(
        kernel,
        out_shape=jax.ShapeDtypeStruct((d_out, B_pad), jnp.float32),
        grid=grid,
        in_specs=[
            pl.BlockSpec((xT.shape[0], tile_b), lambda i: (0, i)),   # x^T batch tile
            pl.BlockSpec(w1c.shape, full),                           # W1 (full)
            pl.BlockSpec((h1_dim, 1), full),                         # b1
            pl.BlockSpec((h2_dim, h1_dim), full),                    # W2 (full)
            pl.BlockSpec((h2_dim, 1), full),                         # b2
            pl.BlockSpec(w3c.shape, full),                           # W3
            pl.BlockSpec((d_out, 1), full),                          # b3
        ],
        out_specs=pl.BlockSpec((d_out, tile_b), lambda i: (0, i)),   # lane-dense output
        compiler_params=pltpu.CompilerParams(
            dimension_semantics=("parallel",),          # megacore sharding on v7x
            vmem_limit_bytes=48 * 1024 * 1024,          # room for TB up to 4096
        ),
    )(xT, w1c, b1c, w2c, b2c, w3c, b3c)

    return yT[:, :B].T                                  # (B, d_out), torch layout


def init_params(key, layer_mat):
    """Mirror Net._initial_param:
       - weights: kaiming_normal_(mode='fan_out', relu) -> std = sqrt(2 / out_features)
       - first-layer bias: Normal(0, sqrt(2 / layer_mat[1])); other biases: zeros.
       Torch orientation: W_i is (out, in), b_i is (out,)."""
    d_in, h1, h2, d_out = layer_mat
    k1, k2, k3, kb = jax.random.split(key, 4)
    w1 = jax.random.normal(k1, (h1, d_in), jnp.float32) * (2.0 / h1) ** 0.5
    w2 = jax.random.normal(k2, (h2, h1), jnp.float32) * (2.0 / h2) ** 0.5
    w3 = jax.random.normal(k3, (d_out, h2), jnp.float32) * (2.0 / d_out) ** 0.5
    b1 = jax.random.normal(kb, (h1,), jnp.float32) * (2.0 / h1) ** 0.5
    b2 = jnp.zeros((h2,), jnp.float32)
    b3 = jnp.zeros((d_out,), jnp.float32)
    return w1, b1, w2, b2, w3, b3


def reference_forward(x, w1, b1, w2, b2, w3, b3):
    # HIGHEST precision so the reference itself is f32-accurate (TPU default matmul is bf16).
    prec = lax.Precision.HIGHEST
    h = jnp.maximum(jnp.dot(x, w1.T, precision=prec) + b1, 0.0)
    h = jnp.maximum(jnp.dot(h, w2.T, precision=prec) + b2, 0.0)
    return jnp.dot(h, w3.T, precision=prec) + b3


if __name__ == "__main__":
    # Small shapes consistent with the module: layer_mat = [2, 256, 256, 1].
    layer_mat = [2, 256, 256, 1]

    key = jax.random.PRNGKey(0)
    kx, kp = jax.random.split(key)
    params = init_params(kp, layer_mat)

    # B=3000 exercises a >256 auto-picked batch tile with a 2-step parallel grid,
    # B=300 exercises padding + a 2-step grid at the minimum tile,
    # B=16 exercises the single-block tiny-batch path.
    for B in (3000, 300, 16):
        x = jax.random.normal(jax.random.fold_in(kx, B), (B, layer_mat[0]), jnp.float32)
        ref = reference_forward(x, *params)
        out = jax.block_until_ready(net_forward(x, *params))
        assert out.shape == (B, layer_mat[-1])
        # Default path runs layer 2 (and, on v6e/v7x, layers 1/3) in bf16 on the MXU with
        # f32 accumulation — a deliberate precision trade, hence the loosened tolerance
        # (observed error ~1e-2 absolute on O(1) outputs).
        assert jnp.allclose(out, ref, atol=3e-2, rtol=3e-2), f"bf16-path mismatch at B={B}"

    # f32-parity path (HIGHEST-precision MXU, VPU layers 1/3): tight tolerance.
    x = jax.random.normal(jax.random.fold_in(kx, 7), (300, layer_mat[0]), jnp.float32)
    ref = reference_forward(x, *params)
    out = jax.block_until_ready(net_forward(x, *params, high_precision=True))
    assert jnp.allclose(out, ref, atol=1e-3, rtol=1e-3), "f32-path mismatch vs reference"

    print("KERNEL_OK")
</pallas_src>

<mosaic_0001>
module attributes {stable_mosaic.version = 11 : i64} {
  func.func @mlp_kernel(%arg0: i32, %arg1: memref<2x1536xf32, #tpu.memory_space<vmem>>, %arg2: memref<256x2xf32, #tpu.memory_space<vmem>>, %arg3: memref<256x1xf32, #tpu.memory_space<vmem>>, %arg4: memref<256x256xbf16, #tpu.memory_space<vmem>>, %arg5: memref<256x1xf32, #tpu.memory_space<vmem>>, %arg6: memref<256x1xf32, #tpu.memory_space<vmem>>, %arg7: memref<1x1xf32, #tpu.memory_space<vmem>>, %arg8: memref<1x1536xf32, #tpu.memory_space<vmem>>) attributes {dimension_semantics = [#tpu.dimension_semantics<parallel>], iteration_bounds = array<i64: 2>, scalar_prefetch = 0 : i64, scratch_operands = 0 : i64, tpu.core_type = #tpu.core_type<tc>, window_params = [{transform_indices = @transform_0, window_bounds = array<i64: 2, 1536>}, {pipeline_mode = #tpu.pipeline_mode<synchronous>, transform_indices = @transform_1, window_bounds = array<i64: 256, 2>}, {pipeline_mode = #tpu.pipeline_mode<synchronous>, transform_indices = @transform_2, window_bounds = array<i64: 256, 1>}, {pipeline_mode = #tpu.pipeline_mode<synchronous>, transform_indices = @transform_3, window_bounds = array<i64: 256, 256>}, {pipeline_mode = #tpu.pipeline_mode<synchronous>, transform_indices = @transform_4, window_bounds = array<i64: 256, 1>}, {pipeline_mode = #tpu.pipeline_mode<synchronous>, transform_indices = @transform_5, window_bounds = array<i64: 256, 1>}, {pipeline_mode = #tpu.pipeline_mode<synchronous>, transform_indices = @transform_6, window_bounds = array<i64: 1, 1>}, {transform_indices = @transform_7, window_bounds = array<i64: 1, 1536>}]} {
    %c0 = arith.constant 0 : index
    %c0_0 = arith.constant 0 : index
    %0 = vector.load %arg1[%c0, %c0_0] : memref<2x1536xf32, #tpu.memory_space<vmem>>, vector<2x1536xf32>
    %c0_1 = arith.constant 0 : index
    %c0_2 = arith.constant 0 : index
    %1 = vector.load %arg3[%c0_1, %c0_2] : memref<256x1xf32, #tpu.memory_space<vmem>>, vector<256x1xf32>
    %c0_3 = arith.constant 0 : index
    %c0_4 = arith.constant 0 : index
    %2 = vector.load %arg2[%c0_3, %c0_4] : memref<256x2xf32, #tpu.memory_space<vmem>>, vector<256x2xf32>
    %3 = vector.extract_strided_slice %2 {offsets = [0, 0], sizes = [256, 1], strides = [1, 1]} : vector<256x2xf32> to vector<256x1xf32>
    %4 = vector.extract_strided_slice %0 {offsets = [0, 0], sizes = [1, 1536], strides = [1, 1]} : vector<2x1536xf32> to vector<1x1536xf32>
    %5 = vector.broadcast %3 : vector<256x1xf32> to vector<256x1536xf32>
    %6 = vector.broadcast %4 : vector<1x1536xf32> to vector<256x1536xf32>
    %7 = arith.mulf %5, %6 : vector<256x1536xf32>
    %8 = vector.extract_strided_slice %2 {offsets = [0, 1], sizes = [256, 1], strides = [1, 1]} : vector<256x2xf32> to vector<256x1xf32>
    %9 = vector.extract_strided_slice %0 {offsets = [1, 0], sizes = [1, 1536], strides = [1, 1]} : vector<2x1536xf32> to vector<1x1536xf32>
    %10 = vector.broadcast %8 : vector<256x1xf32> to vector<256x1536xf32>
    %11 = vector.broadcast %9 : vector<1x1536xf32> to vector<256x1536xf32>
    %12 = arith.mulf %10, %11 : vector<256x1536xf32>
    %13 = arith.addf %7, %12 : vector<256x1536xf32>
    %14 = vector.broadcast %1 : vector<256x1xf32> to vector<256x1536xf32>
    %15 = arith.addf %13, %14 : vector<256x1536xf32>
    %cst = arith.constant 0.000000e+00 : f32
    %16 = vector.broadcast %cst : f32 to vector<256x1536xf32>
    %17 = arith.maximumf %15, %16 : vector<256x1536xf32>
    %c0_5 = arith.constant 0 : index
    %c0_6 = arith.constant 0 : index
    %18 = vector.load %arg4[%c0_5, %c0_6] : memref<256x256xbf16, #tpu.memory_space<vmem>>, vector<256x256xbf16>
    %19 = arith.truncf %17 : vector<256x1536xf32> to vector<256x1536xbf16>
    %cst_7 = arith.constant dense<0.000000e+00> : vector<256x1536xf32>
    %20 = tpu.matmul %18, %19, %cst_7 {dimension_numbers = #tpu.dot_dimension_numbers<[1], [0], [0], [1], [0, 0, 1, 1], [], []>} : vector<256x256xbf16>, vector<256x1536xbf16>, vector<256x1536xf32> -> vector<256x1536xf32>
    %c0_8 = arith.constant 0 : index
    %c0_9 = arith.constant 0 : index
    %21 = vector.load %arg5[%c0_8, %c0_9] : memref<256x1xf32, #tpu.memory_space<vmem>>, vector<256x1xf32>
    %22 = vector.broadcast %21 : vector<256x1xf32> to vector<256x1536xf32>
    %23 = arith.addf %20, %22 : vector<256x1536xf32>
    %cst_10 = arith.constant 0.000000e+00 : f32
    %24 = vector.broadcast %cst_10 : f32 to vector<256x1536xf32>
    %25 = arith.maximumf %23, %24 : vector<256x1536xf32>
    %c0_11 = arith.constant 0 : index
    %c0_12 = arith.constant 0 : index
    %26 = vector.load %arg6[%c0_11, %c0_12] : memref<256x1xf32, #tpu.memory_space<vmem>>, vector<256x1xf32>
    %27 = vector.broadcast %26 : vector<256x1xf32> to vector<256x1536xf32>
    %28 = arith.mulf %27, %25 : vector<256x1536xf32>
    %cst_13 = arith.constant dense<0.000000e+00> : vector<1536xf32>
    %29 = vector.multi_reduction <add>, %28, %cst_13 [0] : vector<256x1536xf32> to vector<1536xf32>
    %30 = vector.shape_cast %29 : vector<1536xf32> to vector<1x1536xf32>
    %c0_14 = arith.constant 0 : index
    %c0_15 = arith.constant 0 : index
    %31 = vector.load %arg7[%c0_14, %c0_15] : memref<1x1xf32, #tpu.memory_space<vmem>>, vector<1x1xf32>
    %32 = vector.broadcast %31 : vector<1x1xf32> to vector<1x1536xf32>
    %33 = arith.addf %30, %32 : vector<1x1536xf32>
    %c0_16 = arith.constant 0 : index
    %c0_17 = arith.constant 0 : index
    %34 = vector.load %arg8[%c0_16, %c0_17] : memref<1x1536xf32, #tpu.memory_space<vmem>>, vector<1x1536xf32>
    tpu.vector_store %arg8[%c0_16, %c0_17], %33 {strides = array<i32>} : memref<1x1536xf32, #tpu.memory_space<vmem>>, vector<1x1536xf32>,
    return
  }
  func.func @transform_0(%arg0: i32) -> (i32, i32) {
    %c0_i32 = arith.constant 0 : i32
    %c0_i32_0 = arith.constant 0 : i32
    return %c0_i32, %arg0 : i32, i32
  }
  func.func @transform_1(%arg0: i32) -> (i32, i32) {
    %c0_i32 = arith.constant 0 : i32
    %c0_i32_0 = arith.constant 0 : i32
    %c0_i32_1 = arith.constant 0 : i32
    return %c0_i32, %c0_i32_0 : i32, i32
  }
  func.func @transform_2(%arg0: i32) -> (i32, i32) {
    %c0_i32 = arith.constant 0 : i32
    %c0_i32_0 = arith.constant 0 : i32
    %c0_i32_1 = arith.constant 0 : i32
    return %c0_i32, %c0_i32_0 : i32, i32
  }
  func.func @transform_3(%arg0: i32) -> (i32, i32) {
    %c0_i32 = arith.constant 0 : i32
    %c0_i32_0 = arith.constant 0 : i32
    %c0_i32_1 = arith.constant 0 : i32
    return %c0_i32, %c0_i32_0 : i32, i32
  }
  func.func @transform_4(%arg0: i32) -> (i32, i32) {
    %c0_i32 = arith.constant 0 : i32
    %c0_i32_0 = arith.constant 0 : i32
    %c0_i32_1 = arith.constant 0 : i32
    return %c0_i32, %c0_i32_0 : i32, i32
  }
  func.func @transform_5(%arg0: i32) -> (i32, i32) {
    %c0_i32 = arith.constant 0 : i32
    %c0_i32_0 = arith.constant 0 : i32
    %c0_i32_1 = arith.constant 0 : i32
    return %c0_i32, %c0_i32_0 : i32, i32
  }
  func.func @transform_6(%arg0: i32) -> (i32, i32) {
    %c0_i32 = arith.constant 0 : i32
    %c0_i32_0 = arith.constant 0 : i32
    %c0_i32_1 = arith.constant 0 : i32
    return %c0_i32, %c0_i32_0 : i32, i32
  }
  func.func @transform_7(%arg0: i32) -> (i32, i32) {
    %c0_i32 = arith.constant 0 : i32
    %c0_i32_0 = arith.constant 0 : i32
    return %c0_i32, %arg0 : i32, i32
  }
}

</mosaic_0001>

<bundles_post_ra>
// kernel: net_forward.1
= control target key start
LH: loop header
LB: loop body
LE: loop exit
PB: predicated region body
PF: predicated region fallthrough
CT: control target
= control target key end

     0   :  { %s6493_s26 = smov 0   ;;  %s12561_s0 = inlined_call_operand.vmem [shape: f32[2,3072], index: 0, kind: input, shape index: {}]   ;;  %s12562_s1 = inlined_call_operand.vmem [shape: f32[256,2], index: 1, kind: input, shape index: {}]   ;;  %s12563_s2 = inlined_call_operand.vmem [shape: f32[256,1], index: 2, kind: input, shape index: {}]   ;;  %s12564_s3 = inlined_call_operand.vmem [shape: bf16[256,256], index: 3, kind: input, shape index: {}]   ;;  %s12565_s4 = inlined_call_operand.vmem [shape: f32[256,1], index: 4, kind: input, shape index: {}]   ;;  %s12566_s5 = inlined_call_operand.vmem [shape: f32[256,1], index: 5, kind: input, shape index: {}]   ;;  %s12567_s6 = inlined_call_operand.<no memory space> [shape: f32[1,1], index: 6, kind: input, shape index: {}]   ;;  %s12568_s7 = inlined_call_operand.vmem [shape: f32[1,3072], index: 7, kind: output, shape index: {}]  }
   0x1   :  { %v12_v0 = vstv %s12567_s6 }
   0x2   :  { %13 = vst [vmem:[#allocation2] sm:$0x1] %v12_v0 }
   0x3 LB: > { %s6239_s27 = sadd.s32 4294967295, %s6445_s26   ;;  %p6243_p0 = scmp.ge.s32.totalorder %s6445_s26, 1  ;;  %s6445_s26 = sphi %s6493_s26, %s19_s26  }
   0x4   : > { %p240_p1 = scmp.lt.s32.totalorder %s6445_s26, 3 }
   0x6   : > { %p241_p2 = pnand %p6243_p0, %p240_p1 }
   0x8   : > { %244 = sbr.rel (%p241_p2) target bundleno = 1140 (0x474), region = 48 }
   0xf   : > { %v6504_v1 = vld [vmem:[%s12562_s1 + $0x10] sm:$0xff]  ;;  %v6509_v2 = vld [vmem:[%s12562_s1] sm:$0xff]  ;;  %v12572_v3 = vmov 1   ;;  %v318_v5 = vld [vmem:[%s12562_s1 + $0x8] sm:$0xff]  ;;  %v12570_v8 = vmov 0   ;;  %s271_s18 = smul.u32 12, %s6239_s27  ;;  %v12569_v46 = vlaneseq }
  0x10   : > { %6292 = vset.pattern.permute.xlu0 %v12572_v3  ;;  %6290 = vset.pattern.permute.xlu1 %v12572_v3  ;;  %v321_v4 = vld [vmem:[%s12562_s1 + $0x20] sm:$0xff]  ;;  %v323_v6 = vld [vmem:[%s12562_s1 + $0x30] sm:$0xff]  ;;  %v320_v7 = vld [vmem:[%s12562_s1 + $0x18] sm:$0xff] }
  0x11   : > { %1013 = vperm.xlu0 %6292, %v6504_v1   ;;  %1005 = vperm.xlu1 %6290, %v6509_v2   ;;  %v325_v9 = vld [vmem:[%s12562_s1 + $0x40] sm:$0xff]  ;;  %v327_v10 = vld [vmem:[%s12562_s1 + $0x50] sm:$0xff]  ;;  %v322_v14 = vld [vmem:[%s12562_s1 + $0x28] sm:$0xff]  ;;  %p272_p3 = scmp.lt.s32.totalorder %s271_s18, 23  ;;  %v6690_v49 = vshrl.u32 %v12569_v46, 7 }
  0x12   : > { %v285_v11 = vld [vmem:[%s12563_s2] sm:$0xff]  ;;  %v6547_v13 = vld [vmem:[%s12562_s1 + $0x70] sm:$0xff]  ;;  %v324_v21 = vld [vmem:[%s12562_s1 + $0x38] sm:$0xff] }
  0x13   : > { %v6541_v12 = vld [vmem:[%s12562_s1 + $0x60] sm:$0xff]  ;;  %v6563_v16 = vld [vmem:[%s12562_s1 + $0x90] sm:$0xff]  ;;  %v326_v26 = vld [vmem:[%s12562_s1 + $0x48] sm:$0xff]  ;;  %s14130_s18 = smov (!%p272_p3, %s271_s18), 23  ;;  %13057 = vst [vmem:[#allocation4_spill] sm:$0xff] %v6690_v49  ;;  %v6706_v53 = vsub.s32 3, %v6690_v49 }
  0x14   : > { %v6557_v15 = vld [vmem:[%s12562_s1 + $0x80] sm:$0xff]  ;;  %v287_v18 = vld [vmem:[%s12563_s2 + $0x10] sm:$0xff]  ;;  %v286_v27 = vld [vmem:[%s12563_s2 + $0x8] sm:$0xff]  ;;  %s6244_s28 = sshll.u32 %s14130_s18, 1  ;;  %v6709_v54 = vsub.s32 7, %v6690_v49  ;;  %v6713_v56 = vsub.s32 2, %v6690_v49  ;;  %s12108_s12 = scalar_lea.vmem %s12568_s7, %s14130_s18 }
  0x15   : > { %1021 = vperm.xlu0 %6292, %v321_v4   ;;  %1009 = vperm.xlu1 %6290, %v318_v5   ;;  %v6570_v17 = vld [vmem:[%s12562_s1 + $0xa0] sm:$0xff]  ;;  %v6580_v19 = vld [vmem:[%s12562_s1 + $0xb0] sm:$0xff]  ;;  %v288_v29 = vld [vmem:[%s12563_s2 + $0x18] sm:$0xff]  ;;  %s6699_s11 = scalar_lea.vmem %s12561_s0, %s6244_s28  ;;  %13060 = vst [vmem:[#allocation7_spill] sm:$0xff] %v6706_v53  ;;  %v6716_v57 = vsub.s32 1, %v6690_v49  ;;  %v6719_v58 = vsub.s32 6, %v6690_v49 }
  0x16   : > { %v6586_v20 = vld [vmem:[%s12562_s1 + $0xc0] sm:$0xff]  ;;  %v343_v22 = vld [vmem:[%s12562_s1 + $0xd0] sm:$0xff]  ;;  %v290_v30 = vld [vmem:[%s12563_s2 + $0x28] sm:$0xff]  ;;  %13061 = vst [vmem:[#allocation8_spill] sm:$0xff] %v6709_v54  ;;  %v6722_v59 = vsub.s32 5, %v6690_v49  ;;  %v6728_v61 = vsub.s32 0, %v6690_v49 }
  0x17   : > { %13056 = vst [vmem:[#allocation3_spill] sm:$0xff] %v6586_v20  ;;  %v345_v23 = vld [vmem:[%s12562_s1 + $0xe0] sm:$0xff]  ;;  %v347_v25 = vld [vmem:[%s12562_s1 + $0xf0] sm:$0xff]  ;;  %v328_v31 = vld [vmem:[%s12562_s1 + $0x58] sm:$0xff]  ;;  %v6731_v62 = vsub.s32 4, %v6690_v49 }
  0x18   : > { %v289_v24 = vld [vmem:[%s12563_s2 + $0x20] sm:$0xff]  ;;  %v291_v28 = vld [vmem:[%s12563_s2 + $0x30] sm:$0xff]  ;;  %v292_v32 = vld [vmem:[%s12563_s2 + $0x38] sm:$0xff]  ;;  %13062 = vst [vmem:[#allocation9_spill] sm:$0xff] %v6713_v56 }
  0x19   : > { %1029 = vperm.xlu0 %6292, %v323_v6   ;;  %6291 = vset.pattern.permute.xlu1 %v12570_v8  ;;  %v294_v33 = vld [vmem:[%s12563_s2 + $0x48] sm:$0xff]  ;;  %v293_v34 = vld [vmem:[%s12563_s2 + $0x40] sm:$0xff]  ;;  %v296_v35 = vld [vmem:[%s12563_s2 + $0x58] sm:$0xff]  ;;  %13063 = vst [vmem:[#allocation10_spill] sm:$0xff] %v6716_v57 }
  0x1a   : > { %366 = vperm.xlu1 %6291, %v320_v7   ;;  %v298_v36 = vld [vmem:[%s12563_s2 + $0x68] sm:$0xff]  ;;  %v300_v38 = vld [vmem:[%s12563_s2 + $0x78] sm:$0xff]  ;;  %v295_v41 = vld [vmem:[%s12563_s2 + $0x50] sm:$0xff]  ;;  %13064 = vst [vmem:[#allocation11_spill] sm:$0xff] %v6719_v58 }
  0x1b   : > { %v330_v37 = vld [vmem:[%s12562_s1 + $0x68] sm:$0xff]  ;;  %v304_v40 = vld [vmem:[%s12563_s2 + $0x98] sm:$0xff]  ;;  %v297_v48 = vld [vmem:[%s12563_s2 + $0x60] sm:$0xff]  ;;  %13065 = vst [vmem:[#allocation12_spill] sm:$0xff] %v6722_v59 }
  0x1c   : > { %v302_v39 = vld [vmem:[%s12563_s2 + $0x88] sm:$0xff]  ;;  %v308_v43 = vld [vmem:[%s12563_s2 + $0xb8] sm:$0xff]  ;;  %v282_v55 = vld [vmem:[%s6699_s11] sm:$0xff]  ;;  %13066 = vst [vmem:[#allocation13_spill] sm:$0xff] %v6728_v61 }
  0x1d   : > { %1037 = vperm.xlu0 %6292, %v325_v9   ;;  %v306_v42 = vld [vmem:[%s12563_s2 + $0xa8] sm:$0xff]  ;;  %v332_v44 = vld [vmem:[%s12562_s1 + $0x78] sm:$0xff]  ;;  %v3160_v60 = vld [vmem:[%s12565_s4] sm:$0xff]  ;;  %13067 = vst [vmem:[#allocation14_spill] sm:$0xff] %v6731_v62 }
  0x1e   : > { %6293 = vset.pattern.permute.xlu1 %v12572_v3  ;;  %v310_v45 = vld [vmem:[%s12563_s2 + $0xc8] sm:$0xff]  ;;  %v312_v47 = vld [vmem:[%s12563_s2 + $0xd8] sm:$0xff] }
  0x1f   : > { %1017 = vperm.xlu1 %6293, %v320_v7   ;;  %v314_v50 = vld [vmem:[%s12563_s2 + $0xe8] sm:$0xff]  ;;  %v527_v7 = vrot.slane %v282_v55, %v6719_v58 }
  0x21   : > { %1045 = vperm.xlu0 %6292, %v327_v10  }
  0x23   : > { %6294 = vset.pattern.permute.xlu1 %v12570_v8 }
  0x24   : > { %2010 = vperm.xlu1 %6294, %v285_v11   ;;  %v3162_v11 = vld [vmem:[%s12565_s4 + $0x10] sm:$0xff] }
  0x25   : > { %1053 = vperm.xlu0 %6292, %v6541_v12  }
  0x28   : > { %371 = vperm.xlu1 %6294, %v321_v4   ;;  %v1139_v4 = vrot.slane %v282_v55, %v6706_v53 }
  0x29   : > { %1061 = vperm.xlu0 %6292, %v6547_v13  }
  0x2c   : > { %376 = vperm.xlu1 %6294, %v322_v14  }
  0x2d   : > { %1069 = vperm.xlu0 %6292, %v6557_v15  }
  0x30   : > { %6295 = vset.pattern.permute.xlu1 %v12572_v3 }
  0x31   : > { %1077 = vperm.xlu0 %6292, %v6563_v16   ;;  %1025 = vperm.xlu1 %6295, %v322_v14  }
  0x35   : > { %1085 = vperm.xlu0 %6292, %v6570_v17   ;;  %6296 = vset.pattern.permute.xlu1 %v12570_v8 }
  0x36   : > { %2020 = vperm.xlu1 %6296, %v287_v18  }
  0x39   : > { %1093 = vperm.xlu0 %6292, %v6580_v19  }
  0x3a   : > { %381 = vperm.xlu1 %6296, %v323_v6   ;;  %v519_v6 = vrot.slane %v282_v55, %v6713_v56 }
  0x3d   : > { %1101 = vperm.xlu0 %6292, %v6586_v20  }
  0x3e   : > { %386 = vperm.xlu1 %6296, %v324_v21  }
  0x41   : > { %1109 = vperm.xlu0 %6292, %v343_v22  }
  0x42   : > { %6297 = vset.pattern.permute.xlu1 %v12572_v3 }
  0x43   : > { %1033 = vperm.xlu1 %6297, %v324_v21  }
  0x45   : > { %1117 = vperm.xlu0 %6292, %v345_v23  }
  0x47   : > { %6298 = vset.pattern.permute.xlu1 %v12570_v8 }
  0x48   : > { %2030 = vperm.xlu1 %6298, %v289_v24  }
  0x49   : > { %1125 = vperm.xlu0 %6292, %v347_v25  }
  0x4c   : > { %391 = vperm.xlu1 %6298, %v325_v9   ;;  %v1135_v9 = vrot.slane %v282_v55, %v6716_v57 }
  0x4d   : > { %6321 = vset.pattern.permute.xlu0 %v12570_v8 }
  0x4e   : > { %351 = vperm.xlu0 %6321, %v6509_v2   ;;  %v334_v2 = vld [vmem:[%s12562_s1 + $0x88] sm:$0xff] }
  0x50   : > { %396 = vperm.xlu1 %6298, %v326_v26  }
  0x52   : > { %356 = vperm.xlu0 %6321, %v318_v5   ;;  %v1147_v5 = vrot.slane %v282_v55, %v6709_v54 }
  0x54   : > { %6299 = vset.pattern.permute.xlu1 %v12572_v3 }
  0x55   : > { %1041 = vperm.xlu1 %6299, %v326_v26   ;;  %v6764_v26 = vrot.slane %v1139_v4, %v6716_v57  ;;  %v3166_v4 = vld [vmem:[%s12565_s4 + $0x30] sm:$0xff] }
  0x56   : > { %361 = vperm.xlu0 %6321, %v6504_v1   ;;  %v283_v1 = vld [vmem:[%s6699_s11 + $0x8] sm:$0xff] }
  0x57   : > { %v1155_v14 = vrot.slane %v283_v1, %v6706_v53  ;;  %v535_v21 = vrot.slane %v283_v1, %v6713_v56  ;;  %v543_v22 = vrot.slane %v283_v1, %v6719_v58  ;;  %v1151_v23 = vrot.slane %v283_v1, %v6716_v57 }
  0x58   : > { %v1159_v24 = vrot.slane %v283_v1, %v6722_v59 }
  0x59   : > { %6300 = vset.pattern.permute.xlu1 %v12570_v8 }
  0x5a   : > { %2015 = vperm.xlu0 %6321, %v286_v27   ;;  %2040 = vperm.xlu1 %6300, %v291_v28   ;;  %v6767_v27 = vrot.slane %v1147_v5, %v6716_v57  ;;  %v531_v28 = vrot.slane %v283_v1, %v6728_v61  ;;  %v299_v5 = vld [vmem:[%s12563_s2 + $0x70] sm:$0xff] }
  0x5e   : > { %2025 = vperm.xlu0 %6321, %v288_v29   ;;  %401 = vperm.xlu1 %6300, %v327_v10   ;;  %v1143_v10 = vrot.slane %v282_v55, %v6722_v59  ;;  %v539_v29 = vrot.slane %v283_v1, %v6731_v62 }
  0x62   : > { %2035 = vperm.xlu0 %6321, %v290_v30   ;;  %406 = vperm.xlu1 %6300, %v328_v31   ;;  %v6772_v30 = vrot.slane %v519_v6, %v6728_v61 }
  0x66   : > { %2045 = vperm.xlu0 %6321, %v292_v32   ;;  %6301 = vset.pattern.permute.xlu1 %v12572_v3  ;;  %v6778_v32 = vrot.slane %v1135_v9, %v6716_v57 }
  0x67   : > { %1049 = vperm.xlu1 %6301, %v328_v31   ;;  %v6775_v31 = vrot.slane %v527_v7, %v6728_v61 }
  0x68   : > { %13072 = vst [vmem:[#allocation19_spill] sm:$0xff] %v6778_v32 }
  0x6a   : > { %2055 = vperm.xlu0 %6321, %v294_v33   ;;  %v6781_v33 = vrot.slane %v1143_v10, %v6716_v57 }
  0x6b   : > { %6302 = vset.pattern.permute.xlu1 %v12570_v8 }
  0x6c   : > { %2050 = vperm.xlu1 %6302, %v293_v34   ;;  %13073 = vst [vmem:[#allocation20_spill] sm:$0xff] %v6781_v33  ;;  %v3164_v34 = vld [vmem:[%s12565_s4 + $0x20] sm:$0xff] }
  0x6e   : > { %2065 = vperm.xlu0 %6321, %v296_v35  }
  0x70   : > { %411 = vperm.xlu1 %6302, %v6541_v12   ;;  %v515_v12 = vrot.slane %v282_v55, %v6728_v61 }
  0x72   : > { %2075 = vperm.xlu0 %6321, %v298_v36   ;;  %v6787_v35 = vrot.slane %v515_v12, %v6728_v61 }
  0x74   : > { %416 = vperm.xlu1 %6302, %v330_v37   ;;  %13074 = vst [vmem:[#allocation21_spill] sm:$0xff] %v6787_v35 }
  0x76   : > { %2085 = vperm.xlu0 %6321, %v300_v38  }
  0x78   : > { %6303 = vset.pattern.permute.xlu1 %v12572_v3 }
  0x79   : > { %1057 = vperm.xlu1 %6303, %v330_v37   ;;  %v6793_v37 = vrot.slane %v1155_v14, %v6716_v57 }
  0x7a   : > { %2095 = vperm.xlu0 %6321, %v302_v39  }
  0x7b   : > { %13076 = vst [vmem:[#allocation23_spill] sm:$0xff] %v6793_v37 }
  0x7d   : > { %6304 = vset.pattern.permute.xlu1 %v12570_v8 }
  0x7e   : > { %2105 = vperm.xlu0 %6321, %v304_v40   ;;  %2060 = vperm.xlu1 %6304, %v295_v41   ;;  %v6802_v40 = vrot.slane %v535_v21, %v6728_v61  ;;  %v6805_v41 = vrot.slane %v543_v22, %v6728_v61 }
  0x80   : > { %13079 = vst [vmem:[#allocation26_spill] sm:$0xff] %v6802_v40  ;;  %13080 = vst [vmem:[#allocation27_spill] sm:$0xff] %v6805_v41 }
  0x82   : > { %2115 = vperm.xlu0 %6321, %v306_v42   ;;  %421 = vperm.xlu1 %6304, %v6547_v13   ;;  %v523_v13 = vrot.slane %v282_v55, %v6731_v62  ;;  %v6808_v42 = vrot.slane %v1151_v23, %v6716_v57 }
  0x84   : > { %v6790_v36 = vrot.slane %v523_v13, %v6728_v61  ;;  %13081 = vst [vmem:[#allocation28_spill] sm:$0xff] %v6808_v42 }
  0x86   : > { %2125 = vperm.xlu0 %6321, %v308_v43   ;;  %426 = vperm.xlu1 %6304, %v332_v44   ;;  %13075 = vst [vmem:[#allocation22_spill] sm:$0xff] %v6790_v36  ;;  %v6811_v43 = vrot.slane %v1159_v24, %v6716_v57 }
  0x88   : > { %13082 = vst [vmem:[#allocation29_spill] sm:$0xff] %v6811_v43 }
  0x8a   : > { %2135 = vperm.xlu0 %6321, %v310_v45   ;;  %6305 = vset.pattern.permute.xlu1 %v12572_v3 }
  0x8b   : > { %1065 = vperm.xlu1 %6305, %v332_v44  }
  0x8e   : > { %2145 = vperm.xlu0 %6321, %v312_v47   ;;  %v6822_v47 = vrot.slane %v531_v28, %v6728_v61 }
  0x8f   : > { %6306 = vset.pattern.permute.xlu1 %v12570_v8 }
  0x90   : > { %v6701_v51 = vpop.permute.xlu1 %1005  ;;  %2070 = vperm.xlu1 %6306, %v297_v48   ;;  %v6703_v52 = vpop.permute.xlu0 %1013  ;;  %13084 = vst [vmem:[#allocation31_spill] sm:$0xff] %v6822_v47  ;;  %v6825_v48 = vrot.slane %v539_v29, %v6728_v61 }
  0x91   : > { %13058 = vst [vmem:[#allocation5_spill] sm:$0xff] %v6701_v51  ;;  %13059 = vst [vmem:[#allocation6_spill] sm:$0xff] %v6703_v52  ;;  %v6815_v44 = vmul.f32 %v6764_v26, %v6701_v51  ;;  %v6819_v45 = vmul.f32 %v6767_v27, %v6701_v51  ;;  %v6831_v55 = vmul.f32 %v6778_v32, %v6701_v51 }
  0x92   : > { %2155 = vperm.xlu0 %6321, %v314_v50   ;;  %13085 = vst [vmem:[#allocation32_spill] sm:$0xff] %v6825_v48  ;;  %v6853_v6 = vmul.f32 %v6778_v32, %v6703_v52  ;;  %v6857_v7 = vmul.f32 %v6781_v33, %v6703_v52  ;;  %v6861_v9 = vmul.f32 %v6793_v37, %v6701_v51 }
  0x93   : > { %13083 = vst [vmem:[#allocation30_spill] sm:$0xff] %v6819_v45  ;;  %13087 = vst [vmem:[#allocation34_spill] sm:$0xff] %v6831_v55  ;;  %v6879_v14 = vmul.f32 %v6808_v42, %v6701_v51  ;;  %v6933_v49 = vmul.f32 %v6793_v37, %v6703_v52  ;;  %v6998_v20 = vmul.f32 %v6808_v42, %v6703_v52 }
  0x94   : > { %v6733_v63 = vpop.permute.xlu1 %1009  ;;  %431 = vperm.xlu1 %6306, %v6557_v15   ;;  %v6736_v0 = vpop.permute.xlu0 %1021  ;;  %v1163_v15 = vrot.slane %v283_v1, %v6709_v54  ;;  %v6839_v1 = vmul.f32 %v6764_v26, %v6703_v52  ;;  %13091 = vst [vmem:[#allocation38_spill] sm:$0xff] %v6853_v6  ;;  %13092 = vst [vmem:[#allocation39_spill] sm:$0xff] %v6857_v7  ;;  %v7004_v6 = vmul.f32 %v6811_v43, %v6703_v52 }
  0x95   : > { %13068 = vst [vmem:[#allocation15_spill] sm:$0xff] %v6733_v63  ;;  %13069 = vst [vmem:[#allocation16_spill] sm:$0xff] %v6736_v0  ;;  %v6871_v12 = vmul.f32 %v6764_v26, %v6733_v63  ;;  %v6875_v13 = vmul.f32 %v6767_v27, %v6733_v63  ;;  %v6888_v21 = vmul.f32 %v6778_v32, %v6733_v63 }
  0x96   : > { %3194 = vperm.xlu0 %6321, %v3160_v60   ;;  %v6796_v38 = vrot.slane %v1163_v15, %v6716_v57  ;;  %v6835_v60 = vmul.f32 %v6781_v33, %v6701_v51  ;;  %13089 = vst [vmem:[#allocation36_spill] sm:$0xff] %v6839_v1  ;;  %13093 = vst [vmem:[#allocation40_spill] sm:$0xff] %v6861_v9  ;;  %v6883_v15 = vmul.f32 %v6811_v43, %v6701_v51 }
  0x97   : > { %13096 = vst [vmem:[#allocation43_spill] sm:$0xff] %v6871_v12  ;;  %13097 = vst [vmem:[#allocation44_spill] sm:$0xff] %v6875_v13  ;;  %v6892_v22 = vmul.f32 %v6781_v33, %v6733_v63  ;;  %v6896_v23 = vmul.f32 %v6764_v26, %v6736_v0  ;;  %v6900_v24 = vmul.f32 %v6767_v27, %v6736_v0 }
  0x98   : > { %436 = vperm.xlu1 %6306, %v334_v2   ;;  %v6755_v18 = vpop.permute.xlu0 %1029  ;;  %13077 = vst [vmem:[#allocation24_spill] sm:$0xff] %v6796_v38  ;;  %13088 = vst [vmem:[#allocation35_spill] sm:$0xff] %v6835_v60  ;;  %v6865_v10 = vmul.f32 %v6796_v38, %v6701_v51  ;;  %v6904_v28 = vmul.f32 %v6778_v32, %v6736_v0  ;;  %v6908_v29 = vmul.f32 %v6781_v33, %v6736_v0 }
  0x99   : > { %13070 = vst [vmem:[#allocation17_spill] sm:$0xff] %v6755_v18  ;;  %v6761_v25 = vpop.permute.xlu1 %366  ;;  %13098 = vst [vmem:[#allocation45_spill] sm:$0xff] %v6879_v14  ;;  %v6939_v62 = vmul.f32 %v6764_v26, %v6755_v18  ;;  %v6943_v51 = vmul.f32 %v6793_v37, %v6736_v0  ;;  %v6947_v54 = vmul.f32 %v6796_v38, %v6736_v0 }
  0x9a   : > { %13071 = vst [vmem:[#allocation18_spill] sm:$0xff] %v6761_v25  ;;  %3204 = vperm.xlu0 %6321, %v3162_v11   ;;  %13094 = vst [vmem:[#allocation41_spill] sm:$0xff] %v6865_v10  ;;  %v657_v57 = vmul.f32 %v6772_v30, %v6761_v25  ;;  %v6957_v58 = vmul.f32 %v6767_v27, %v6755_v18  ;;  %v6961_v53 = vmul.f32 %v6778_v32, %v6755_v18 }
  0x9b   : > { %13099 = vst [vmem:[#allocation46_spill] sm:$0xff] %v6883_v15  ;;  %13100 = vst [vmem:[#allocation47_spill] sm:$0xff] %v6888_v21  ;;  %v6965_v56 = vmul.f32 %v6781_v33, %v6755_v18  ;;  %v659_v61 = vmul.f32 %v6775_v31, %v6761_v25  ;;  %v663_v14 = vmul.f32 %v6805_v41, %v6761_v25 }
  0x9c   : > { %6307 = vset.pattern.permute.xlu1 %v12572_v3  ;;  %v6799_v39 = vpop.permute.xlu0 %1037  ;;  %13101 = vst [vmem:[#allocation48_spill] sm:$0xff] %v6892_v22  ;;  %v6929_v3 = vmul.f32 %v6811_v43, %v6733_v63  ;;  %13107 = vst [vmem:[#allocation54_spill] sm:$0xff] %v6933_v49  ;;  %v656_v49 = vmul.f32 %v6787_v35, %v6761_v25  ;;  %v660_v10 = vmul.f32 %v6822_v47, %v6761_v25 }
  0x9d   : > { %13078 = vst [vmem:[#allocation25_spill] sm:$0xff] %v6799_v39  ;;  %1073 = vperm.xlu1 %6307, %v334_v2   ;;  %v6843_v2 = vmul.f32 %v6767_v27, %v6703_v52  ;;  %13112 = vst [vmem:[#allocation59_spill] sm:$0xff] %v6998_v20  ;;  %v662_v7 = vmul.f32 %v6825_v48, %v6761_v25  ;;  %v7014_v22 = vmul.f32 %v6811_v43, %v6736_v0 }
  0x9e   : > { %v6827_v50 = vpop.permute.xlu1 %1017  ;;  %3214 = vperm.xlu0 %6321, %v3164_v34   ;;  %v6912_v34 = vmul.f32 %v6793_v37, %v6733_v63  ;;  %13106 = vst [vmem:[#allocation53_spill] sm:$0xff] %v6929_v3  ;;  %v658_v3 = vmul.f32 %v6790_v36, %v6761_v25  ;;  %13113 = vst [vmem:[#allocation60_spill] sm:$0xff] %v7004_v6  ;;  %v7026_v6 = vmul.f32 %v6778_v32, %v6799_v39 }
  0x9f   : > { %13086 = vst [vmem:[#allocation33_spill] sm:$0xff] %v6827_v50  ;;  %13090 = vst [vmem:[#allocation37_spill] sm:$0xff] %v6843_v2  ;;  %v1277_v9 = vmul.f32 %v6764_v26, %v6827_v50  ;;  %v1276_v2 = vmul.f32 %v6778_v32, %v6827_v50  ;;  %v1278_v1 = vmul.f32 %v6781_v33, %v6827_v50 }
  0xa0   : > { %v6867_v11 = vpop.permute.xlu0 %1045  ;;  %13102 = vst [vmem:[#allocation49_spill] sm:$0xff] %v6912_v34  ;;  %13116 = vst [vmem:[#allocation63_spill] sm:$0xff] %v7026_v6  ;;  %v1281_v21 = vmul.f32 %v6793_v37, %v6827_v50  ;;  %v7041_v13 = vmul.f32 %v6793_v37, %v6755_v18  ;;  %v7045_v12 = vmul.f32 %v6796_v38, %v6755_v18 }
  0xa1   : > { %13095 = vst [vmem:[#allocation42_spill] sm:$0xff] %v6867_v11  ;;  %6308 = vset.pattern.permute.xlu1 %v12570_v8  ;;  %v3168_v8 = vld [vmem:[%s12565_s4 + $0x40] sm:$0xff]  ;;  %v7049_v6 = vadd.f32 %v1277_v9, %v657_v57  ;;  %v7061_v55 = vadd.f32 %v1278_v1, %v658_v3  ;;  %v7065_v45 = vmul.f32 %v6764_v26, %v6867_v11  ;;  %v13125_v57 = vmov 1   ;;  %v3174_v3 = vld [vmem:[%s12565_s4 + $0x70] sm:$0xff] }
  0xa2   : > { %3224 = vperm.xlu0 %6321, %v3166_v4   ;;  %2080 = vperm.xlu1 %6308, %v299_v5   ;;  %v6921_v4 = vmul.f32 %v6796_v38, %v6733_v63  ;;  %v6925_v5 = vmul.f32 %v6808_v42, %v6733_v63  ;;  %v6951_v63 = vmul.f32 %v6808_v42, %v6736_v0  ;;  %v3172_v0 = vld [vmem:[%s12565_s4 + $0x60] sm:$0xff] }
  0xa3   : > { %v6914_v46 = vpop.permute.xlu1 %2010  ;;  %13120 = vst [vmem:[#allocation67_spill] sm:$0xff] %v7049_v6  ;;  %13123 = vst [vmem:[#allocation70_spill] sm:$0xff] %v7061_v55  ;;  %v7070_v9 = vmul.f32 %v6767_v27, %v6867_v11  ;;  %v3180_v6 = vld [vmem:[%s12565_s4 + $0xa0] sm:$0xff] }
  0xa4   : > { %13103 = vst [vmem:[#allocation50_spill] sm:$0xff] %v6914_v46  ;;  %13104 = vst [vmem:[#allocation51_spill] sm:$0xff] %v6921_v4  ;;  %v6935_v59 = vpop.permute.xlu0 %1053  ;;  %v6988_v4 = vmul.f32 %v6796_v38, %v6703_v52  ;;  %v7022_v52 = vmul.f32 %v6767_v27, %v6799_v39 }
  0xa5   : > { %13105 = vst [vmem:[#allocation52_spill] sm:$0xff] %v6925_v5  ;;  %13108 = vst [vmem:[#allocation55_spill] sm:$0xff] %v6935_v59  ;;  %v3170_v5 = vld [vmem:[%s12565_s4 + $0x50] sm:$0xff] }
  0xa6   : > { %3234 = vperm.xlu0 %6321, %v3168_v8   ;;  %441 = vperm.xlu1 %6308, %v6563_v16   ;;  %v336_v8 = vld [vmem:[%s12562_s1 + $0x98] sm:$0xff]  ;;  %v661_v16 = vmul.f32 %v6802_v40, %v6761_v25  ;;  %13110 = vst [vmem:[#allocation57_spill] sm:$0xff] %v6988_v4  ;;  %v1279_v4 = vmul.f32 %v6767_v27, %v6827_v50  ;;  %13115 = vst [vmem:[#allocation62_spill] sm:$0xff] %v7022_v52 }
  0xa7   : > { %v6974_v15 = vpop.permute.xlu1 %371  ;;  %v7018_v25 = vmul.f32 %v6764_v26, %v6799_v39  ;;  %v1283_v52 = vmul.f32 %v6796_v38, %v6827_v50  ;;  %13124 = vst [vmem:[#allocation71_spill] sm:$0xff] %v7065_v45  ;;  %13126 = vst [vmem:[#allocation72_spill] sm:$0xff] %v7070_v9  ;;  %v301_v45 = vld [vmem:[%s12563_s2 + $0x80] sm:$0xff] }
  0xa8   : > { %13109 = vst [vmem:[#allocation56_spill] sm:$0xff] %v6974_v15  ;;  %v6992_v34 = vpop.permute.xlu0 %1061  ;;  %v7057_v60 = vadd.f32 %v1279_v4, %v659_v61  ;;  %v669_v61 = vmul.f32 %v6772_v30, %v6974_v15  ;;  %v668_v1 = vmul.f32 %v6787_v35, %v6974_v15 }
  0xa9   : > { %13111 = vst [vmem:[#allocation58_spill] sm:$0xff] %v6992_v34  ;;  %13114 = vst [vmem:[#allocation61_spill] sm:$0xff] %v7018_v25  ;;  %v7059_v25 = vadd.f32 %v1276_v2, %v656_v49  ;;  %v7078_v49 = vmul.f32 %v6781_v33, %v6867_v11  ;;  %v7089_v2 = vadd.f32 %v1281_v21, %v661_v16 }
  0xaa   : > { %3244 = vperm.xlu0 %6321, %v3170_v5   ;;  %446 = vperm.xlu1 %6308, %v336_v8   ;;  %v7035_v5 = vmul.f32 %v6781_v33, %v6799_v39  ;;  %v1280_v39 = vmul.f32 %v6808_v42, %v6827_v50  ;;  %13121 = vst [vmem:[#allocation68_spill] sm:$0xff] %v7057_v60 }
  0xab   : > { %v7028_v20 = vpop.permute.xlu1 %376  ;;  %13122 = vst [vmem:[#allocation69_spill] sm:$0xff] %v7059_v25  ;;  %13128 = vst [vmem:[#allocation74_spill] sm:$0xff] %v7078_v49  ;;  %v7097_v49 = vadd.f32 %v1283_v52, %v663_v14  ;;  %v7108_v21 = vmul.f32 %v6764_v26, %v6935_v59  ;;  %v7112_v16 = vmul.f32 %v6767_v27, %v6935_v59 }
  0xac   : > { %13117 = vst [vmem:[#allocation64_spill] sm:$0xff] %v7028_v20  ;;  %13118 = vst [vmem:[#allocation65_spill] sm:$0xff] %v7035_v5  ;;  %v7047_v46 = vpop.permute.xlu0 %1069  ;;  %v1282_v5 = vmul.f32 %v6811_v43, %v6827_v50  ;;  %v7074_v50 = vmul.f32 %v6778_v32, %v6867_v11  ;;  %v7116_v52 = vmul.f32 %v6778_v32, %v6935_v59 }
  0xad   : > { %13119 = vst [vmem:[#allocation66_spill] sm:$0xff] %v7047_v46  ;;  %13129 = vst [vmem:[#allocation75_spill] sm:$0xff] %v7089_v2  ;;  %v7132_v14 = vmul.f32 %v6778_v32, %v6992_v34  ;;  %v673_v2 = vmul.f32 %v6802_v40, %v6974_v15  ;;  %v7236_v60 = vmul.f32 %v6808_v42, %v6755_v18 }
  0xae   : > { %3254 = vperm.xlu0 %6321, %v3172_v0   ;;  %6309 = vset.pattern.permute.xlu1 %v13125_v57  ;;  %13127 = vst [vmem:[#allocation73_spill] sm:$0xff] %v7074_v50  ;;  %v671_v0 = vmul.f32 %v6775_v31, %v6974_v15  ;;  %13132 = vst [vmem:[#allocation78_spill] sm:$0xff] %v7097_v49  ;;  %v7099_v50 = vadd.f32 %v1280_v39, %v660_v10 }
  0xaf   : > { %1081 = vperm.xlu1 %6309, %v336_v8   ;;  %v670_v8 = vmul.f32 %v6790_v36, %v6974_v15  ;;  %v7101_v9 = vadd.f32 %v1282_v5, %v662_v7  ;;  %13135 = vst [vmem:[#allocation81_spill] sm:$0xff] %v7108_v21  ;;  %13136 = vst [vmem:[#allocation82_spill] sm:$0xff] %v7112_v16  ;;  %v7120_v39 = vmul.f32 %v6781_v33, %v6935_v59 }
  0xb0   : > { %v7091_v4 = vpop.permute.xlu1 %1025  ;;  %v7093_v11 = vpop.permute.xlu0 %1077  ;;  %13133 = vst [vmem:[#allocation79_spill] sm:$0xff] %v7099_v50  ;;  %13137 = vst [vmem:[#allocation83_spill] sm:$0xff] %v7116_v52  ;;  %v7124_v7 = vmul.f32 %v6764_v26, %v6992_v34  ;;  %v7128_v10 = vmul.f32 %v6767_v27, %v6992_v34  ;;  %v7136_v5 = vmul.f32 %v6781_v33, %v6992_v34 }
  0xb1   : > { %13130 = vst [vmem:[#allocation76_spill] sm:$0xff] %v7091_v4  ;;  %13131 = vst [vmem:[#allocation77_spill] sm:$0xff] %v7093_v11  ;;  %v7143_v59 = vadd.f32 %v6896_v23, %v669_v61  ;;  %v7146_v50 = vadd.f32 %v6900_v24, %v671_v0  ;;  %v7149_v49 = vadd.f32 %v6904_v28, %v668_v1 }
  0xb2   : > { %13134 = vst [vmem:[#allocation80_spill] sm:$0xff] %v7101_v9  ;;  %13138 = vst [vmem:[#allocation84_spill] sm:$0xff] %v7120_v39  ;;  %3264 = vperm.xlu0 %6321, %v3174_v3   ;;  %v13143_v9 = vmov 0   ;;  %v3176_v3 = vld [vmem:[%s12565_s4 + $0x80] sm:$0xff]  ;;  %v675_v23 = vmul.f32 %v6805_v41, %v6974_v15  ;;  %v672_v24 = vmul.f32 %v6822_v47, %v6974_v15  ;;  %v683_v61 = vmul.f32 %v6775_v31, %v7028_v20 }
  0xb3   : > { %13139 = vst [vmem:[#allocation85_spill] sm:$0xff] %v7124_v7  ;;  %13140 = vst [vmem:[#allocation86_spill] sm:$0xff] %v7128_v10  ;;  %6310 = vset.pattern.permute.xlu1 %v13143_v9  ;;  %v682_v0 = vmul.f32 %v6790_v36, %v7028_v20  ;;  %v7178_v1 = vmul.f32 %v6767_v27, %v7047_v46  ;;  %v7186_v10 = vmul.f32 %v6781_v33, %v7047_v46 }
  0xb4   : > { %13141 = vst [vmem:[#allocation87_spill] sm:$0xff] %v7132_v14  ;;  %13142 = vst [vmem:[#allocation88_spill] sm:$0xff] %v7136_v5  ;;  %2090 = vperm.xlu1 %6310, %v301_v45   ;;  %v7153_v34 = vpop.permute.xlu0 %1085  ;;  %v681_v5 = vmul.f32 %v6772_v30, %v7028_v20  ;;  %v7158_v14 = vadd.f32 %v6908_v29, %v670_v8  ;;  %v680_v45 = vmul.f32 %v6787_v35, %v7028_v20 }
  0xb5   : > { %13144 = vst [vmem:[#allocation89_spill] sm:$0xff] %v7153_v34  ;;  %v7164_v28 = vpop.permute.xlu1 %2020  ;;  %v7174_v29 = vmul.f32 %v6764_v26, %v7047_v46  ;;  %13147 = vst [vmem:[#allocation92_spill] sm:$0xff] %v7178_v1  ;;  %v7182_v8 = vmul.f32 %v6778_v32, %v7047_v46  ;;  %v685_v7 = vmul.f32 %v6802_v40, %v7028_v20 }
  0xb6   : > { %13145 = vst [vmem:[#allocation90_spill] sm:$0xff] %v7164_v28  ;;  %3274 = vperm.xlu0 %6321, %v3176_v3   ;;  %13149 = vst [vmem:[#allocation94_spill] sm:$0xff] %v7186_v10  ;;  %v1301_v3 = vmul.f32 %v6764_v26, %v7091_v4  ;;  %v1303_v1 = vmul.f32 %v6767_v27, %v7091_v4  ;;  %v7198_v39 = vadd.f32 %v6943_v51, %v673_v2 }
  0xb7   : > { %13146 = vst [vmem:[#allocation91_spill] sm:$0xff] %v7174_v29  ;;  %13148 = vst [vmem:[#allocation93_spill] sm:$0xff] %v7182_v8  ;;  %v3178_v29 = vld [vmem:[%s12565_s4 + $0x90] sm:$0xff]  ;;  %v687_v46 = vmul.f32 %v6805_v41, %v7028_v20  ;;  %v1300_v8 = vmul.f32 %v6778_v32, %v7091_v4  ;;  %v1302_v52 = vmul.f32 %v6781_v33, %v7091_v4 }
  0xb8   : > { %13150 = vst [vmem:[#allocation95_spill] sm:$0xff] %v7198_v39  ;;  %451 = vperm.xlu1 %6310, %v6570_v17   ;;  %v7203_v10 = vpop.permute.xlu0 %1093  ;;  %v7210_v16 = vadd.f32 %v6947_v54, %v675_v23  ;;  %v684_v51 = vmul.f32 %v6822_v47, %v7028_v20  ;;  %v338_v17 = vld [vmem:[%s12562_s1 + $0xa8] sm:$0xff]  ;;  %v1305_v21 = vmul.f32 %v6793_v37, %v7091_v4  ;;  %13155 = vst [vmem:[#allocation100_spill] sm:$0xff] %v7236_v60 }
  0xb9   : > { %13151 = vst [vmem:[#allocation96_spill] sm:$0xff] %v7203_v10  ;;  %v7214_v2 = vpop.permute.xlu1 %381  ;;  %v1307_v39 = vmul.f32 %v6796_v38, %v7091_v4  ;;  %v1304_v55 = vmul.f32 %v6808_v42, %v7091_v4  ;;  %v674_v54 = vmul.f32 %v6825_v48, %v6974_v15  ;;  %v7228_v23 = vadd.f32 %v6951_v63, %v672_v24 }
  0xba   : > { %13152 = vst [vmem:[#allocation97_spill] sm:$0xff] %v7210_v16  ;;  %13153 = vst [vmem:[#allocation98_spill] sm:$0xff] %v7214_v2  ;;  %3284 = vperm.xlu0 %6321, %v3178_v29   ;;  %v686_v16 = vmul.f32 %v6825_v48, %v7028_v20  ;;  %v1306_v25 = vmul.f32 %v6811_v43, %v7091_v4  ;;  %v7241_v28 = vadd.f32 %v1301_v3, %v681_v5 }
  0xbb   : > { %13154 = vst [vmem:[#allocation99_spill] sm:$0xff] %v7228_v23  ;;  %v7243_v29 = vadd.f32 %v1303_v1, %v683_v61  ;;  %v693_v63 = vmul.f32 %v6772_v30, %v7214_v2  ;;  %v695_v24 = vmul.f32 %v6775_v31, %v7214_v2  ;;  %v7251_v20 = vadd.f32 %v1300_v8, %v680_v45 }
  0xbc   : > { %456 = vperm.xlu1 %6310, %v338_v17   ;;  %v7249_v4 = vpop.permute.xlu0 %1101  ;;  %v7253_v15 = vadd.f32 %v1302_v52, %v682_v0  ;;  %v692_v60 = vmul.f32 %v6787_v35, %v7214_v2  ;;  %v694_v5 = vmul.f32 %v6790_v36, %v7214_v2  ;;  %v7261_v1 = vadd.f32 %v1305_v21, %v685_v7 }
  0xbd   : > { %13156 = vst [vmem:[#allocation101_spill] sm:$0xff] %v7249_v4  ;;  %v7259_v61 = vpop.permute.xlu1 %386  ;;  %v7263_v3 = vadd.f32 %v1307_v39, %v687_v46  ;;  %v7265_v42 = vadd.f32 %v1304_v55, %v684_v51  ;;  %v7268_v48 = vadd.f32 %v7014_v22, %v674_v54  ;;  %v7272_v52 = vmul.f32 %v6764_v26, %v7093_v11  ;;  %v3182_v55 = vld [vmem:[%s12565_s4 + $0xb0] sm:$0xff] }
  0xbe   : > { %13157 = vst [vmem:[#allocation102_spill] sm:$0xff] %v7259_v61  ;;  %13158 = vst [vmem:[#allocation103_spill] sm:$0xff] %v7261_v1  ;;  %3294 = vperm.xlu0 %6321, %v3180_v6   ;;  %v7276_v45 = vmul.f32 %v6767_v27, %v7093_v11  ;;  %v7278_v0 = vadd.f32 %v1306_v25, %v686_v16  ;;  %v7282_v46 = vmul.f32 %v6811_v43, %v6755_v18  ;;  %v13215_v1 = vld [vmem:[#allocation47_spill] sm:$0xff] }
  0xbf   : > { %13159 = vst [vmem:[#allocation104_spill] sm:$0xff] %v7263_v3  ;;  %13160 = vst [vmem:[#allocation105_spill] sm:$0xff] %v7265_v42  ;;  %v7288_v6 = vadd.f32 %v6939_v62, %v693_v63  ;;  %v7291_v22 = vadd.f32 %v6957_v58, %v695_v24  ;;  %v7295_v21 = vmul.f32 %v6778_v32, %v7093_v11 }
  0xc0   : > { %13161 = vst [vmem:[#allocation106_spill] sm:$0xff] %v7268_v48  ;;  %13162 = vst [vmem:[#allocation107_spill] sm:$0xff] %v7272_v52  ;;  %v7299_v25 = vmul.f32 %v6781_v33, %v7093_v11  ;;  %6311 = vset.pattern.permute.xlu1 %v13125_v57  ;;  %v7302_v16 = vpop.permute.xlu0 %1109  ;;  %v7305_v39 = vadd.f32 %v6961_v53, %v692_v60  ;;  %v7308_v62 = vadd.f32 %v6965_v56, %v694_v5  ;;  %v3184_v5 = vld [vmem:[%s12565_s4 + $0xc0] sm:$0xff]  ;;  %v13214_v52 = vld [vmem:[#allocation44_spill] sm:$0xff] }
  0xc1   : > { %13163 = vst [vmem:[#allocation108_spill] sm:$0xff] %v7276_v45  ;;  %13164 = vst [vmem:[#allocation109_spill] sm:$0xff] %v7278_v0  ;;  %v7312_v58 = vmul.f32 %v6764_v26, %v7153_v34  ;;  %v7316_v7 = vmul.f32 %v6767_v27, %v7153_v34  ;;  %1089 = vperm.xlu1 %6311, %v338_v17   ;;  %v705_v8 = vmul.f32 %v6772_v30, %v7259_v61  ;;  %v13209_v45 = vld [vmem:[#allocation63_spill] sm:$0xff] }
  0xc2   : > { %13165 = vst [vmem:[#allocation110_spill] sm:$0xff] %v7282_v46  ;;  %13166 = vst [vmem:[#allocation111_spill] sm:$0xff] %v7295_v21  ;;  %v707_v51 = vmul.f32 %v6775_v31, %v7259_v61  ;;  %v7324_v53 = vmul.f32 %v6778_v32, %v7153_v34  ;;  %v7328_v56 = vmul.f32 %v6781_v33, %v7153_v34  ;;  %3304 = vperm.xlu0 %6321, %v3182_v55   ;;  %v7330_v60 = vpop.permute.xlu1 %1033  ;;  %v303_v55 = vld [vmem:[%s12563_s2 + $0x90] sm:$0xff] }
  0xc3   : > { %13167 = vst [vmem:[#allocation112_spill] sm:$0xff] %v7299_v25  ;;  %13168 = vst [vmem:[#allocation113_spill] sm:$0xff] %v7302_v16  ;;  %v704_v17 = vmul.f32 %v6787_v35, %v7259_v61  ;;  %v706_v54 = vmul.f32 %v6790_v36, %v7259_v61  ;;  %v7338_v63 = vmul.f32 %v6764_v26, %v7203_v10 }
  0xc4   : > { %13169 = vst [vmem:[#allocation114_spill] sm:$0xff] %v7312_v58  ;;  %13170 = vst [vmem:[#allocation115_spill] sm:$0xff] %v7316_v7  ;;  %v7342_v24 = vmul.f32 %v6767_v27, %v7203_v10  ;;  %v7352_v18 = vmul.f32 %v6778_v32, %v7203_v10  ;;  %v7356_v34 = vmul.f32 %v6781_v33, %v7203_v10 }
  0xc5   : > { %13171 = vst [vmem:[#allocation116_spill] sm:$0xff] %v7324_v53  ;;  %13172 = vst [vmem:[#allocation117_spill] sm:$0xff] %v7328_v56  ;;  %v7360_v11 = vmul.f32 %v6764_v26, %v7249_v4  ;;  %v1325_v56 = vmul.f32 %v6764_v26, %v7330_v60  ;;  %v697_v10 = vmul.f32 %v6802_v40, %v7214_v2  ;;  %6312 = vset.pattern.permute.xlu1 %v13143_v9 }
  0xc6   : > { %13173 = vst [vmem:[#allocation118_spill] sm:$0xff] %v7330_v60  ;;  %13174 = vst [vmem:[#allocation119_spill] sm:$0xff] %v7338_v63  ;;  %v7366_v63 = vpop.permute.xlu0 %1117  ;;  %v1326_v53 = vmul.f32 %v6781_v33, %v7330_v60  ;;  %3314 = vperm.xlu0 %6321, %v3184_v5   ;;  %2100 = vperm.xlu1 %6312, %v303_v55   ;;  %v7391_v7 = vmul.f32 %v6764_v26, %v7302_v16 }
  0xc7   : > { %13175 = vst [vmem:[#allocation120_spill] sm:$0xff] %v7342_v24  ;;  %13176 = vst [vmem:[#allocation121_spill] sm:$0xff] %v7352_v18  ;;  %v7364_v24 = vmul.f32 %v6767_v27, %v7249_v4  ;;  %v7372_v18 = vmul.f32 %v6778_v32, %v7249_v4  ;;  %v7395_v58 = vmul.f32 %v6767_v27, %v7302_v16  ;;  %v7401_v43 = vpop.permute.xlu1 %2030 }
  0xc8   : > { %13177 = vst [vmem:[#allocation122_spill] sm:$0xff] %v7356_v34  ;;  %13178 = vst [vmem:[#allocation123_spill] sm:$0xff] %v7360_v11  ;;  %v699_v34 = vmul.f32 %v6805_v41, %v7214_v2  ;;  %v1324_v11 = vmul.f32 %v6778_v32, %v7330_v60  ;;  %v7399_v46 = vmul.f32 %v6778_v32, %v7302_v16 }
  0xc9   : > { %13179 = vst [vmem:[#allocation124_spill] sm:$0xff] %v7364_v24  ;;  %13180 = vst [vmem:[#allocation125_spill] sm:$0xff] %v7366_v63  ;;  %v1327_v24 = vmul.f32 %v6767_v27, %v7330_v60  ;;  %v7408_v5 = vmul.f32 %v6781_v33, %v7302_v16  ;;  %v709_v55 = vmul.f32 %v6802_v40, %v7259_v61  ;;  %v13219_v40 = vld [vmem:[#allocation38_spill] sm:$0xff] }
  0xca   : > { %13181 = vst [vmem:[#allocation126_spill] sm:$0xff] %v7372_v18  ;;  %v7387_v18 = vmul.f32 %v6781_v33, %v7249_v4  ;;  %13183 = vst [vmem:[#allocation128_spill] sm:$0xff] %v7391_v7  ;;  %v3186_v4 = vld [vmem:[%s12565_s4 + $0xd0] sm:$0xff]  ;;  %v1331_v7 = vmul.f32 %v6796_v38, %v7330_v60  ;;  %v7421_v25 = vadd.f32 %v7041_v13, %v697_v10  ;;  %461 = vperm.xlu1 %6312, %v6580_v19   ;;  %v340_v19 = vld [vmem:[%s12562_s1 + $0xb8] sm:$0xff] }
  0xcb   : > { %13184 = vst [vmem:[#allocation129_spill] sm:$0xff] %v7395_v58  ;;  %13185 = vst [vmem:[#allocation130_spill] sm:$0xff] %v7399_v46  ;;  %v1329_v58 = vmul.f32 %v6793_v37, %v7330_v60  ;;  %v7416_v46 = vpop.permute.xlu0 %1125  ;;  %v711_v16 = vmul.f32 %v6805_v41, %v7259_v61  ;;  %v7428_v0 = vadd.f32 %v1327_v24, %v707_v51  ;;  %3324 = vperm.xlu0 %6321, %v3186_v4   ;;  %v5055_v4 = vld [vmem:[%s12566_s5 + $0x8] sm:$0xff]  ;;  %v13205_v60 = vld [vmem:[#allocation61_spill] sm:$0xff] }
  0xcc   : > { %13182 = vst [vmem:[#allocation127_spill] sm:$0xff] %v7387_v18  ;;  %13186 = vst [vmem:[#allocation131_spill] sm:$0xff] %v7401_v43  ;;  %v7418_v18 = vadd.f32 %v1325_v56, %v705_v8  ;;  %v7430_v21 = vadd.f32 %v1324_v11, %v704_v17  ;;  %v7432_v37 = vadd.f32 %v1326_v53, %v706_v54 }
  0xcd   : > { %13187 = vst [vmem:[#allocation132_spill] sm:$0xff] %v7408_v5  ;;  %13188 = vst [vmem:[#allocation133_spill] sm:$0xff] %v7416_v46  ;;  %v7426_v5 = vadd.f32 %v7045_v12, %v699_v34  ;;  %v7436_v38 = vmul.f32 %v6764_v26, %v7366_v63  ;;  %v7441_v13 = vmul.f32 %v6767_v27, %v7366_v63  ;;  %v7451_v34 = vpop.permute.xlu1 %391 }
  0xce   : > { %13189 = vst [vmem:[#allocation134_spill] sm:$0xff] %v7421_v25  ;;  %v7445_v12 = vmul.f32 %v6778_v32, %v7366_v63  ;;  %v7449_v11 = vmul.f32 %v6781_v33, %v7366_v63  ;;  %13195 = vst [vmem:[#allocation140_spill] sm:$0xff] %v7451_v34  ;;  %v7461_v10 = vadd.f32 %v7401_v43, %v7143_v59  ;;  %466 = vperm.xlu1 %6312, %v340_v19  }
  0xcf   : > { %13190 = vst [vmem:[#allocation135_spill] sm:$0xff] %v7426_v5  ;;  %13191 = vst [vmem:[#allocation136_spill] sm:$0xff] %v7436_v38  ;;  %v7465_v8 = vadd.f32 %v7401_v43, %v7146_v50  ;;  %v7467_v51 = vadd.f32 %v1329_v58, %v709_v55  ;;  %v7469_v53 = vadd.f32 %v1331_v7, %v711_v16  ;;  %v7485_v50 = vpop.permute.xlu0 %351  ;;  %5093 = vperm.xlu0 %6321, %v5055_v4   ;;  %v13203_v38 = vld [vmem:[#allocation30_spill] sm:$0xff] }
  0xd0   : > { %13192 = vst [vmem:[#allocation137_spill] sm:$0xff] %v7441_v13  ;;  %13193 = vst [vmem:[#allocation138_spill] sm:$0xff] %v7445_v12  ;;  %v7473_v56 = vadd.f32 %v7401_v43, %v7149_v49  ;;  %v7477_v17 = vadd.f32 %v7401_v43, %v7158_v14  ;;  %v717_v59 = vmul.f32 %v6772_v30, %v7451_v34  ;;  %v13208_v4 = vld [vmem:[#allocation62_spill] sm:$0xff] }
  0xd1   : > { %13194 = vst [vmem:[#allocation139_spill] sm:$0xff] %v7449_v11  ;;  %13196 = vst [vmem:[#allocation141_spill] sm:$0xff] %v7467_v51  ;;  %v7483_v54 = vmul.f32 %v6822_v47, %v7214_v2  ;;  %v719_v16 = vmul.f32 %v6775_v31, %v7451_v34  ;;  %v716_v49 = vmul.f32 %v6787_v35, %v7451_v34  ;;  %v7505_v63 = vpop.permute.xlu1 %396  ;;  %v13207_v51 = vld [vmem:[#allocation35_spill] sm:$0xff] }
  0xd2   : > { %13197 = vst [vmem:[#allocation142_spill] sm:$0xff] %v7469_v53  ;;  %13199 = vst [vmem:[#allocation144_spill] sm:$0xff] %v7485_v50  ;;  %v7493_v58 = vmul.f32 %v6764_v26, %v7416_v46  ;;  %v7497_v14 = vmul.f32 %v6767_v27, %v7416_v46  ;;  %v621_v7 = vmul.f32 %v6772_v30, %v7485_v50  ;;  %6313 = vset.pattern.permute.xlu1 %v13125_v57 }
  0xd3   : > { %13198 = vst [vmem:[#allocation143_spill] sm:$0xff] %v7483_v54  ;;  %v623_v24 = vmul.f32 %v6775_v31, %v7485_v50  ;;  %v620_v55 = vmul.f32 %v6787_v35, %v7485_v50  ;;  %13202 = vst [vmem:[#allocation147_spill] sm:$0xff] %v7505_v63  ;;  %v7516_v12 = vmul.f32 %v6790_v36, %v7451_v34  ;;  %v13204_v54 = vld [vmem:[#allocation34_spill] sm:$0xff]  ;;  %v7524_v5 = vpop.permute.xlu0 %356  ;;  %1097 = vperm.xlu1 %6313, %v340_v19  }
  0xd4   : > { %13200 = vst [vmem:[#allocation145_spill] sm:$0xff] %v7493_v58  ;;  %13201 = vst [vmem:[#allocation146_spill] sm:$0xff] %v7497_v14  ;;  %v5057_v58 = vld [vmem:[%s12566_s5 + $0x18] sm:$0xff]  ;;  %v622_v14 = vmul.f32 %v6790_v36, %v7485_v50  ;;  %v1625_v13 = vadd.f32 %v6815_v44, %v621_v7  ;;  %v7522_v53 = vadd.f32 %v13205_v60, %v717_v59 }
  0xd5   : > { %v1627_v2 = vadd.f32 %v13203_v38, %v623_v24  ;;  %v1624_v61 = vadd.f32 %v13204_v54, %v620_v55  ;;  %13206 = vst [vmem:[#allocation30_spill] sm:$0xff] %v7524_v5  ;;  %v7529_v11 = vmul.f32 %v6772_v30, %v7505_v63  ;;  %v7532_v34 = vadd.f32 %v13208_v4, %v719_v16  ;;  %v13210_v60 = vld [vmem:[#allocation50_spill] sm:$0xff]  ;;  %v13213_v4 = vld [vmem:[#allocation43_spill] sm:$0xff] }
  0xd6   : > { %v1626_v25 = vadd.f32 %v13207_v51, %v622_v14  ;;  %v7535_v44 = vadd.f32 %v13209_v45, %v716_v49  ;;  %5103 = vperm.xlu0 %6321, %v5057_v58   ;;  %v633_v38 = vmul.f32 %v6772_v30, %v7524_v5  ;;  %v7541_v59 = vadd.f32 %v13210_v60, %v1625_v13  ;;  %v5059_v45 = vld [vmem:[%s12566_s5 + $0x28] sm:$0xff]  ;;  %v7555_v14 = vpop.permute.xlu1 %1041  ;;  %v305_v55 = vld [vmem:[%s12563_s2 + $0xa0] sm:$0xff] }
  0xd7   : > { %v635_v51 = vmul.f32 %v6775_v31, %v7524_v5  ;;  %v2171_v16 = vadd.f32 %v13210_v60, %v1627_v2  ;;  %v632_v49 = vmul.f32 %v6787_v35, %v7524_v5  ;;  %v2168_v58 = vadd.f32 %v13210_v60, %v1624_v61  ;;  %13211 = vst [vmem:[#allocation34_spill] sm:$0xff] %v7555_v14  ;;  %v7570_v61 = vpop.permute.xlu0 %361 }
  0xd8   : > { %v634_v13 = vmul.f32 %v6790_v36, %v7524_v5  ;;  %v2170_v7 = vadd.f32 %v13210_v60, %v1626_v25  ;;  %v7560_v19 = vmul.f32 %v6775_v31, %v7505_v63  ;;  %v7564_v24 = vmul.f32 %v6787_v35, %v7505_v63  ;;  %13212 = vst [vmem:[#allocation61_spill] sm:$0xff] %v7570_v61 }
  0xd9   : > { %v7568_v2 = vmul.f32 %v6790_v36, %v7505_v63  ;;  %v1637_v25 = vadd.f32 %v13213_v4, %v633_v38  ;;  %v2553_v54 = vmax.f32 %v7541_v59, 0.0  ;;  %v1639_v42 = vadd.f32 %v13214_v52, %v635_v51  ;;  %6314 = vset.pattern.permute.xlu1 %v13143_v9  ;;  %v5061_v38 = vld [vmem:[%s12566_s5 + $0x38] sm:$0xff]  ;;  %v13216_v59 = vld [vmem:[#allocation48_spill] sm:$0xff] }
  0xda   : > { %v2555_v3 = vmax.f32 %v2171_v16, 0.0  ;;  %5113 = vperm.xlu0 %6321, %v5059_v45   ;;  %v1636_v47 = vadd.f32 %v13215_v1, %v632_v49  ;;  %v645_v63 = vmul.f32 %v6772_v30, %v7570_v61  ;;  %v647_v60 = vmul.f32 %v6775_v31, %v7570_v61  ;;  %2110 = vperm.xlu1 %6314, %v305_v55   ;;  %v13217_v16 = vld [vmem:[#allocation36_spill] sm:$0xff]  ;;  %v13218_v4 = vld [vmem:[#allocation37_spill] sm:$0xff]  ;;  %v7599_v46 = vpop.permute.xlu1 %2040 }
  0xdb   : > { %v644_v41 = vmul.f32 %v6787_v35, %v7570_v61  ;;  %v2552_v52 = vmax.f32 %v2168_v58, 0.0  ;;  %v1638_v51 = vadd.f32 %v13216_v59, %v634_v13  ;;  %v2554_v45 = vmax.f32 %v2170_v7, 0.0  ;;  %v7597_v23 = vpop.permute.xlu0 %2015  ;;  %13221 = vst [vmem:[#allocation62_spill] sm:$0xff] %v7599_v46  ;;  %v13222_v58 = vld [vmem:[#allocation39_spill] sm:$0xff]  ;;  %v13228_v35 = vld [vmem:[#allocation68_spill] sm:$0xff] }
  0xdc   : > { %v646_v1 = vmul.f32 %v6790_v36, %v7570_v61  ;;  %v1649_v49 = vadd.f32 %v13217_v16, %v645_v63  ;;  %v1651_v5 = vadd.f32 %v13218_v4, %v647_v60  ;;  %v1349_v48 = vmul.f32 %v6764_v26, %v7555_v14  ;;  %13220 = vst [vmem:[#allocation35_spill] sm:$0xff] %v7597_v23  ;;  %v13223_v16 = vld [vmem:[#allocation90_spill] sm:$0xff]  ;;  %v13224_v61 = vld [vmem:[#allocation3_spill] sm:$0xff] }
  0xdd   : > { %v1648_v50 = vadd.f32 %v13219_v40, %v644_v41  ;;  %v7604_v7 = vmul.f32 %v6767_v27, %v7555_v14  ;;  %v7608_v63 = vmul.f32 %v6778_v32, %v7555_v14  ;;  %v7612_v40 = vmul.f32 %v6781_v33, %v7555_v14 }
  0xde   : > { %v1650_v13 = vadd.f32 %v13222_v58, %v646_v1  ;;  %5123 = vperm.xlu0 %6321, %v5061_v38   ;;  %v2181_v41 = vadd.f32 %v7597_v23, %v1637_v25  ;;  %v2183_v60 = vadd.f32 %v7597_v23, %v1639_v42  ;;  %v2180_v55 = vadd.f32 %v7597_v23, %v1636_v47  ;;  %v5063_v1 = vld [vmem:[%s12566_s5 + $0x48] sm:$0xff] }
  0xdf   : > { %v2182_v59 = vadd.f32 %v7597_v23, %v1638_v51  ;;  %v2193_v4 = vadd.f32 %v13223_v16, %v1649_v49  ;;  %v2195_v58 = vadd.f32 %v13223_v16, %v1651_v5  ;;  %v2192_v14 = vadd.f32 %v13223_v16, %v1648_v50  ;;  %471 = vperm.xlu1 %6314, %v13224_v61   ;;  %v7626_v33 = vpop.permute.xlu0 %2025  ;;  %v7628_v51 = vpop.permute.xlu1 %401  ;;  %v342_v49 = vld [vmem:[%s12562_s1 + $0xc8] sm:$0xff] }
  0xe0   : > { %v2194_v38 = vadd.f32 %v13223_v16, %v1650_v13  ;;  %v2565_v25 = vmax.f32 %v2181_v41, 0.0  ;;  %v2567_v42 = vmax.f32 %v2183_v60, 0.0  ;;  %v2564_v36 = vmax.f32 %v2180_v55, 0.0  ;;  %13225 = vst [vmem:[#allocation63_spill] sm:$0xff] %v7626_v33  ;;  %13226 = vst [vmem:[#allocation43_spill] sm:$0xff] %v7628_v51  ;;  %v5065_v55 = vld [vmem:[%s12566_s5 + $0x58] sm:$0xff] }
  0xe1   : > { %v2566_v47 = vmax.f32 %v2182_v59, 0.0  ;;  %v2577_v23 = vmax.f32 %v2193_v4, 0.0  ;;  %v2579_v5 = vmax.f32 %v2195_v58, 0.0  ;;  %v2576_v32 = vmax.f32 %v2192_v14, 0.0  ;;  %v13227_v59 = vld [vmem:[#allocation67_spill] sm:$0xff]  ;;  %v13229_v58 = vld [vmem:[#allocation69_spill] sm:$0xff] }
  0xe2   : > { %v7634_v50 = vadd.f32 %v1349_v48, %v7529_v11  ;;  %5133 = vperm.xlu0 %6321, %v5063_v1   ;;  %v2969_v61 = vpack.c.bf16 %v2565_v25, %v2553_v54  ;;  %v2971_v13 = vpack.c.bf16 %v2567_v42, %v2555_v3  ;;  %v2968_v41 = vpack.c.bf16 %v2564_v36, %v2552_v52  ;;  %v13230_v48 = vld [vmem:[#allocation70_spill] sm:$0xff] }
  0xe3   : > { %v2970_v60 = vpack.c.bf16 %v2566_v47, %v2554_v45  ;;  %v2205_v16 = vadd.f32 %v7626_v33, %v13227_v59  ;;  %v2207_v4 = vadd.f32 %v7626_v33, %v13228_v35  ;;  %v2204_v14 = vadd.f32 %v7626_v33, %v13229_v58  ;;  %476 = vperm.xlu1 %6314, %v342_v49   ;;  %v7659_v52 = vpop.permute.xlu0 %2035  ;;  %v7661_v45 = vpop.permute.xlu1 %406 }
  0xe4   : > { %v2206_v11 = vadd.f32 %v7626_v33, %v13230_v48  ;;  %3512 = vmatprep.subr.bf16.mxu0 %v2969_v61  ;;  %v2578_v36 = vmax.f32 %v2194_v38, 0.0  ;;  %v7649_v3 = vadd.f32 %v7599_v46, %v7288_v6  ;;  %v7653_v54 = vadd.f32 %v7599_v46, %v7291_v22  ;;  %3705 = vmatprep.subr.bf16.mxu1 %v2971_v13 }
  0xe5   : > { %v7657_v35 = vadd.f32 %v7599_v46, %v7305_v39  ;;  %13231 = vst [vmem:[#allocation44_spill] sm:$0xff] %v7659_v52  ;;  %13232 = vst [vmem:[#allocation47_spill] sm:$0xff] %v7661_v45  ;;  %3513 = vmatpush1.bf16.msra.mxu0 %v2968_v41  ;;  %v2589_v1 = vmax.f32 %v2205_v16, 0.0  ;;  %v2591_v38 = vmax.f32 %v2207_v4, 0.0  ;;  %v2588_v25 = vmax.f32 %v2204_v14, 0.0  ;;  %3706 = vmatpush1.bf16.msra.mxu1 %v2970_v60  ;;  %v5067_v60 = vld [vmem:[%s12566_s5 + $0x68] sm:$0xff] }
  0xe6   : > { %v2590_v42 = vmax.f32 %v2206_v11, 0.0  ;;  %5143 = vperm.xlu0 %6321, %v5065_v55   ;;  %v2229_v6 = vadd.f32 %v7659_v52, %v7241_v28  ;;  %v2231_v22 = vadd.f32 %v7659_v52, %v7243_v29  ;;  %v2228_v39 = vadd.f32 %v7659_v52, %v7251_v20 }
  0xe7   : > { %v2602_v47 = vmax.f32 %v7477_v17, 0.0  ;;  %v2981_v61 = vpack.c.bf16 %v2589_v1, %v2577_v23  ;;  %v2983_v13 = vpack.c.bf16 %v2591_v38, %v2579_v5  ;;  %v2980_v41 = vpack.c.bf16 %v2588_v25, %v2576_v32  ;;  %6315 = vset.pattern.permute.xlu1 %v13125_v57  ;;  %v7676_v20 = vpop.permute.xlu0 %2045  ;;  %v7685_v4 = vpop.permute.xlu1 %1049 }
  0xe8   : > { %v2982_v16 = vpack.c.bf16 %v2590_v42, %v2578_v36  ;;  %v2613_v55 = vmax.f32 %v2229_v6, 0.0  ;;  %v2615_v28 = vmax.f32 %v2231_v22, 0.0  ;;  %v2612_v59 = vmax.f32 %v2228_v39, 0.0  ;;  %13233 = vst [vmem:[#allocation48_spill] sm:$0xff] %v7676_v20  ;;  %1105 = vperm.xlu1 %6315, %v342_v49   ;;  %13234 = vst [vmem:[#allocation36_spill] sm:$0xff] %v7685_v4  ;;  %v13238_v49 = vld [vmem:[#allocation65_spill] sm:$0xff] }
  0xe9   : > { %v2230_v29 = vadd.f32 %v7659_v52, %v7253_v15  ;;  %3514 = vmatprep.subr.bf16.mxu0 %v2981_v61  ;;  %3707 = vmatprep.subr.bf16.mxu1 %v2983_v13  ;;  %v2625_v23 = vmax.f32 %v7649_v3, 0.0  ;;  %v2242_v32 = vadd.f32 %v7599_v46, %v7308_v62  ;;  %v1735_v17 = vadd.f32 %v7604_v7, %v7560_v19  ;;  %v5071_v13 = vld [vmem:[%s12566_s5 + $0x88] sm:$0xff] }
  0xea   : > { %v1732_v5 = vadd.f32 %v7608_v63, %v7564_v24  ;;  %3515 = vmatpush1.bf16.msra.mxu0 %v2980_v41  ;;  %v13235_v15 = vmax.f32 %v7461_v10, 0.0  ;;  %v13236_v14 = vmax.f32 %v7465_v8, 0.0  ;;  %v13237_v11 = vmax.f32 %v7473_v56, 0.0  ;;  %3708 = vmatpush1.bf16.msra.mxu1 %v2982_v16  ;;  %v5069_v56 = vld [vmem:[%s12566_s5 + $0x78] sm:$0xff] }
  0xeb   : > { %v2614_v62 = vmax.f32 %v2230_v29, 0.0  ;;  %5153 = vperm.xlu0 %6321, %v5067_v60   ;;  %v2253_v19 = vadd.f32 %v7676_v20, %v7418_v18  ;;  %v2255_v24 = vadd.f32 %v7676_v20, %v7428_v0  ;;  %v2627_v7 = vmax.f32 %v7653_v54, 0.0  ;;  %v7708_v3 = vpop.permute.xlu0 %2055  ;;  %v7718_v6 = vpop.permute.xlu1 %2050 }
  0xec   : > { %v2993_v58 = vpack.c.bf16 %v2613_v55, %v13235_v15  ;;  %v2995_v48 = vpack.c.bf16 %v2615_v28, %v13236_v14  ;;  %v2992_v36 = vpack.c.bf16 %v2612_v59, %v13237_v11  ;;  %v2252_v10 = vadd.f32 %v7676_v20, %v7430_v21  ;;  %13239 = vst [vmem:[#allocation37_spill] sm:$0xff] %v7708_v3  ;;  %v307_v21 = vld [vmem:[%s12563_s2 + $0xb0] sm:$0xff] }
  0xed   : > { %v2994_v8 = vpack.c.bf16 %v2614_v62, %v2602_v47  ;;  %v2624_v63 = vmax.f32 %v7657_v35, 0.0  ;;  %v2254_v18 = vadd.f32 %v7676_v20, %v7432_v37  ;;  %v1722_v0 = vadd.f32 %v13238_v49, %v7516_v12  ;;  %6316 = vset.pattern.permute.xlu1 %v13143_v9  ;;  %13240 = vst [vmem:[#allocation38_spill] sm:$0xff] %v7718_v6  ;;  %v6372_v15 = vld [vmem:[%s12562_s1 + $0xd0] sm:$0xff] }
  0xee   : > { %3516 = vmatprep.subr.bf16.mxu0 %v2993_v58  ;;  %3709 = vmatprep.subr.bf16.mxu1 %v2995_v48  ;;  %v2637_v54 = vmax.f32 %v2253_v19, 0.0  ;;  %v2639_v1 = vmax.f32 %v2255_v24, 0.0  ;;  %v2636_v38 = vmax.f32 %v2252_v10, 0.0  ;;  %v2626_v25 = vmax.f32 %v2242_v32, 0.0  ;;  %v5073_v58 = vld [vmem:[%s12566_s5 + $0x98] sm:$0xff] }
  0xef   : > { %3517 = vmatpush1.bf16.msra.mxu0 %v2992_v36  ;;  %v2638_v35 = vmax.f32 %v2254_v18, 0.0  ;;  %v2277_v37 = vadd.f32 %v7708_v3, %v7634_v50  ;;  %v2279_v42 = vadd.f32 %v7708_v3, %v1735_v17  ;;  %v2276_v12 = vadd.f32 %v7708_v3, %v1732_v5  ;;  %3710 = vmatpush1.bf16.msra.mxu1 %v2994_v8  ;;  %v7729_v60 = vpop.permute.xlu0 %2065  ;;  %v13243_v36 = vld [vmem:[#allocation95_spill] sm:$0xff]  ;;  %v344_v24 = vld [vmem:[%s12562_s1 + $0xd8] sm:$0xff] }
  0xf0   : > { %5163 = vperm.xlu0 %6321, %v5069_v56   ;;  %v3005_v22 = vpack.c.bf16 %v2637_v54, %v2625_v23  ;;  %v3007_v39 = vpack.c.bf16 %v2639_v1, %v2627_v7  ;;  %v3004_v47 = vpack.c.bf16 %v2636_v38, %v2624_v63  ;;  %2120 = vperm.xlu1 %6316, %v307_v21   ;;  %v13245_v56 = vld [vmem:[#allocation97_spill] sm:$0xff] }
  0xf1   : > { %v3006_v61 = vpack.c.bf16 %v2638_v35, %v2626_v25  ;;  %v2265_v50 = vadd.f32 %v7718_v6, %v7522_v53  ;;  %v2267_v41 = vadd.f32 %v7718_v6, %v7532_v34  ;;  %v1734_v16 = vadd.f32 %v7612_v40, %v7568_v2  ;;  %13241 = vst [vmem:[#allocation39_spill] sm:$0xff] %v7729_v60  ;;  %v7735_v2 = vpop.permute.xlu1 %411  ;;  %v13248_v38 = vld [vmem:[#allocation21_spill] sm:$0xff]  ;;  %v5075_v35 = vld [vmem:[%s12566_s5 + $0xa8] sm:$0xff] }
  0xf2   : > { %3518 = vmatprep.subr.bf16.mxu0 %v3005_v22  ;;  %3711 = vmatprep.subr.bf16.mxu1 %v3007_v39  ;;  %v2661_v55 = vmax.f32 %v2277_v37, 0.0  ;;  %v2663_v28 = vmax.f32 %v2279_v42, 0.0  ;;  %v2264_v59 = vadd.f32 %v7718_v6, %v7535_v44  ;;  %v2266_v29 = vadd.f32 %v7718_v6, %v1722_v0  ;;  %13242 = vst [vmem:[#allocation3_spill] sm:$0xff] %v7735_v2 }
  0xf3   : > { %3519 = vmatpush1.bf16.msra.mxu0 %v3004_v47  ;;  %v2649_v23 = vmax.f32 %v2265_v50, 0.0  ;;  %v2651_v53 = vmax.f32 %v2267_v41, 0.0  ;;  %v2660_v32 = vmax.f32 %v2276_v12, 0.0  ;;  %v2278_v34 = vadd.f32 %v7708_v3, %v1734_v16  ;;  %3712 = vmatpush1.bf16.msra.mxu1 %v3006_v61  ;;  %v7751_v19 = vpop.permute.xlu0 %2075  ;;  %v13249_v12 = vld [vmem:[#allocation19_spill] sm:$0xff]  ;;  %v13251_v47 = vld [vmem:[#allocation20_spill] sm:$0xff] }
  0xf4   : > { %5173 = vperm.xlu0 %6321, %v5071_v13   ;;  %v2648_v40 = vmax.f32 %v2264_v59, 0.0  ;;  %v2650_v17 = vmax.f32 %v2266_v29, 0.0  ;;  %v753_v5 = vmul.f32 %v6772_v30, %v7661_v45  ;;  %v1373_v44 = vmul.f32 %v6764_v26, %v7685_v4  ;;  %481 = vperm.xlu1 %6316, %v6372_v15   ;;  %13244 = vst [vmem:[#allocation67_spill] sm:$0xff] %v7751_v19  ;;  %v13252_v13 = vld [vmem:[#allocation133_spill] sm:$0xff]  ;;  %v13255_v16 = vld [vmem:[#allocation99_spill] sm:$0xff]  ;;  %v13257_v29 = vld [vmem:[#allocation22_spill] sm:$0xff] }
  0xf5   : > { %v3017_v14 = vpack.c.bf16 %v2661_v55, %v2649_v23  ;;  %v3019_v48 = vpack.c.bf16 %v2663_v28, %v2651_v53  ;;  %v2662_v11 = vmax.f32 %v2278_v34, 0.0  ;;  %v7749_v62 = vadd.f32 %v7401_v43, %v13243_v36  ;;  %v7766_v21 = vpop.permute.xlu1 %416  ;;  %v13258_v53 = vld [vmem:[#allocation106_spill] sm:$0xff]  ;;  %v13260_v34 = vld [vmem:[#allocation71_spill] sm:$0xff]  ;;  %v13263_v36 = vld [vmem:[#allocation73_spill] sm:$0xff] }
  0xf6   : > { %v3016_v7 = vpack.c.bf16 %v2660_v32, %v2648_v40  ;;  %v1757_v10 = vadd.f32 %v1373_v44, %v753_v5  ;;  %v1375_v8 = vmul.f32 %v6767_v27, %v7685_v4  ;;  %v7760_v63 = vadd.f32 %v7401_v43, %v13245_v56  ;;  %13247 = vst [vmem:[#allocation69_spill] sm:$0xff] %v7766_v21 }
  0xf7   : > { %3520 = vmatprep.subr.bf16.mxu0 %v3017_v14  ;;  %3713 = vmatprep.subr.bf16.mxu1 %v3019_v48  ;;  %v3018_v18 = vpack.c.bf16 %v2662_v11, %v2650_v17  ;;  %v741_v49 = vmul.f32 %v6772_v30, %v7628_v51  ;;  %v755_v0 = vmul.f32 %v6775_v31, %v7661_v45  ;;  %v7782_v39 = vpop.permute.xlu0 %2085  ;;  %v13262_v48 = vld [vmem:[#allocation72_spill] sm:$0xff] }
  0xf8   : > { %13246 = vst [vmem:[#allocation68_spill] sm:$0xff] %v7760_v63  ;;  %5183 = vperm.xlu0 %6321, %v5073_v58   ;;  %3521 = vmatpush1.bf16.msra.mxu0 %v3016_v7  ;;  %v7769_v54 = vadd.f32 %v7729_v60, %v1757_v10  ;;  %v743_v1 = vmul.f32 %v6775_v31, %v7628_v51  ;;  %13250 = vst [vmem:[#allocation70_spill] sm:$0xff] %v7782_v39  ;;  %v5077_v58 = vld [vmem:[%s12566_s5 + $0xb8] sm:$0xff] }
  0xf9   : > { %v740_v25 = vmul.f32 %v13248_v38, %v7628_v51  ;;  %486 = vperm.xlu1 %6316, %v344_v24   ;;  %3714 = vmatpush1.bf16.msra.mxu1 %v3018_v18  ;;  %v1759_v37 = vadd.f32 %v1375_v8, %v755_v0  ;;  %v752_v42 = vmul.f32 %v13248_v38, %v7661_v45  ;;  %v7813_v15 = vpop.permute.xlu1 %1057 }
  0xfa   : > { %v1372_v22 = vmul.f32 %v13249_v12, %v7685_v4  ;;  %v1374_v61 = vmul.f32 %v13251_v47, %v7685_v4  ;;  %v7788_v50 = vmul.f32 %v13249_v12, %v13252_v13  ;;  %v7792_v41 = vmul.f32 %v13251_v47, %v13252_v13  ;;  %13261 = vst [vmem:[#allocation19_spill] sm:$0xff] %v7813_v15 }
  0xfb   : > { %v7796_v55 = vadd.f32 %v7401_v43, %v13255_v16  ;;  %v7799_v28 = vadd.f32 %v7729_v60, %v1759_v37  ;;  %v742_v23 = vmul.f32 %v13257_v29, %v7628_v51  ;;  %v7805_v32 = vadd.f32 %v7401_v43, %v13258_v53  ;;  %v7822_v8 = vpop.permute.xlu0 %2095  ;;  %v309_v37 = vld [vmem:[%s12563_s2 + $0xc0] sm:$0xff] }
  0xfc   : > { %13253 = vst [vmem:[#allocation65_spill] sm:$0xff] %v7788_v50  ;;  %13254 = vst [vmem:[#allocation95_spill] sm:$0xff] %v7792_v41  ;;  %v1756_v59 = vadd.f32 %v1372_v22, %v752_v42  ;;  %5193 = vperm.xlu0 %6321, %v5075_v35   ;;  %v1745_v40 = vadd.f32 %v13260_v34, %v741_v49  ;;  %v754_v17 = vmul.f32 %v13257_v29, %v7661_v45  ;;  %v13292_v45 = vld [vmem:[#allocation32_spill] sm:$0xff] }
  0xfd   : > { %13256 = vst [vmem:[#allocation97_spill] sm:$0xff] %v7796_v55  ;;  %13259 = vst [vmem:[#allocation21_spill] sm:$0xff] %v7805_v32  ;;  %6317 = vset.pattern.permute.xlu1 %v13125_v57  ;;  %v2685_v14 = vmax.f32 %v7769_v54, 0.0  ;;  %v1747_v11 = vadd.f32 %v13262_v48, %v743_v1  ;;  %v1744_v7 = vadd.f32 %v13263_v36, %v740_v25  ;;  %v2687_v54 = vmax.f32 %v7799_v28, 0.0  ;;  %v13265_v1 = vld [vmem:[#allocation74_spill] sm:$0xff]  ;;  %v13296_v32 = vld [vmem:[#allocation45_spill] sm:$0xff] }
  0xfe   : > { %v2300_v10 = vadd.f32 %v7729_v60, %v1756_v59  ;;  %1113 = vperm.xlu1 %6317, %v344_v24   ;;  %13264 = vst [vmem:[#allocation20_spill] sm:$0xff] %v7822_v8  ;;  %v1758_v56 = vadd.f32 %v1374_v61, %v754_v17  ;;  %v777_v18 = vmul.f32 %v6772_v30, %v7766_v21  ;;  %v3187_v28 = vld [vmem:[%s12565_s4 + $0xd8] sm:$0xff]  ;;  %v13297_v55 = vld [vmem:[#allocation52_spill] sm:$0xff] }
  0xff   : > { %v1397_v49 = vmul.f32 %v6764_v26, %v7813_v15  ;;  %v1399_v0 = vmul.f32 %v6767_v27, %v7813_v15  ;;  %v1746_v35 = vadd.f32 %v13265_v1, %v742_v23  ;;  %v765_v25 = vmul.f32 %v6772_v30, %v7735_v2  ;;  %v7854_v17 = vpop.permute.xlu0 %2105 }
 0x100   : > { %v767_v24 = vmul.f32 %v6775_v31, %v7735_v2  ;;  %5203 = vperm.xlu0 %6321, %v5077_v58   ;;  %v2302_v42 = vadd.f32 %v7729_v60, %v1758_v56  ;;  %v779_v61 = vmul.f32 %v6775_v31, %v7766_v21  ;;  %v1396_v16 = vmul.f32 %v13249_v12, %v7813_v15  ;;  %v7856_v58 = vpop.permute.xlu1 %2060  ;;  %v13269_v56 = vld [vmem:[#allocation26_spill] sm:$0xff] }
 0x101   : > { %v1781_v22 = vadd.f32 %v1397_v49, %v777_v18  ;;  %v2684_v59 = vmax.f32 %v2300_v10, 0.0  ;;  %v764_v23 = vmul.f32 %v13248_v38, %v7735_v2  ;;  %v776_v53 = vmul.f32 %v13248_v38, %v7766_v21  ;;  %13266 = vst [vmem:[#allocation99_spill] sm:$0xff] %v7854_v17  ;;  %13267 = vst [vmem:[#allocation22_spill] sm:$0xff] %v7856_v58  ;;  %v13268_v10 = vld [vmem:[#allocation144_spill] sm:$0xff]  ;;  %v13270_v49 = vld [vmem:[#allocation30_spill] sm:$0xff] }
 0x102   : > { %v766_v34 = vmul.f32 %v13257_v29, %v7735_v2  ;;  %6318 = vset.pattern.permute.xlu1 %v13143_v9  ;;  %v1783_v48 = vadd.f32 %v1399_v0, %v779_v61  ;;  %v1398_v36 = vmul.f32 %v13251_v47, %v7813_v15  ;;  %v625_v18 = vmul.f32 %v13269_v56, %v13268_v10  ;;  %v6373_v60 = vld [vmem:[%s12562_s1 + $0xe0] sm:$0xff] }
 0x103   : > { %v637_v1 = vmul.f32 %v13269_v56, %v13270_v49  ;;  %2130 = vperm.xlu1 %6318, %v309_v37   ;;  %v2289_v44 = vadd.f32 %v7856_v58, %v1745_v40  ;;  %v2291_v5 = vadd.f32 %v7856_v58, %v1747_v11  ;;  %v2288_v43 = vadd.f32 %v7856_v58, %v1744_v7  ;;  %v3188_v37 = vld [vmem:[%s12565_s4 + $0xe0] sm:$0xff]  ;;  %v7876_v7 = vpop.permute.xlu0 %2115 }
 0x104   : > { %v2290_v13 = vadd.f32 %v7856_v58, %v1746_v35  ;;  %3329 = vperm.xlu0 %6321, %v3187_v28   ;;  %v2686_v0 = vmax.f32 %v2302_v42, 0.0  ;;  %v7869_v61 = vadd.f32 %v7751_v19, %v1781_v22  ;;  %v1780_v41 = vadd.f32 %v1396_v16, %v776_v53  ;;  %13271 = vst [vmem:[#allocation106_spill] sm:$0xff] %v7876_v7  ;;  %v7878_v35 = vpop.permute.xlu1 %421  ;;  %v13273_v16 = vld [vmem:[#allocation40_spill] sm:$0xff]  ;;  %v13274_v53 = vld [vmem:[#allocation49_spill] sm:$0xff] }
 0x105   : > { %v778_v50 = vmul.f32 %v13257_v29, %v7766_v21  ;;  %v2673_v40 = vmax.f32 %v2289_v44, 0.0  ;;  %v2675_v15 = vmax.f32 %v2291_v5, 0.0  ;;  %v2672_v11 = vmax.f32 %v2288_v43, 0.0  ;;  %13272 = vst [vmem:[#allocation71_spill] sm:$0xff] %v7878_v35  ;;  %v13275_v58 = vld [vmem:[#allocation81_spill] sm:$0xff] }
 0x106   : > { %v2674_v2 = vmax.f32 %v2290_v13, 0.0  ;;  %v7881_v42 = vadd.f32 %v7751_v19, %v1783_v48  ;;  %v1629_v28 = vadd.f32 %v13273_v16, %v625_v18  ;;  %v1641_v21 = vadd.f32 %v13274_v53, %v637_v1  ;;  %v346_v48 = vld [vmem:[%s12562_s1 + $0xe8] sm:$0xff] }
 0x107   : > { %v1782_v22 = vadd.f32 %v1398_v36, %v778_v50  ;;  %491 = vperm.xlu1 %6318, %v6373_v60   ;;  %v3029_v5 = vpack.c.bf16 %v2685_v14, %v2673_v40  ;;  %v3031_v43 = vpack.c.bf16 %v2687_v54, %v2675_v15  ;;  %v3028_v13 = vpack.c.bf16 %v2684_v59, %v2672_v11  ;;  %v13276_v15 = vld [vmem:[#allocation82_spill] sm:$0xff]  ;;  %v7909_v1 = vpop.permute.xlu0 %2125  ;;  %v13280_v40 = vld [vmem:[#allocation83_spill] sm:$0xff]  ;;  %v13281_v16 = vld [vmem:[#allocation84_spill] sm:$0xff] }
 0x108   : > { %v3030_v44 = vpack.c.bf16 %v2686_v0, %v2674_v2  ;;  %3334 = vperm.xlu0 %6321, %v3188_v37   ;;  %v7892_v50 = vadd.f32 %v13275_v58, %v765_v25  ;;  %v789_v36 = vmul.f32 %v6772_v30, %v7878_v35  ;;  %v791_v18 = vmul.f32 %v6775_v31, %v7878_v35  ;;  %v3189_v2 = vld [vmem:[%s12565_s4 + $0xe8] sm:$0xff]  ;;  %v7911_v0 = vpop.permute.xlu1 %426  ;;  %v13284_v58 = vld [vmem:[#allocation85_spill] sm:$0xff] }
 0x109   : > { %3522 = vmatprep.subr.bf16.mxu0 %v3029_v5  ;;  %3715 = vmatprep.subr.bf16.mxu1 %v3031_v43  ;;  %v7903_v14 = vadd.f32 %v13276_v15, %v767_v24  ;;  %v788_v54 = vmul.f32 %v13248_v38, %v7878_v35  ;;  %v13277_v25 = vld [vmem:[#allocation35_spill] sm:$0xff]  ;;  %13278 = vst [vmem:[#allocation72_spill] sm:$0xff] %v7909_v1  ;;  %13279 = vst [vmem:[#allocation73_spill] sm:$0xff] %v7911_v0 }
 0x10a   : > { %v2185_v59 = vadd.f32 %v13277_v25, %v1641_v21  ;;  %3523 = vmatpush1.bf16.msra.mxu0 %v3028_v13  ;;  %3716 = vmatpush1.bf16.msra.mxu1 %v3030_v44  ;;  %v1768_v11 = vadd.f32 %v13280_v40, %v764_v23  ;;  %v1770_v24 = vadd.f32 %v13281_v16, %v766_v34  ;;  %v13282_v53 = vld [vmem:[#allocation27_spill] sm:$0xff]  ;;  %v13283_v13 = vld [vmem:[#allocation50_spill] sm:$0xff] }
 0x10b   : > { %v627_v5 = vmul.f32 %v13282_v53, %v13268_v10  ;;  %496 = vperm.xlu1 %6318, %v346_v48   ;;  %v7920_v43 = vadd.f32 %v7751_v19, %v1780_v41  ;;  %v7923_v15 = vadd.f32 %v7751_v19, %v1782_v22  ;;  %v2173_v44 = vadd.f32 %v13283_v13, %v1629_v28  ;;  %v13285_v23 = vld [vmem:[#allocation86_spill] sm:$0xff]  ;;  %v3190_v41 = vld [vmem:[%s12565_s4 + $0xf0] sm:$0xff]  ;;  %v13288_v37 = vld [vmem:[#allocation31_spill] sm:$0xff] }
 0x10c   : > { %3339 = vperm.xlu0 %6321, %v3189_v2   ;;  %v7927_v60 = vadd.f32 %v13284_v58, %v789_v36  ;;  %v7930_v34 = vadd.f32 %v13285_v23, %v791_v18  ;;  %v790_v40 = vmul.f32 %v13257_v29, %v7878_v35  ;;  %v639_v16 = vmul.f32 %v13282_v53, %v13270_v49  ;;  %v13286_v36 = vld [vmem:[#allocation87_spill] sm:$0xff]  ;;  %v7946_v58 = vpop.permute.xlu0 %2135  ;;  %v7957_v1 = vpop.permute.xlu1 %1065 }
 0x10d   : > { %v801_v22 = vmul.f32 %v6772_v30, %v7911_v0  ;;  %v803_v28 = vmul.f32 %v6775_v31, %v7911_v0  ;;  %v7944_v2 = vadd.f32 %v13286_v36, %v788_v54  ;;  %v2569_v18 = vmax.f32 %v2185_v59, 0.0  ;;  %13287 = vst [vmem:[#allocation74_spill] sm:$0xff] %v7946_v58  ;;  %13289 = vst [vmem:[#allocation26_spill] sm:$0xff] %v7957_v1  ;;  %v13290_v59 = vld [vmem:[#allocation41_spill] sm:$0xff]  ;;  %v13291_v58 = vld [vmem:[#allocation51_spill] sm:$0xff] }
 0x10e   : > { %v800_v23 = vmul.f32 %v13248_v38, %v7911_v0  ;;  %v802_v21 = vmul.f32 %v13257_v29, %v7911_v0  ;;  %v624_v35 = vmul.f32 %v13288_v37, %v13268_v10  ;;  %v636_v19 = vmul.f32 %v13288_v37, %v13270_v49 }
 0x10f   : > { %6319 = vset.pattern.permute.xlu1 %v13125_v57  ;;  %v2557_v54 = vmax.f32 %v2173_v44, 0.0  ;;  %v1631_v36 = vadd.f32 %v13290_v59, %v627_v5  ;;  %v1643_v4 = vadd.f32 %v13291_v58, %v639_v16  ;;  %v626_v51 = vmul.f32 %v13292_v45, %v13268_v10  ;;  %v3191_v5 = vld [vmem:[%s12565_s4 + $0xf8] sm:$0xff]  ;;  %v311_v10 = vld [vmem:[%s12563_s2 + $0xd0] sm:$0xff] }
 0x110   : > { %1121 = vperm.xlu1 %6319, %v346_v48   ;;  %3344 = vperm.xlu0 %6321, %v3190_v41   ;;  %v2708_v0 = vmax.f32 %v7920_v43, 0.0  ;;  %v1421_v7 = vmul.f32 %v6764_v26, %v7957_v1  ;;  %v1423_v3 = vmul.f32 %v6767_v27, %v7957_v1  ;;  %v1420_v44 = vmul.f32 %v13249_v12, %v7957_v1  ;;  %v13293_v48 = vld [vmem:[#allocation88_spill] sm:$0xff]  ;;  %v7982_v59 = vpop.permute.xlu0 %2145  ;;  %v7997_v63 = vpop.permute.xlu1 %2070 }
 0x111   : > { %v1422_v16 = vmul.f32 %v13251_v47, %v7957_v1  ;;  %v7976_v41 = vadd.f32 %v13293_v48, %v790_v40  ;;  %v7978_v43 = vpack.c.bf16 %v2569_v18, %v2557_v54  ;;  %v638_v58 = vmul.f32 %v13292_v45, %v13270_v49  ;;  %13295 = vst [vmem:[#allocation49_spill] sm:$0xff] %v7982_v59  ;;  %v13298_v54 = vld [vmem:[#allocation46_spill] sm:$0xff]  ;;  %v13299_v49 = vld [vmem:[#allocation61_spill] sm:$0xff] }
 0x112   : > { %v1805_v6 = vadd.f32 %v1421_v7, %v801_v22  ;;  %v7988_v17 = vadd.f32 %v13277_v25, %v1643_v4  ;;  %v1628_v1 = vadd.f32 %v13296_v32, %v624_v35  ;;  %v1640_v40 = vadd.f32 %v13297_v55, %v636_v19  ;;  %13300 = vst [vmem:[#allocation81_spill] sm:$0xff] %v7997_v63 }
 0x113   : > { %13294 = vst [vmem:[#allocation40_spill] sm:$0xff] %v7978_v43  ;;  %v1807_v48 = vadd.f32 %v1423_v3, %v803_v28  ;;  %v2175_v18 = vadd.f32 %v13283_v13, %v1631_v36  ;;  %v1630_v43 = vadd.f32 %v13298_v54, %v626_v51  ;;  %v649_v59 = vmul.f32 %v13269_v56, %v13299_v49  ;;  %v5084_v3 = vld [vmem:[%s12566_s5 + $0xf0] sm:$0xff] }
 0x114   : > { %6320 = vset.pattern.permute.xlu1 %v13143_v9  ;;  %3349 = vperm.xlu0 %6321, %v3191_v5   ;;  %v2710_v4 = vmax.f32 %v7923_v15, 0.0  ;;  %v1804_v7 = vadd.f32 %v1420_v44, %v800_v23  ;;  %v1806_v22 = vadd.f32 %v1422_v16, %v802_v21  ;;  %v2184_v32 = vadd.f32 %v13277_v25, %v1640_v40  ;;  %v8010_v15 = vpop.permute.xlu0 %2155  ;;  %v13302_v23 = vld [vmem:[#allocation53_spill] sm:$0xff] }
 0x115   : > { %2140 = vperm.xlu1 %6320, %v311_v10   ;;  %v2313_v51 = vadd.f32 %v7997_v63, %v7892_v50  ;;  %v2315_v19 = vadd.f32 %v7997_v63, %v7903_v14  ;;  %v2312_v55 = vadd.f32 %v7997_v63, %v1768_v11  ;;  %v2314_v35 = vadd.f32 %v7997_v63, %v1770_v24  ;;  %v8018_v14 = vpop.permute.xlu1 %431  ;;  %v13406_v63 = vld [vmem:[#allocation106_spill] sm:$0xff] }
 0x116   : > { %13301 = vst [vmem:[#allocation82_spill] sm:$0xff] %v8010_v15  ;;  %v8013_v21 = vadd.f32 %v7782_v39, %v1805_v6  ;;  %v2571_v10 = vmax.f32 %v7988_v17, 0.0  ;;  %v2172_v28 = vadd.f32 %v13283_v13, %v1628_v1  ;;  %v1642_v36 = vadd.f32 %v13302_v23, %v638_v58  ;;  %13303 = vst [vmem:[#allocation83_spill] sm:$0xff] %v8018_v14  ;;  %v6374_v1 = vld [vmem:[%s12562_s1 + $0xf0] sm:$0xff]  ;;  %v6074_v58 = vld [vmem:[#allocation2] sm:$0x1] }
 0x117   : > { %v2697_v44 = vmax.f32 %v2313_v51, 0.0  ;;  %v2699_v50 = vmax.f32 %v2315_v19, 0.0  ;;  %v2696_v5 = vmax.f32 %v2312_v55, 0.0  ;;  %v2698_v16 = vmax.f32 %v2314_v35, 0.0  ;;  %v13307_v23 = vld [vmem:[#allocation54_spill] sm:$0xff] }
 0x118   : > { %5238 = vperm.xlu0 %6321, %v5084_v3   ;;  %v8021_v11 = vadd.f32 %v7782_v39, %v1807_v48  ;;  %v8024_v24 = vadd.f32 %v7782_v39, %v1804_v7  ;;  %v8027_v6 = vadd.f32 %v7782_v39, %v1806_v22  ;;  %v2568_v17 = vmax.f32 %v2184_v32, 0.0  ;;  %v8036_v7 = vpop.permute.xlu0 %3194  ;;  %v348_v22 = vld [vmem:[%s12562_s1 + $0xf8] sm:$0xff] }
 0x119   : > { %501 = vperm.xlu1 %6320, %v6374_v1   ;;  %v13304_v40 = vmax.f32 %v7869_v61, 0.0  ;;  %v13305_v3 = vmax.f32 %v7881_v42, 0.0  ;;  %v3040_v51 = vpack.c.bf16 %v2708_v0, %v2696_v5  ;;  %v3042_v19 = vpack.c.bf16 %v2710_v4, %v2698_v16  ;;  %13306 = vst [vmem:[#allocation84_spill] sm:$0xff] %v8036_v7  ;;  %v13316_v1 = vld [vmem:[#allocation90_spill] sm:$0xff] }
 0x11a   : > { %v813_v32 = vmul.f32 %v6772_v30, %v8018_v14  ;;  %v815_v55 = vmul.f32 %v6775_v31, %v8018_v14  ;;  %v812_v61 = vmul.f32 %v13248_v38, %v8018_v14  ;;  %v2174_v42 = vadd.f32 %v13283_v13, %v1630_v43  ;;  %v313_v7 = vld [vmem:[%s12563_s2 + $0xe0] sm:$0xff] }
 0x11b   : > { %v3041_v54 = vpack.c.bf16 %v13304_v40, %v2697_v44  ;;  %v3043_v48 = vpack.c.bf16 %v13305_v3, %v2699_v50  ;;  %v2559_v0 = vmax.f32 %v2175_v18, 0.0  ;;  %v2556_v4 = vmax.f32 %v2172_v28, 0.0  ;;  %v8050_v50 = vpop.permute.xlu1 %436  ;;  %v13309_v40 = vld [vmem:[#allocation75_spill] sm:$0xff] }
 0x11c   : > { %v2186_v35 = vadd.f32 %v13277_v25, %v1642_v36  ;;  %v1653_v44 = vadd.f32 %v13307_v23, %v649_v59  ;;  %6077 = vperm.xlu0 %6321, %v6074_v58   ;;  %13308 = vst [vmem:[#allocation27_spill] sm:$0xff] %v8050_v50  ;;  %v2209_v43 = vadd.f32 %v7626_v33, %v13309_v40  ;;  %v8064_v58 = vpop.permute.xlu0 %3204  ;;  %v13315_v23 = vld [vmem:[#allocation93_spill] sm:$0xff] }
 0x11d   : > { %3524 = vmatprep.subr.bf16.mxu0 %v3041_v54  ;;  %3717 = vmatprep.subr.bf16.mxu1 %v3043_v48  ;;  %v814_v59 = vmul.f32 %v13257_v29, %v8018_v14  ;;  %v8060_v28 = vpack.c.bf16 %v2571_v10, %v2559_v0  ;;  %v8062_v36 = vpack.c.bf16 %v2568_v17, %v2556_v4  ;;  %v13313_v54 = vld [vmem:[#allocation91_spill] sm:$0xff]  ;;  %v13314_v48 = vld [vmem:[#allocation92_spill] sm:$0xff]  ;;  %v13318_v4 = vld [vmem:[#allocation57_spill] sm:$0xff] }
 0x11e   : > { %3525 = vmatpush1.bf16.msra.mxu0 %v3040_v51  ;;  %506 = vperm.xlu1 %6320, %v348_v22   ;;  %13312 = vst [vmem:[#allocation87_spill] sm:$0xff] %v8064_v58  ;;  %v8067_v3 = vadd.f32 %v13313_v54, %v813_v32  ;;  %v8070_v51 = vadd.f32 %v13314_v48, %v815_v55  ;;  %v2570_v18 = vmax.f32 %v2186_v35, 0.0  ;;  %v2593_v0 = vmax.f32 %v2209_v43, 0.0  ;;  %v13320_v48 = vld [vmem:[#allocation59_spill] sm:$0xff]  ;;  %v13366_v14 = vld [vmem:[#allocation102_spill] sm:$0xff] }
 0x11f   : > { %3718 = vmatpush1.bf16.msra.mxu1 %v3042_v19  ;;  %13310 = vst [vmem:[#allocation85_spill] sm:$0xff] %v8060_v28  ;;  %13311 = vst [vmem:[#allocation86_spill] sm:$0xff] %v8062_v36  ;;  %v8073_v40 = vadd.f32 %v13315_v23, %v812_v61  ;;  %v2558_v19 = vmax.f32 %v2174_v42, 0.0  ;;  %v2197_v16 = vadd.f32 %v13316_v1, %v1653_v44  ;;  %v8087_v42 = vpop.permute.xlu1 %1073  ;;  %v13319_v44 = vld [vmem:[#allocation78_spill] sm:$0xff]  ;;  %v13324_v36 = vld [vmem:[#allocation79_spill] sm:$0xff] }
 0x120   : > { %v651_v10 = vmul.f32 %v13282_v53, %v13299_v49  ;;  %v648_v17 = vmul.f32 %v13288_v37, %v13299_v49  ;;  %v825_v32 = vmul.f32 %v6772_v30, %v8050_v50  ;;  %v827_v55 = vmul.f32 %v6775_v31, %v8050_v50  ;;  %13317 = vst [vmem:[#allocation31_spill] sm:$0xff] %v8087_v42  ;;  %v8097_v58 = vpop.permute.xlu0 %3214 }
 0x121   : > { %v824_v61 = vmul.f32 %v13248_v38, %v8050_v50  ;;  %v8092_v54 = vadd.f32 %v7626_v33, %v13319_v44  ;;  %v650_v5 = vmul.f32 %v13292_v45, %v13299_v49  ;;  %13321 = vst [vmem:[#allocation41_spill] sm:$0xff] %v8097_v58  ;;  %v1445_v43 = vmul.f32 %v6764_v26, %v8087_v42  ;;  %v13322_v44 = vld [vmem:[#allocation94_spill] sm:$0xff] }
 0x122   : > { %6322 = vset.pattern.permute.xlu1 %v13125_v57  ;;  %v1655_v35 = vadd.f32 %v13318_v4, %v651_v10  ;;  %v1652_v23 = vadd.f32 %v13320_v48, %v648_v17  ;;  %v1447_v57 = vmul.f32 %v6767_v27, %v8087_v42  ;;  %v1444_v10 = vmul.f32 %v13249_v12, %v8087_v42 }
 0x123   : > { %1129 = vperm.xlu1 %6322, %v348_v22   ;;  %v1446_v4 = vmul.f32 %v13251_v47, %v8087_v42  ;;  %v826_v17 = vmul.f32 %v13257_v29, %v8050_v50  ;;  %v8110_v48 = vadd.f32 %v13322_v44, %v814_v59  ;;  %v8112_v22 = vpack.c.bf16 %v2570_v18, %v2558_v19  ;;  %v13326_v59 = vld [vmem:[#allocation80_spill] sm:$0xff] }
 0x124   : > { %v2581_v58 = vmax.f32 %v2197_v16, 0.0  ;;  %v1829_v49 = vadd.f32 %v1445_v43, %v825_v32  ;;  %v1831_v25 = vadd.f32 %v1447_v57, %v827_v55  ;;  %v2199_v13 = vadd.f32 %v13316_v1, %v1655_v35  ;;  %v13327_v16 = vld [vmem:[#allocation103_spill] sm:$0xff]  ;;  %v8130_v32 = vpop.permute.xlu0 %3224  ;;  %v8132_v55 = vpop.permute.xlu1 %2080 }
 0x125   : > { %13323 = vst [vmem:[#allocation51_spill] sm:$0xff] %v8112_v22  ;;  %v2208_v28 = vadd.f32 %v7626_v33, %v13324_v36  ;;  %v2595_v50 = vmax.f32 %v8092_v54, 0.0  ;;  %v8125_v18 = vadd.f32 %v7626_v33, %v13326_v59  ;;  %v2233_v19 = vadd.f32 %v7659_v52, %v13327_v16  ;;  %13328 = vst [vmem:[#allocation88_spill] sm:$0xff] %v8130_v32  ;;  %v13360_v33 = vld [vmem:[#allocation97_spill] sm:$0xff] }
 0x126   : > { %v8120_v42 = vpack.c.bf16 %v2593_v0, %v2581_v58  ;;  %13329 = vst [vmem:[#allocation45_spill] sm:$0xff] %v8132_v55  ;;  %v1828_v35 = vadd.f32 %v1444_v10, %v824_v61  ;;  %v1830_v43 = vadd.f32 %v1446_v4, %v826_v17  ;;  %v2196_v36 = vadd.f32 %v13316_v1, %v1652_v23  ;;  %v13330_v58 = vld [vmem:[#allocation60_spill] sm:$0xff] }
 0x127   : > { %6323 = vset.pattern.permute.xlu1 %v13143_v9  ;;  %v1654_v0 = vadd.f32 %v13330_v58, %v650_v5  ;;  %v2337_v54 = vadd.f32 %v8132_v55, %v7927_v60  ;;  %v2339_v57 = vadd.f32 %v8132_v55, %v7930_v34  ;;  %v2336_v9 = vadd.f32 %v8132_v55, %v7944_v2  ;;  %v315_v61 = vld [vmem:[%s12563_s2 + $0xf0] sm:$0xff] }
 0x128   : > { %13325 = vst [vmem:[#allocation32_spill] sm:$0xff] %v8120_v42  ;;  %2150 = vperm.xlu1 %6323, %v313_v7   ;;  %v2338_v44 = vadd.f32 %v8132_v55, %v7976_v41  ;;  %v8148_v23 = vadd.f32 %v7822_v8, %v1829_v49  ;;  %v8151_v7 = vadd.f32 %v7822_v8, %v1831_v25  ;;  %v2583_v60 = vmax.f32 %v2199_v13, 0.0  ;;  %v8153_v2 = vpop.permute.xlu0 %3234  ;;  %v8155_v59 = vpop.permute.xlu1 %441 }
 0x129   : > { %v2592_v5 = vmax.f32 %v2208_v28, 0.0  ;;  %v2721_v10 = vmax.f32 %v2337_v54, 0.0  ;;  %v2723_v34 = vmax.f32 %v2339_v57, 0.0  ;;  %v2720_v4 = vmax.f32 %v2336_v9, 0.0  ;;  %13331 = vst [vmem:[#allocation52_spill] sm:$0xff] %v8153_v2  ;;  %13332 = vst [vmem:[#allocation46_spill] sm:$0xff] %v8155_v59 }
 0x12a   : > { %v2722_v17 = vmax.f32 %v2338_v44, 0.0  ;;  %v8158_v41 = vadd.f32 %v7822_v8, %v1828_v35  ;;  %v8161_v16 = vadd.f32 %v7822_v8, %v1830_v43  ;;  %v2198_v49 = vadd.f32 %v13316_v1, %v1654_v0  ;;  %v316_v43 = vld [vmem:[%s12563_s2 + $0xf8] sm:$0xff] }
 0x12b   : > { %v2617_v25 = vmax.f32 %v2233_v19, 0.0  ;;  %v13333_v13 = vmax.f32 %v8013_v21, 0.0  ;;  %v13334_v58 = vmax.f32 %v8021_v11, 0.0  ;;  %v13335_v57 = vmax.f32 %v8024_v24, 0.0  ;;  %v13355_v2 = vld [vmem:[#allocation142_spill] sm:$0xff] }
 0x12c   : > { %2160 = vperm.xlu1 %6323, %v315_v61   ;;  %v13336_v44 = vmax.f32 %v8027_v6, 0.0  ;;  %v837_v19 = vmul.f32 %v6772_v30, %v8155_v59  ;;  %v839_v21 = vmul.f32 %v6775_v31, %v8155_v59  ;;  %v836_v11 = vmul.f32 %v13248_v38, %v8155_v59  ;;  %v13337_v61 = vld [vmem:[#allocation104_spill] sm:$0xff] }
 0x12d   : > { %v3053_v28 = vpack.c.bf16 %v13333_v13, %v2721_v10  ;;  %v3055_v54 = vpack.c.bf16 %v13334_v58, %v2723_v34  ;;  %v3052_v9 = vpack.c.bf16 %v13335_v57, %v2720_v4  ;;  %v2580_v0 = vmax.f32 %v2196_v36, 0.0  ;;  %v13338_v34 = vld [vmem:[#allocation105_spill] sm:$0xff]  ;;  %v8189_v13 = vpop.permute.xlu1 %446  ;;  %v13345_v58 = vld [vmem:[#allocation107_spill] sm:$0xff] }
 0x12e   : > { %v3054_v35 = vpack.c.bf16 %v13336_v44, %v2722_v17  ;;  %v2594_v6 = vmax.f32 %v8125_v18, 0.0  ;;  %v2235_v10 = vadd.f32 %v7659_v52, %v13337_v61  ;;  %v2232_v4 = vadd.f32 %v7659_v52, %v13338_v34  ;;  %v8187_v17 = vpop.permute.xlu0 %3244  ;;  %13340 = vst [vmem:[#allocation54_spill] sm:$0xff] %v8189_v13 }
 0x12f   : > { %3526 = vmatprep.subr.bf16.mxu0 %v3053_v28  ;;  %3719 = vmatprep.subr.bf16.mxu1 %v3055_v54  ;;  %13339 = vst [vmem:[#allocation53_spill] sm:$0xff] %v8187_v17  ;;  %v838_v18 = vmul.f32 %v13257_v29, %v8155_v59  ;;  %v8196_v54 = vpack.c.bf16 %v2595_v50, %v2583_v60  ;;  %v2582_v44 = vmax.f32 %v2198_v49, 0.0  ;;  %v13343_v61 = vmax.f32 %v7749_v62, 0.0  ;;  %v13347_v60 = vld [vmem:[#allocation111_spill] sm:$0xff] }
 0x130   : > { %3527 = vmatpush1.bf16.msra.mxu0 %v3052_v9  ;;  %3720 = vmatpush1.bf16.msra.mxu1 %v3054_v35  ;;  %v8198_v57 = vpack.c.bf16 %v2592_v5, %v2580_v0  ;;  %v3161_v9 = vld [vmem:[%s12565_s4 + $0x8] sm:$0xff]  ;;  %v849_v35 = vmul.f32 %v6772_v30, %v8189_v13  ;;  %v8210_v28 = vadd.f32 %v13345_v58, %v837_v19  ;;  %v2619_v49 = vmax.f32 %v2235_v10, 0.0  ;;  %v13348_v0 = vld [vmem:[#allocation109_spill] sm:$0xff] }
 0x131   : > { %2165 = vperm.xlu1 %6323, %v316_v43   ;;  %13341 = vst [vmem:[#allocation75_spill] sm:$0xff] %v8196_v54  ;;  %v8202_v34 = vpack.c.bf16 %v2617_v25, %v13343_v61  ;;  %v13346_v43 = vld [vmem:[#allocation108_spill] sm:$0xff]  ;;  %v8216_v5 = vadd.f32 %v13347_v60, %v836_v11  ;;  %v851_v62 = vmul.f32 %v6775_v31, %v8189_v13  ;;  %v2616_v25 = vmax.f32 %v2232_v4, 0.0  ;;  %v13351_v11 = vld [vmem:[#allocation134_spill] sm:$0xff]  ;;  %v8235_v10 = vpop.permute.xlu1 %1081 }
 0x132   : > { %13342 = vst [vmem:[#allocation91_spill] sm:$0xff] %v8198_v57  ;;  %v8213_v50 = vadd.f32 %v13346_v43, %v839_v21  ;;  %v2234_v61 = vadd.f32 %v7659_v52, %v13348_v0  ;;  %v8222_v36 = vpop.permute.xlu0 %3254  ;;  %v848_v19 = vmul.f32 %v13248_v38, %v8189_v13  ;;  %v850_v21 = vmul.f32 %v13257_v29, %v8189_v13  ;;  %v13350_v58 = vld [vmem:[#allocation112_spill] sm:$0xff]  ;;  %v13353_v0 = vld [vmem:[#allocation141_spill] sm:$0xff]  ;;  %v13363_v57 = vld [vmem:[#allocation118_spill] sm:$0xff] }
 0x133   : > { %13344 = vst [vmem:[#allocation92_spill] sm:$0xff] %v8202_v34  ;;  %13349 = vst [vmem:[#allocation93_spill] sm:$0xff] %v8222_v36  ;;  %v8229_v43 = vadd.f32 %v13350_v58, %v838_v18  ;;  %v8233_v60 = vadd.f32 %v7599_v46, %v13351_v11  ;;  %v8239_v24 = vadd.f32 %v7676_v20, %v13353_v0  ;;  %v13354_v36 = vld [vmem:[#allocation135_spill] sm:$0xff]  ;;  %v3163_v58 = vld [vmem:[%s12565_s4 + $0x18] sm:$0xff]  ;;  %v13361_v1 = vmax.f32 %v13360_v33, 0.0 }
 0x134   : > { %13352 = vst [vmem:[#allocation57_spill] sm:$0xff] %v8235_v10  ;;  %v2618_v4 = vmax.f32 %v2234_v61, 0.0  ;;  %v8243_v17 = vadd.f32 %v7599_v46, %v13354_v36  ;;  %v8247_v18 = vadd.f32 %v7676_v20, %v13355_v2  ;;  %v1471_v61 = vmul.f32 %v6767_v27, %v8235_v10  ;;  %v13357_v2 = vld [vmem:[#allocation68_spill] sm:$0xff] }
 0x135   : > { %3199 = vperm.xlu1 %6323, %v3161_v9   ;;  %v1469_v9 = vmul.f32 %v6764_v26, %v8235_v10  ;;  %v1468_v11 = vmul.f32 %v13249_v12, %v8235_v10  ;;  %v1470_v36 = vmul.f32 %v13251_v47, %v8235_v10  ;;  %v8260_v0 = vpack.c.bf16 %v2594_v6, %v2582_v44  ;;  %v13364_v54 = vld [vmem:[#allocation28_spill] sm:$0xff]  ;;  %v13367_v44 = vld [vmem:[#allocation21_spill] sm:$0xff] }
 0x136   : > { %v13358_v32 = vmax.f32 %v13357_v2, 0.0  ;;  %v8268_v34 = vpack.c.bf16 %v2616_v25, %v13361_v1  ;;  %v1328_v42 = vmul.f32 %v13364_v54, %v13363_v57  ;;  %v8272_v22 = vpop.permute.xlu0 %3264  ;;  %v1855_v59 = vadd.f32 %v1471_v61, %v851_v62  ;;  %v8286_v62 = vpop.permute.xlu1 %2090  ;;  %v13371_v61 = vld [vmem:[#allocation143_spill] sm:$0xff] }
 0x137   : > { %13356 = vst [vmem:[#allocation78_spill] sm:$0xff] %v8260_v0  ;;  %13365 = vst [vmem:[#allocation79_spill] sm:$0xff] %v8272_v22  ;;  %v1853_v13 = vadd.f32 %v1469_v9, %v849_v35  ;;  %v1852_v8 = vadd.f32 %v1468_v11, %v848_v19  ;;  %v708_v6 = vmul.f32 %v13288_v37, %v13366_v14  ;;  %v13368_v33 = vmax.f32 %v13367_v44, 0.0  ;;  %v3165_v19 = vld [vmem:[%s12565_s4 + $0x28] sm:$0xff] }
 0x138   : > { %v8264_v52 = vpack.c.bf16 %v2619_v49, %v13358_v32  ;;  %13362 = vst [vmem:[#allocation94_spill] sm:$0xff] %v8268_v34  ;;  %v6324_v32 = vld [vmem:[%s12564_s3 + $0x4] ss:$8 sps:$4 sm:$0xff]   ;;  %v2629_v49 = vmax.f32 %v8233_v60, 0.0  ;;  %v2641_v25 = vmax.f32 %v8239_v24, 0.0  ;;  %v2631_v35 = vmax.f32 %v8243_v17, 0.0 }
 0x139   : > { %3209 = vperm.xlu1 %6323, %v3163_v58   ;;  %v8281_v1 = vpack.c.bf16 %v2618_v4, %v13368_v33  ;;  %13370 = vst [vmem:[#allocation103_spill] sm:$0xff] %v8286_v62  ;;  %v1854_v58 = vadd.f32 %v1470_v36, %v850_v21  ;;  %v2643_v9 = vmax.f32 %v8247_v18, 0.0  ;;  %v13372_v11 = vld [vmem:[#allocation100_spill] sm:$0xff]  ;;  %v1712_v4 = vadd.f32 %v1328_v42, %v708_v6  ;;  %v13374_v18 = vld [vmem:[#allocation99_spill] sm:$0xff] }
 0x13a   : > { %13359 = vst [vmem:[#allocation59_spill] sm:$0xff] %v8264_v52  ;;  %v1700_v2 = vadd.f32 %v13372_v11, %v13371_v61  ;;  %v2361_v60 = vadd.f32 %v8286_v62, %v8067_v3  ;;  %v2363_v24 = vadd.f32 %v8286_v62, %v8070_v51  ;;  %v2360_v17 = vadd.f32 %v8286_v62, %v8073_v40  ;;  %v8302_v21 = vpop.permute.xlu0 %3274  ;;  %v13375_v51 = vld [vmem:[#allocation98_spill] sm:$0xff]  ;;  %v8315_v11 = vpop.permute.xlu1 %451  ;;  %v3173_v52 = vld [vmem:[%s12565_s4 + $0x68] sm:$0xff] }
 0x13b   : > { %13369 = vst [vmem:[#allocation80_spill] sm:$0xff] %v8281_v1  ;;  %v2362_v44 = vadd.f32 %v8286_v62, %v8110_v48  ;;  %3544 = vmatprep.mubr.bf16.mxu0 %v6324_v32  ;;  %13373 = vst [vmem:[#allocation60_spill] sm:$0xff] %v8302_v21  ;;  %v8305_v36 = vadd.f32 %v13374_v18, %v1853_v13  ;;  %v8308_v42 = vadd.f32 %v13374_v18, %v1855_v59  ;;  %v3167_v13 = vld [vmem:[%s12565_s4 + $0x38] sm:$0xff] }
 0x13c   : > { %v8311_v3 = vadd.f32 %v13374_v18, %v1852_v8  ;;  %3737 = vmatprep.mubr.bf16.mxu1 %v6324_v32  ;;  %v698_v6 = vmul.f32 %v13292_v45, %v13375_v51  ;;  %v2745_v40 = vmax.f32 %v2361_v60, 0.0  ;;  %v2747_v33 = vmax.f32 %v2363_v24, 0.0  ;;  %13376 = vst [vmem:[#allocation104_spill] sm:$0xff] %v8315_v11  ;;  %v13400_v62 = vld [vmem:[#allocation37_spill] sm:$0xff] }
 0x13d   : > { %3219 = vperm.xlu1 %6323, %v3165_v19   ;;  %v2744_v48 = vmax.f32 %v2360_v17, 0.0  ;;  %v2746_v61 = vmax.f32 %v2362_v44, 0.0  ;;  %v8321_v59 = vadd.f32 %v13374_v18, %v1854_v58  ;;  %v8324_v8 = vadd.f32 %v7599_v46, %v1700_v2  ;;  %v13377_v19 = vld [vmem:[#allocation29_spill] sm:$0xff] }
 0x13e   : > { %v8327_v32 = vadd.f32 %v7676_v20, %v1712_v4  ;;  %v1330_v60 = vmul.f32 %v13377_v19, %v13363_v57  ;;  %v13378_v24 = vmax.f32 %v8148_v23, 0.0  ;;  %v13379_v44 = vmax.f32 %v8151_v7, 0.0  ;;  %v8339_v2 = vpop.permute.xlu0 %3284 }
 0x13f   : > { %v13380_v22 = vmax.f32 %v8158_v41, 0.0  ;;  %v13381_v58 = vmax.f32 %v8161_v16, 0.0  ;;  %13382 = vst [vmem:[#allocation105_spill] sm:$0xff] %v8339_v2  ;;  %v861_v4 = vmul.f32 %v6772_v30, %v8315_v11  ;;  %v863_v57 = vmul.f32 %v6775_v31, %v8315_v11 }
 0x140   : > { %v3065_v17 = vpack.c.bf16 %v13378_v24, %v2745_v40  ;;  %v3067_v21 = vpack.c.bf16 %v13379_v44, %v2747_v33  ;;  %v860_v23 = vmul.f32 %v13248_v38, %v8315_v11  ;;  %v710_v7 = vmul.f32 %v13292_v45, %v13366_v14  ;;  %v8355_v33 = vpop.permute.xlu1 %456  ;;  %v13386_v24 = vld [vmem:[#allocation110_spill] sm:$0xff] }
 0x141   : > { %v3064_v51 = vpack.c.bf16 %v13380_v22, %v2744_v48  ;;  %v3066_v1 = vpack.c.bf16 %v13381_v58, %v2746_v61  ;;  %3229 = vperm.xlu1 %6323, %v3167_v13   ;;  %v8351_v16 = vpack.c.bf16 %v2641_v25, %v2629_v49  ;;  %v8353_v40 = vpack.c.bf16 %v2643_v9, %v2631_v35  ;;  %v3169_v48 = vld [vmem:[%s12565_s4 + $0x48] sm:$0xff]  ;;  %v13387_v49 = vld [vmem:[#allocation114_spill] sm:$0xff] }
 0x142   : > { %3528 = vmatprep.subr.bf16.mxu0 %v3065_v17  ;;  %3721 = vmatprep.subr.bf16.mxu1 %v3067_v21  ;;  %13385 = vst [vmem:[#allocation111_spill] sm:$0xff] %v8355_v33  ;;  %v1702_v17 = vadd.f32 %v13386_v24, %v698_v6  ;;  %v1714_v44 = vadd.f32 %v1330_v60, %v710_v7  ;;  %v2628_v9 = vmax.f32 %v8324_v8, 0.0  ;;  %v2640_v21 = vmax.f32 %v8327_v32, 0.0  ;;  %v13389_v58 = vld [vmem:[#allocation115_spill] sm:$0xff]  ;;  %v13390_v13 = vld [vmem:[#allocation116_spill] sm:$0xff]  ;;  %v13393_v32 = vld [vmem:[#allocation25_spill] sm:$0xff] }
 0x143   : > { %13383 = vst [vmem:[#allocation107_spill] sm:$0xff] %v8351_v16  ;;  %13384 = vst [vmem:[#allocation108_spill] sm:$0xff] %v8353_v40  ;;  %3529 = vmatpush1.bf16.msra.mxu0 %v3064_v51  ;;  %3722 = vmatpush1.bf16.msra.mxu1 %v3066_v1  ;;  %v8364_v25 = vadd.f32 %v13387_v49, %v861_v4  ;;  %v862_v35 = vmul.f32 %v13257_v29, %v8315_v11  ;;  %v8370_v51 = vpop.permute.xlu0 %3294  ;;  %v13391_v60 = vld [vmem:[#allocation140_spill] sm:$0xff]  ;;  %v13392_v7 = vld [vmem:[#allocation147_spill] sm:$0xff] }
 0x144   : > { %13388 = vst [vmem:[#allocation109_spill] sm:$0xff] %v8370_v51  ;;  %v8373_v61 = vadd.f32 %v13389_v58, %v863_v57  ;;  %v8376_v41 = vadd.f32 %v13390_v13, %v860_v23  ;;  %v2246_v1 = vadd.f32 %v7599_v46, %v1702_v17  ;;  %v2258_v6 = vadd.f32 %v7676_v20, %v1714_v44  ;;  %v13394_v24 = vld [vmem:[#allocation23_spill] sm:$0xff]  ;;  %v13395_v22 = vld [vmem:[#allocation34_spill] sm:$0xff]  ;;  %v8397_v58 = vpop.permute.xlu1 %1089  ;;  %v13397_v46 = vld [vmem:[#allocation24_spill] sm:$0xff] }
 0x145   : > { %3239 = vperm.xlu1 %6323, %v3169_v48   ;;  %v721_v4 = vmul.f32 %v13269_v56, %v13391_v60  ;;  %v733_v8 = vmul.f32 %v13269_v56, %v13392_v7  ;;  %v1341_v49 = vmul.f32 %v13394_v24, %v13393_v32  ;;  %v1353_v57 = vmul.f32 %v13394_v24, %v13395_v22  ;;  %v3171_v23 = vld [vmem:[%s12565_s4 + $0x58] sm:$0xff] }
 0x146   : > { %v873_v13 = vmul.f32 %v6772_v30, %v8355_v33  ;;  %v875_v48 = vmul.f32 %v6775_v31, %v8355_v33  ;;  %v872_v17 = vmul.f32 %v13248_v38, %v8355_v33  ;;  %v2642_v44 = vmax.f32 %v2258_v6, 0.0  ;;  %13396 = vst [vmem:[#allocation112_spill] sm:$0xff] %v8397_v58 }
 0x147   : > { %v1725_v51 = vadd.f32 %v1341_v49, %v721_v4  ;;  %v1737_v2 = vadd.f32 %v1353_v57, %v733_v8  ;;  %v723_v20 = vmul.f32 %v13282_v53, %v13391_v60  ;;  %v1343_v14 = vmul.f32 %v13397_v46, %v13393_v32  ;;  %v8403_v40 = vpop.permute.xlu0 %3304  ;;  %v13399_v57 = vld [vmem:[#allocation38_spill] sm:$0xff] }
 0x148   : > { %13398 = vst [vmem:[#allocation134_spill] sm:$0xff] %v8403_v40  ;;  %v1493_v16 = vmul.f32 %v6764_v26, %v8397_v58  ;;  %v1495_v34 = vmul.f32 %v6767_v27, %v8397_v58  ;;  %v1492_v6 = vmul.f32 %v13249_v12, %v8397_v58  ;;  %v1494_v4 = vmul.f32 %v13251_v47, %v8397_v58  ;;  %v13401_v58 = vld [vmem:[#allocation117_spill] sm:$0xff]  ;;  %v8433_v55 = vpop.permute.xlu1 %2100 }
 0x149   : > { %3249 = vperm.xlu1 %6323, %v3171_v23   ;;  %v874_v8 = vmul.f32 %v13257_v29, %v8355_v33  ;;  %v2630_v49 = vmax.f32 %v2246_v1, 0.0  ;;  %v2269_v11 = vadd.f32 %v13399_v57, %v1725_v51  ;;  %v1355_v40 = vmul.f32 %v13397_v46, %v13395_v22  ;;  %13405 = vst [vmem:[#allocation68_spill] sm:$0xff] %v8433_v55 }
 0x14a   : > { %v1877_v0 = vadd.f32 %v1493_v16, %v873_v13  ;;  %v1879_v18 = vadd.f32 %v1495_v34, %v875_v48  ;;  %v1876_v10 = vadd.f32 %v1492_v6, %v872_v17  ;;  %v2281_v15 = vadd.f32 %v13400_v62, %v1737_v2 }
 0x14b   : > { %v8423_v23 = vadd.f32 %v13401_v58, %v862_v35  ;;  %v8425_v39 = vpack.c.bf16 %v2640_v21, %v2628_v9  ;;  %v8427_v1 = vpack.c.bf16 %v2642_v44, %v2630_v49  ;;  %v735_v51 = vmul.f32 %v13282_v53, %v13392_v7  ;;  %v8431_v33 = vpop.permute.xlu0 %3314 }
 0x14c   : > { %13404 = vst [vmem:[#allocation142_spill] sm:$0xff] %v8431_v33  ;;  %v8436_v16 = vadd.f32 %v13406_v63, %v1877_v0  ;;  %v1878_v34 = vadd.f32 %v1494_v4, %v874_v8  ;;  %v2653_v13 = vmax.f32 %v2269_v11, 0.0  ;;  %v1727_v2 = vadd.f32 %v1343_v14, %v723_v20  ;;  %v3175_v0 = vld [vmem:[%s12565_s4 + $0x78] sm:$0xff]  ;;  %v8457_v58 = vpop.permute.xlu1 %461  ;;  %v3181_v33 = vld [vmem:[%s12565_s4 + $0xa8] sm:$0xff] }
 0x14d   : > { %13402 = vst [vmem:[#allocation141_spill] sm:$0xff] %v8425_v39  ;;  %13403 = vst [vmem:[#allocation135_spill] sm:$0xff] %v8427_v1  ;;  %3259 = vperm.xlu1 %6323, %v3173_v52   ;;  %v2385_v35 = vadd.f32 %v8433_v55, %v8210_v28  ;;  %v2387_v9 = vadd.f32 %v8433_v55, %v8213_v50  ;;  %v2384_v21 = vadd.f32 %v8433_v55, %v8216_v5 }
 0x14e   : > { %v2386_v48 = vadd.f32 %v8433_v55, %v8229_v43  ;;  %v8450_v11 = vadd.f32 %v13406_v63, %v1879_v18  ;;  %v8453_v52 = vadd.f32 %v13406_v63, %v1876_v10  ;;  %v2665_v20 = vmax.f32 %v2281_v15, 0.0  ;;  %13408 = vst [vmem:[#allocation28_spill] sm:$0xff] %v8457_v58  ;;  %v13421_v43 = vld [vmem:[#allocation43_spill] sm:$0xff] }
 0x14f   : > { %v1739_v14 = vadd.f32 %v1355_v40, %v735_v51  ;;  %v2769_v28 = vmax.f32 %v2385_v35, 0.0  ;;  %v2771_v50 = vmax.f32 %v2387_v9, 0.0  ;;  %v2768_v17 = vmax.f32 %v2384_v21, 0.0  ;;  %v8455_v5 = vpop.permute.xlu0 %3324 }
 0x150   : > { %v2770_v44 = vmax.f32 %v2386_v48, 0.0  ;;  %13407 = vst [vmem:[#allocation97_spill] sm:$0xff] %v8455_v5  ;;  %v8461_v6 = vadd.f32 %v13406_v63, %v1878_v34  ;;  %v8464_v18 = vadd.f32 %v13399_v57, %v1727_v2  ;;  %v13409_v15 = vmax.f32 %v8305_v36, 0.0  ;;  %v3177_v2 = vld [vmem:[%s12565_s4 + $0x88] sm:$0xff] }
 0x151   : > { %v8467_v10 = vadd.f32 %v13400_v62, %v1739_v14  ;;  %3269 = vperm.xlu1 %6323, %v3175_v0   ;;  %v13410_v4 = vmax.f32 %v8308_v42, 0.0  ;;  %v13411_v49 = vmax.f32 %v8311_v3, 0.0  ;;  %v13412_v35 = vmax.f32 %v8321_v59, 0.0 }
 0x152   : > { %v3077_v40 = vpack.c.bf16 %v13409_v15, %v2769_v28  ;;  %v885_v9 = vmul.f32 %v6772_v30, %v8457_v58  ;;  %v887_v36 = vmul.f32 %v6775_v31, %v8457_v58  ;;  %v884_v42 = vmul.f32 %v13248_v38, %v8457_v58  ;;  %v8496_v28 = vpop.permute.xlu1 %466 }
 0x153   : > { %v3079_v8 = vpack.c.bf16 %v13410_v4, %v2771_v50  ;;  %v3076_v51 = vpack.c.bf16 %v13411_v49, %v2768_v17  ;;  %v3078_v34 = vpack.c.bf16 %v13412_v35, %v2770_v44  ;;  %v720_v3 = vmul.f32 %v13288_v37, %v13391_v60  ;;  %v8494_v14 = vpop.permute.xlu0 %5093  ;;  %13414 = vst [vmem:[#allocation143_spill] sm:$0xff] %v8496_v28 }
 0x154   : > { %3530 = vmatprep.subr.bf16.mxu0 %v3077_v40  ;;  %v1340_v48 = vmul.f32 %v13364_v54, %v13393_v32  ;;  %v1352_v0 = vmul.f32 %v13364_v54, %v13395_v22  ;;  %13413 = vst [vmem:[#allocation21_spill] sm:$0xff] %v8494_v14  ;;  %v8499_v17 = vpack.c.bf16 %v2665_v20, %v2653_v13  ;;  %v2655_v44 = vmax.f32 %v8464_v18, 0.0  ;;  %v13416_v40 = vld [vmem:[#allocation119_spill] sm:$0xff]  ;;  %v3179_v13 = vld [vmem:[%s12565_s4 + $0x98] sm:$0xff] }
 0x155   : > { %3723 = vmatprep.subr.bf16.mxu1 %v3079_v8  ;;  %3531 = vmatpush1.bf16.msra.mxu0 %v3076_v51  ;;  %v732_v15 = vmul.f32 %v13288_v37, %v13392_v7  ;;  %v8505_v4 = vadd.f32 %v13416_v40, %v885_v9  ;;  %v13417_v8 = vld [vmem:[#allocation120_spill] sm:$0xff]  ;;  %v886_v51 = vmul.f32 %v13257_v29, %v8457_v58  ;;  %v2667_v35 = vmax.f32 %v8467_v10, 0.0  ;;  %v13418_v18 = vld [vmem:[#allocation121_spill] sm:$0xff]  ;;  %v13424_v58 = vld [vmem:[#allocation122_spill] sm:$0xff] }
 0x156   : > { %3724 = vmatpush1.bf16.msra.mxu1 %v3078_v34  ;;  %13415 = vst [vmem:[#allocation100_spill] sm:$0xff] %v8499_v17  ;;  %3279 = vperm.xlu1 %6323, %v3177_v2   ;;  %v8508_v49 = vadd.f32 %v13417_v8, %v887_v36  ;;  %v897_v20 = vmul.f32 %v6772_v30, %v8496_v28 }
 0x157   : > { %v8519_v34 = vadd.f32 %v13418_v18, %v884_v42  ;;  %v1724_v2 = vadd.f32 %v1340_v48, %v720_v3  ;;  %v1736_v9 = vadd.f32 %v1352_v0, %v732_v15  ;;  %v722_v36 = vmul.f32 %v13292_v45, %v13391_v60  ;;  %v8529_v50 = vpop.permute.xlu0 %5103  ;;  %v8537_v15 = vpop.permute.xlu1 %1097 }
 0x158   : > { %v734_v40 = vmul.f32 %v13292_v45, %v13392_v7  ;;  %v1342_v10 = vmul.f32 %v13377_v19, %v13393_v32  ;;  %v1354_v8 = vmul.f32 %v13377_v19, %v13395_v22  ;;  %13419 = vst [vmem:[#allocation29_spill] sm:$0xff] %v8529_v50  ;;  %v899_v42 = vmul.f32 %v6775_v31, %v8496_v28  ;;  %v13422_v50 = vld [vmem:[#allocation42_spill] sm:$0xff] }
 0x159   : > { %v896_v3 = vmul.f32 %v13248_v38, %v8496_v28  ;;  %v2268_v48 = vadd.f32 %v13399_v57, %v1724_v2  ;;  %v2280_v0 = vadd.f32 %v13400_v62, %v1736_v9  ;;  %13420 = vst [vmem:[#allocation110_spill] sm:$0xff] %v8537_v15  ;;  %v898_v18 = vmul.f32 %v13257_v29, %v8496_v28 }
 0x15a   : > { %3289 = vperm.xlu1 %6323, %v3179_v13   ;;  %v1726_v21 = vadd.f32 %v1342_v10, %v722_v36  ;;  %v1738_v59 = vadd.f32 %v1354_v8, %v734_v40  ;;  %v745_v5 = vmul.f32 %v13269_v56, %v13421_v43  ;;  %v1517_v2 = vmul.f32 %v6764_v26, %v8537_v15 }
 0x15b   : > { %v1519_v13 = vmul.f32 %v6767_v27, %v8537_v15  ;;  %v1516_v9 = vmul.f32 %v13249_v12, %v8537_v15  ;;  %v1518_v36 = vmul.f32 %v13251_v47, %v8537_v15  ;;  %v2652_v40 = vmax.f32 %v2268_v48, 0.0  ;;  %v8557_v22 = vpop.permute.xlu0 %5113  ;;  %v13426_v15 = vld [vmem:[#allocation47_spill] sm:$0xff] }
 0x15c   : > { %v2664_v10 = vmax.f32 %v2280_v0, 0.0  ;;  %v2270_v8 = vadd.f32 %v13399_v57, %v1726_v21  ;;  %v1365_v14 = vmul.f32 %v13394_v24, %v13422_v50  ;;  %13423 = vst [vmem:[#allocation114_spill] sm:$0xff] %v8557_v22  ;;  %v1901_v32 = vadd.f32 %v1517_v2, %v897_v20  ;;  %v13427_v0 = vld [vmem:[#allocation36_spill] sm:$0xff]  ;;  %v8568_v57 = vpop.permute.xlu1 %2110  ;;  %v3183_v20 = vld [vmem:[%s12565_s4 + $0xb8] sm:$0xff] }
 0x15d   : > { %v1903_v7 = vadd.f32 %v1519_v13, %v899_v42  ;;  %v1900_v60 = vadd.f32 %v1516_v9, %v896_v3  ;;  %v1902_v28 = vadd.f32 %v1518_v36, %v898_v18  ;;  %v8560_v63 = vadd.f32 %v13424_v58, %v886_v51  ;;  %13428 = vst [vmem:[#allocation116_spill] sm:$0xff] %v8568_v57  ;;  %v13429_v42 = vld [vmem:[#allocation72_spill] sm:$0xff] }
 0x15e   : > { %3299 = vperm.xlu1 %6323, %v3181_v33   ;;  %v8562_v17 = vpack.c.bf16 %v2667_v35, %v2655_v44  ;;  %v757_v48 = vmul.f32 %v13269_v56, %v13426_v15  ;;  %v1377_v21 = vmul.f32 %v13394_v24, %v13427_v0  ;;  %v8574_v3 = vadd.f32 %v13429_v42, %v1901_v32 }
 0x15f   : > { %v8576_v33 = vpack.c.bf16 %v2664_v10, %v2652_v40  ;;  %v2282_v58 = vadd.f32 %v13400_v62, %v1738_v59  ;;  %v2654_v44 = vmax.f32 %v2270_v8, 0.0  ;;  %v2409_v51 = vadd.f32 %v8568_v57, %v8364_v25  ;;  %v8587_v13 = vpop.permute.xlu0 %5123 }
 0x160   : > { %13425 = vst [vmem:[#allocation115_spill] sm:$0xff] %v8562_v17  ;;  %v2411_v35 = vadd.f32 %v8568_v57, %v8373_v61  ;;  %v2408_v18 = vadd.f32 %v8568_v57, %v8376_v41  ;;  %v2410_v2 = vadd.f32 %v8568_v57, %v8423_v23  ;;  %13431 = vst [vmem:[#allocation24_spill] sm:$0xff] %v8587_v13  ;;  %v8598_v10 = vpop.permute.xlu1 %471  ;;  %v3185_v23 = vld [vmem:[%s12565_s4 + $0xc8] sm:$0xff]  ;;  %v13433_v13 = vld [vmem:[#allocation22_spill] sm:$0xff] }
 0x161   : > { %13430 = vst [vmem:[#allocation23_spill] sm:$0xff] %v8576_v33  ;;  %v8590_v32 = vadd.f32 %v13429_v42, %v1903_v7  ;;  %v8593_v59 = vadd.f32 %v13429_v42, %v1900_v60  ;;  %v8596_v9 = vadd.f32 %v13429_v42, %v1902_v28  ;;  %v1749_v25 = vadd.f32 %v1365_v14, %v745_v5 }
 0x162   : > { %3309 = vperm.xlu1 %6323, %v3183_v20   ;;  %v2793_v61 = vmax.f32 %v2409_v51, 0.0  ;;  %v2795_v36 = vmax.f32 %v2411_v35, 0.0  ;;  %v2792_v40 = vmax.f32 %v2408_v18, 0.0  ;;  %v2794_v41 = vmax.f32 %v2410_v2, 0.0  ;;  %13432 = vst [vmem:[#allocation117_spill] sm:$0xff] %v8598_v10 }
 0x163   : > { %v2666_v8 = vmax.f32 %v2282_v58, 0.0  ;;  %v1761_v60 = vadd.f32 %v1377_v21, %v757_v48  ;;  %v8605_v22 = vadd.f32 %v13433_v13, %v1749_v25  ;;  %v13434_v5 = vmax.f32 %v8436_v16, 0.0  ;;  %v8615_v62 = vpop.permute.xlu0 %5133 }
 0x164   : > { %v13435_v28 = vmax.f32 %v8450_v11, 0.0  ;;  %v13436_v51 = vmax.f32 %v8453_v52, 0.0  ;;  %v13437_v18 = vmax.f32 %v8461_v6, 0.0  ;;  %13438 = vst [vmem:[#allocation119_spill] sm:$0xff] %v8615_v62  ;;  %v909_v48 = vmul.f32 %v6772_v30, %v8598_v10 }
 0x165   : > { %v3089_v14 = vpack.c.bf16 %v13434_v5, %v2793_v61  ;;  %v911_v21 = vmul.f32 %v6775_v31, %v8598_v10  ;;  %v908_v16 = vmul.f32 %v13248_v38, %v8598_v10  ;;  %v747_v11 = vmul.f32 %v13282_v53, %v13421_v43  ;;  %v8630_v61 = vpop.permute.xlu1 %476 }
 0x166   : > { %v3091_v20 = vpack.c.bf16 %v13435_v28, %v2795_v36  ;;  %v3088_v35 = vpack.c.bf16 %v13436_v51, %v2792_v40  ;;  %v3090_v2 = vpack.c.bf16 %v13437_v18, %v2794_v41  ;;  %3319 = vperm.xlu1 %6323, %v3185_v23   ;;  %v1367_v25 = vmul.f32 %v13397_v46, %v13422_v50  ;;  %v5054_v36 = vld [vmem:[%s12566_s5] sm:$0xff] }
 0x167   : > { %3532 = vmatprep.subr.bf16.mxu0 %v3089_v14  ;;  %13439 = vst [vmem:[#allocation120_spill] sm:$0xff] %v8630_v61  ;;  %v910_v40 = vmul.f32 %v13257_v29, %v8598_v10  ;;  %v8637_v41 = vpack.c.bf16 %v2666_v8, %v2654_v44  ;;  %v13441_v23 = vld [vmem:[#allocation39_spill] sm:$0xff]  ;;  %v2677_v14 = vmax.f32 %v8605_v22, 0.0  ;;  %v759_v6 = vmul.f32 %v13282_v53, %v13426_v15  ;;  %v8652_v52 = vpop.permute.xlu0 %5143 }
 0x168   : > { %3725 = vmatprep.subr.bf16.mxu1 %v3091_v20  ;;  %3533 = vmatpush1.bf16.msra.mxu0 %v3088_v35  ;;  %v2305_v5 = vadd.f32 %v13441_v23, %v1761_v60  ;;  %v13442_v28 = vld [vmem:[#allocation123_spill] sm:$0xff]  ;;  %v13443_v20 = vld [vmem:[#allocation124_spill] sm:$0xff]  ;;  %v13444_v35 = vld [vmem:[#allocation126_spill] sm:$0xff]  ;;  %13445 = vst [vmem:[#allocation122_spill] sm:$0xff] %v8652_v52  ;;  %v921_v44 = vmul.f32 %v6772_v30, %v8630_v61 }
 0x169   : > { %13440 = vst [vmem:[#allocation121_spill] sm:$0xff] %v8637_v41  ;;  %3726 = vmatpush1.bf16.msra.mxu1 %v3090_v2  ;;  %v8642_v51 = vadd.f32 %v13442_v28, %v909_v48  ;;  %v8645_v18 = vadd.f32 %v13443_v20, %v911_v21  ;;  %v8648_v58 = vadd.f32 %v13444_v35, %v908_v16  ;;  %v5056_v28 = vld [vmem:[%s12566_s5 + $0x10] sm:$0xff]  ;;  %v13446_v35 = vld [vmem:[#allocation127_spill] sm:$0xff]  ;;  %v8681_v42 = vpop.permute.xlu1 %1105 }
 0x16a   : > { %v923_v22 = vmul.f32 %v6775_v31, %v8630_v61  ;;  %v1379_v8 = vmul.f32 %v13397_v46, %v13427_v0  ;;  %v1751_v60 = vadd.f32 %v1367_v25, %v747_v11  ;;  %5088 = vperm.xlu1 %6323, %v5054_v36   ;;  %v744_v2 = vmul.f32 %v13288_v37, %v13421_v43 }
 0x16b   : > { %v756_v48 = vmul.f32 %v13288_v37, %v13426_v15  ;;  %v1364_v21 = vmul.f32 %v13364_v54, %v13422_v50  ;;  %v1376_v16 = vmul.f32 %v13364_v54, %v13427_v0  ;;  %v920_v11 = vmul.f32 %v13248_v38, %v8630_v61  ;;  %13447 = vst [vmem:[#allocation123_spill] sm:$0xff] %v8681_v42 }
 0x16c   : > { %v922_v25 = vmul.f32 %v13257_v29, %v8630_v61  ;;  %v1763_v36 = vadd.f32 %v1379_v8, %v759_v6  ;;  %v2295_v20 = vadd.f32 %v13433_v13, %v1751_v60  ;;  %v8677_v7 = vadd.f32 %v13446_v35, %v910_v40  ;;  %v8688_v8 = vpop.permute.xlu0 %5153 }
 0x16d   : > { %v1748_v52 = vadd.f32 %v1364_v21, %v744_v2  ;;  %v1760_v62 = vadd.f32 %v1376_v16, %v756_v48  ;;  %v746_v10 = vmul.f32 %v13292_v45, %v13421_v43  ;;  %v1366_v57 = vmul.f32 %v13377_v19, %v13422_v50  ;;  %13448 = vst [vmem:[#allocation124_spill] sm:$0xff] %v8688_v8  ;;  %v5058_v21 = vld [vmem:[%s12566_s5 + $0x20] sm:$0xff] }
 0x16e   : > { %v2307_v41 = vadd.f32 %v13441_v23, %v1763_v36  ;;  %v2679_v33 = vmax.f32 %v2295_v20, 0.0  ;;  %v1378_v6 = vmul.f32 %v13377_v19, %v13427_v0  ;;  %5098 = vperm.xlu1 %6323, %v5056_v28   ;;  %v1541_v40 = vmul.f32 %v6764_v26, %v8681_v42 }
 0x16f   : > { %v1543_v60 = vmul.f32 %v6767_v27, %v8681_v42  ;;  %v1540_v2 = vmul.f32 %v13249_v12, %v8681_v42  ;;  %v1542_v48 = vmul.f32 %v13251_v47, %v8681_v42  ;;  %v2689_v16 = vmax.f32 %v2305_v5, 0.0 }
 0x170   : > { %v2292_v28 = vadd.f32 %v13433_v13, %v1748_v52  ;;  %v2304_v36 = vadd.f32 %v13441_v23, %v1760_v62  ;;  %v758_v20 = vmul.f32 %v13292_v45, %v13426_v15  ;;  %v1925_v35 = vadd.f32 %v1541_v40, %v921_v44  ;;  %v8707_v1 = vpop.permute.xlu0 %5163  ;;  %v13452_v62 = vld [vmem:[#allocation3_spill] sm:$0xff]  ;;  %v8713_v15 = vpop.permute.xlu1 %2120 }
 0x171   : > { %v1927_v8 = vadd.f32 %v1543_v60, %v923_v22  ;;  %v1924_v0 = vadd.f32 %v1540_v2, %v920_v11  ;;  %v2691_v50 = vmax.f32 %v2307_v41, 0.0  ;;  %v1926_v43 = vadd.f32 %v1542_v48, %v922_v25  ;;  %13450 = vst [vmem:[#allocation127_spill] sm:$0xff] %v8707_v1  ;;  %13453 = vst [vmem:[#allocation149_spill] sm:$0xff] %v8713_v15  ;;  %v5060_v41 = vld [vmem:[%s12566_s5 + $0x30] sm:$0xff] }
 0x172   : > { %v8705_v61 = vpack.c.bf16 %v2689_v16, %v2677_v14  ;;  %v2676_v42 = vmax.f32 %v2292_v28, 0.0  ;;  %v1750_v17 = vadd.f32 %v1366_v57, %v746_v10  ;;  %5108 = vperm.xlu1 %6323, %v5058_v21   ;;  %v2688_v52 = vmax.f32 %v2304_v36, 0.0  ;;  %v13454_v14 = vld [vmem:[#allocation74_spill] sm:$0xff]  ;;  %v13460_v16 = vld [vmem:[#allocation19_spill] sm:$0xff] }
 0x173   : > { %v8709_v5 = vpack.c.bf16 %v2691_v50, %v2679_v33  ;;  %v1762_v39 = vadd.f32 %v1378_v6, %v758_v20  ;;  %v769_v55 = vmul.f32 %v13269_v56, %v13452_v62  ;;  %v8719_v44 = vadd.f32 %v13454_v14, %v1925_v35 }
 0x174   : > { %13449 = vst [vmem:[#allocation126_spill] sm:$0xff] %v8705_v61  ;;  %v8722_v57 = vadd.f32 %v13454_v14, %v1927_v8  ;;  %v8725_v50 = vadd.f32 %v13454_v14, %v1924_v0  ;;  %v2294_v33 = vadd.f32 %v13433_v13, %v1750_v17  ;;  %v2433_v10 = vadd.f32 %v8713_v15, %v8505_v4  ;;  %v13456_v17 = vld [vmem:[#allocation69_spill] sm:$0xff]  ;;  %v8744_v4 = vpop.permute.xlu0 %5173  ;;  %v8746_v48 = vpop.permute.xlu1 %481 }
 0x175   : > { %13451 = vst [vmem:[#allocation148_spill] sm:$0xff] %v8709_v5  ;;  %v2435_v22 = vadd.f32 %v8713_v15, %v8508_v49  ;;  %v2432_v11 = vadd.f32 %v8713_v15, %v8519_v34  ;;  %v2434_v25 = vadd.f32 %v8713_v15, %v8560_v63  ;;  %v8737_v6 = vadd.f32 %v13454_v14, %v1926_v43  ;;  %v5062_v63 = vld [vmem:[%s12566_s5 + $0x40] sm:$0xff] }
 0x176   : > { %v8739_v8 = vpack.c.bf16 %v2688_v52, %v2676_v42  ;;  %v2306_v0 = vadd.f32 %v13441_v23, %v1762_v39  ;;  %v781_v40 = vmul.f32 %v13269_v56, %v13456_v17  ;;  %5118 = vperm.xlu1 %6323, %v5060_v41   ;;  %13457 = vst [vmem:[#allocation151_spill] sm:$0xff] %v8744_v4  ;;  %v2817_v49 = vmax.f32 %v2433_v10, 0.0  ;;  %v13459_v39 = vld [vmem:[#allocation55_spill] sm:$0xff] }
 0x177   : > { %v2819_v60 = vmax.f32 %v2435_v22, 0.0  ;;  %v2816_v2 = vmax.f32 %v2432_v11, 0.0  ;;  %v2818_v34 = vmax.f32 %v2434_v25, 0.0  ;;  %13458 = vst [vmem:[#allocation152_spill] sm:$0xff] %v8746_v48  ;;  %v2678_v42 = vmax.f32 %v2294_v33, 0.0 }
 0x178   : > { %13455 = vst [vmem:[#allocation150_spill] sm:$0xff] %v8739_v8  ;;  %v1389_v21 = vmul.f32 %v13394_v24, %v13459_v39  ;;  %v1401_v28 = vmul.f32 %v13394_v24, %v13460_v16  ;;  %v13461_v36 = vmax.f32 %v8574_v3, 0.0  ;;  %v13462_v35 = vmax.f32 %v8590_v32, 0.0  ;;  %v8770_v32 = vpop.permute.xlu0 %5183  ;;  %v13479_v8 = vld [vmem:[#allocation49_spill] sm:$0xff] }
 0x179   : > { %v13463_v41 = vmax.f32 %v8593_v59, 0.0  ;;  %v13464_v22 = vmax.f32 %v8596_v9, 0.0  ;;  %v933_v33 = vmul.f32 %v6772_v30, %v8746_v48  ;;  %v935_v25 = vmul.f32 %v6775_v31, %v8746_v48  ;;  %13465 = vst [vmem:[#allocation153_spill] sm:$0xff] %v8770_v32 }
 0x17a   : > { %v3101_v20 = vpack.c.bf16 %v13461_v36, %v2817_v49  ;;  %v3103_v52 = vpack.c.bf16 %v13462_v35, %v2819_v60  ;;  %v932_v43 = vmul.f32 %v13248_v38, %v8746_v48  ;;  %v2690_v3 = vmax.f32 %v2306_v0, 0.0  ;;  %5128 = vperm.xlu1 %6323, %v5062_v63   ;;  %v5064_v0 = vld [vmem:[%s12566_s5 + $0x50] sm:$0xff] }
 0x17b   : > { %v3100_v10 = vpack.c.bf16 %v13463_v41, %v2816_v2  ;;  %v3102_v11 = vpack.c.bf16 %v13464_v22, %v2818_v34  ;;  %v934_v9 = vmul.f32 %v13257_v29, %v8746_v48  ;;  %v1785_v60 = vadd.f32 %v1401_v28, %v781_v40  ;;  %v8776_v2 = vpop.permute.xlu1 %486  ;;  %v13467_v63 = vld [vmem:[#allocation128_spill] sm:$0xff] }
 0x17c   : > { %3534 = vmatprep.subr.bf16.mxu0 %v3101_v20  ;;  %3727 = vmatprep.subr.bf16.mxu1 %v3103_v52  ;;  %13466 = vst [vmem:[#allocation154_spill] sm:$0xff] %v8776_v2  ;;  %v8783_v36 = vadd.f32 %v13467_v63, %v933_v33  ;;  %v8785_v20 = vpack.c.bf16 %v2690_v3, %v2678_v42  ;;  %v13469_v52 = vld [vmem:[#allocation129_spill] sm:$0xff]  ;;  %v13472_v3 = vld [vmem:[#allocation67_spill] sm:$0xff] }
 0x17d   : > { %3535 = vmatpush1.bf16.msra.mxu0 %v3100_v10  ;;  %v1773_v35 = vadd.f32 %v1389_v21, %v769_v55  ;;  %3728 = vmatpush1.bf16.msra.mxu1 %v3102_v11  ;;  %v945_v40 = vmul.f32 %v6772_v30, %v8776_v2  ;;  %v947_v28 = vmul.f32 %v6775_v31, %v8776_v2  ;;  %v13470_v10 = vld [vmem:[#allocation130_spill] sm:$0xff]  ;;  %v13471_v63 = vld [vmem:[#allocation81_spill] sm:$0xff]  ;;  %v8803_v11 = vpop.permute.xlu0 %5193 }
 0x17e   : > { %13468 = vst [vmem:[#allocation128_spill] sm:$0xff] %v8785_v20  ;;  %v8792_v41 = vadd.f32 %v13469_v52, %v935_v25  ;;  %v8795_v22 = vadd.f32 %v13470_v10, %v932_v43  ;;  %v944_v33 = vmul.f32 %v13248_v38, %v8776_v2  ;;  %v2329_v55 = vadd.f32 %v13472_v3, %v1785_v60  ;;  %v5066_v60 = vld [vmem:[%s12566_s5 + $0x60] sm:$0xff]  ;;  %v13474_v10 = vld [vmem:[#allocation132_spill] sm:$0xff] }
 0x17f   : > { %v2317_v42 = vadd.f32 %v13471_v63, %v1773_v35  ;;  %v771_v21 = vmul.f32 %v13282_v53, %v13452_v62  ;;  %5138 = vperm.xlu1 %6323, %v5064_v0   ;;  %13473 = vst [vmem:[#allocation129_spill] sm:$0xff] %v8803_v11  ;;  %v946_v25 = vmul.f32 %v13257_v29, %v8776_v2  ;;  %v8821_v11 = vpop.permute.xlu1 %1113  ;;  %v5068_v2 = vld [vmem:[%s12566_s5 + $0x70] sm:$0xff] }
 0x180   : > { %v783_v43 = vmul.f32 %v13282_v53, %v13456_v17  ;;  %v1391_v52 = vmul.f32 %v13397_v46, %v13459_v39  ;;  %v1403_v35 = vmul.f32 %v13397_v46, %v13460_v16  ;;  %v8817_v0 = vadd.f32 %v13474_v10, %v934_v9  ;;  %13475 = vst [vmem:[#allocation130_spill] sm:$0xff] %v8821_v11 }
 0x181   : > { %v2701_v34 = vmax.f32 %v2317_v42, 0.0  ;;  %v2713_v49 = vmax.f32 %v2329_v55, 0.0  ;;  %v768_v59 = vmul.f32 %v13288_v37, %v13452_v62  ;;  %v1388_v1 = vmul.f32 %v13364_v54, %v13459_v39 }
 0x182   : > { %v1775_v32 = vadd.f32 %v1391_v52, %v771_v21  ;;  %v1787_v4 = vadd.f32 %v1403_v35, %v783_v43  ;;  %v1400_v23 = vmul.f32 %v13364_v54, %v13460_v16  ;;  %v1565_v13 = vmul.f32 %v6764_v26, %v8821_v11  ;;  %v8835_v21 = vpop.permute.xlu0 %5203 }
 0x183   : > { %v1567_v9 = vmul.f32 %v6767_v27, %v8821_v11  ;;  %v1564_v42 = vmul.f32 %v13249_v12, %v8821_v11  ;;  %v1566_v55 = vmul.f32 %v13251_v47, %v8821_v11  ;;  %5148 = vperm.xlu1 %6323, %v5066_v60   ;;  %13476 = vst [vmem:[#allocation132_spill] sm:$0xff] %v8835_v21  ;;  %v8850_v20 = vpop.permute.xlu1 %2130 }
 0x184   : > { %v2319_v43 = vadd.f32 %v13471_v63, %v1775_v32  ;;  %v2331_v52 = vadd.f32 %v13472_v3, %v1787_v4  ;;  %v780_v35 = vmul.f32 %v13288_v37, %v13456_v17  ;;  %v8843_v10 = vmul.f32 %v13292_v45, %v13452_v62  ;;  %13478 = vst [vmem:[#allocation156_spill] sm:$0xff] %v8850_v20 }
 0x185   : > { %v1949_v48 = vadd.f32 %v1565_v13, %v945_v40  ;;  %v1951_v11 = vadd.f32 %v1567_v9, %v947_v28  ;;  %v1948_v60 = vadd.f32 %v1564_v42, %v944_v33  ;;  %v1950_v14 = vadd.f32 %v1566_v55, %v946_v25 }
 0x186   : > { %v8848_v21 = vpack.c.bf16 %v2713_v49, %v2701_v34  ;;  %v2703_v32 = vmax.f32 %v2319_v43, 0.0  ;;  %v1772_v15 = vadd.f32 %v1388_v1, %v768_v59  ;;  %v1784_v4 = vadd.f32 %v1400_v23, %v780_v35  ;;  %v8864_v49 = vpop.permute.xlu0 %3329  ;;  %v13496_v34 = vld [vmem:[#allocation73_spill] sm:$0xff] }
 0x187   : > { %v8853_v5 = vadd.f32 %v13479_v8, %v1949_v48  ;;  %v8856_v62 = vadd.f32 %v13479_v8, %v1951_v11  ;;  %v8859_v61 = vadd.f32 %v13479_v8, %v1948_v60  ;;  %v8862_v13 = vadd.f32 %v13479_v8, %v1950_v14  ;;  %5158 = vperm.xlu1 %6323, %v5068_v2   ;;  %v5070_v14 = vld [vmem:[%s12566_s5 + $0x80] sm:$0xff]  ;;  %v8880_v25 = vpop.permute.xlu1 %491 }
 0x188   : > { %13477 = vst [vmem:[#allocation155_spill] sm:$0xff] %v8848_v21  ;;  %13480 = vst [vmem:[#allocation157_spill] sm:$0xff] %v8864_v49  ;;  %v2457_v1 = vadd.f32 %v8850_v20, %v8642_v51  ;;  %v2459_v23 = vadd.f32 %v8850_v20, %v8645_v18  ;;  %v2456_v48 = vadd.f32 %v8850_v20, %v8648_v58  ;;  %v2715_v40 = vmax.f32 %v2331_v52, 0.0 }
 0x189   : > { %v2458_v59 = vadd.f32 %v8850_v20, %v8677_v7  ;;  %v2316_v51 = vadd.f32 %v13471_v63, %v1772_v15  ;;  %13481 = vst [vmem:[#allocation158_spill] sm:$0xff] %v8880_v25  ;;  %v2328_v42 = vadd.f32 %v13472_v3, %v1784_v4  ;;  %v13484_v43 = vmax.f32 %v8719_v44, 0.0 }
 0x18a   : > { %v2841_v28 = vmax.f32 %v2457_v1, 0.0  ;;  %v2843_v33 = vmax.f32 %v2459_v23, 0.0  ;;  %v2840_v18 = vmax.f32 %v2456_v48, 0.0  ;;  %v8884_v9 = vpack.c.bf16 %v2715_v40, %v2703_v32  ;;  %v8887_v55 = vpop.permute.xlu0 %3334  ;;  %v5072_v32 = vld [vmem:[%s12566_s5 + $0x90] sm:$0xff] }
 0x18b   : > { %v2842_v11 = vmax.f32 %v2458_v59, 0.0  ;;  %5168 = vperm.xlu1 %6323, %v5070_v14   ;;  %13483 = vst [vmem:[#allocation160_spill] sm:$0xff] %v8887_v55  ;;  %v13485_v52 = vmax.f32 %v8722_v57, 0.0  ;;  %v13486_v60 = vmax.f32 %v8725_v50, 0.0  ;;  %v13487_v23 = vmax.f32 %v8737_v6, 0.0 }
 0x18c   : > { %13482 = vst [vmem:[#allocation159_spill] sm:$0xff] %v8884_v9  ;;  %v3113_v15 = vpack.c.bf16 %v13484_v43, %v2841_v28  ;;  %v957_v4 = vmul.f32 %v6772_v30, %v8880_v25  ;;  %v959_v44 = vmul.f32 %v6775_v31, %v8880_v25  ;;  %v956_v57 = vmul.f32 %v13248_v38, %v8880_v25  ;;  %v8914_v28 = vpop.permute.xlu1 %496 }
 0x18d   : > { %v3115_v35 = vpack.c.bf16 %v13485_v52, %v2843_v33  ;;  %v3112_v1 = vpack.c.bf16 %v13486_v60, %v2840_v18  ;;  %v3114_v48 = vpack.c.bf16 %v13487_v23, %v2842_v11  ;;  %v958_v50 = vmul.f32 %v13257_v29, %v8880_v25  ;;  %13488 = vst [vmem:[#allocation161_spill] sm:$0xff] %v8914_v28  ;;  %v13489_v33 = vld [vmem:[#allocation136_spill] sm:$0xff]  ;;  %v13490_v11 = vld [vmem:[#allocation137_spill] sm:$0xff] }
 0x18e   : > { %3536 = vmatprep.subr.bf16.mxu0 %v3113_v15  ;;  %v2700_v6 = vmax.f32 %v2316_v51, 0.0  ;;  %v782_v59 = vmul.f32 %v13292_v45, %v13456_v17  ;;  %v1390_v14 = vmul.f32 %v13377_v19, %v13459_v39  ;;  %v1402_v40 = vmul.f32 %v13377_v19, %v13460_v16  ;;  %v13491_v15 = vld [vmem:[#allocation71_spill] sm:$0xff] }
 0x18f   : > { %3729 = vmatprep.subr.bf16.mxu1 %v3115_v35  ;;  %3537 = vmatpush1.bf16.msra.mxu0 %v3112_v1  ;;  %v8917_v18 = vadd.f32 %v13489_v33, %v957_v4  ;;  %v8920_v43 = vadd.f32 %v13490_v11, %v959_v44  ;;  %v2712_v51 = vmax.f32 %v2328_v42, 0.0  ;;  %v793_v52 = vmul.f32 %v13269_v56, %v13491_v15  ;;  %v8924_v35 = vpop.permute.xlu0 %3339  ;;  %v5074_v42 = vld [vmem:[%s12566_s5 + $0xa0] sm:$0xff] }
 0x190   : > { %3730 = vmatpush1.bf16.msra.mxu1 %v3114_v48  ;;  %5178 = vperm.xlu1 %6323, %v5072_v32   ;;  %13492 = vst [vmem:[#allocation136_spill] sm:$0xff] %v8924_v35  ;;  %v969_v60 = vmul.f32 %v6772_v30, %v8914_v28  ;;  %v971_v1 = vmul.f32 %v6775_v31, %v8914_v28  ;;  %v13493_v48 = vld [vmem:[#allocation138_spill] sm:$0xff]  ;;  %v13494_v44 = vld [vmem:[#allocation139_spill] sm:$0xff] }
 0x191   : > { %v968_v23 = vmul.f32 %v13248_v38, %v8914_v28  ;;  %v8933_v4 = vadd.f32 %v13493_v48, %v956_v57  ;;  %v970_v32 = vmul.f32 %v13257_v29, %v8914_v28  ;;  %v8941_v33 = vadd.f32 %v13494_v44, %v958_v50  ;;  %v13497_v57 = vld [vmem:[#allocation58_spill] sm:$0xff] }
 0x192   : > { %v1774_v11 = vadd.f32 %v1390_v14, %v8843_v10  ;;  %v1786_v7 = vadd.f32 %v1402_v40, %v782_v59  ;;  %v8944_v58 = vpack.c.bf16 %v2712_v51, %v2700_v6  ;;  %v805_v2 = vmul.f32 %v13269_v56, %v13496_v34  ;;  %v13498_v35 = vld [vmem:[#allocation26_spill] sm:$0xff]  ;;  %v8958_v6 = vpop.permute.xlu1 %1121 }
 0x193   : > { %v1413_v48 = vmul.f32 %v13394_v24, %v13497_v57  ;;  %v1425_v55 = vmul.f32 %v13394_v24, %v13498_v35  ;;  %v795_v50 = vmul.f32 %v13282_v53, %v13491_v15  ;;  %v807_v10 = vmul.f32 %v13282_v53, %v13496_v34  ;;  %13499 = vst [vmem:[#allocation138_spill] sm:$0xff] %v8958_v6  ;;  %v8960_v59 = vpop.permute.xlu0 %3344 }
 0x194   : > { %13495 = vst [vmem:[#allocation137_spill] sm:$0xff] %v8944_v58  ;;  %v2318_v49 = vadd.f32 %v13471_v63, %v1774_v11  ;;  %v2330_v16 = vadd.f32 %v13472_v3, %v1786_v7  ;;  %5188 = vperm.xlu1 %6323, %v5074_v42   ;;  %13500 = vst [vmem:[#allocation139_spill] sm:$0xff] %v8960_v59  ;;  %v1415_v51 = vmul.f32 %v13397_v46, %v13497_v57  ;;  %v5076_v7 = vld [vmem:[%s12566_s5 + $0xb0] sm:$0xff]  ;;  %v13502_v63 = vld [vmem:[#allocation70_spill] sm:$0xff] }
 0x195   : > { %v1797_v14 = vadd.f32 %v1413_v48, %v793_v52  ;;  %v1809_v40 = vadd.f32 %v1425_v55, %v805_v2  ;;  %v1427_v44 = vmul.f32 %v13397_v46, %v13498_v35  ;;  %v1589_v11 = vmul.f32 %v6764_v26, %v8958_v6  ;;  %v13501_v59 = vld [vmem:[#allocation45_spill] sm:$0xff] }
 0x196   : > { %v1591_v42 = vmul.f32 %v6767_v27, %v8958_v6  ;;  %v1588_v52 = vmul.f32 %v13249_v12, %v8958_v6  ;;  %v1590_v2 = vmul.f32 %v13251_v47, %v8958_v6  ;;  %v2702_v55 = vmax.f32 %v2318_v49, 0.0  ;;  %v8985_v49 = vpop.permute.xlu1 %2140 }
 0x197   : > { %v2714_v48 = vmax.f32 %v2330_v16, 0.0  ;;  %v2341_v3 = vadd.f32 %v13501_v59, %v1797_v14  ;;  %v2353_v39 = vadd.f32 %v13502_v63, %v1809_v40  ;;  %v1973_v17 = vadd.f32 %v1589_v11, %v969_v60  ;;  %v8979_v20 = vpop.permute.xlu0 %3349  ;;  %13504 = vst [vmem:[#allocation162_spill] sm:$0xff] %v8985_v49  ;;  %v5078_v16 = vld [vmem:[%s12566_s5 + $0xc0] sm:$0xff] }
 0x198   : > { %v1975_v28 = vadd.f32 %v1591_v42, %v971_v1  ;;  %v1972_v25 = vadd.f32 %v1588_v52, %v968_v23  ;;  %v1974_v8 = vadd.f32 %v1590_v2, %v970_v32  ;;  %5198 = vperm.xlu1 %6323, %v5076_v7   ;;  %13503 = vst [vmem:[#allocation45_spill] sm:$0xff] %v8979_v20  ;;  %v13505_v60 = vld [vmem:[#allocation82_spill] sm:$0xff] }
 0x199   : > { %v8981_v58 = vpack.c.bf16 %v2714_v48, %v2702_v55  ;;  %v2725_v9 = vmax.f32 %v2341_v3, 0.0  ;;  %v2737_v21 = vmax.f32 %v2353_v39, 0.0  ;;  %v792_v6 = vmul.f32 %v13288_v37, %v13491_v15 }
 0x19a   : > { %v8991_v1 = vadd.f32 %v13505_v60, %v1973_v17  ;;  %v8994_v23 = vadd.f32 %v13505_v60, %v1975_v28  ;;  %v8997_v32 = vadd.f32 %v13505_v60, %v1972_v25  ;;  %v1799_v3 = vadd.f32 %v1415_v51, %v795_v50 }
 0x19b   : > { %v2481_v39 = vadd.f32 %v8985_v49, %v8783_v36  ;;  %v2483_v14 = vadd.f32 %v8985_v49, %v8792_v41  ;;  %v2480_v40 = vadd.f32 %v8985_v49, %v8795_v22  ;;  %v2482_v17 = vadd.f32 %v8985_v49, %v8817_v0  ;;  %v9013_v36 = vpop.permute.xlu0 %5238  ;;  %v9015_v22 = vpop.permute.xlu1 %501  ;;  %v5079_v0 = vld [vmem:[%s12566_s5 + $0xc8] sm:$0xff] }
 0x19c   : > { %v9011_v50 = vadd.f32 %v13505_v60, %v1974_v8  ;;  %5208 = vperm.xlu1 %6323, %v5078_v16   ;;  %13506 = vst [vmem:[#allocation163_spill] sm:$0xff] %v9013_v36  ;;  %13507 = vst [vmem:[#allocation164_spill] sm:$0xff] %v9015_v22  ;;  %v9020_v52 = vpack.c.bf16 %v2737_v21, %v2725_v9  ;;  %v1811_v2 = vadd.f32 %v1427_v44, %v807_v10  ;;  %v5082_v36 = vld [vmem:[%s12566_s5 + $0xe0] sm:$0xff] }
 0x19d   : > { %v2865_v51 = vmax.f32 %v2481_v39, 0.0  ;;  %v2867_v41 = vmax.f32 %v2483_v14, 0.0  ;;  %v2864_v11 = vmax.f32 %v2480_v40, 0.0  ;;  %v2866_v42 = vmax.f32 %v2482_v17, 0.0 }
 0x19e   : > { %v2343_v55 = vadd.f32 %v13501_v59, %v1799_v3  ;;  %v804_v8 = vmul.f32 %v13288_v37, %v13496_v34  ;;  %v13508_v48 = vmax.f32 %v8853_v5, 0.0  ;;  %v13509_v39 = vmax.f32 %v8856_v62, 0.0 }
 0x19f   : > { %v13510_v40 = vmax.f32 %v8859_v61, 0.0  ;;  %v13511_v25 = vmax.f32 %v8862_v13, 0.0  ;;  %v981_v21 = vmul.f32 %v6772_v30, %v9015_v22  ;;  %v983_v9 = vmul.f32 %v6775_v31, %v9015_v22  ;;  %v6078_v62 = vpop.permute.xlu0 %6077  ;;  %v13522_v61 = vld [vmem:[#allocation66_spill] sm:$0xff] }
 0x1a0   : > { %v3125_v16 = vpack.c.bf16 %v13508_v48, %v2865_v51  ;;  %v3127_v14 = vpack.c.bf16 %v13509_v39, %v2867_v41  ;;  %v980_v10 = vmul.f32 %v13248_v38, %v9015_v22  ;;  %v982_v5 = vmul.f32 %v13257_v29, %v9015_v22  ;;  %5213 = vperm.xlu1 %6323, %v5079_v0   ;;  %v9050_v41 = vpop.permute.xlu1 %506 }
 0x1a1   : > { %v3124_v17 = vpack.c.bf16 %v13510_v40, %v2864_v11  ;;  %v3126_v28 = vpack.c.bf16 %v13511_v25, %v2866_v42  ;;  %v2355_v13 = vadd.f32 %v13502_v63, %v1811_v2  ;;  %v1412_v44 = vmul.f32 %v13364_v54, %v13497_v57  ;;  %v13512_v25 = vld [vmem:[#allocation13_spill] sm:$0xff]  ;;  %13514 = vst [vmem:[#allocation165_spill] sm:$0xff] %v9050_v41  ;;  %v13516_v2 = vld [vmem:[#allocation146_spill] sm:$0xff] }
 0x1a2   : > { %3538 = vmatprep.subr.bf16.mxu0 %v3125_v16  ;;  %v1424_v3 = vmul.f32 %v13364_v54, %v13498_v35  ;;  %3731 = vmatprep.subr.bf16.mxu1 %v3127_v14  ;;  %v9048_v51 = vrot.slane %v6078_v62, %v13512_v25  ;;  %v5080_v11 = vld [vmem:[%s12566_s5 + $0xd0] sm:$0xff]  ;;  %v9059_v48 = vadd.f32 %v13516_v2, %v983_v9  ;;  %v2727_v16 = vmax.f32 %v2343_v55, 0.0 }
 0x1a3   : > { %3539 = vmatpush1.bf16.msra.mxu0 %v3124_v17  ;;  %v13515_v42 = vld [vmem:[#allocation145_spill] sm:$0xff]  ;;  %3732 = vmatpush1.bf16.msra.mxu1 %v3126_v28  ;;  %v993_v39 = vmul.f32 %v6772_v30, %v9050_v41  ;;  %v995_v14 = vmul.f32 %v6775_v31, %v9050_v41  ;;  %v992_v40 = vmul.f32 %v13248_v38, %v9050_v41  ;;  %v2739_v55 = vmax.f32 %v2355_v13, 0.0 }
 0x1a4   : > { %13513 = vst [vmem:[#allocation13_spill] sm:$0xff] %v9048_v51  ;;  %v9056_v0 = vadd.f32 %v13515_v42, %v981_v21  ;;  %v13517_v17 = vld [vmem:[#allocation65_spill] sm:$0xff]  ;;  %v994_v21 = vmul.f32 %v13257_v29, %v9050_v41  ;;  %v13518_v42 = vld [vmem:[#allocation95_spill] sm:$0xff]  ;;  %v1796_v28 = vadd.f32 %v1412_v44, %v792_v6  ;;  %5218 = vperm.xlu1 %6323, %v5080_v11   ;;  %v9091_v44 = vpop.permute.xlu1 %1129 }
 0x1a5   : > { %v9068_v62 = vadd.f32 %v13517_v17, %v980_v10  ;;  %v9073_v9 = vadd.f32 %v13518_v42, %v982_v5  ;;  %v1808_v2 = vadd.f32 %v1424_v3, %v804_v8  ;;  %v794_v30 = vmul.f32 %v13292_v45, %v13491_v15  ;;  %v5081_v29 = vld [vmem:[%s12566_s5 + $0xd8] sm:$0xff]  ;;  %v13519_v8 = vld [vmem:[#allocation83_spill] sm:$0xff]  ;;  %13520 = vst [vmem:[#allocation145_spill] sm:$0xff] %v9091_v44 }
 0x1a6   : > { %v806_v31 = vmul.f32 %v13292_v45, %v13496_v34  ;;  %v1414_v38 = vmul.f32 %v13377_v19, %v13497_v57  ;;  %v9084_v10 = vpack.c.bf16 %v2739_v55, %v2727_v16  ;;  %v2340_v5 = vadd.f32 %v13501_v59, %v1796_v28  ;;  %v13521_v17 = vld [vmem:[#allocation27_spill] sm:$0xff] }
 0x1a7   : > { %v1426_v6 = vmul.f32 %v13377_v19, %v13498_v35  ;;  %v817_v13 = vmul.f32 %v13269_v56, %v13519_v8  ;;  %v2352_v3 = vadd.f32 %v13502_v63, %v1808_v2  ;;  %v829_v42 = vmul.f32 %v13269_v56, %v13521_v17 }
 0x1a8   : > { %v1798_v11 = vadd.f32 %v1414_v38, %v794_v30  ;;  %v1437_v16 = vmul.f32 %v13394_v24, %v13522_v61  ;;  %v1613_v55 = vmul.f32 %v6764_v26, %v9091_v44  ;;  %v1615_v28 = vmul.f32 %v6767_v27, %v9091_v44  ;;  %5223 = vperm.xlu1 %6323, %v5081_v29  }
 0x1a9   : > { %v1612_v7 = vmul.f32 %v13249_v12, %v9091_v44  ;;  %v1614_v51 = vmul.f32 %v13251_v47, %v9091_v44  ;;  %v2724_v2 = vmax.f32 %v2340_v5, 0.0  ;;  %v2736_v30 = vmax.f32 %v2352_v3, 0.0  ;;  %v13523_v47 = vld [vmem:[#allocation31_spill] sm:$0xff]  ;;  %v9115_v5 = vpop.permute.xlu1 %2150 }
 0x1aa   : > { %v1810_v38 = vadd.f32 %v1426_v6, %v806_v31  ;;  %v2342_v20 = vadd.f32 %v13501_v59, %v1798_v11  ;;  %v1997_v26 = vadd.f32 %v1613_v55, %v993_v39  ;;  %v1999_v35 = vadd.f32 %v1615_v28, %v995_v14  ;;  %13524 = vst [vmem:[#allocation146_spill] sm:$0xff] %v9115_v5  ;;  %v13525_v11 = vld [vmem:[#allocation103_spill] sm:$0xff] }
 0x1ab   : > { %v1996_v57 = vadd.f32 %v1612_v7, %v992_v40  ;;  %v1998_v27 = vadd.f32 %v1614_v51, %v994_v21  ;;  %v9110_v34 = vpack.c.bf16 %v2736_v30, %v2724_v2  ;;  %v1449_v29 = vmul.f32 %v13394_v24, %v13523_v47  ;;  %v5083_v21 = vld [vmem:[%s12566_s5 + $0xe8] sm:$0xff] }
 0x1ac   : > { %v2354_v12 = vadd.f32 %v13502_v63, %v1810_v38  ;;  %v2726_v15 = vmax.f32 %v2342_v20, 0.0  ;;  %v1821_v31 = vadd.f32 %v1437_v16, %v817_v13  ;;  %v819_v6 = vmul.f32 %v13282_v53, %v13519_v8  ;;  %5228 = vperm.xlu1 %6323, %v5082_v36  }
 0x1ad   : > { %v831_v39 = vmul.f32 %v13282_v53, %v13521_v17  ;;  %v1439_v7 = vmul.f32 %v13397_v46, %v13522_v61  ;;  %v2505_v51 = vadd.f32 %v9115_v5, %v8917_v18  ;;  %v2507_v20 = vadd.f32 %v9115_v5, %v8920_v43  ;;  %v9137_v2 = vpop.permute.xlu1 %2160 }
 0x1ae   : > { %v2504_v14 = vadd.f32 %v9115_v5, %v8933_v4  ;;  %v2506_v40 = vadd.f32 %v9115_v5, %v8941_v33  ;;  %v2738_v13 = vmax.f32 %v2354_v12, 0.0  ;;  %v1833_v3 = vadd.f32 %v1449_v29, %v829_v42  ;;  %13526 = vst [vmem:[#allocation65_spill] sm:$0xff] %v9137_v2  ;;  %v13527_v33 = vld [vmem:[#allocation20_spill] sm:$0xff] }
 0x1af   : > { %v2365_v36 = vadd.f32 %v13525_v11, %v1821_v31  ;;  %v1451_v18 = vmul.f32 %v13397_v46, %v13523_v47  ;;  %v2889_v16 = vmax.f32 %v2505_v51, 0.0  ;;  %v2891_v55 = vmax.f32 %v2507_v20, 0.0 }
 0x1b0   : > { %v2888_v43 = vmax.f32 %v2504_v14, 0.0  ;;  %v2890_v28 = vmax.f32 %v2506_v40, 0.0  ;;  %v9139_v4 = vpack.c.bf16 %v2738_v13, %v2726_v15  ;;  %v2377_v30 = vadd.f32 %v13527_v33, %v1833_v3  ;;  %5233 = vperm.xlu1 %6323, %v5083_v21   ;;  %v5085_v15 = vld [vmem:[%s12566_s5 + $0xf8] sm:$0xff] }
 0x1b1   : > { %v2749_v38 = vmax.f32 %v2365_v36, 0.0  ;;  %v1823_v63 = vadd.f32 %v1439_v7, %v819_v6  ;;  %v13528_v42 = vmax.f32 %v8991_v1, 0.0  ;;  %v13529_v29 = vmax.f32 %v8994_v23, 0.0  ;;  %v9164_v3 = vpop.permute.xlu1 %2165 }
 0x1b2   : > { %v13530_v51 = vmax.f32 %v8997_v32, 0.0  ;;  %v13531_v14 = vmax.f32 %v9011_v50, 0.0  ;;  %v2529_v6 = vadd.f32 %v9137_v2, %v9056_v0  ;;  %v2531_v1 = vadd.f32 %v9137_v2, %v9059_v48  ;;  %13532 = vst [vmem:[#allocation95_spill] sm:$0xff] %v9164_v3 }
 0x1b3   : > { %v3137_v12 = vpack.c.bf16 %v13528_v42, %v2889_v16  ;;  %v3139_v31 = vpack.c.bf16 %v13529_v29, %v2891_v55  ;;  %v2528_v23 = vadd.f32 %v9137_v2, %v9068_v62  ;;  %v2530_v32 = vadd.f32 %v9137_v2, %v9073_v9 }
 0x1b4   : > { %v3136_v20 = vpack.c.bf16 %v13530_v51, %v2888_v43  ;;  %v3138_v40 = vpack.c.bf16 %v13531_v14, %v2890_v28  ;;  %v2761_v50 = vmax.f32 %v2377_v30, 0.0  ;;  %v1835_v7 = vadd.f32 %v1451_v18, %v831_v39  ;;  %5243 = vperm.xlu1 %6323, %v5085_v15  }
 0x1b5   : > { %3540 = vmatprep.subr.bf16.mxu0 %v3137_v12  ;;  %3733 = vmatprep.subr.bf16.mxu1 %v3139_v31  ;;  %v2367_v21 = vadd.f32 %v13525_v11, %v1823_v63  ;;  %v816_v13 = vmul.f32 %v13288_v37, %v13519_v8  ;;  %v2913_v0 = vmax.f32 %v2529_v6, 0.0  ;;  %v2915_v48 = vmax.f32 %v2531_v1, 0.0  ;;  %v6326_v1 = vld [vmem:[%s12564_s3] ss:$8 sps:$4 sm:$0xff]  }
 0x1b6   : > { %3541 = vmatpush1.bf16.msra.mxu0 %v3136_v20  ;;  %3734 = vmatpush1.bf16.msra.mxu1 %v3138_v40  ;;  %v2912_v36 = vmax.f32 %v2528_v23, 0.0  ;;  %v2914_v62 = vmax.f32 %v2530_v32, 0.0  ;;  %v2541_v9 = vadd.f32 %v9164_v3, %v1997_v26  ;;  %v2543_v16 = vadd.f32 %v9164_v3, %v1999_v35 }
 0x1b7   : > { %v2540_v39 = vadd.f32 %v9164_v3, %v1996_v57  ;;  %v2542_v63 = vadd.f32 %v9164_v3, %v1998_v27  ;;  %v9170_v18 = vpack.c.bf16 %v2761_v50, %v2749_v38  ;;  %v2379_v55 = vadd.f32 %v13527_v33, %v1835_v7  ;;  %v13533_v50 = vld [vmem:[#allocation46_spill] sm:$0xff] }
 0x1b8   : > { %v2751_v43 = vmax.f32 %v2367_v21, 0.0  ;;  %v828_v28 = vmul.f32 %v13288_v37, %v13521_v17  ;;  %v2925_v30 = vmax.f32 %v2541_v9, 0.0  ;;  %v2927_v42 = vmax.f32 %v2543_v16, 0.0 }
 0x1b9   : > { %v2924_v12 = vmax.f32 %v2540_v39, 0.0  ;;  %v2926_v29 = vmax.f32 %v2542_v63, 0.0  ;;  %v2763_v31 = vmax.f32 %v2379_v55, 0.0  ;;  %v1436_v35 = vmul.f32 %v13364_v54, %v13522_v61  ;;  %v13537_v39 = vld [vmem:[#allocation77_spill] sm:$0xff] }
 0x1ba   : > { %v1448_v57 = vmul.f32 %v13364_v54, %v13523_v47  ;;  %v818_v26 = vmul.f32 %v13292_v45, %v13519_v8  ;;  %v3149_v27 = vpack.c.bf16 %v2925_v30, %v2913_v0  ;;  %v3151_v38 = vpack.c.bf16 %v2927_v42, %v2915_v48  ;;  %v13534_v0 = vld [vmem:[#allocation54_spill] sm:$0xff]  ;;  %v13538_v30 = vld [vmem:[#allocation57_spill] sm:$0xff] }
 0x1bb   : > { %v3148_v51 = vpack.c.bf16 %v2924_v12, %v2912_v36  ;;  %v3150_v20 = vpack.c.bf16 %v2926_v29, %v2914_v62  ;;  %v9181_v14 = vpack.c.bf16 %v2763_v31, %v2751_v43  ;;  %v1820_v40 = vadd.f32 %v1436_v35, %v816_v13  ;;  %v13535_v36 = vld [vmem:[#allocation40_spill] sm:$0xff]  ;;  %v13536_v62 = vld [vmem:[#allocation85_spill] sm:$0xff] }
 0x1bc   : > { %v1832_v15 = vadd.f32 %v1448_v57, %v828_v28  ;;  %v830_v6 = vmul.f32 %v13292_v45, %v13521_v17  ;;  %3542 = vmatprep.subr.bf16.mxu0 %v3149_v27  ;;  %3735 = vmatprep.subr.bf16.mxu1 %v3151_v38  ;;  %v1438_v23 = vmul.f32 %v13377_v19, %v13522_v61  ;;  %v6327_v55 = vld [vmem:[%s12564_s3 + $0x14] ss:$8 sps:$4 sm:$0xff]  }
 0x1bd   : > { %v1450_v32 = vmul.f32 %v13377_v19, %v13523_v47  ;;  %v841_v7 = vmul.f32 %v13269_v56, %v13533_v50  ;;  %3543 = vmatpush1.bf16.msra.mxu0 %v3148_v51  ;;  %3736 = vmatpush1.bf16.msra.mxu1 %v3150_v20  ;;  %v2364_v21 = vadd.f32 %v13525_v11, %v1820_v40  ;;  %v13539_v57 = vld [vmem:[#allocation86_spill] sm:$0xff]  ;;  %v13541_v20 = vld [vmem:[#allocation32_spill] sm:$0xff]  ;;  %v13542_v40 = vld [vmem:[#allocation75_spill] sm:$0xff] }
 0x1be   : > { %v2376_v13 = vadd.f32 %v13527_v33, %v1832_v15  ;;  %v853_v48 = vmul.f32 %v13269_v56, %v13534_v0  ;;  %3898 = vmatprep.subr.bf16.mxu0 %v13535_v36  ;;  %4091 = vmatprep.subr.bf16.mxu1 %v13536_v62  ;;  %v1822_v9 = vadd.f32 %v1438_v23, %v818_v26  ;;  %v13540_v26 = vld [vmem:[#allocation51_spill] sm:$0xff]  ;;  %v6329_v36 = vld [vmem:[%s12564_s3 + $0x10] ss:$8 sps:$4 sm:$0xff]  }
 0x1bf   : > { %v1834_v16 = vadd.f32 %v1450_v32, %v830_v6  ;;  %v1461_v63 = vmul.f32 %v13394_v24, %v13537_v39  ;;  %v2748_v43 = vmax.f32 %v2364_v21, 0.0  ;;  %v1473_v42 = vmul.f32 %v13394_v24, %v13538_v30 }
 0x1c0   : > { %v2760_v28 = vmax.f32 %v2376_v13, 0.0  ;;  %v843_v12 = vmul.f32 %v13282_v53, %v13533_v50  ;;  %3545 = vmatmul.mubr.bf16.vlgmr.msra.gmra.mrb[0].mxu0 %v6326_v1  ;;  %3738 = vmatmul.mubr.bf16.vlgmr.msra.gmra.mrb[0].mxu1 %v6326_v1  ;;  %v2366_v29 = vadd.f32 %v13525_v11, %v1822_v9  ;;  %v855_v51 = vmul.f32 %v13282_v53, %v13534_v0  ;;  %v13543_v1 = vld [vmem:[#allocation68_spill] sm:$0xff] }
 0x1c1   : > { %v2378_v31 = vadd.f32 %v13527_v33, %v1834_v16  ;;  %v1845_v35 = vadd.f32 %v1461_v63, %v841_v7  ;;  %3899 = vmatpush1.bf16.msra.mxu0 %v13539_v57  ;;  %4092 = vmatpush1.bf16.msra.mxu1 %v13540_v26  ;;  %v1857_v38 = vadd.f32 %v1473_v42, %v853_v48  ;;  %v13544_v7 = vld [vmem:[#allocation99_spill] sm:$0xff] }
 0x1c2   : > { %v9213_v27 = vpack.c.bf16 %v2760_v28, %v2748_v43  ;;  %3900 = vmatprep.subr.bf16.mxu0 %v13541_v20  ;;  %4093 = vmatprep.subr.bf16.mxu1 %v13542_v40  ;;  %v2750_v15 = vmax.f32 %v2366_v29, 0.0  ;;  %v1463_v32 = vmul.f32 %v13397_v46, %v13537_v39  ;;  %v1475_v13 = vmul.f32 %v13397_v46, %v13538_v30  ;;  %v13546_v43 = vld [vmem:[#allocation78_spill] sm:$0xff]  ;;  %v13548_v57 = vld [vmem:[#allocation59_spill] sm:$0xff] }
 0x1c3   : > { %v2762_v6 = vmax.f32 %v2378_v31, 0.0  ;;  %v2389_v23 = vadd.f32 %v13543_v1, %v1845_v35  ;;  %3554 = vmatprep.mubr.bf16.mxu0 %v6327_v55  ;;  %3747 = vmatprep.mubr.bf16.mxu1 %v6327_v55  ;;  %v2401_v21 = vadd.f32 %v13544_v7, %v1857_v38  ;;  %v840_v48 = vmul.f32 %v13288_v37, %v13533_v50  ;;  %v13545_v55 = vld [vmem:[#allocation91_spill] sm:$0xff]  ;;  %v13547_v35 = vld [vmem:[#allocation92_spill] sm:$0xff] }
 0x1c4   : > { %v1847_v16 = vadd.f32 %v1463_v32, %v843_v12  ;;  %v852_v63 = vmul.f32 %v13288_v37, %v13534_v0  ;;  %v1859_v42 = vadd.f32 %v1475_v13, %v855_v51  ;;  %v1460_v29 = vmul.f32 %v13364_v54, %v13537_v39  ;;  %v6330_v51 = vld [vmem:[%s12564_s3 + $0x24] ss:$8 sps:$4 sm:$0xff]  }
 0x1c5   : > { %v9230_v62 = vpack.c.bf16 %v2762_v6, %v2750_v15  ;;  %v2773_v9 = vmax.f32 %v2389_v23, 0.0  ;;  %3901 = vmatpush1.bf16.msra.mxu0 %v13545_v55  ;;  %4094 = vmatpush1.bf16.msra.mxu1 %v13546_v43  ;;  %v2785_v28 = vmax.f32 %v2401_v21, 0.0  ;;  %v1472_v31 = vmul.f32 %v13364_v54, %v13538_v30  ;;  %v13549_v13 = vld [vmem:[#allocation104_spill] sm:$0xff]  ;;  %v13550_v55 = vld [vmem:[#allocation94_spill] sm:$0xff] }
 0x1c6   : > { %3902 = vmatprep.subr.bf16.mxu0 %v13547_v35  ;;  %4095 = vmatprep.subr.bf16.mxu1 %v13548_v57  ;;  %v2391_v12 = vadd.f32 %v13543_v1, %v1847_v16  ;;  %v842_v26 = vmul.f32 %v13292_v45, %v13533_v50  ;;  %v854_v38 = vmul.f32 %v13292_v45, %v13534_v0  ;;  %v13555_v57 = vld [vmem:[#allocation89_spill] sm:$0xff] }
 0x1c7   : > { %v9250_v20 = vpack.c.bf16 %v2785_v28, %v2773_v9  ;;  %v2403_v40 = vadd.f32 %v13544_v7, %v1859_v42  ;;  %v1844_v15 = vadd.f32 %v1460_v29, %v840_v48  ;;  %v1856_v6 = vadd.f32 %v1472_v31, %v852_v63  ;;  %v13551_v9 = vld [vmem:[#allocation80_spill] sm:$0xff]  ;;  %v13553_v42 = vld [vmem:[#allocation107_spill] sm:$0xff] }
 0x1c8   : > { %3555 = vmatmul.mubr.bf16.gmra.mrb[4].mxu0 %v6329_v36  ;;  %3748 = vmatmul.mubr.bf16.gmra.mrb[4].mxu1 %v6329_v36  ;;  %v2775_v23 = vmax.f32 %v2391_v12, 0.0  ;;  %v1462_v32 = vmul.f32 %v13377_v19, %v13537_v39  ;;  %v1474_v21 = vmul.f32 %v13377_v19, %v13538_v30  ;;  %v865_v16 = vmul.f32 %v13269_v56, %v13549_v13  ;;  %v13552_v36 = vld [vmem:[#allocation111_spill] sm:$0xff]  ;;  %v13554_v29 = vld [vmem:[#allocation108_spill] sm:$0xff] }
 0x1c9   : > { %3903 = vmatpush1.bf16.msra.mxu0 %v13550_v55  ;;  %4096 = vmatpush1.bf16.msra.mxu1 %v13551_v9  ;;  %v2787_v43 = vmax.f32 %v2403_v40, 0.0  ;;  %v2388_v48 = vadd.f32 %v13543_v1, %v1844_v15  ;;  %v2400_v63 = vadd.f32 %v13544_v7, %v1856_v6  ;;  %v877_v28 = vmul.f32 %v13269_v56, %v13552_v36  ;;  %v13556_v9 = vld [vmem:[#allocation112_spill] sm:$0xff]  ;;  %v13560_v30 = vld [vmem:[#allocation115_spill] sm:$0xff] }
 0x1ca   : > { %3904 = vmatprep.subr.bf16.mxu0 %v13553_v42  ;;  %4097 = vmatprep.subr.bf16.mxu1 %v13554_v29  ;;  %v1846_v31 = vadd.f32 %v1462_v32, %v842_v26  ;;  %v1858_v35 = vadd.f32 %v1474_v21, %v854_v38  ;;  %v1485_v12 = vmul.f32 %v13394_v24, %v13555_v57  ;;  %v6332_v42 = vld [vmem:[%s12564_s3 + $0x20] ss:$8 sps:$4 sm:$0xff]  }
 0x1cb   : > { %3564 = vmatprep.mubr.bf16.mxu0 %v6330_v51  ;;  %3757 = vmatprep.mubr.bf16.mxu1 %v6330_v51  ;;  %v9269_v55 = vpack.c.bf16 %v2787_v43, %v2775_v23  ;;  %v2772_v40 = vmax.f32 %v2388_v48, 0.0  ;;  %v2784_v15 = vmax.f32 %v2400_v63, 0.0  ;;  %v1497_v6 = vmul.f32 %v13394_v24, %v13556_v9  ;;  %v13557_v51 = vld [vmem:[#allocation141_spill] sm:$0xff]  ;;  %v13558_v23 = vld [vmem:[#allocation135_spill] sm:$0xff]  ;;  %v13559_v63 = vld [vmem:[#allocation100_spill] sm:$0xff] }
 0x1cc   : > { %v2390_v29 = vadd.f32 %v13543_v1, %v1846_v31  ;;  %v2402_v26 = vadd.f32 %v13544_v7, %v1858_v35  ;;  %v1869_v38 = vadd.f32 %v1485_v12, %v865_v16  ;;  %v867_v32 = vmul.f32 %v13282_v53, %v13549_v13  ;;  %v13561_v16 = vld [vmem:[#allocation116_spill] sm:$0xff] }
 0x1cd   : > { %3905 = vmatpush1.bf16.msra.mxu0 %v13557_v51  ;;  %4098 = vmatpush1.bf16.msra.mxu1 %v13558_v23  ;;  %v9282_v21 = vpack.c.bf16 %v2784_v15, %v2772_v40  ;;  %v1881_v43 = vadd.f32 %v1497_v6, %v877_v28  ;;  %v879_v48 = vmul.f32 %v13282_v53, %v13552_v36  ;;  %v6333_v40 = vld [vmem:[%s12564_s3 + $0x34] ss:$8 sps:$4 sm:$0xff]  }
 0x1ce   : > { %3906 = vmatprep.subr.bf16.mxu0 %v13559_v63  ;;  %4099 = vmatprep.subr.bf16.mxu1 %v13560_v30  ;;  %v2774_v31 = vmax.f32 %v2390_v29, 0.0  ;;  %v2786_v35 = vmax.f32 %v2402_v26, 0.0  ;;  %v2413_v12 = vadd.f32 %v13561_v16, %v1869_v38  ;;  %v1487_v7 = vmul.f32 %v13397_v46, %v13555_v57  ;;  %v13562_v15 = vld [vmem:[#allocation106_spill] sm:$0xff]  ;;  %v13563_v63 = vld [vmem:[#allocation23_spill] sm:$0xff] }
 0x1cf   : > { %v2425_v28 = vadd.f32 %v13562_v15, %v1881_v43  ;;  %v1499_v6 = vmul.f32 %v13397_v46, %v13556_v9  ;;  %v864_v51 = vmul.f32 %v13288_v37, %v13549_v13  ;;  %v876_v30 = vmul.f32 %v13288_v37, %v13552_v36  ;;  %v13564_v43 = vld [vmem:[#allocation121_spill] sm:$0xff] }
 0x1d0   : > { %3565 = vmatmul.mubr.bf16.gmra.mrb[8].mxu0 %v6332_v42  ;;  %3758 = vmatmul.mubr.bf16.gmra.mrb[8].mxu1 %v6332_v42  ;;  %v9301_v29 = vpack.c.bf16 %v2786_v35, %v2774_v31  ;;  %v2797_v26 = vmax.f32 %v2413_v12, 0.0  ;;  %v1871_v38 = vadd.f32 %v1487_v7, %v867_v32  ;;  %v1484_v23 = vmul.f32 %v13364_v54, %v13555_v57  ;;  %v13565_v42 = vld [vmem:[#allocation126_spill] sm:$0xff]  ;;  %v13566_v31 = vld [vmem:[#allocation148_spill] sm:$0xff] }
 0x1d1   : > { %3907 = vmatpush1.bf16.msra.mxu0 %v13563_v63  ;;  %4100 = vmatpush1.bf16.msra.mxu1 %v13564_v43  ;;  %v2809_v1 = vmax.f32 %v2425_v28, 0.0  ;;  %v1883_v39 = vadd.f32 %v1499_v6, %v879_v48  ;;  %v1496_v0 = vmul.f32 %v13364_v54, %v13556_v9  ;;  %v866_v50 = vmul.f32 %v13292_v45, %v13549_v13  ;;  %v6335_v6 = vld [vmem:[%s12564_s3 + $0x30] ss:$8 sps:$4 sm:$0xff]  }
 0x1d2   : > { %3908 = vmatprep.subr.bf16.mxu0 %v13565_v42  ;;  %4101 = vmatprep.subr.bf16.mxu1 %v13566_v31  ;;  %v2415_v7 = vadd.f32 %v13561_v16, %v1871_v38  ;;  %v1868_v32 = vadd.f32 %v1484_v23, %v864_v51  ;;  %v878_v35 = vmul.f32 %v13292_v45, %v13552_v36  ;;  %v13567_v23 = vld [vmem:[#allocation150_spill] sm:$0xff]  ;;  %v13571_v31 = vld [vmem:[#allocation155_spill] sm:$0xff]  ;;  %v13573_v36 = vld [vmem:[#allocation96_spill] sm:$0xff] }
 0x1d3   : > { %3574 = vmatprep.mubr.bf16.mxu0 %v6333_v40  ;;  %3767 = vmatprep.mubr.bf16.mxu1 %v6333_v40  ;;  %v9316_v12 = vpack.c.bf16 %v2809_v1, %v2797_v26  ;;  %v2427_v48 = vadd.f32 %v13562_v15, %v1883_v39  ;;  %v1880_v28 = vadd.f32 %v1496_v0, %v876_v30  ;;  %v13568_v1 = vld [vmem:[#allocation128_spill] sm:$0xff]  ;;  %v13570_v26 = vld [vmem:[#allocation143_spill] sm:$0xff]  ;;  %v13574_v13 = vld [vmem:[#allocation110_spill] sm:$0xff] }
 0x1d4   : > { %v2799_v63 = vmax.f32 %v2415_v7, 0.0  ;;  %v2412_v43 = vadd.f32 %v13561_v16, %v1868_v32  ;;  %v1486_v51 = vmul.f32 %v13377_v19, %v13555_v57  ;;  %v1498_v38 = vmul.f32 %v13377_v19, %v13556_v9  ;;  %v13569_v39 = vld [vmem:[#allocation28_spill] sm:$0xff]  ;;  %v13572_v7 = vld [vmem:[#allocation159_spill] sm:$0xff] }
 0x1d5   : > { %3909 = vmatpush1.bf16.msra.mxu0 %v13567_v23  ;;  %4102 = vmatpush1.bf16.msra.mxu1 %v13568_v1  ;;  %v2811_v40 = vmax.f32 %v2427_v48, 0.0  ;;  %v2424_v0 = vadd.f32 %v13562_v15, %v1880_v28  ;;  %v889_v30 = vmul.f32 %v13269_v56, %v13569_v39  ;;  %v901_v42 = vmul.f32 %v13269_v56, %v13570_v26  ;;  %v6336_v48 = vld [vmem:[%s12564_s3 + $0x44] ss:$8 sps:$4 sm:$0xff]  }
 0x1d6   : > { %3910 = vmatprep.subr.bf16.mxu0 %v13571_v31  ;;  %4103 = vmatprep.subr.bf16.mxu1 %v13572_v7  ;;  %v2796_v32 = vmax.f32 %v2412_v43, 0.0  ;;  %v1870_v57 = vadd.f32 %v1486_v51, %v866_v50  ;;  %v1882_v9 = vadd.f32 %v1498_v38, %v878_v35  ;;  %v1509_v23 = vmul.f32 %v13394_v24, %v13573_v36  ;;  %v13575_v51 = vld [vmem:[#allocation137_spill] sm:$0xff] }
 0x1d7   : > { %v9341_v28 = vpack.c.bf16 %v2811_v40, %v2799_v63  ;;  %v2808_v1 = vmax.f32 %v2424_v0, 0.0  ;;  %v1521_v33 = vmul.f32 %v13394_v24, %v13574_v13  ;;  %v891_v31 = vmul.f32 %v13282_v53, %v13569_v39 }
 0x1d8   : > { %3575 = vmatmul.mubr.bf16.gmra.mrb[12].mxu0 %v6335_v6  ;;  %3768 = vmatmul.mubr.bf16.gmra.mrb[12].mxu1 %v6335_v6  ;;  %v2414_v50 = vadd.f32 %v13561_v16, %v1870_v57  ;;  %v2426_v35 = vadd.f32 %v13562_v15, %v1882_v9  ;;  %v1893_v43 = vadd.f32 %v1509_v23, %v889_v30  ;;  %v13576_v57 = vld [vmem:[#allocation149_spill] sm:$0xff] }
 0x1d9   : > { %3911 = vmatpush1.bf16.msra.mxu0 %v13575_v51  ;;  %4104 = vmatpush1.bf16.msra.mxu1 %v8981_v58  ;;  %v9351_v63 = vpack.c.bf16 %v2808_v1, %v2796_v32  ;;  %v1905_v38 = vadd.f32 %v1521_v33, %v901_v42  ;;  %v903_v40 = vmul.f32 %v13282_v53, %v13570_v26  ;;  %v13577_v58 = vld [vmem:[#allocation72_spill] sm:$0xff] }
 0x1da   : > { %3912 = vmatprep.subr.bf16.mxu0 %v9020_v52  ;;  %4105 = vmatprep.subr.bf16.mxu1 %v9084_v10  ;;  %v2798_v6 = vmax.f32 %v2414_v50, 0.0  ;;  %v2810_v0 = vmax.f32 %v2426_v35, 0.0  ;;  %v2437_v7 = vadd.f32 %v13576_v57, %v1893_v43  ;;  %v1511_v9 = vmul.f32 %v13397_v46, %v13573_v36  ;;  %v6338_v52 = vld [vmem:[%s12564_s3 + $0x40] ss:$8 sps:$4 sm:$0xff]  }
 0x1db   : > { %3584 = vmatprep.mubr.bf16.mxu0 %v6336_v48  ;;  %3777 = vmatprep.mubr.bf16.mxu1 %v6336_v48  ;;  %v2449_v30 = vadd.f32 %v13577_v58, %v1905_v38  ;;  %v1523_v33 = vmul.f32 %v13397_v46, %v13574_v13  ;;  %v888_v42 = vmul.f32 %v13288_v37, %v13569_v39 }
 0x1dc   : > { %v9368_v10 = vpack.c.bf16 %v2810_v0, %v2798_v6  ;;  %v2821_v32 = vmax.f32 %v2437_v7, 0.0  ;;  %v1895_v23 = vadd.f32 %v1511_v9, %v891_v31  ;;  %v900_v1 = vmul.f32 %v13288_v37, %v13570_v26  ;;  %v13578_v9 = vld [vmem:[#allocation117_spill] sm:$0xff] }
 0x1dd   : > { %3913 = vmatpush1.bf16.msra.mxu0 %v9110_v34  ;;  %4106 = vmatpush1.bf16.msra.mxu1 %v9139_v4  ;;  %v2833_v48 = vmax.f32 %v2449_v30, 0.0  ;;  %v1907_v50 = vadd.f32 %v1523_v33, %v903_v40  ;;  %v1508_v35 = vmul.f32 %v13364_v54, %v13573_v36  ;;  %v1520_v43 = vmul.f32 %v13364_v54, %v13574_v13  ;;  %v6339_v4 = vld [vmem:[%s12564_s3 + $0x54] ss:$8 sps:$4 sm:$0xff]  }
 0x1de   : > { %3914 = vmatprep.subr.bf16.mxu0 %v9170_v18  ;;  %4107 = vmatprep.subr.bf16.mxu1 %v9181_v14  ;;  %v2439_v31 = vadd.f32 %v13576_v57, %v1895_v23  ;;  %v890_v51 = vmul.f32 %v13292_v45, %v13569_v39  ;;  %v902_v34 = vmul.f32 %v13292_v45, %v13570_v26 }
 0x1df   : > { %v3105_v38 = vpack.c.bf16 %v2833_v48, %v2821_v32  ;;  %v2451_v40 = vadd.f32 %v13577_v58, %v1907_v50  ;;  %v1892_v6 = vadd.f32 %v1508_v35, %v888_v42  ;;  %v1904_v0 = vadd.f32 %v1520_v43, %v900_v1  ;;  %v13580_v50 = vld [vmem:[#allocation101_spill] sm:$0xff] }
 0x1e0   : > { %3585 = vmatmul.mubr.bf16.gmra.mrb[16].mxu0 %v6338_v52  ;;  %3778 = vmatmul.mubr.bf16.gmra.mrb[16].mxu1 %v6338_v52  ;;  %v2823_v18 = vmax.f32 %v2439_v31, 0.0  ;;  %v1510_v14 = vmul.f32 %v13377_v19, %v13573_v36  ;;  %v1522_v7 = vmul.f32 %v13377_v19, %v13574_v13  ;;  %v913_v30 = vmul.f32 %v13269_v56, %v13578_v9  ;;  %v13579_v52 = vld [vmem:[#allocation120_spill] sm:$0xff]  ;;  %v13581_v31 = vld [vmem:[#allocation123_spill] sm:$0xff] }
 0x1e1   : > { %3915 = vmatpush1.bf16.msra.mxu0 %v9213_v27  ;;  %4108 = vmatpush1.bf16.msra.mxu1 %v9230_v62  ;;  %v2835_v33 = vmax.f32 %v2451_v40, 0.0  ;;  %v2436_v42 = vadd.f32 %v13576_v57, %v1892_v6  ;;  %v2448_v32 = vadd.f32 %v13577_v58, %v1904_v0  ;;  %v925_v23 = vmul.f32 %v13269_v56, %v13579_v52  ;;  %v6341_v6 = vld [vmem:[%s12564_s3 + $0x50] ss:$8 sps:$4 sm:$0xff]  }
 0x1e2   : > { %3916 = vmatprep.subr.bf16.mxu0 %v9250_v20  ;;  %4109 = vmatprep.subr.bf16.mxu1 %v9269_v55  ;;  %v1894_v1 = vadd.f32 %v1510_v14, %v890_v51  ;;  %v1906_v48 = vadd.f32 %v1522_v7, %v902_v34  ;;  %v1533_v35 = vmul.f32 %v13394_v24, %v13580_v50 }
 0x1e3   : > { %3594 = vmatprep.mubr.bf16.mxu0 %v6339_v4  ;;  %3787 = vmatprep.mubr.bf16.mxu1 %v6339_v4  ;;  %v3107_v27 = vpack.c.bf16 %v2835_v33, %v2823_v18  ;;  %v2820_v62 = vmax.f32 %v2436_v42, 0.0  ;;  %v2832_v43 = vmax.f32 %v2448_v32, 0.0  ;;  %v1545_v40 = vmul.f32 %v13394_v24, %v13581_v31  ;;  %v13582_v33 = vld [vmem:[#allocation156_spill] sm:$0xff]  ;;  %v13583_v32 = vld [vmem:[#allocation74_spill] sm:$0xff] }
 0x1e4   : > { %v2438_v20 = vadd.f32 %v13576_v57, %v1894_v1  ;;  %v2450_v55 = vadd.f32 %v13577_v58, %v1906_v48  ;;  %v1917_v51 = vadd.f32 %v1533_v35, %v913_v30  ;;  %v915_v34 = vmul.f32 %v13282_v53, %v13578_v9 }
 0x1e5   : > { %3917 = vmatpush1.bf16.msra.mxu0 %v9282_v21  ;;  %4110 = vmatpush1.bf16.msra.mxu1 %v9301_v29  ;;  %v3104_v4 = vpack.c.bf16 %v2832_v43, %v2820_v62  ;;  %v1929_v0 = vadd.f32 %v1545_v40, %v925_v23  ;;  %v927_v18 = vmul.f32 %v13282_v53, %v13579_v52  ;;  %v6342_v23 = vld [vmem:[%s12564_s3 + $0x64] ss:$8 sps:$4 sm:$0xff]  }
 0x1e6   : > { %3918 = vmatprep.subr.bf16.mxu0 %v9316_v12  ;;  %4111 = vmatprep.subr.bf16.mxu1 %v9341_v28  ;;  %v2822_v14 = vmax.f32 %v2438_v20, 0.0  ;;  %v2834_v7 = vmax.f32 %v2450_v55, 0.0  ;;  %v2461_v30 = vadd.f32 %v13582_v33, %v1917_v51  ;;  %v1535_v42 = vmul.f32 %v13397_v46, %v13580_v50 }
 0x1e7   : > { %v2473_v21 = vadd.f32 %v13583_v32, %v1929_v0  ;;  %v1547_v29 = vmul.f32 %v13397_v46, %v13581_v31  ;;  %v912_v12 = vmul.f32 %v13288_v37, %v13578_v9  ;;  %v924_v28 = vmul.f32 %v13288_v37, %v13579_v52 }
 0x1e8   : > { %3595 = vmatmul.mubr.bf16.gmra.mrb[20].mxu0 %v6341_v6  ;;  %3788 = vmatmul.mubr.bf16.gmra.mrb[20].mxu1 %v6341_v6  ;;  %v3106_v1 = vpack.c.bf16 %v2834_v7, %v2822_v14  ;;  %v2845_v48 = vmax.f32 %v2461_v30, 0.0  ;;  %v1919_v35 = vadd.f32 %v1535_v42, %v915_v34  ;;  %v1532_v62 = vmul.f32 %v13364_v54, %v13580_v50  ;;  %v6344_v14 = vld [vmem:[%s12564_s3 + $0x60] ss:$8 sps:$4 sm:$0xff]  }
 0x1e9   : > { %3919 = vmatpush1.bf16.msra.mxu0 %v9351_v63  ;;  %4112 = vmatpush1.bf16.msra.mxu1 %v9368_v10  ;;  %v2857_v43 = vmax.f32 %v2473_v21, 0.0  ;;  %v1931_v40 = vadd.f32 %v1547_v29, %v927_v18  ;;  %v1544_v20 = vmul.f32 %v13364_v54, %v13581_v31  ;;  %v914_v55 = vmul.f32 %v13292_v45, %v13578_v9  ;;  %v13584_v21 = vld [vmem:[#allocation152_spill] sm:$0xff] }
 0x1ea   : > { %3920 = vmatprep.subr.bf16.mxu0 %v3105_v38  ;;  %4113 = vmatprep.subr.bf16.mxu1 %v3107_v27  ;;  %v2463_v6 = vadd.f32 %v13582_v33, %v1919_v35  ;;  %v1916_v51 = vadd.f32 %v1532_v62, %v912_v12  ;;  %v926_v34 = vmul.f32 %v13292_v45, %v13579_v52  ;;  %v13586_v62 = vld [vmem:[#allocation113_spill] sm:$0xff] }
 0x1eb   : > { %v3117_v0 = vpack.c.bf16 %v2857_v43, %v2845_v48  ;;  %v2475_v63 = vadd.f32 %v13583_v32, %v1931_v40  ;;  %3604 = vmatprep.mubr.bf16.mxu0 %v6342_v23  ;;  %3797 = vmatprep.mubr.bf16.mxu1 %v6342_v23  ;;  %v1928_v10 = vadd.f32 %v1544_v20, %v924_v28  ;;  %v13585_v23 = vld [vmem:[#allocation154_spill] sm:$0xff] }
 0x1ec   : > { %v2847_v18 = vmax.f32 %v2463_v6, 0.0  ;;  %v2460_v38 = vadd.f32 %v13582_v33, %v1916_v51  ;;  %v1534_v27 = vmul.f32 %v13377_v19, %v13580_v50  ;;  %v1546_v7 = vmul.f32 %v13377_v19, %v13581_v31  ;;  %v13587_v20 = vld [vmem:[#allocation130_spill] sm:$0xff] }
 0x1ed   : > { %3921 = vmatpush1.bf16.msra.mxu0 %v3104_v4  ;;  %4114 = vmatpush1.bf16.msra.mxu1 %v3106_v1  ;;  %v2859_v30 = vmax.f32 %v2475_v63, 0.0  ;;  %v2472_v42 = vadd.f32 %v13583_v32, %v1928_v10  ;;  %v937_v29 = vmul.f32 %v13269_v56, %v13584_v21  ;;  %v949_v12 = vmul.f32 %v13269_v56, %v13585_v23  ;;  %v6345_v4 = vld [vmem:[%s12564_s3 + $0x74] ss:$8 sps:$4 sm:$0xff]  }
 0x1ee   : > { %3922 = vmatprep.subr.bf16.mxu0 %v3117_v0  ;;  %v2844_v28 = vmax.f32 %v2460_v38, 0.0  ;;  %v1918_v48 = vadd.f32 %v1534_v27, %v914_v55  ;;  %v1930_v35 = vadd.f32 %v1546_v7, %v926_v34  ;;  %v1557_v43 = vmul.f32 %v13394_v24, %v13586_v62 }
 0x1ef   : > { %v3119_v1 = vpack.c.bf16 %v2859_v30, %v2847_v18  ;;  %v2856_v40 = vmax.f32 %v2472_v42, 0.0  ;;  %v1569_v6 = vmul.f32 %v13394_v24, %v13587_v20  ;;  %v939_v51 = vmul.f32 %v13282_v53, %v13584_v21  ;;  %v13588_v42 = vld [vmem:[#allocation49_spill] sm:$0xff] }
 0x1f0   : > { %3605 = vmatmul.mubr.bf16.gmra.mrb[24].mxu0 %v6344_v14  ;;  %3798 = vmatmul.mubr.bf16.gmra.mrb[24].mxu1 %v6344_v14  ;;  %v2462_v55 = vadd.f32 %v13582_v33, %v1918_v48  ;;  %v2474_v34 = vadd.f32 %v13583_v32, %v1930_v35  ;;  %v1941_v0 = vadd.f32 %v1557_v43, %v937_v29 }
 0x1f1   : > { %4115 = vmatprep.subr.bf16.mxu1 %v3119_v1  ;;  %v3116_v63 = vpack.c.bf16 %v2856_v40, %v2844_v28  ;;  %v1953_v10 = vadd.f32 %v1569_v6, %v949_v12  ;;  %v951_v18 = vmul.f32 %v13282_v53, %v13585_v23  ;;  %v1559_v38 = vmul.f32 %v13397_v46, %v13586_v62 }
 0x1f2   : > { %v2846_v27 = vmax.f32 %v2462_v55, 0.0  ;;  %v2858_v7 = vmax.f32 %v2474_v34, 0.0  ;;  %v2485_v30 = vadd.f32 %v8985_v49, %v1941_v0  ;;  %v1571_v14 = vmul.f32 %v13397_v46, %v13587_v20  ;;  %3614 = vmatprep.mubr.bf16.mxu0 %v6345_v4  ;;  %3807 = vmatprep.mubr.bf16.mxu1 %v6345_v4  ;;  %v6347_v4 = vld [vmem:[%s12564_s3 + $0x70] ss:$8 sps:$4 sm:$0xff]  }
 0x1f3   : > { %3923 = vmatpush1.bf16.msra.mxu0 %v3116_v63  ;;  %v2497_v29 = vadd.f32 %v13588_v42, %v1953_v10  ;;  %v1943_v28 = vadd.f32 %v1559_v38, %v939_v51  ;;  %v936_v12 = vmul.f32 %v13288_v37, %v13584_v21  ;;  %v948_v48 = vmul.f32 %v13288_v37, %v13585_v23  ;;  %v6348_v38 = vld [vmem:[%s12564_s3 + $0x84] ss:$8 sps:$4 sm:$0xff]  }
 0x1f4   : > { %v3118_v35 = vpack.c.bf16 %v2858_v7, %v2846_v27  ;;  %v2869_v43 = vmax.f32 %v2485_v30, 0.0  ;;  %v1955_v1 = vadd.f32 %v1571_v14, %v951_v18  ;;  %v1556_v40 = vmul.f32 %v13364_v54, %v13586_v62 }
 0x1f5   : > { %v2881_v6 = vmax.f32 %v2497_v29, 0.0  ;;  %v2487_v55 = vadd.f32 %v8985_v49, %v1943_v28  ;;  %v1568_v51 = vmul.f32 %v13364_v54, %v13587_v20  ;;  %v938_v34 = vmul.f32 %v13292_v45, %v13584_v21 }
 0x1f6   : > { %4116 = vmatpush1.bf16.msra.mxu1 %v3118_v35  ;;  %v2499_v0 = vadd.f32 %v13588_v42, %v1955_v1  ;;  %v1940_v63 = vadd.f32 %v1556_v40, %v936_v12  ;;  %v950_v10 = vmul.f32 %v13292_v45, %v13585_v23  ;;  %v1558_v18 = vmul.f32 %v13377_v19, %v13586_v62  ;;  %v13589_v35 = vld [vmem:[#allocation158_spill] sm:$0xff]  ;;  %v13590_v23 = vld [vmem:[#allocation161_spill] sm:$0xff] }
 0x1f7   : > { %v3129_v27 = vpack.c.bf16 %v2881_v6, %v2869_v43  ;;  %v2871_v7 = vmax.f32 %v2487_v55, 0.0  ;;  %v1952_v30 = vadd.f32 %v1568_v51, %v948_v48  ;;  %v1570_v14 = vmul.f32 %v13377_v19, %v13587_v20  ;;  %v13591_v48 = vld [vmem:[#allocation125_spill] sm:$0xff] }
 0x1f8   : > { %v2883_v29 = vmax.f32 %v2499_v0, 0.0  ;;  %v2484_v28 = vadd.f32 %v8985_v49, %v1940_v63  ;;  %v1942_v12 = vadd.f32 %v1558_v18, %v938_v34  ;;  %v961_v1 = vmul.f32 %v13269_v56, %v13589_v35  ;;  %3615 = vmatmul.mubr.bf16.gmra.mrb[28].mxu0 %v6347_v4  ;;  %3808 = vmatmul.mubr.bf16.gmra.mrb[28].mxu1 %v6347_v4  ;;  %v13592_v34 = vld [vmem:[#allocation138_spill] sm:$0xff] }
 0x1f9   : > { %3924 = vmatprep.subr.bf16.mxu0 %v3129_v27  ;;  %v2496_v40 = vadd.f32 %v13588_v42, %v1952_v30  ;;  %v1954_v62 = vadd.f32 %v1570_v14, %v950_v10  ;;  %v973_v43 = vmul.f32 %v13269_v56, %v13590_v23  ;;  %v1581_v6 = vmul.f32 %v13394_v24, %v13591_v48 }
 0x1fa   : > { %v3131_v55 = vpack.c.bf16 %v2883_v29, %v2871_v7  ;;  %v2868_v51 = vmax.f32 %v2484_v28, 0.0  ;;  %v2486_v0 = vadd.f32 %v8985_v49, %v1942_v12  ;;  %v1593_v63 = vmul.f32 %v13394_v24, %v13592_v34  ;;  %3624 = vmatprep.mubr.bf16.mxu0 %v6348_v38  ;;  %3817 = vmatprep.mubr.bf16.mxu1 %v6348_v38  ;;  %v6350_v38 = vld [vmem:[%s12564_s3 + $0x80] ss:$8 sps:$4 sm:$0xff]  }
 0x1fb   : > { %v2880_v4 = vmax.f32 %v2496_v40, 0.0  ;;  %v2498_v18 = vadd.f32 %v13588_v42, %v1954_v62  ;;  %v1965_v27 = vadd.f32 %v1581_v6, %v961_v1  ;;  %v963_v10 = vmul.f32 %v13282_v53, %v13589_v35 }
 0x1fc   : > { %4117 = vmatprep.subr.bf16.mxu1 %v3131_v55  ;;  %v2870_v30 = vmax.f32 %v2486_v0, 0.0  ;;  %v1977_v14 = vadd.f32 %v1593_v63, %v973_v43  ;;  %v975_v7 = vmul.f32 %v13282_v53, %v13590_v23  ;;  %v1583_v29 = vmul.f32 %v13397_v46, %v13591_v48  ;;  %v6351_v0 = vld [vmem:[%s12564_s3 + $0x94] ss:$8 sps:$4 sm:$0xff]  }
 0x1fd   : > { %v3128_v28 = vpack.c.bf16 %v2880_v4, %v2868_v51  ;;  %v2882_v12 = vmax.f32 %v2498_v18, 0.0  ;;  %v2509_v62 = vadd.f32 %v9115_v5, %v1965_v27  ;;  %v1595_v1 = vmul.f32 %v13397_v46, %v13592_v34 }
 0x1fe   : > { %v2521_v40 = vadd.f32 %v13505_v60, %v1977_v14  ;;  %v1967_v43 = vadd.f32 %v1583_v29, %v963_v10  ;;  %v960_v6 = vmul.f32 %v13288_v37, %v13589_v35  ;;  %v972_v55 = vmul.f32 %v13288_v37, %v13590_v23 }
 0x1ff   : > { %3925 = vmatpush1.bf16.msra.mxu0 %v3128_v28  ;;  %v3130_v51 = vpack.c.bf16 %v2882_v12, %v2870_v30  ;;  %v2893_v63 = vmax.f32 %v2509_v62, 0.0  ;;  %v1979_v4 = vadd.f32 %v1595_v1, %v975_v7  ;;  %v1580_v18 = vmul.f32 %v13364_v54, %v13591_v48 }
 0x200   : > { %v2905_v27 = vmax.f32 %v2521_v40, 0.0  ;;  %v2511_v10 = vadd.f32 %v9115_v5, %v1967_v43  ;;  %v1592_v14 = vmul.f32 %v13364_v54, %v13592_v34  ;;  %v962_v29 = vmul.f32 %v13292_v45, %v13589_v35  ;;  %3625 = vmatmul.mubr.bf16.gmra.mrb[32].mxu0 %v6350_v38  ;;  %3818 = vmatmul.mubr.bf16.gmra.mrb[32].mxu1 %v6350_v38 }
 0x201   : > { %4118 = vmatpush1.bf16.msra.mxu1 %v3130_v51  ;;  %v2523_v28 = vadd.f32 %v13505_v60, %v1979_v4  ;;  %v1964_v30 = vadd.f32 %v1580_v18, %v960_v6  ;;  %v974_v7 = vmul.f32 %v13292_v45, %v13590_v23  ;;  %v1582_v12 = vmul.f32 %v13377_v19, %v13591_v48 }
 0x202   : > { %v3141_v62 = vpack.c.bf16 %v2905_v27, %v2893_v63  ;;  %v2895_v1 = vmax.f32 %v2511_v10, 0.0  ;;  %v1976_v40 = vadd.f32 %v1592_v14, %v972_v55  ;;  %v1594_v43 = vmul.f32 %v13377_v19, %v13592_v34  ;;  %3634 = vmatprep.mubr.bf16.mxu0 %v6351_v0  ;;  %3827 = vmatprep.mubr.bf16.mxu1 %v6351_v0  ;;  %v13593_v55 = vld [vmem:[#allocation133_spill] sm:$0xff] }
 0x203   : > { %v2907_v35 = vmax.f32 %v2523_v28, 0.0  ;;  %v2508_v38 = vadd.f32 %v9115_v5, %v1964_v30  ;;  %v1966_v51 = vadd.f32 %v1582_v12, %v962_v29  ;;  %v985_v6 = vmul.f32 %v13269_v56, %v9015_v22  ;;  %v6353_v0 = vld [vmem:[%s12564_s3 + $0x90] ss:$8 sps:$4 sm:$0xff]   ;;  %v6354_v30 = vld [vmem:[%s12564_s3 + $0xa4] ss:$8 sps:$4 sm:$0xff]  }
 0x204   : > { %3926 = vmatprep.subr.bf16.mxu0 %v3141_v62  ;;  %v2520_v4 = vadd.f32 %v13505_v60, %v1976_v40  ;;  %v1978_v18 = vadd.f32 %v1594_v43, %v974_v7  ;;  %v997_v63 = vmul.f32 %v13269_v56, %v9050_v41  ;;  %v1605_v27 = vmul.f32 %v13394_v24, %v13593_v55 }
 0x205   : > { %v3143_v10 = vpack.c.bf16 %v2907_v35, %v2895_v1  ;;  %v2892_v14 = vmax.f32 %v2508_v38, 0.0  ;;  %v2510_v29 = vadd.f32 %v9115_v5, %v1966_v51  ;;  %v1617_v28 = vmul.f32 %v13394_v24, %v9091_v44 }
 0x206   : > { %v2904_v7 = vmax.f32 %v2520_v4, 0.0  ;;  %v2522_v56 = vadd.f32 %v13505_v60, %v1978_v18  ;;  %v1989_v12 = vadd.f32 %v1605_v27, %v985_v6  ;;  %v987_v62 = vmul.f32 %v13282_v53, %v9015_v22 }
 0x207   : > { %4119 = vmatprep.subr.bf16.mxu1 %v3143_v10  ;;  %v2894_v40 = vmax.f32 %v2510_v29, 0.0  ;;  %v2001_v35 = vadd.f32 %v1617_v28, %v997_v63  ;;  %v999_v1 = vmul.f32 %v13282_v53, %v9050_v41  ;;  %v1607_v24 = vmul.f32 %v13397_v46, %v13593_v55 }
 0x208   : > { %v3140_v43 = vpack.c.bf16 %v2904_v7, %v2892_v14  ;;  %v2906_v38 = vmax.f32 %v2522_v56, 0.0  ;;  %v2533_v51 = vadd.f32 %v9137_v2, %v1989_v12  ;;  %v1619_v4 = vmul.f32 %v13397_v46, %v9091_v44  ;;  %3635 = vmatmul.mubr.bf16.gmra.mrb[36].mxu0 %v6353_v0  ;;  %3828 = vmatmul.mubr.bf16.gmra.mrb[36].mxu1 %v6353_v0 }
 0x209   : > { %v2545_v6 = vadd.f32 %v9164_v3, %v2001_v35  ;;  %v1991_v18 = vadd.f32 %v1607_v24, %v987_v62  ;;  %v984_v63 = vmul.f32 %v13288_v37, %v9015_v22  ;;  %v996_v53 = vmul.f32 %v13288_v37, %v9050_v41  ;;  %3644 = vmatprep.mubr.bf16.mxu0 %v6354_v30 }
 0x20a   : > { %3927 = vmatpush1.bf16.msra.mxu0 %v3140_v43  ;;  %v3142_v27 = vpack.c.bf16 %v2906_v38, %v2894_v40  ;;  %v2917_v10 = vmax.f32 %v2533_v51, 0.0  ;;  %v2003_v14 = vadd.f32 %v1619_v4, %v999_v1  ;;  %v1604_v46 = vmul.f32 %v13364_v54, %v13593_v55  ;;  %3837 = vmatprep.mubr.bf16.mxu1 %v6354_v30  ;;  %v9592_v30 = vld [vmem:[%s6699_s11 + $0x10] sm:$0xff]  ;;  %v6356_v40 = vld [vmem:[%s12564_s3 + $0xa0] ss:$8 sps:$4 sm:$0xff]  }
 0x20b   : > { %v2929_v0 = vmax.f32 %v2545_v6, 0.0  ;;  %v2535_v29 = vadd.f32 %v9137_v2, %v1991_v18  ;;  %v1616_v28 = vmul.f32 %v13364_v54, %v9091_v44  ;;  %v986_v7 = vmul.f32 %v13292_v45, %v9015_v22  ;;  %v6357_v43 = vld [vmem:[%s12564_s3 + $0xb4] ss:$8 sps:$4 sm:$0xff]  }
 0x20c   : > { %4120 = vmatpush1.bf16.msra.mxu1 %v3142_v27  ;;  %v2547_v37 = vadd.f32 %v9164_v3, %v2003_v14  ;;  %v1988_v56 = vadd.f32 %v1604_v46, %v984_v63  ;;  %v998_v12 = vmul.f32 %v13292_v45, %v9050_v41  ;;  %v1606_v62 = vmul.f32 %v13377_v19, %v13593_v55  ;;  %v13594_v4 = vld [vmem:[#allocation9_spill] sm:$0xff]  ;;  %v13595_v27 = vld [vmem:[#allocation7_spill] sm:$0xff] }
 0x20d   : > { %v3153_v54 = vpack.c.bf16 %v2929_v0, %v2917_v10  ;;  %v2919_v35 = vmax.f32 %v2535_v29, 0.0  ;;  %v2000_v1 = vadd.f32 %v1616_v28, %v996_v53  ;;  %v1618_v24 = vmul.f32 %v13377_v19, %v9091_v44  ;;  %v13596_v10 = vld [vmem:[#allocation11_spill] sm:$0xff] }
 0x20e   : > { %v2931_v45 = vmax.f32 %v2547_v37, 0.0  ;;  %v2532_v38 = vadd.f32 %v9137_v2, %v1988_v56  ;;  %v1990_v51 = vadd.f32 %v1606_v62, %v986_v7  ;;  %v551_v6 = vrot.slane %v9592_v30, %v13594_v4  ;;  %v13597_v37 = vld [vmem:[#allocation10_spill] sm:$0xff]  ;;  %v13601_v4 = vld [vmem:[#allocation5_spill] sm:$0xff] }
 0x20f   : > { %3928 = vmatprep.subr.bf16.mxu0 %v3153_v54  ;;  %v2544_v18 = vadd.f32 %v9164_v3, %v2000_v1  ;;  %v2002_v63 = vadd.f32 %v1618_v24, %v998_v12  ;;  %v1171_v53 = vrot.slane %v9592_v30, %v13595_v27  ;;  %v559_v19 = vrot.slane %v9592_v30, %v13596_v10  ;;  %v13598_v54 = vld [vmem:[#allocation144_spill] sm:$0xff]  ;;  %v13599_v1 = vld [vmem:[#allocation30_spill] sm:$0xff] }
 0x210   : > { %v3155_v14 = vpack.c.bf16 %v2931_v45, %v2919_v35  ;;  %v2916_v46 = vmax.f32 %v2532_v38, 0.0  ;;  %v2534_v0 = vadd.f32 %v9137_v2, %v1990_v51  ;;  %v9612_v29 = vrot.slane %v551_v6, %v13512_v25  ;;  %3645 = vmatmul.mubr.bf16.gmra.mrb[40].mxu0 %v6356_v40  ;;  %3838 = vmatmul.mubr.bf16.gmra.mrb[40].mxu1 %v6356_v40  ;;  %v13600_v40 = vld [vmem:[#allocation8_spill] sm:$0xff] }
 0x211   : > { %v2928_v28 = vmax.f32 %v2544_v18, 0.0  ;;  %v2546_v7 = vadd.f32 %v9164_v3, %v2002_v63  ;;  %v9616_v56 = vrot.slane %v1171_v53, %v13597_v37  ;;  %v9619_v12 = vrot.slane %v559_v19, %v13512_v25  ;;  %3654 = vmatprep.mubr.bf16.mxu0 %v6357_v43  ;;  %3847 = vmatprep.mubr.bf16.mxu1 %v6357_v43  ;;  %v13602_v18 = vld [vmem:[#allocation15_spill] sm:$0xff]  ;;  %v6359_v10 = vld [vmem:[%s12564_s3 + $0xb0] ss:$8 sps:$4 sm:$0xff]  }
 0x212   : > { %4121 = vmatprep.subr.bf16.mxu1 %v3155_v14  ;;  %v2918_v62 = vmax.f32 %v2534_v0, 0.0  ;;  %v629_v35 = vmul.f32 %v9612_v29, %v13598_v54  ;;  %v641_v24 = vmul.f32 %v9612_v29, %v13599_v1  ;;  %v1179_v45 = vrot.slane %v9592_v30, %v13600_v40  ;;  %v13606_v2 = vld [vmem:[#allocation12_spill] sm:$0xff] }
 0x213   : > { %v3152_v38 = vpack.c.bf16 %v2928_v28, %v2916_v46  ;;  %v2930_v51 = vmax.f32 %v2546_v7, 0.0  ;;  %v1249_v6 = vmul.f32 %v9616_v56, %v13601_v4  ;;  %v1261_v63 = vmul.f32 %v9616_v56, %v13602_v18  ;;  %v6360_v28 = vld [vmem:[%s12564_s3 + $0xc4] ss:$8 sps:$4 sm:$0xff]  }
 0x214   : > { %v631_v43 = vmul.f32 %v9619_v12, %v13598_v54  ;;  %v643_v27 = vmul.f32 %v9619_v12, %v13599_v1  ;;  %v9636_v53 = vrot.slane %v1179_v45, %v13597_v37  ;;  %v547_v19 = vrot.slane %v9592_v30, %v13512_v25 }
 0x215   : > { %3929 = vmatpush1.bf16.msra.mxu0 %v3152_v38  ;;  %v3154_v14 = vpack.c.bf16 %v2930_v51, %v2918_v62  ;;  %v1633_v46 = vadd.f32 %v1249_v6, %v629_v35  ;;  %v1645_v0 = vadd.f32 %v1261_v63, %v641_v24  ;;  %v1167_v7 = vrot.slane %v9592_v30, %v13597_v37  ;;  %v13603_v38 = vld [vmem:[#allocation14_spill] sm:$0xff]  ;;  %v13605_v51 = vld [vmem:[#allocation35_spill] sm:$0xff] }
 0x216   : > { %v1251_v40 = vmul.f32 %v9636_v53, %v13601_v4  ;;  %v1263_v45 = vmul.f32 %v9636_v53, %v13602_v18  ;;  %v9653_v3 = vrot.slane %v547_v19, %v13512_v25  ;;  %v555_v62 = vrot.slane %v9592_v30, %v13603_v38  ;;  %v13604_v35 = vld [vmem:[#allocation50_spill] sm:$0xff] }
 0x217   : > { %4122 = vmatpush1.bf16.msra.mxu1 %v3154_v14  ;;  %v2177_v24 = vadd.f32 %v13604_v35, %v1633_v46  ;;  %v2189_v6 = vadd.f32 %v13605_v51, %v1645_v0  ;;  %v9660_v63 = vrot.slane %v1167_v7, %v13597_v37  ;;  %v1175_v44 = vrot.slane %v9592_v30, %v13606_v2  ;;  %v13607_v7 = vld [vmem:[#allocation61_spill] sm:$0xff] }
 0x218   : > { %v1635_v55 = vadd.f32 %v1251_v40, %v631_v43  ;;  %v1647_v41 = vadd.f32 %v1263_v45, %v643_v27  ;;  %3655 = vmatmul.mubr.bf16.gmra.mrb[44].mxu0 %v6359_v10  ;;  %3848 = vmatmul.mubr.bf16.gmra.mrb[44].mxu1 %v6359_v10  ;;  %v628_v19 = vmul.f32 %v9653_v3, %v13598_v54 }
 0x219   : > { %v2561_v22 = vmax.f32 %v2177_v24, 0.0  ;;  %v2573_v38 = vmax.f32 %v2189_v6, 0.0  ;;  %3664 = vmatprep.mubr.bf16.mxu0 %v6360_v28  ;;  %3857 = vmatprep.mubr.bf16.mxu1 %v6360_v28  ;;  %v640_v14 = vmul.f32 %v9653_v3, %v13599_v1  ;;  %v1248_v46 = vmul.f32 %v9660_v63, %v13601_v4 }
 0x21a   : > { %v2179_v0 = vadd.f32 %v13604_v35, %v1635_v55  ;;  %v2191_v2 = vadd.f32 %v13605_v51, %v1647_v41  ;;  %v1260_v30 = vmul.f32 %v9660_v63, %v13602_v18  ;;  %v9675_v43 = vrot.slane %v555_v62, %v13512_v25  ;;  %v6362_v41 = vld [vmem:[%s12564_s3 + $0xc0] ss:$8 sps:$4 sm:$0xff]  }
 0x21b   : > { %v2977_v27 = vpack.c.bf16 %v2573_v38, %v2561_v22  ;;  %v1632_v10 = vadd.f32 %v1248_v46, %v628_v19  ;;  %v9678_v28 = vrot.slane %v1175_v44, %v13597_v37  ;;  %v653_v40 = vmul.f32 %v9612_v29, %v13607_v7  ;;  %v6363_v22 = vld [vmem:[%s12564_s3 + $0xd4] ss:$8 sps:$4 sm:$0xff]  }
 0x21c   : > { %v2563_v45 = vmax.f32 %v2179_v0, 0.0  ;;  %v2575_v24 = vmax.f32 %v2191_v2, 0.0  ;;  %v1644_v55 = vadd.f32 %v1260_v30, %v640_v14  ;;  %v630_v6 = vmul.f32 %v9675_v43, %v13598_v54  ;;  %v13608_v54 = vld [vmem:[#allocation18_spill] sm:$0xff] }
 0x21d   : > { %4284 = vmatprep.subr.bf16.mxu0 %v2977_v27  ;;  %v2176_v25 = vadd.f32 %v13604_v35, %v1632_v10  ;;  %v642_v44 = vmul.f32 %v9675_v43, %v13599_v1  ;;  %v1250_v37 = vmul.f32 %v9678_v28, %v13601_v4  ;;  %v1262_v62 = vmul.f32 %v9678_v28, %v13602_v18  ;;  %v13609_v46 = vld [vmem:[#allocation6_spill] sm:$0xff]  ;;  %v13610_v10 = vld [vmem:[#allocation33_spill] sm:$0xff] }
 0x21e   : > { %v2979_v19 = vpack.c.bf16 %v2575_v24, %v2563_v45  ;;  %v2188_v38 = vadd.f32 %v13605_v51, %v1644_v55  ;;  %v665_v14 = vmul.f32 %v9612_v29, %v13608_v54  ;;  %v1273_v0 = vmul.f32 %v9616_v56, %v13609_v46 }
 0x21f   : > { %v2560_v2 = vmax.f32 %v2176_v25, 0.0  ;;  %v1634_v30 = vadd.f32 %v1250_v37, %v630_v6  ;;  %v1646_v27 = vadd.f32 %v1262_v62, %v642_v44  ;;  %v1285_v1 = vmul.f32 %v9616_v56, %v13610_v10  ;;  %v13611_v44 = vld [vmem:[#allocation90_spill] sm:$0xff] }
 0x220   : > { %4477 = vmatprep.subr.bf16.mxu1 %v2979_v19  ;;  %3665 = vmatmul.mubr.bf16.gmra.mrb[48].mxu0 %v6362_v41  ;;  %v2572_v4 = vmax.f32 %v2188_v38, 0.0  ;;  %v1657_v60 = vadd.f32 %v1273_v0, %v653_v40  ;;  %v655_v18 = vmul.f32 %v9619_v12, %v13607_v7  ;;  %v667_v45 = vmul.f32 %v9619_v12, %v13608_v54 }
 0x221   : > { %3858 = vmatmul.mubr.bf16.gmra.mrb[48].mxu1 %v6362_v41  ;;  %3674 = vmatprep.mubr.bf16.mxu0 %v6363_v22  ;;  %v2178_v24 = vadd.f32 %v13604_v35, %v1634_v30  ;;  %v2190_v55 = vadd.f32 %v13605_v51, %v1646_v27  ;;  %v1669_v6 = vadd.f32 %v1285_v1, %v665_v14  ;;  %v13612_v41 = vld [vmem:[#allocation63_spill] sm:$0xff]  ;;  %v6365_v51 = vld [vmem:[%s12564_s3 + $0xd0] ss:$8 sps:$4 sm:$0xff]  }
 0x222   : > { %3867 = vmatprep.mubr.bf16.mxu1 %v6363_v22  ;;  %v9710_v25 = vpack.c.bf16 %v2572_v4, %v2560_v2  ;;  %v2201_v37 = vadd.f32 %v13611_v44, %v1657_v60  ;;  %v1275_v40 = vmul.f32 %v9636_v53, %v13609_v46  ;;  %v1287_v62 = vmul.f32 %v9636_v53, %v13610_v10  ;;  %v6366_v30 = vld [vmem:[%s12564_s3 + $0xe4] ss:$8 sps:$4 sm:$0xff]  }
 0x223   : > { %v2562_v19 = vmax.f32 %v2178_v24, 0.0  ;;  %v2574_v38 = vmax.f32 %v2190_v55, 0.0  ;;  %v2213_v0 = vadd.f32 %v13612_v41, %v1669_v6  ;;  %v652_v35 = vmul.f32 %v9653_v3, %v13607_v7 }
 0x224   : > { %v2585_v22 = vmax.f32 %v2201_v37, 0.0  ;;  %v1659_v14 = vadd.f32 %v1275_v40, %v655_v18  ;;  %v1671_v60 = vadd.f32 %v1287_v62, %v667_v45  ;;  %v664_v2 = vmul.f32 %v9653_v3, %v13608_v54 }
 0x225   : > { %v9728_v27 = vpack.c.bf16 %v2574_v38, %v2562_v19  ;;  %v2597_v1 = vmax.f32 %v2213_v0, 0.0  ;;  %v1272_v4 = vmul.f32 %v9660_v63, %v13609_v46  ;;  %v1284_v24 = vmul.f32 %v9660_v63, %v13610_v10 }
 0x226   : > { %v2203_v55 = vadd.f32 %v13611_v44, %v1659_v14  ;;  %v2215_v18 = vadd.f32 %v13612_v41, %v1671_v60  ;;  %v654_v45 = vmul.f32 %v9675_v43, %v13607_v7  ;;  %v666_v6 = vmul.f32 %v9675_v43, %v13608_v54  ;;  %v13613_v60 = vld [vmem:[#allocation56_spill] sm:$0xff] }
 0x227   : > { %v9740_v37 = vpack.c.bf16 %v2597_v1, %v2585_v22  ;;  %v1656_v40 = vadd.f32 %v1272_v4, %v652_v35  ;;  %v1668_v62 = vadd.f32 %v1284_v24, %v664_v2  ;;  %v1274_v19 = vmul.f32 %v9678_v28, %v13609_v46  ;;  %v13614_v2 = vld [vmem:[#allocation64_spill] sm:$0xff] }
 0x228   : > { %3675 = vmatmul.mubr.bf16.gmra.mrb[52].mxu0 %v6365_v51  ;;  %v2587_v38 = vmax.f32 %v2203_v55, 0.0  ;;  %v2599_v0 = vmax.f32 %v2215_v18, 0.0  ;;  %v1286_v14 = vmul.f32 %v9678_v28, %v13610_v10  ;;  %v677_v5 = vmul.f32 %v9612_v29, %v13613_v60  ;;  %v13615_v4 = vld [vmem:[#allocation16_spill] sm:$0xff] }
 0x229   : > { %3868 = vmatmul.mubr.bf16.gmra.mrb[52].mxu1 %v6365_v51  ;;  %3684 = vmatprep.mubr.bf16.mxu0 %v6366_v30  ;;  %v2200_v7 = vadd.f32 %v13611_v44, %v1656_v40  ;;  %v2212_v54 = vadd.f32 %v13612_v41, %v1668_v62  ;;  %v1658_v35 = vadd.f32 %v1274_v19, %v654_v45  ;;  %v13616_v18 = vld [vmem:[#allocation76_spill] sm:$0xff] }
 0x22a   : > { %3877 = vmatprep.mubr.bf16.mxu1 %v6366_v30  ;;  %v9750_v22 = vpack.c.bf16 %v2599_v0, %v2587_v38  ;;  %v1670_v46 = vadd.f32 %v1286_v14, %v666_v6  ;;  %v689_v1 = vmul.f32 %v9612_v29, %v13614_v2  ;;  %v1297_v10 = vmul.f32 %v9616_v56, %v13615_v4  ;;  %v6368_v30 = vld [vmem:[%s12564_s3 + $0xe0] ss:$8 sps:$4 sm:$0xff]  }
 0x22b   : > { %v2584_v24 = vmax.f32 %v2200_v7, 0.0  ;;  %v2596_v55 = vmax.f32 %v2212_v54, 0.0  ;;  %v2202_v51 = vadd.f32 %v13611_v44, %v1658_v35  ;;  %v1309_v40 = vmul.f32 %v9616_v56, %v13616_v18  ;;  %v6369_v44 = vld [vmem:[%s12564_s3 + $0xf4] ss:$8 sps:$4 sm:$0xff]  }
 0x22c   : > { %v2214_v45 = vadd.f32 %v13612_v41, %v1670_v46  ;;  %v1681_v6 = vadd.f32 %v1297_v10, %v677_v5  ;;  %v679_v62 = vmul.f32 %v9619_v12, %v13613_v60  ;;  %v691_v19 = vmul.f32 %v9619_v12, %v13614_v2  ;;  %v13617_v41 = vld [vmem:[#allocation131_spill] sm:$0xff]  ;;  %v13618_v10 = vld [vmem:[#allocation44_spill] sm:$0xff] }
 0x22d   : > { %v9770_v38 = vpack.c.bf16 %v2596_v55, %v2584_v24  ;;  %v2586_v0 = vmax.f32 %v2202_v51, 0.0  ;;  %v1693_v14 = vadd.f32 %v1309_v40, %v689_v1  ;;  %v1299_v7 = vmul.f32 %v9636_v53, %v13615_v4 }
 0x22e   : > { %v2598_v54 = vmax.f32 %v2214_v45, 0.0  ;;  %v2225_v5 = vadd.f32 %v13617_v41, %v1681_v6  ;;  %v1311_v35 = vmul.f32 %v9636_v53, %v13616_v18  ;;  %v676_v46 = vmul.f32 %v9653_v3, %v13613_v60 }
 0x22f   : > { %v2237_v34 = vadd.f32 %v13618_v10, %v1693_v14  ;;  %v1683_v48 = vadd.f32 %v1299_v7, %v679_v62  ;;  %v688_v24 = vmul.f32 %v9653_v3, %v13614_v2  ;;  %v1296_v1 = vmul.f32 %v9660_v63, %v13615_v4 }
 0x230   : > { %3685 = vmatmul.mubr.bf16.gmra.mrb[56].mxu0 %v6368_v30  ;;  %v9784_v55 = vpack.c.bf16 %v2598_v54, %v2586_v0  ;;  %v2609_v51 = vmax.f32 %v2225_v5, 0.0  ;;  %v1695_v40 = vadd.f32 %v1311_v35, %v691_v19  ;;  %v1308_v45 = vmul.f32 %v9660_v63, %v13616_v18 }
 0x231   : > { %3878 = vmatmul.mubr.bf16.gmra.mrb[56].mxu1 %v6368_v30  ;;  %3694 = vmatprep.mubr.bf16.mxu0 %v6369_v44  ;;  %v2621_v6 = vmax.f32 %v2237_v34, 0.0  ;;  %v2227_v14 = vadd.f32 %v13617_v41, %v1683_v48  ;;  %v1680_v62 = vadd.f32 %v1296_v1, %v676_v46  ;;  %v678_v7 = vmul.f32 %v9675_v43, %v13613_v60  ;;  %v6371_v60 = vld [vmem:[%s12564_s3 + $0xf0] ss:$8 sps:$4 sm:$0xff]  }
 0x232   : > { %3887 = vmatprep.mubr.bf16.mxu1 %v6369_v44  ;;  %v2239_v23 = vadd.f32 %v13618_v10, %v1695_v40  ;;  %v1692_v42 = vadd.f32 %v1308_v45, %v688_v24  ;;  %v690_v0 = vmul.f32 %v9675_v43, %v13614_v2  ;;  %v1298_v19 = vmul.f32 %v9678_v28, %v13615_v4  ;;  %v13619_v2 = vld [vmem:[#allocation98_spill] sm:$0xff]  ;;  %v13621_v40 = vld [vmem:[#allocation17_spill] sm:$0xff] }
 0x233   : > { %v9796_v54 = vpack.c.bf16 %v2621_v6, %v2609_v51  ;;  %v2611_v30 = vmax.f32 %v2227_v14, 0.0  ;;  %v2224_v34 = vadd.f32 %v13617_v41, %v1680_v62  ;;  %v1310_v48 = vmul.f32 %v9678_v28, %v13616_v18  ;;  %v13620_v1 = vld [vmem:[#allocation102_spill] sm:$0xff] }
 0x234   : > { %v2623_v44 = vmax.f32 %v2239_v23, 0.0  ;;  %v2236_v5 = vadd.f32 %v13618_v10, %v1692_v42  ;;  %v1682_v35 = vadd.f32 %v1298_v19, %v678_v7  ;;  %v701_v46 = vmul.f32 %v9612_v29, %v13619_v2  ;;  %v13622_v23 = vld [vmem:[#allocation118_spill] sm:$0xff] }
 0x235   : > { %v2608_v4 = vmax.f32 %v2224_v34, 0.0  ;;  %v1694_v24 = vadd.f32 %v1310_v48, %v690_v0  ;;  %v713_v51 = vmul.f32 %v9612_v29, %v13620_v1  ;;  %v1321_v45 = vmul.f32 %v9616_v56, %v13621_v40 }
 0x236   : > { %v9811_v18 = vpack.c.bf16 %v2623_v44, %v2611_v30  ;;  %v2620_v6 = vmax.f32 %v2236_v5, 0.0  ;;  %v2226_v14 = vadd.f32 %v13617_v41, %v1682_v35  ;;  %v1333_v42 = vmul.f32 %v9616_v56, %v13622_v23  ;;  %v13623_v5 = vld [vmem:[#allocation62_spill] sm:$0xff] }
 0x237   : > { %v2238_v62 = vadd.f32 %v13618_v10, %v1694_v24  ;;  %v1705_v7 = vadd.f32 %v1321_v45, %v701_v46  ;;  %v703_v0 = vmul.f32 %v9619_v12, %v13619_v2  ;;  %v715_v19 = vmul.f32 %v9619_v12, %v13620_v1  ;;  %v6375_v10 = vld [vmem:[%s12564_s3 + $0x4] ss:$8 sps:$4 sm:$0xff]  }
 0x238   : > { %3695 = vmatmul.mubr.bf16.gmra.mrb[60].mxu0 %v6371_v60  ;;  %v9821_v34 = vpack.c.bf16 %v2620_v6, %v2608_v4  ;;  %v2610_v30 = vmax.f32 %v2226_v14, 0.0  ;;  %v1717_v48 = vadd.f32 %v1333_v42, %v713_v51  ;;  %v1323_v41 = vmul.f32 %v9636_v53, %v13621_v40  ;;  %v13624_v24 = vld [vmem:[#allocation48_spill] sm:$0xff] }
 0x239   : > { %3888 = vmatmul.mubr.bf16.gmra.mrb[60].mxu1 %v6371_v60  ;;  %3930 = vmatprep.mubr.bf16.mxu0 %v6375_v10  ;;  %v2622_v44 = vmax.f32 %v2238_v62, 0.0  ;;  %v2249_v35 = vadd.f32 %v13623_v5, %v1705_v7  ;;  %v1335_v46 = vmul.f32 %v9636_v53, %v13622_v23  ;;  %v700_v4 = vmul.f32 %v9653_v3, %v13619_v2 }
 0x23a   : > { %4123 = vmatprep.mubr.bf16.mxu1 %v6375_v10  ;;  %v2261_v51 = vadd.f32 %v13624_v24, %v1717_v48  ;;  %v1707_v45 = vadd.f32 %v1323_v41, %v703_v0  ;;  %v712_v60 = vmul.f32 %v9653_v3, %v13620_v1  ;;  %v1320_v6 = vmul.f32 %v9660_v63, %v13621_v40 }
 0x23b   : > { %v9838_v14 = vpack.c.bf16 %v2622_v44, %v2610_v30  ;;  %v2633_v42 = vmax.f32 %v2249_v35, 0.0  ;;  %v1719_v62 = vadd.f32 %v1335_v46, %v715_v19  ;;  %v1332_v7 = vmul.f32 %v9660_v63, %v13622_v23 }
 0x23c   : > { %v2645_v49 = vmax.f32 %v2261_v51, 0.0  ;;  %v2251_v20 = vadd.f32 %v13623_v5, %v1707_v45  ;;  %v1704_v10 = vadd.f32 %v1320_v6, %v700_v4  ;;  %v702_v0 = vmul.f32 %v9675_v43, %v13619_v2  ;;  %v13625_v45 = vld [vmem:[#allocation140_spill] sm:$0xff] }
 0x23d   : > { %v2263_v48 = vadd.f32 %v13624_v24, %v1719_v62  ;;  %v1716_v41 = vadd.f32 %v1332_v7, %v712_v60  ;;  %v714_v21 = vmul.f32 %v9675_v43, %v13620_v1  ;;  %v1322_v30 = vmul.f32 %v9678_v28, %v13621_v40  ;;  %v6376_v1 = vld [vmem:[%s12564_s3] ss:$8 sps:$4 sm:$0xff]  }
 0x23e   : > { %v9850_v19 = vpack.c.bf16 %v2645_v49, %v2633_v42  ;;  %v2635_v44 = vmax.f32 %v2251_v20, 0.0  ;;  %v2248_v35 = vadd.f32 %v13623_v5, %v1704_v10  ;;  %v1334_v46 = vmul.f32 %v9678_v28, %v13622_v23  ;;  %v13626_v20 = vld [vmem:[#allocation147_spill] sm:$0xff]  ;;  %v13627_v42 = vld [vmem:[#allocation25_spill] sm:$0xff] }
 0x23f   : > { %v2647_v4 = vmax.f32 %v2263_v48, 0.0  ;;  %v2260_v2 = vadd.f32 %v13624_v24, %v1716_v41  ;;  %v1706_v51 = vadd.f32 %v1322_v30, %v702_v0  ;;  %v725_v60 = vmul.f32 %v9612_v29, %v13625_v45  ;;  %v13628_v0 = vld [vmem:[#allocation34_spill] sm:$0xff] }
 0x240   : > { %3931 = vmatmul.mubr.bf16.vlgmr.msra.gmra.mrb[64].mxu0 %v6376_v1  ;;  %v2632_v49 = vmax.f32 %v2248_v35, 0.0  ;;  %v1718_v40 = vadd.f32 %v1334_v46, %v714_v21  ;;  %v737_v6 = vmul.f32 %v9612_v29, %v13626_v20  ;;  %v1345_v23 = vmul.f32 %v9616_v56, %v13627_v42 }
 0x241   : > { %4124 = vmatmul.mubr.bf16.vlgmr.msra.gmra.mrb[64].mxu1 %v6376_v1  ;;  %4285 = vmatpush1.bf16.msra.mxu0 %v9710_v25  ;;  %v3015_v62 = vpack.c.bf16 %v2647_v4, %v2635_v44  ;;  %v2644_v7 = vmax.f32 %v2260_v2, 0.0  ;;  %v2250_v10 = vadd.f32 %v13623_v5, %v1706_v51  ;;  %v1357_v48 = vmul.f32 %v9616_v56, %v13628_v0  ;;  %v6377_v25 = vld [vmem:[%s12564_s3 + $0x14] ss:$8 sps:$4 sm:$0xff]  }
 0x242   : > { %4478 = vmatpush1.bf16.msra.mxu1 %v9728_v27  ;;  %4286 = vmatprep.subr.bf16.mxu0 %v9740_v37  ;;  %v2262_v21 = vadd.f32 %v13624_v24, %v1718_v40  ;;  %v1729_v41 = vadd.f32 %v1345_v23, %v725_v60  ;;  %v727_v30 = vmul.f32 %v9619_v12, %v13625_v45  ;;  %v13629_v24 = vld [vmem:[#allocation38_spill] sm:$0xff]  ;;  %v13630_v2 = vld [vmem:[#allocation37_spill] sm:$0xff] }
 0x243   : > { %4479 = vmatprep.subr.bf16.mxu1 %v9750_v22  ;;  %3940 = vmatprep.mubr.bf16.mxu0 %v6377_v25  ;;  %v3012_v5 = vpack.c.bf16 %v2644_v7, %v2632_v49  ;;  %v2634_v44 = vmax.f32 %v2250_v10, 0.0  ;;  %v1741_v35 = vadd.f32 %v1357_v48, %v737_v6  ;;  %v739_v27 = vmul.f32 %v9619_v12, %v13626_v20 }
 0x244   : > { %4133 = vmatprep.mubr.bf16.mxu1 %v6377_v25  ;;  %v2646_v37 = vmax.f32 %v2262_v21, 0.0  ;;  %v2273_v46 = vadd.f32 %v13629_v24, %v1729_v41  ;;  %v1347_v4 = vmul.f32 %v9636_v53, %v13627_v42  ;;  %v1359_v22 = vmul.f32 %v9636_v53, %v13628_v0 }
 0x245   : > { %4287 = vmatpush1.bf16.msra.mxu0 %v9770_v38  ;;  %v2285_v51 = vadd.f32 %v13630_v2, %v1741_v35  ;;  %v724_v60 = vmul.f32 %v9653_v3, %v13625_v45  ;;  %v736_v1 = vmul.f32 %v9653_v3, %v13626_v20  ;;  %v1344_v49 = vmul.f32 %v9660_v63, %v13627_v42 }
 0x246   : > { %4480 = vmatpush1.bf16.msra.mxu1 %v9784_v55  ;;  %4288 = vmatprep.subr.bf16.mxu0 %v9796_v54  ;;  %v3014_v40 = vpack.c.bf16 %v2646_v37, %v2634_v44  ;;  %v2657_v6 = vmax.f32 %v2273_v46, 0.0  ;;  %v1731_v23 = vadd.f32 %v1347_v4, %v727_v30  ;;  %v1743_v7 = vadd.f32 %v1359_v22, %v739_v27  ;;  %v6378_v55 = vld [vmem:[%s12564_s3 + $0x10] ss:$8 sps:$4 sm:$0xff]   ;;  %v13631_v4 = vld [vmem:[#allocation43_spill] sm:$0xff] }
 0x247   : > { %4481 = vmatprep.subr.bf16.mxu1 %v9811_v18  ;;  %v2669_v38 = vmax.f32 %v2285_v51, 0.0  ;;  %v1356_v10 = vmul.f32 %v9660_v63, %v13628_v0  ;;  %v1728_v48 = vadd.f32 %v1344_v49, %v724_v60  ;;  %v726_v21 = vmul.f32 %v9675_v43, %v13625_v45  ;;  %v13632_v22 = vld [vmem:[#allocation47_spill] sm:$0xff] }
 0x248   : > { %3941 = vmatmul.mubr.bf16.gmra.mrb[68].mxu0 %v6378_v55  ;;  %v2275_v54 = vadd.f32 %v13629_v24, %v1731_v23  ;;  %v2287_v41 = vadd.f32 %v13630_v2, %v1743_v7  ;;  %v738_v18 = vmul.f32 %v9675_v43, %v13626_v20  ;;  %v1346_v30 = vmul.f32 %v9678_v28, %v13627_v42  ;;  %v6379_v42 = vld [vmem:[%s12564_s3 + $0x24] ss:$8 sps:$4 sm:$0xff]  }
 0x249   : > { %4134 = vmatmul.mubr.bf16.gmra.mrb[68].mxu1 %v6378_v55  ;;  %4289 = vmatpush1.bf16.msra.mxu0 %v9821_v34  ;;  %v3025_v25 = vpack.c.bf16 %v2669_v38, %v2657_v6  ;;  %v1740_v45 = vadd.f32 %v1356_v10, %v736_v1  ;;  %v2272_v44 = vadd.f32 %v13629_v24, %v1728_v48  ;;  %v13634_v6 = vld [vmem:[#allocation36_spill] sm:$0xff] }
 0x24a   : > { %4482 = vmatpush1.bf16.msra.mxu1 %v9838_v14  ;;  %4290 = vmatprep.subr.bf16.mxu0 %v9850_v19  ;;  %v2659_v35 = vmax.f32 %v2275_v54, 0.0  ;;  %v2671_v27 = vmax.f32 %v2287_v41, 0.0  ;;  %v1358_v37 = vmul.f32 %v9678_v28, %v13628_v0  ;;  %v1730_v20 = vadd.f32 %v1346_v30, %v726_v21 }
 0x24b   : > { %4483 = vmatprep.subr.bf16.mxu1 %v3015_v62  ;;  %3950 = vmatprep.mubr.bf16.mxu0 %v6379_v42  ;;  %v2284_v34 = vadd.f32 %v13630_v2, %v1740_v45  ;;  %v2656_v46 = vmax.f32 %v2272_v44, 0.0  ;;  %v749_v14 = vmul.f32 %v9612_v29, %v13631_v4  ;;  %v761_v19 = vmul.f32 %v9612_v29, %v13632_v22  ;;  %v13633_v62 = vld [vmem:[#allocation42_spill] sm:$0xff]  ;;  %v13636_v44 = vld [vmem:[#allocation39_spill] sm:$0xff] }
 0x24c   : > { %v3027_v51 = vpack.c.bf16 %v2671_v27, %v2659_v35  ;;  %4143 = vmatprep.mubr.bf16.mxu1 %v6379_v42  ;;  %v1742_v60 = vadd.f32 %v1358_v37, %v738_v18  ;;  %v2274_v0 = vadd.f32 %v13629_v24, %v1730_v20  ;;  %v1369_v1 = vmul.f32 %v9616_v56, %v13633_v62  ;;  %v13635_v18 = vld [vmem:[#allocation22_spill] sm:$0xff] }
 0x24d   : > { %4291 = vmatpush1.bf16.msra.mxu0 %v3012_v5  ;;  %v2668_v49 = vmax.f32 %v2284_v34, 0.0  ;;  %v1381_v23 = vmul.f32 %v9616_v56, %v13634_v6  ;;  %v751_v7 = vmul.f32 %v9619_v12, %v13631_v4  ;;  %v763_v38 = vmul.f32 %v9619_v12, %v13632_v22 }
 0x24e   : > { %4484 = vmatpush1.bf16.msra.mxu1 %v3014_v40  ;;  %4292 = vmatprep.subr.bf16.mxu0 %v3025_v25  ;;  %v2286_v10 = vadd.f32 %v13630_v2, %v1742_v60  ;;  %v2658_v48 = vmax.f32 %v2274_v0, 0.0  ;;  %v1753_v24 = vadd.f32 %v1369_v1, %v749_v14  ;;  %v1371_v21 = vmul.f32 %v9636_v53, %v13633_v62  ;;  %v6380_v40 = vld [vmem:[%s12564_s3 + $0x20] ss:$8 sps:$4 sm:$0xff]   ;;  %v6381_v14 = vld [vmem:[%s12564_s3 + $0x34] ss:$8 sps:$4 sm:$0xff]  }
 0x24f   : > { %4485 = vmatprep.subr.bf16.mxu1 %v3027_v51  ;;  %v3024_v5 = vpack.c.bf16 %v2668_v49, %v2656_v46  ;;  %v1765_v55 = vadd.f32 %v1381_v23, %v761_v19  ;;  %v1383_v54 = vmul.f32 %v9636_v53, %v13634_v6  ;;  %v748_v41 = vmul.f32 %v9653_v3, %v13631_v4 }
 0x250   : > { %3951 = vmatmul.mubr.bf16.gmra.mrb[72].mxu0 %v6380_v40  ;;  %v2670_v2 = vmax.f32 %v2286_v10, 0.0  ;;  %v2297_v30 = vadd.f32 %v13635_v18, %v1753_v24  ;;  %v1755_v25 = vadd.f32 %v1371_v21, %v751_v7  ;;  %v760_v45 = vmul.f32 %v9653_v3, %v13632_v22 }
 0x251   : > { %4144 = vmatmul.mubr.bf16.gmra.mrb[72].mxu1 %v6380_v40  ;;  %4293 = vmatpush1.bf16.msra.mxu0 %v3024_v5  ;;  %v2309_v35 = vadd.f32 %v13636_v44, %v1765_v55  ;;  %v1767_v27 = vadd.f32 %v1383_v54, %v763_v38  ;;  %v1368_v37 = vmul.f32 %v9660_v63, %v13633_v62  ;;  %v13638_v54 = vld [vmem:[#allocation69_spill] sm:$0xff] }
 0x252   : > { %v3026_v20 = vpack.c.bf16 %v2670_v2, %v2658_v48  ;;  %v2681_v42 = vmax.f32 %v2297_v30, 0.0  ;;  %v2299_v34 = vadd.f32 %v13635_v18, %v1755_v25  ;;  %v1380_v46 = vmul.f32 %v9660_v63, %v13634_v6  ;;  %3960 = vmatprep.mubr.bf16.mxu0 %v6381_v14  ;;  %4153 = vmatprep.mubr.bf16.mxu1 %v6381_v14  ;;  %v13639_v2 = vld [vmem:[#allocation55_spill] sm:$0xff] }
 0x253   : > { %v2693_v19 = vmax.f32 %v2309_v35, 0.0  ;;  %v2311_v51 = vadd.f32 %v13636_v44, %v1767_v27  ;;  %v1752_v60 = vadd.f32 %v1368_v37, %v748_v41  ;;  %v750_v0 = vmul.f32 %v9675_v43, %v13631_v4  ;;  %v13637_v4 = vld [vmem:[#allocation3_spill] sm:$0xff]  ;;  %v6382_v37 = vld [vmem:[%s12564_s3 + $0x30] ss:$8 sps:$4 sm:$0xff]  }
 0x254   : > { %4486 = vmatpush1.bf16.msra.mxu1 %v3026_v20  ;;  %v2683_v1 = vmax.f32 %v2299_v34, 0.0  ;;  %v1764_v49 = vadd.f32 %v1380_v46, %v760_v45  ;;  %v762_v23 = vmul.f32 %v9675_v43, %v13632_v22  ;;  %v1370_v7 = vmul.f32 %v9678_v28, %v13633_v62 }
 0x255   : > { %v3037_v38 = vpack.c.bf16 %v2693_v19, %v2681_v42  ;;  %v2695_v10 = vmax.f32 %v2311_v51, 0.0  ;;  %v2296_v48 = vadd.f32 %v13635_v18, %v1752_v60  ;;  %v1382_v24 = vmul.f32 %v9678_v28, %v13634_v6  ;;  %v13640_v6 = vld [vmem:[#allocation19_spill] sm:$0xff] }
 0x256   : > { %v2308_v21 = vadd.f32 %v13636_v44, %v1764_v49  ;;  %v1754_v5 = vadd.f32 %v1370_v7, %v750_v0  ;;  %v773_v55 = vmul.f32 %v9612_v29, %v13637_v4  ;;  %v785_v41 = vmul.f32 %v9612_v29, %v13638_v54  ;;  %v6383_v60 = vld [vmem:[%s12564_s3 + $0x44] ss:$8 sps:$4 sm:$0xff]   ;;  %v13641_v0 = vld [vmem:[#allocation81_spill] sm:$0xff]  ;;  %v9992_v7 = vpop.permute.xlu1 %3199 }
 0x257   : > { %4294 = vmatprep.subr.bf16.mxu0 %v3037_v38  ;;  %v3039_v22 = vpack.c.bf16 %v2695_v10, %v2683_v1  ;;  %v2680_v40 = vmax.f32 %v2296_v48, 0.0  ;;  %v1766_v62 = vadd.f32 %v1382_v24, %v762_v23  ;;  %v1393_v30 = vmul.f32 %v9616_v56, %v13639_v2  ;;  %13642 = vst [vmem:[#allocation83_spill] sm:$0xff] %v9992_v7  ;;  %v13643_v38 = vld [vmem:[#allocation67_spill] sm:$0xff] }
 0x258   : > { %v2692_v25 = vmax.f32 %v2308_v21, 0.0  ;;  %v2298_v45 = vadd.f32 %v13635_v18, %v1754_v5  ;;  %v1405_v35 = vmul.f32 %v9616_v56, %v13640_v6  ;;  %v775_v27 = vmul.f32 %v9619_v12, %v13637_v4  ;;  %3961 = vmatmul.mubr.bf16.gmra.mrb[76].mxu0 %v6382_v37 }
 0x259   : > { %4487 = vmatprep.subr.bf16.mxu1 %v3039_v22  ;;  %v2310_v20 = vadd.f32 %v13636_v44, %v1766_v62  ;;  %v1777_v42 = vadd.f32 %v1393_v30, %v773_v55  ;;  %v787_v34 = vmul.f32 %v9619_v12, %v13638_v54  ;;  %v1395_v18 = vmul.f32 %v9636_v53, %v13639_v2 }
 0x25a   : > { %v3036_v46 = vpack.c.bf16 %v2692_v25, %v2680_v40  ;;  %v2682_v14 = vmax.f32 %v2298_v45, 0.0  ;;  %v1789_v19 = vadd.f32 %v1405_v35, %v785_v41  ;;  %v1407_v51 = vmul.f32 %v9636_v53, %v13640_v6  ;;  %4154 = vmatmul.mubr.bf16.gmra.mrb[76].mxu1 %v6382_v37  ;;  %3970 = vmatprep.mubr.bf16.mxu0 %v6383_v60 }
 0x25b   : > { %v2694_v44 = vmax.f32 %v2310_v20, 0.0  ;;  %v2321_v1 = vadd.f32 %v13641_v0, %v1777_v42  ;;  %v1779_v49 = vadd.f32 %v1395_v18, %v775_v27  ;;  %v772_v23 = vmul.f32 %v9653_v3, %v13637_v4  ;;  %4163 = vmatprep.mubr.bf16.mxu1 %v6383_v60  ;;  %v6385_v60 = vld [vmem:[%s12564_s3 + $0x54] ss:$8 sps:$4 sm:$0xff]  }
 0x25c   : > { %4295 = vmatpush1.bf16.msra.mxu0 %v3036_v46  ;;  %v2333_v10 = vadd.f32 %v13643_v38, %v1789_v19  ;;  %v1791_v48 = vadd.f32 %v1407_v51, %v787_v34  ;;  %v784_v24 = vmul.f32 %v9653_v3, %v13638_v54  ;;  %v1392_v21 = vmul.f32 %v9660_v63, %v13639_v2  ;;  %v13644_v19 = vld [vmem:[#allocation71_spill] sm:$0xff]  ;;  %v13645_v51 = vld [vmem:[#allocation73_spill] sm:$0xff] }
 0x25d   : > { %v3038_v5 = vpack.c.bf16 %v2694_v44, %v2682_v14  ;;  %v2705_v55 = vmax.f32 %v2321_v1, 0.0  ;;  %v2323_v41 = vadd.f32 %v13641_v0, %v1779_v49  ;;  %v1404_v22 = vmul.f32 %v9660_v63, %v13640_v6 }
 0x25e   : > { %v2717_v40 = vmax.f32 %v2333_v10, 0.0  ;;  %v2335_v62 = vadd.f32 %v13643_v38, %v1791_v48  ;;  %v1776_v30 = vadd.f32 %v1392_v21, %v772_v23  ;;  %v774_v25 = vmul.f32 %v9675_v43, %v13637_v4  ;;  %v6384_v4 = vld [vmem:[%s12564_s3 + $0x40] ss:$8 sps:$4 sm:$0xff]  }
 0x25f   : > { %4488 = vmatpush1.bf16.msra.mxu1 %v3038_v5  ;;  %v2707_v45 = vmax.f32 %v2323_v41, 0.0  ;;  %v1788_v35 = vadd.f32 %v1404_v22, %v784_v24  ;;  %v786_v27 = vmul.f32 %v9675_v43, %v13638_v54  ;;  %v1394_v37 = vmul.f32 %v9678_v28, %v13639_v2  ;;  %v13647_v23 = vld [vmem:[#allocation58_spill] sm:$0xff] }
 0x260   : > { %v3049_v20 = vpack.c.bf16 %v2717_v40, %v2705_v55  ;;  %v2719_v42 = vmax.f32 %v2335_v62, 0.0  ;;  %v2320_v34 = vadd.f32 %v13641_v0, %v1776_v30  ;;  %v1406_v18 = vmul.f32 %v9678_v28, %v13640_v6  ;;  %3971 = vmatmul.mubr.bf16.gmra.mrb[80].mxu0 %v6384_v4  ;;  %v10023_v6 = vpop.permute.xlu1 %3209  ;;  %v13648_v21 = vld [vmem:[#allocation26_spill] sm:$0xff] }
 0x261   : > { %v2332_v46 = vadd.f32 %v13643_v38, %v1788_v35  ;;  %v1778_v14 = vadd.f32 %v1394_v37, %v774_v25  ;;  %v797_v54 = vmul.f32 %v9612_v29, %v13644_v19  ;;  %v809_v2 = vmul.f32 %v9612_v29, %v13645_v51  ;;  %3980 = vmatprep.mubr.bf16.mxu0 %v6385_v60 }
 0x262   : > { %13646 = vst [vmem:[#allocation27_spill] sm:$0xff] %v10023_v6  ;;  %4296 = vmatprep.subr.bf16.mxu0 %v3049_v20  ;;  %v3051_v44 = vpack.c.bf16 %v2719_v42, %v2707_v45  ;;  %v2704_v1 = vmax.f32 %v2320_v34, 0.0  ;;  %v1790_v49 = vadd.f32 %v1406_v18, %v786_v27  ;;  %v1417_v10 = vmul.f32 %v9616_v56, %v13647_v23  ;;  %v13649_v20 = vld [vmem:[#allocation70_spill] sm:$0xff] }
 0x263   : > { %4164 = vmatmul.mubr.bf16.gmra.mrb[80].mxu1 %v6384_v4  ;;  %v2716_v48 = vmax.f32 %v2332_v46, 0.0  ;;  %v2322_v24 = vadd.f32 %v13641_v0, %v1778_v14  ;;  %v1429_v5 = vmul.f32 %v9616_v56, %v13648_v21  ;;  %v799_v55 = vmul.f32 %v9619_v12, %v13644_v19 }
 0x264   : > { %4173 = vmatprep.mubr.bf16.mxu1 %v6385_v60  ;;  %4489 = vmatprep.subr.bf16.mxu1 %v3051_v44  ;;  %v2334_v41 = vadd.f32 %v13643_v38, %v1790_v49  ;;  %v1801_v22 = vadd.f32 %v1417_v10, %v797_v54  ;;  %v811_v40 = vmul.f32 %v9619_v12, %v13645_v51  ;;  %v10047_v46 = vpop.permute.xlu1 %3219  ;;  %v6386_v44 = vld [vmem:[%s12564_s3 + $0x50] ss:$8 sps:$4 sm:$0xff]  }
 0x265   : > { %v1419_v62 = vmul.f32 %v9636_v53, %v13647_v23  ;;  %v3048_v30 = vpack.c.bf16 %v2716_v48, %v2704_v1  ;;  %v2706_v25 = vmax.f32 %v2322_v24, 0.0  ;;  %v1813_v0 = vadd.f32 %v1429_v5, %v809_v2  ;;  %13650 = vst [vmem:[#allocation66_spill] sm:$0xff] %v10047_v46  ;;  %v6387_v24 = vld [vmem:[%s12564_s3 + $0x64] ss:$8 sps:$4 sm:$0xff]  }
 0x266   : > { %v1431_v45 = vmul.f32 %v9636_v53, %v13648_v21  ;;  %v2718_v35 = vmax.f32 %v2334_v41, 0.0  ;;  %v2345_v27 = vadd.f32 %v13501_v59, %v1801_v22  ;;  %v796_v38 = vmul.f32 %v9653_v3, %v13644_v19 }
 0x267   : > { %v1803_v37 = vadd.f32 %v1419_v62, %v799_v55  ;;  %4297 = vmatpush1.bf16.msra.mxu0 %v3048_v30  ;;  %v2357_v42 = vadd.f32 %v13649_v20, %v1813_v0  ;;  %v808_v18 = vmul.f32 %v9653_v3, %v13645_v51  ;;  %v1416_v4 = vmul.f32 %v9660_v63, %v13647_v23 }
 0x268   : > { %v1815_v34 = vadd.f32 %v1431_v45, %v811_v40  ;;  %v3050_v14 = vpack.c.bf16 %v2718_v35, %v2706_v25  ;;  %v2729_v54 = vmax.f32 %v2345_v27, 0.0  ;;  %v1428_v60 = vmul.f32 %v9660_v63, %v13648_v21  ;;  %3981 = vmatmul.mubr.bf16.gmra.mrb[84].mxu0 %v6386_v44 }
 0x269   : > { %v2347_v2 = vadd.f32 %v13501_v59, %v1803_v37  ;;  %v2741_v1 = vmax.f32 %v2357_v42, 0.0  ;;  %v1800_v10 = vadd.f32 %v1416_v4, %v796_v38  ;;  %v798_v48 = vmul.f32 %v9675_v43, %v13644_v19  ;;  %3990 = vmatprep.mubr.bf16.mxu0 %v6387_v24  ;;  %v10075_v38 = vpop.permute.xlu1 %3229 }
 0x26a   : > { %v2359_v49 = vadd.f32 %v13649_v20, %v1815_v34  ;;  %4490 = vmatpush1.bf16.msra.mxu1 %v3050_v14  ;;  %v1812_v55 = vadd.f32 %v1428_v60, %v808_v18  ;;  %v810_v41 = vmul.f32 %v9675_v43, %v13645_v51  ;;  %v1418_v22 = vmul.f32 %v9678_v28, %v13647_v23 }
 0x26b   : > { %v2731_v5 = vmax.f32 %v2347_v2, 0.0  ;;  %v3061_v40 = vpack.c.bf16 %v2741_v1, %v2729_v54  ;;  %v2344_v30 = vadd.f32 %v13501_v59, %v1800_v10  ;;  %v1430_v19 = vmul.f32 %v9678_v28, %v13648_v21  ;;  %4174 = vmatmul.mubr.bf16.gmra.mrb[84].mxu1 %v6386_v44  ;;  %13651 = vst [vmem:[#allocation31_spill] sm:$0xff] %v10075_v38  ;;  %v13685_v38 = vld [vmem:[#allocation161_spill] sm:$0xff] }
 0x26c   : > { %v2743_v62 = vmax.f32 %v2359_v49, 0.0  ;;  %v2356_v25 = vadd.f32 %v13649_v20, %v1812_v55  ;;  %v1802_v0 = vadd.f32 %v1418_v22, %v798_v48  ;;  %v821_v45 = vmul.f32 %v9612_v29, %v13519_v8  ;;  %4183 = vmatprep.mubr.bf16.mxu1 %v6387_v24  ;;  %v6388_v49 = vld [vmem:[%s12564_s3 + $0x60] ss:$8 sps:$4 sm:$0xff]  }
 0x26d   : > { %v833_v51 = vmul.f32 %v9612_v29, %v13521_v17  ;;  %4298 = vmatprep.subr.bf16.mxu0 %v3061_v40  ;;  %v2728_v35 = vmax.f32 %v2344_v30, 0.0  ;;  %v1814_v27 = vadd.f32 %v1430_v19, %v810_v41  ;;  %v1441_v37 = vmul.f32 %v9616_v56, %v13522_v61  ;;  %v13652_v55 = vld [vmem:[#allocation20_spill] sm:$0xff] }
 0x26e   : > { %v3063_v23 = vpack.c.bf16 %v2743_v62, %v2731_v5  ;;  %v2740_v21 = vmax.f32 %v2356_v25, 0.0  ;;  %v2346_v42 = vadd.f32 %v13501_v59, %v1802_v0  ;;  %v1453_v34 = vmul.f32 %v9616_v56, %v13523_v47  ;;  %v6389_v5 = vld [vmem:[%s12564_s3 + $0x74] ss:$8 sps:$4 sm:$0xff]  }
 0x26f   : > { %v823_v18 = vmul.f32 %v9619_v12, %v13519_v8  ;;  %v2358_v4 = vadd.f32 %v13649_v20, %v1814_v27  ;;  %v1825_v14 = vadd.f32 %v1441_v37, %v821_v45  ;;  %v835_v54 = vmul.f32 %v9619_v12, %v13521_v17  ;;  %v10106_v45 = vpop.permute.xlu1 %3239 }
 0x270   : > { %4491 = vmatprep.subr.bf16.mxu1 %v3063_v23  ;;  %v1443_v2 = vmul.f32 %v9636_v53, %v13522_v61  ;;  %v3060_v60 = vpack.c.bf16 %v2740_v21, %v2728_v35  ;;  %v2730_v44 = vmax.f32 %v2346_v42, 0.0  ;;  %v1837_v1 = vadd.f32 %v1453_v34, %v833_v51  ;;  %3991 = vmatmul.mubr.bf16.gmra.mrb[88].mxu0 %v6388_v49 }
 0x271   : > { %v1455_v59 = vmul.f32 %v9636_v53, %v13523_v47  ;;  %v2742_v10 = vmax.f32 %v2358_v4, 0.0  ;;  %v2369_v20 = vadd.f32 %v13525_v11, %v1825_v14  ;;  %v820_v24 = vmul.f32 %v9653_v3, %v13519_v8  ;;  %4000 = vmatprep.mubr.bf16.mxu0 %v6389_v5  ;;  %13653 = vst [vmem:[#allocation103_spill] sm:$0xff] %v10106_v45 }
 0x272   : > { %v1827_v48 = vadd.f32 %v1443_v2, %v823_v18  ;;  %4299 = vmatpush1.bf16.msra.mxu0 %v3060_v60  ;;  %v2381_v41 = vadd.f32 %v13652_v55, %v1837_v1  ;;  %v832_v40 = vmul.f32 %v9653_v3, %v13521_v17  ;;  %v1440_v62 = vmul.f32 %v9660_v63, %v13522_v61  ;;  %v13654_v60 = vld [vmem:[#allocation46_spill] sm:$0xff] }
 0x273   : > { %v1839_v22 = vadd.f32 %v1455_v59, %v835_v54  ;;  %v3062_v30 = vpack.c.bf16 %v2742_v10, %v2730_v44  ;;  %v2753_v19 = vmax.f32 %v2369_v20, 0.0  ;;  %v1452_v0 = vmul.f32 %v9660_v63, %v13523_v47  ;;  %4184 = vmatmul.mubr.bf16.gmra.mrb[88].mxu1 %v6388_v49  ;;  %v13655_v1 = vld [vmem:[#allocation54_spill] sm:$0xff]  ;;  %v13656_v10 = vld [vmem:[#allocation77_spill] sm:$0xff] }
 0x274   : > { %v2371_v25 = vadd.f32 %v13525_v11, %v1827_v48  ;;  %v2765_v51 = vmax.f32 %v2381_v41, 0.0  ;;  %v1824_v35 = vadd.f32 %v1440_v62, %v820_v24  ;;  %v822_v27 = vmul.f32 %v9675_v43, %v13519_v8  ;;  %4193 = vmatprep.mubr.bf16.mxu1 %v6389_v5  ;;  %v13657_v5 = vld [vmem:[#allocation57_spill] sm:$0xff]  ;;  %v10136_v62 = vpop.permute.xlu1 %3249 }
 0x275   : > { %v2383_v23 = vadd.f32 %v13652_v55, %v1839_v22  ;;  %4492 = vmatpush1.bf16.msra.mxu1 %v3062_v30  ;;  %v1836_v21 = vadd.f32 %v1452_v0, %v832_v40  ;;  %v834_v42 = vmul.f32 %v9675_v43, %v13521_v17  ;;  %v1442_v34 = vmul.f32 %v9678_v28, %v13522_v61  ;;  %v6391_v40 = vld [vmem:[%s12564_s3 + $0x84] ss:$8 sps:$4 sm:$0xff]  }
 0x276   : > { %v2755_v37 = vmax.f32 %v2371_v25, 0.0  ;;  %v3073_v18 = vpack.c.bf16 %v2765_v51, %v2753_v19  ;;  %v2368_v14 = vadd.f32 %v13525_v11, %v1824_v35  ;;  %v1454_v54 = vmul.f32 %v9678_v28, %v13523_v47  ;;  %v6390_v47 = vld [vmem:[%s12564_s3 + $0x70] ss:$8 sps:$4 sm:$0xff]   ;;  %13658 = vst [vmem:[#allocation40_spill] sm:$0xff] %v10136_v62 }
 0x277   : > { %v2767_v4 = vmax.f32 %v2383_v23, 0.0  ;;  %v2380_v2 = vadd.f32 %v13652_v55, %v1836_v21  ;;  %v1826_v8 = vadd.f32 %v1442_v34, %v822_v27  ;;  %v845_v44 = vmul.f32 %v9612_v29, %v13654_v60  ;;  %v13660_v34 = vld [vmem:[#allocation99_spill] sm:$0xff] }
 0x278   : > { %v857_v59 = vmul.f32 %v9612_v29, %v13655_v1  ;;  %4300 = vmatprep.subr.bf16.mxu0 %v3073_v18  ;;  %v2752_v49 = vmax.f32 %v2368_v14, 0.0  ;;  %v1838_v61 = vadd.f32 %v1454_v54, %v834_v42  ;;  %v1465_v20 = vmul.f32 %v9616_v56, %v13656_v10  ;;  %4001 = vmatmul.mubr.bf16.gmra.mrb[92].mxu0 %v6390_v47 }
 0x279   : > { %v3075_v17 = vpack.c.bf16 %v2767_v4, %v2755_v37  ;;  %v2764_v48 = vmax.f32 %v2380_v2, 0.0  ;;  %v2370_v24 = vadd.f32 %v13525_v11, %v1826_v8  ;;  %v1477_v41 = vmul.f32 %v9616_v56, %v13657_v5  ;;  %4010 = vmatprep.mubr.bf16.mxu0 %v6391_v40  ;;  %v13659_v37 = vld [vmem:[#allocation68_spill] sm:$0xff] }
 0x27a   : > { %v847_v22 = vmul.f32 %v9619_v12, %v13654_v60  ;;  %v2382_v30 = vadd.f32 %v13652_v55, %v1838_v61  ;;  %v1849_v19 = vadd.f32 %v1465_v20, %v845_v44  ;;  %v859_v11 = vmul.f32 %v9619_v12, %v13655_v1 }
 0x27b   : > { %4493 = vmatprep.subr.bf16.mxu1 %v3075_v17  ;;  %v1467_v25 = vmul.f32 %v9636_v53, %v13656_v10  ;;  %v3072_v0 = vpack.c.bf16 %v2764_v48, %v2752_v49  ;;  %v2754_v51 = vmax.f32 %v2370_v24, 0.0  ;;  %v1861_v23 = vadd.f32 %v1477_v41, %v857_v59  ;;  %4194 = vmatmul.mubr.bf16.gmra.mrb[92].mxu1 %v6390_v47  ;;  %v10159_v47 = vpop.permute.xlu1 %3259 }
 0x27c   : > { %v1479_v35 = vmul.f32 %v9636_v53, %v13657_v5  ;;  %v2766_v27 = vmax.f32 %v2382_v30, 0.0  ;;  %v2393_v21 = vadd.f32 %v13659_v37, %v1849_v19  ;;  %v844_v55 = vmul.f32 %v9653_v3, %v13654_v60  ;;  %4203 = vmatprep.mubr.bf16.mxu1 %v6391_v40  ;;  %13661 = vst [vmem:[#allocation85_spill] sm:$0xff] %v10159_v47  ;;  %v6392_v40 = vld [vmem:[%s12564_s3 + $0x80] ss:$8 sps:$4 sm:$0xff]  }
 0x27d   : > { %v1851_v42 = vadd.f32 %v1467_v25, %v847_v22  ;;  %4301 = vmatpush1.bf16.msra.mxu0 %v3072_v0  ;;  %v2405_v18 = vadd.f32 %v13660_v34, %v1861_v23  ;;  %v856_v14 = vmul.f32 %v9653_v3, %v13655_v1  ;;  %v1464_v54 = vmul.f32 %v9660_v63, %v13656_v10  ;;  %v6393_v25 = vld [vmem:[%s12564_s3 + $0x94] ss:$8 sps:$4 sm:$0xff]   ;;  %v13662_v0 = vld [vmem:[#allocation104_spill] sm:$0xff]  ;;  %v13663_v23 = vld [vmem:[#allocation111_spill] sm:$0xff] }
 0x27e   : > { %v1863_v4 = vadd.f32 %v1479_v35, %v859_v11  ;;  %v3074_v2 = vpack.c.bf16 %v2766_v27, %v2754_v51  ;;  %v2777_v8 = vmax.f32 %v2393_v21, 0.0  ;;  %v1476_v59 = vmul.f32 %v9660_v63, %v13657_v5 }
 0x27f   : > { %v2395_v44 = vadd.f32 %v13659_v37, %v1851_v42  ;;  %v2789_v17 = vmax.f32 %v2405_v18, 0.0  ;;  %v1848_v61 = vadd.f32 %v1464_v54, %v844_v55  ;;  %v846_v20 = vmul.f32 %v9675_v43, %v13654_v60  ;;  %v13664_v55 = vld [vmem:[#allocation89_spill] sm:$0xff] }
 0x280   : > { %v2407_v49 = vadd.f32 %v13660_v34, %v1863_v4  ;;  %4494 = vmatpush1.bf16.msra.mxu1 %v3074_v2  ;;  %v1860_v24 = vadd.f32 %v1476_v59, %v856_v14  ;;  %v858_v41 = vmul.f32 %v9675_v43, %v13655_v1  ;;  %v1466_v22 = vmul.f32 %v9678_v28, %v13656_v10  ;;  %v13665_v14 = vld [vmem:[#allocation112_spill] sm:$0xff] }
 0x281   : > { %v2779_v48 = vmax.f32 %v2395_v44, 0.0  ;;  %4011 = vmatmul.mubr.bf16.gmra.mrb[96].mxu0 %v6392_v40  ;;  %v3085_v30 = vpack.c.bf16 %v2789_v17, %v2777_v8  ;;  %v2392_v60 = vadd.f32 %v13659_v37, %v1848_v61  ;;  %v1478_v11 = vmul.f32 %v9678_v28, %v13657_v5 }
 0x282   : > { %v2791_v19 = vmax.f32 %v2407_v49, 0.0  ;;  %4020 = vmatprep.mubr.bf16.mxu0 %v6393_v25  ;;  %v2404_v1 = vadd.f32 %v13660_v34, %v1860_v24  ;;  %v1850_v10 = vadd.f32 %v1466_v22, %v846_v20  ;;  %v869_v51 = vmul.f32 %v9612_v29, %v13662_v0  ;;  %v10191_v49 = vpop.permute.xlu1 %3269 }
 0x283   : > { %v881_v35 = vmul.f32 %v9612_v29, %v13663_v23  ;;  %4302 = vmatprep.subr.bf16.mxu0 %v3085_v30  ;;  %v2776_v21 = vmax.f32 %v2392_v60, 0.0  ;;  %v1862_v42 = vadd.f32 %v1478_v11, %v858_v41  ;;  %v1489_v5 = vmul.f32 %v9616_v56, %v13664_v55  ;;  %4204 = vmatmul.mubr.bf16.gmra.mrb[96].mxu1 %v6392_v40 }
 0x284   : > { %v3087_v27 = vpack.c.bf16 %v2791_v19, %v2779_v48  ;;  %v2788_v18 = vmax.f32 %v2404_v1, 0.0  ;;  %v2394_v4 = vadd.f32 %v13659_v37, %v1850_v10  ;;  %v1501_v54 = vmul.f32 %v9616_v56, %v13665_v14  ;;  %4213 = vmatprep.mubr.bf16.mxu1 %v6393_v25  ;;  %13666 = vst [vmem:[#allocation86_spill] sm:$0xff] %v10191_v49 }
 0x285   : > { %v871_v2 = vmul.f32 %v9619_v12, %v13662_v0  ;;  %v2406_v8 = vadd.f32 %v13660_v34, %v1862_v42  ;;  %v1873_v44 = vadd.f32 %v1489_v5, %v869_v51  ;;  %v883_v59 = vmul.f32 %v9619_v12, %v13663_v23  ;;  %v6394_v51 = vld [vmem:[%s12564_s3 + $0x90] ss:$8 sps:$4 sm:$0xff]   ;;  %v6395_v5 = vld [vmem:[%s12564_s3 + $0xa4] ss:$8 sps:$4 sm:$0xff]  }
 0x286   : > { %4495 = vmatprep.subr.bf16.mxu1 %v3087_v27  ;;  %v1491_v17 = vmul.f32 %v9636_v53, %v13664_v55  ;;  %v3084_v37 = vpack.c.bf16 %v2788_v18, %v2776_v21  ;;  %v2778_v61 = vmax.f32 %v2394_v4, 0.0  ;;  %v1885_v20 = vadd.f32 %v1501_v54, %v881_v35 }
 0x287   : > { %v1503_v48 = vmul.f32 %v9636_v53, %v13665_v14  ;;  %v2790_v24 = vmax.f32 %v2406_v8, 0.0  ;;  %v2417_v41 = vadd.f32 %v13561_v16, %v1873_v44  ;;  %v868_v34 = vmul.f32 %v9653_v3, %v13662_v0  ;;  %v10219_v8 = vpop.permute.xlu1 %3279 }
 0x288   : > { %v1875_v22 = vadd.f32 %v1491_v17, %v871_v2  ;;  %4303 = vmatpush1.bf16.msra.mxu0 %v3084_v37  ;;  %v2429_v40 = vadd.f32 %v13562_v15, %v1885_v20  ;;  %v880_v19 = vmul.f32 %v9653_v3, %v13663_v23  ;;  %v1488_v60 = vmul.f32 %v9660_v63, %v13664_v55 }
 0x289   : > { %v1887_v30 = vadd.f32 %v1503_v48, %v883_v59  ;;  %v3086_v11 = vpack.c.bf16 %v2790_v24, %v2778_v61  ;;  %v2801_v25 = vmax.f32 %v2417_v41, 0.0  ;;  %v1500_v10 = vmul.f32 %v9660_v63, %v13665_v14  ;;  %4021 = vmatmul.mubr.bf16.gmra.mrb[100].mxu0 %v6394_v51  ;;  %13667 = vst [vmem:[#allocation51_spill] sm:$0xff] %v10219_v8  ;;  %v13675_v8 = vld [vmem:[#allocation162_spill] sm:$0xff] }
 0x28a   : > { %v2419_v1 = vadd.f32 %v13561_v16, %v1875_v22  ;;  %v2813_v35 = vmax.f32 %v2429_v40, 0.0  ;;  %v1872_v21 = vadd.f32 %v1488_v60, %v868_v34  ;;  %v870_v42 = vmul.f32 %v9675_v43, %v13662_v0  ;;  %4030 = vmatprep.mubr.bf16.mxu0 %v6395_v5 }
 0x28b   : > { %v2431_v27 = vadd.f32 %v13562_v15, %v1887_v30  ;;  %4496 = vmatpush1.bf16.msra.mxu1 %v3086_v11  ;;  %v1884_v4 = vadd.f32 %v1500_v10, %v880_v19  ;;  %v882_v54 = vmul.f32 %v9675_v43, %v13663_v23  ;;  %v1490_v2 = vmul.f32 %v9678_v28, %v13664_v55 }
 0x28c   : > { %v2803_v18 = vmax.f32 %v2419_v1, 0.0  ;;  %v3097_v44 = vpack.c.bf16 %v2813_v35, %v2801_v25  ;;  %v2416_v0 = vadd.f32 %v13561_v16, %v1872_v21  ;;  %v1502_v17 = vmul.f32 %v9678_v28, %v13665_v14  ;;  %4214 = vmatmul.mubr.bf16.gmra.mrb[100].mxu1 %v6394_v51  ;;  %v6396_v51 = vld [vmem:[%s12564_s3 + $0xa0] ss:$8 sps:$4 sm:$0xff]   ;;  %v10246_v35 = vpop.permute.xlu1 %3289 }
 0x28d   : > { %v2815_v59 = vmax.f32 %v2431_v27, 0.0  ;;  %v2428_v37 = vadd.f32 %v13562_v15, %v1884_v4  ;;  %v1874_v61 = vadd.f32 %v1490_v2, %v870_v42  ;;  %v893_v20 = vmul.f32 %v9612_v29, %v13569_v39  ;;  %4223 = vmatprep.mubr.bf16.mxu1 %v6395_v5  ;;  %13668 = vst [vmem:[#allocation32_spill] sm:$0xff] %v10246_v35  ;;  %v6397_v5 = vld [vmem:[%s12564_s3 + $0xb4] ss:$8 sps:$4 sm:$0xff]  }
 0x28e   : > { %v905_v23 = vmul.f32 %v9612_v29, %v13570_v26  ;;  %4304 = vmatprep.subr.bf16.mxu0 %v3097_v44  ;;  %v2800_v48 = vmax.f32 %v2416_v0, 0.0  ;;  %v1886_v24 = vadd.f32 %v1502_v17, %v882_v54  ;;  %v1513_v41 = vmul.f32 %v9616_v56, %v13573_v36 }
 0x28f   : > { %v3099_v55 = vpack.c.bf16 %v2815_v59, %v2803_v18  ;;  %v2812_v22 = vmax.f32 %v2428_v37, 0.0  ;;  %v2418_v14 = vadd.f32 %v13561_v16, %v1874_v61  ;;  %v1525_v34 = vmul.f32 %v9616_v56, %v13574_v13 }
 0x290   : > { %v895_v40 = vmul.f32 %v9619_v12, %v13569_v39  ;;  %v2430_v30 = vadd.f32 %v13562_v15, %v1886_v24  ;;  %v1897_v19 = vadd.f32 %v1513_v41, %v893_v20  ;;  %v907_v60 = vmul.f32 %v9619_v12, %v13570_v26 }
 0x291   : > { %4497 = vmatprep.subr.bf16.mxu1 %v3099_v55  ;;  %v1515_v11 = vmul.f32 %v9636_v53, %v13573_v36  ;;  %v3096_v25 = vpack.c.bf16 %v2812_v22, %v2800_v48  ;;  %v2802_v1 = vmax.f32 %v2418_v14, 0.0  ;;  %v1909_v10 = vadd.f32 %v1525_v34, %v905_v23  ;;  %4031 = vmatmul.mubr.bf16.gmra.mrb[104].mxu0 %v6396_v51 }
 0x292   : > { %v1527_v16 = vmul.f32 %v9636_v53, %v13574_v13  ;;  %v2814_v15 = vmax.f32 %v2430_v30, 0.0  ;;  %v2441_v27 = vadd.f32 %v13576_v57, %v1897_v19  ;;  %v892_v42 = vmul.f32 %v9653_v3, %v13569_v39  ;;  %4040 = vmatprep.mubr.bf16.mxu0 %v6397_v5 }
 0x293   : > { %v1899_v21 = vadd.f32 %v1515_v11, %v895_v40  ;;  %4305 = vmatpush1.bf16.msra.mxu0 %v3096_v25  ;;  %v2453_v18 = vadd.f32 %v13577_v58, %v1909_v10  ;;  %v904_v54 = vmul.f32 %v9653_v3, %v13570_v26  ;;  %v1512_v2 = vmul.f32 %v9660_v63, %v13573_v36  ;;  %v10259_v44 = vpop.f32.mrb[0].mxu0  ;;  %v10261_v59 = vpop.f32.mrb[0].mxu1 }
 0x294   : > { %v1911_v4 = vadd.f32 %v1527_v16, %v907_v60  ;;  %v3098_v0 = vpack.c.bf16 %v2814_v15, %v2802_v1  ;;  %v2825_v17 = vmax.f32 %v2441_v27, 0.0  ;;  %v1524_v61 = vmul.f32 %v9660_v63, %v13574_v13  ;;  %4224 = vmatmul.mubr.bf16.gmra.mrb[104].mxu1 %v6396_v51  ;;  %v10266_v20 = vpop.f32.mrb[1].mxu0  ;;  %v10268_v23 = vpop.f32.mrb[1].mxu1 }
 0x295   : > { %v2443_v37 = vadd.f32 %v13576_v57, %v1899_v21  ;;  %v2837_v55 = vmax.f32 %v2453_v18, 0.0  ;;  %v1896_v24 = vadd.f32 %v1512_v2, %v892_v42  ;;  %v894_v41 = vmul.f32 %v9675_v43, %v13569_v39  ;;  %v10273_v22 = vpop.f32.mrb[2].mxu0  ;;  %v10275_v14 = vpop.f32.mrb[2].mxu1  ;;  %4233 = vmatprep.mubr.bf16.mxu1 %v6397_v5 }
 0x296   : > { %v2455_v48 = vadd.f32 %v13577_v58, %v1911_v4  ;;  %4498 = vmatpush1.bf16.msra.mxu1 %v3098_v0  ;;  %v1908_v40 = vadd.f32 %v1524_v61, %v904_v54  ;;  %v906_v30 = vmul.f32 %v9675_v43, %v13570_v26  ;;  %v1514_v19 = vmul.f32 %v9678_v28, %v13573_v36  ;;  %v10281_v60 = vpop.f32.mrb[3].mxu0  ;;  %v10283_v11 = vpop.f32.mrb[3].mxu1  ;;  %v6399_v0 = vld [vmem:[%s12564_s3 + $0xc4] ss:$8 sps:$4 sm:$0xff]  }
 0x297   : > { %v2827_v34 = vmax.f32 %v2443_v37, 0.0  ;;  %v3109_v25 = vpack.c.bf16 %v2837_v55, %v2825_v17  ;;  %v2440_v1 = vadd.f32 %v13576_v57, %v1896_v24  ;;  %v1526_v10 = vmul.f32 %v9678_v28, %v13574_v13  ;;  %v6398_v13 = vld [vmem:[%s12564_s3 + $0xb0] ss:$8 sps:$4 sm:$0xff]   ;;  %v10298_v5 = vpop.permute.xlu1 %3299 }
 0x298   : > { %v2839_v39 = vmax.f32 %v2455_v48, 0.0  ;;  %v2452_v16 = vadd.f32 %v13577_v58, %v1908_v40  ;;  %v1898_v51 = vadd.f32 %v1514_v19, %v894_v41  ;;  %v917_v26 = vmul.f32 %v9612_v29, %v13578_v9  ;;  %13669 = vst [vmem:[#allocation75_spill] sm:$0xff] %v10298_v5 }
 0x299   : > { %v929_v36 = vmul.f32 %v9612_v29, %v13579_v52  ;;  %4306 = vmatprep.subr.bf16.mxu0 %v3109_v25  ;;  %v2824_v27 = vmax.f32 %v2440_v1, 0.0  ;;  %v1910_v21 = vadd.f32 %v1526_v10, %v906_v30  ;;  %v1537_v42 = vmul.f32 %v9616_v56, %v13580_v50  ;;  %4041 = vmatmul.mubr.bf16.gmra.mrb[108].mxu0 %v6398_v13 }
 0x29a   : > { %v3111_v15 = vpack.c.bf16 %v2839_v39, %v2827_v34  ;;  %v2836_v18 = vmax.f32 %v2452_v16, 0.0  ;;  %v2442_v4 = vadd.f32 %v13576_v57, %v1898_v51  ;;  %v1549_v54 = vmul.f32 %v9616_v56, %v13581_v31  ;;  %4050 = vmatprep.mubr.bf16.mxu0 %v6399_v0 }
 0x29b   : > { %v919_v2 = vmul.f32 %v9619_v12, %v13578_v9  ;;  %v2454_v17 = vadd.f32 %v13577_v58, %v1910_v21  ;;  %v1921_v37 = vadd.f32 %v1537_v42, %v917_v26  ;;  %v931_v61 = vmul.f32 %v9619_v12, %v13579_v52  ;;  %v10313_v55 = vpop.f32.mrb[4].mxu0  ;;  %v10315_v48 = vpop.f32.mrb[4].mxu1 }
 0x29c   : > { %4499 = vmatprep.subr.bf16.mxu1 %v3111_v15  ;;  %v1539_v57 = vmul.f32 %v9636_v53, %v13580_v50  ;;  %v3108_v24 = vpack.c.bf16 %v2836_v18, %v2824_v27  ;;  %v2826_v41 = vmax.f32 %v2442_v4, 0.0  ;;  %v1933_v34 = vadd.f32 %v1549_v54, %v929_v36  ;;  %4234 = vmatmul.mubr.bf16.gmra.mrb[108].mxu1 %v6398_v13  ;;  %v10319_v30 = vpop.f32.mrb[5].mxu0  ;;  %v10321_v58 = vpop.f32.mrb[5].mxu1 }
 0x29d   : > { %v1551_v40 = vmul.f32 %v9636_v53, %v13581_v31  ;;  %v2838_v19 = vmax.f32 %v2454_v17, 0.0  ;;  %v2465_v25 = vadd.f32 %v13582_v33, %v1921_v37  ;;  %v916_v1 = vmul.f32 %v9653_v3, %v13578_v9  ;;  %v10326_v10 = vpop.f32.mrb[6].mxu0  ;;  %v10328_v16 = vpop.f32.mrb[6].mxu1  ;;  %4243 = vmatprep.mubr.bf16.mxu1 %v6399_v0 }
 0x29e   : > { %v1923_v39 = vadd.f32 %v1539_v57, %v919_v2  ;;  %4307 = vmatpush1.bf16.msra.mxu0 %v3108_v24  ;;  %v2477_v51 = vadd.f32 %v13583_v32, %v1933_v34  ;;  %v928_v36 = vmul.f32 %v9653_v3, %v13579_v52  ;;  %v1536_v15 = vmul.f32 %v9660_v63, %v13580_v50  ;;  %v10335_v27 = vpop.f32.mrb[7].mxu0  ;;  %v10337_v21 = vpop.f32.mrb[7].mxu1 }
 0x29f   : > { %v1935_v26 = vadd.f32 %v1551_v40, %v931_v61  ;;  %v3110_v42 = vpack.c.bf16 %v2838_v19, %v2826_v41  ;;  %v2849_v13 = vmax.f32 %v2465_v25, 0.0  ;;  %v1548_v4 = vmul.f32 %v9660_v63, %v13581_v31  ;;  %v6400_v41 = vld [vmem:[%s12564_s3 + $0xc0] ss:$8 sps:$4 sm:$0xff]   ;;  %v10352_v34 = vpop.permute.xlu1 %3309 }
 0x2a0   : > { %v2467_v18 = vadd.f32 %v13582_v33, %v1923_v39  ;;  %v2861_v54 = vmax.f32 %v2477_v51, 0.0  ;;  %v1920_v0 = vadd.f32 %v1536_v15, %v916_v1  ;;  %v918_v17 = vmul.f32 %v9675_v43, %v13578_v9  ;;  %13670 = vst [vmem:[#allocation91_spill] sm:$0xff] %v10352_v34  ;;  %v13671_v1 = vld [vmem:[#allocation152_spill] sm:$0xff] }
 0x2a1   : > { %v2479_v2 = vadd.f32 %v13583_v32, %v1935_v26  ;;  %4500 = vmatpush1.bf16.msra.mxu1 %v3110_v42  ;;  %v1932_v61 = vadd.f32 %v1548_v4, %v928_v36  ;;  %v930_v57 = vmul.f32 %v9675_v43, %v13579_v52  ;;  %v1538_v24 = vmul.f32 %v9678_v28, %v13580_v50  ;;  %v6401_v52 = vld [vmem:[%s12564_s3 + $0xd4] ss:$8 sps:$4 sm:$0xff]  }
 0x2a2   : > { %v2851_v37 = vmax.f32 %v2467_v18, 0.0  ;;  %4051 = vmatmul.mubr.bf16.gmra.mrb[112].mxu0 %v6400_v41  ;;  %v3121_v40 = vpack.c.bf16 %v2861_v54, %v2849_v13  ;;  %v2464_v9 = vadd.f32 %v13582_v33, %v1920_v0  ;;  %v1550_v25 = vmul.f32 %v9678_v28, %v13581_v31  ;;  %v13672_v26 = vld [vmem:[#allocation154_spill] sm:$0xff]  ;;  %v13673_v4 = vld [vmem:[#allocation113_spill] sm:$0xff] }
 0x2a3   : > { %v2863_v19 = vmax.f32 %v2479_v2, 0.0  ;;  %4060 = vmatprep.mubr.bf16.mxu0 %v6401_v52  ;;  %v2476_v50 = vadd.f32 %v13583_v32, %v1932_v61  ;;  %v1922_v39 = vadd.f32 %v1538_v24, %v918_v17  ;;  %v941_v51 = vmul.f32 %v9612_v29, %v13671_v1  ;;  %v10365_v15 = vpop.f32.mrb[8].mxu0  ;;  %v10367_v42 = vpop.f32.mrb[8].mxu1  ;;  %v13674_v24 = vld [vmem:[#allocation130_spill] sm:$0xff] }
 0x2a4   : > { %v953_v36 = vmul.f32 %v9612_v29, %v13672_v26  ;;  %4308 = vmatprep.subr.bf16.mxu0 %v3121_v40  ;;  %v2848_v13 = vmax.f32 %v2464_v9, 0.0  ;;  %v1934_v18 = vadd.f32 %v1550_v25, %v930_v57  ;;  %v1561_v54 = vmul.f32 %v9616_v56, %v13673_v4  ;;  %4244 = vmatmul.mubr.bf16.gmra.mrb[112].mxu1 %v6400_v41  ;;  %v10371_v2 = vpop.f32.mrb[9].mxu0  ;;  %v10373_v0 = vpop.f32.mrb[9].mxu1 }
 0x2a5   : > { %v3123_v31 = vpack.c.bf16 %v2863_v19, %v2851_v37  ;;  %v2860_v17 = vmax.f32 %v2476_v50, 0.0  ;;  %v2466_v61 = vadd.f32 %v13582_v33, %v1922_v39  ;;  %v1573_v34 = vmul.f32 %v9616_v56, %v13674_v24  ;;  %v10380_v37 = vpop.f32.mrb[10].mxu0  ;;  %v10382_v57 = vpop.f32.mrb[10].mxu1  ;;  %4253 = vmatprep.mubr.bf16.mxu1 %v6401_v52 }
 0x2a6   : > { %v943_v40 = vmul.f32 %v9619_v12, %v13671_v1  ;;  %v2478_v41 = vadd.f32 %v13583_v32, %v1934_v18  ;;  %v1945_v19 = vadd.f32 %v1561_v54, %v941_v51  ;;  %v955_v9 = vmul.f32 %v9619_v12, %v13672_v26  ;;  %v10389_v25 = vpop.f32.mrb[11].mxu0  ;;  %v10391_v50 = vpop.f32.mrb[11].mxu1  ;;  %v13676_v54 = vld [vmem:[#allocation49_spill] sm:$0xff] }
 0x2a7   : > { %4501 = vmatprep.subr.bf16.mxu1 %v3123_v31  ;;  %v1563_v33 = vmul.f32 %v9636_v53, %v13673_v4  ;;  %v3120_v39 = vpack.c.bf16 %v2860_v17, %v2848_v13  ;;  %v2850_v5 = vmax.f32 %v2466_v61, 0.0  ;;  %v1957_v35 = vadd.f32 %v1573_v34, %v953_v36  ;;  %v10403_v36 = vpop.permute.xlu1 %3319 }
 0x2a8   : > { %v1575_v52 = vmul.f32 %v9636_v53, %v13674_v24  ;;  %v2862_v31 = vmax.f32 %v2478_v41, 0.0  ;;  %v2489_v32 = vadd.f32 %v13675_v8, %v1945_v19  ;;  %v940_v18 = vmul.f32 %v9653_v3, %v13671_v1  ;;  %13677 = vst [vmem:[#allocation78_spill] sm:$0xff] %v10403_v36 }
 0x2a9   : > { %v1947_v51 = vadd.f32 %v1563_v33, %v943_v40  ;;  %4309 = vmatpush1.bf16.msra.mxu0 %v3120_v39  ;;  %v2501_v49 = vadd.f32 %v13676_v54, %v1957_v35  ;;  %v952_v62 = vmul.f32 %v9653_v3, %v13672_v26  ;;  %v1560_v34 = vmul.f32 %v9660_v63, %v13673_v4  ;;  %v6402_v35 = vld [vmem:[%s12564_s3 + $0xd0] ss:$8 sps:$4 sm:$0xff]  }
 0x2aa   : > { %v1959_v47 = vadd.f32 %v1575_v52, %v955_v9  ;;  %v3122_v13 = vpack.c.bf16 %v2862_v31, %v2850_v5  ;;  %v2873_v17 = vmax.f32 %v2489_v32, 0.0  ;;  %v1572_v40 = vmul.f32 %v9660_v63, %v13674_v24  ;;  %4061 = vmatmul.mubr.bf16.gmra.mrb[116].mxu0 %v6402_v35  ;;  %v6403_v52 = vld [vmem:[%s12564_s3 + $0xe4] ss:$8 sps:$4 sm:$0xff]  }
 0x2ab   : > { %v2491_v61 = vadd.f32 %v13675_v8, %v1947_v51  ;;  %v2885_v41 = vmax.f32 %v2501_v49, 0.0  ;;  %v1944_v9 = vadd.f32 %v1560_v34, %v940_v18  ;;  %v942_v33 = vmul.f32 %v9675_v43, %v13671_v1  ;;  %v10414_v39 = vpop.f32.mrb[12].mxu0  ;;  %v10416_v5 = vpop.f32.mrb[12].mxu1  ;;  %4070 = vmatprep.mubr.bf16.mxu0 %v6403_v52 }
 0x2ac   : > { %v2503_v19 = vadd.f32 %v13676_v54, %v1959_v47  ;;  %13678 = vst [vmem:[#allocation92_spill] sm:$0xff] %v10414_v39  ;;  %13679 = vst [vmem:[#allocation59_spill] sm:$0xff] %v10416_v5  ;;  %4502 = vmatpush1.bf16.msra.mxu1 %v3122_v13  ;;  %v1956_v32 = vadd.f32 %v1572_v40, %v952_v62  ;;  %v954_v49 = vmul.f32 %v9675_v43, %v13672_v26  ;;  %v10425_v51 = vpop.f32.mrb[13].mxu0  ;;  %v10427_v1 = vpop.f32.mrb[13].mxu1 }
 0x2ad   : > { %v2875_v31 = vmax.f32 %v2491_v61, 0.0  ;;  %v1562_v47 = vmul.f32 %v9678_v28, %v13673_v4  ;;  %13680 = vst [vmem:[#allocation94_spill] sm:$0xff] %v10425_v51  ;;  %13681 = vst [vmem:[#allocation80_spill] sm:$0xff] %v10427_v1  ;;  %v3133_v18 = vpack.c.bf16 %v2885_v41, %v2873_v17  ;;  %v2488_v36 = vadd.f32 %v13675_v8, %v1944_v9  ;;  %v10432_v13 = vpop.f32.mrb[14].mxu0  ;;  %v10434_v62 = vpop.f32.mrb[14].mxu1  ;;  %v13684_v4 = vld [vmem:[#allocation158_spill] sm:$0xff] }
 0x2ae   : > { %v2887_v34 = vmax.f32 %v2503_v19, 0.0  ;;  %v1574_v45 = vmul.f32 %v9678_v28, %v13674_v24  ;;  %4254 = vmatmul.mubr.bf16.gmra.mrb[116].mxu1 %v6402_v35  ;;  %13682 = vst [vmem:[#allocation107_spill] sm:$0xff] %v10432_v13  ;;  %13683 = vst [vmem:[#allocation108_spill] sm:$0xff] %v10434_v62  ;;  %v2500_v26 = vadd.f32 %v13676_v54, %v1956_v32  ;;  %v10441_v41 = vpop.f32.mrb[15].mxu0  ;;  %v10443_v19 = vpop.f32.mrb[15].mxu1  ;;  %v13688_v13 = vld [vmem:[#allocation125_spill] sm:$0xff] }
 0x2af   : > { %v1946_v61 = vadd.f32 %v1562_v47, %v942_v33  ;;  %v965_v40 = vmul.f32 %v9612_v29, %v13684_v4  ;;  %v977_v17 = vmul.f32 %v9612_v29, %v13685_v38  ;;  %13686 = vst [vmem:[#allocation141_spill] sm:$0xff] %v10441_v41  ;;  %13687 = vst [vmem:[#allocation135_spill] sm:$0xff] %v10443_v19  ;;  %4263 = vmatprep.mubr.bf16.mxu1 %v6403_v52  ;;  %v13689_v47 = vld [vmem:[#allocation138_spill] sm:$0xff] }
 0x2b0   : > { %4310 = vmatprep.subr.bf16.mxu0 %v3133_v18  ;;  %v3135_v24 = vpack.c.bf16 %v2887_v34, %v2875_v31  ;;  %v2872_v35 = vmax.f32 %v2488_v36, 0.0  ;;  %v1958_v9 = vadd.f32 %v1574_v45, %v954_v49  ;;  %v1585_v62 = vmul.f32 %v9616_v56, %v13688_v13  ;;  %v10457_v31 = vpop.permute.xlu1 %5088 }
 0x2b1   : > { %v2884_v32 = vmax.f32 %v2500_v26, 0.0  ;;  %v2490_v33 = vadd.f32 %v13675_v8, %v1946_v61  ;;  %v1597_v1 = vmul.f32 %v9616_v56, %v13689_v47  ;;  %v967_v51 = vmul.f32 %v9619_v12, %v13684_v4  ;;  %13690 = vst [vmem:[#allocation100_spill] sm:$0xff] %v10457_v31  ;;  %v6404_v26 = vld [vmem:[%s12564_s3 + $0xe0] ss:$8 sps:$4 sm:$0xff]  }
 0x2b2   : > { %4503 = vmatprep.subr.bf16.mxu1 %v3135_v24  ;;  %v2502_v19 = vadd.f32 %v13676_v54, %v1958_v9  ;;  %v1969_v52 = vadd.f32 %v1585_v62, %v965_v40  ;;  %v979_v36 = vmul.f32 %v9619_v12, %v13685_v38  ;;  %v1587_v45 = vmul.f32 %v9636_v53, %v13688_v13  ;;  %v13691_v62 = vld [vmem:[#allocation146_spill] sm:$0xff] }
 0x2b3   : > { %v3132_v49 = vpack.c.bf16 %v2884_v32, %v2872_v35  ;;  %v2874_v8 = vmax.f32 %v2490_v33, 0.0  ;;  %v1981_v18 = vadd.f32 %v1597_v1, %v977_v17  ;;  %v1599_v34 = vmul.f32 %v9636_v53, %v13689_v47  ;;  %4071 = vmatmul.mubr.bf16.gmra.mrb[120].mxu0 %v6404_v26  ;;  %v10467_v9 = vpop.f32.mrb[16].mxu0  ;;  %v10469_v35 = vpop.f32.mrb[16].mxu1  ;;  %v6405_v1 = vld [vmem:[%s12564_s3 + $0xf4] ss:$8 sps:$4 sm:$0xff]  }
 0x2b4   : > { %v2886_v54 = vmax.f32 %v2502_v19, 0.0  ;;  %v2513_v61 = vadd.f32 %v13691_v62, %v1969_v52  ;;  %v1971_v40 = vadd.f32 %v1587_v45, %v967_v51  ;;  %v964_v24 = vmul.f32 %v9653_v3, %v13684_v4  ;;  %13692 = vst [vmem:[#allocation115_spill] sm:$0xff] %v10467_v9  ;;  %13693 = vst [vmem:[#allocation116_spill] sm:$0xff] %v10469_v35  ;;  %v13694_v17 = vld [vmem:[#allocation82_spill] sm:$0xff]  ;;  %v10479_v52 = vpop.f32.mrb[17].mxu0  ;;  %v10481_v45 = vpop.f32.mrb[17].mxu1 }
 0x2b5   : > { %4080 = vmatprep.mubr.bf16.mxu0 %v6405_v1  ;;  %4311 = vmatpush1.bf16.msra.mxu0 %v3132_v49  ;;  %v2525_v32 = vadd.f32 %v13694_v17, %v1981_v18  ;;  %v1983_v33 = vadd.f32 %v1599_v34, %v979_v36  ;;  %v976_v19 = vmul.f32 %v9653_v3, %v13685_v38  ;;  %v10486_v18 = vpop.f32.mrb[18].mxu0  ;;  %v10488_v36 = vpop.f32.mrb[18].mxu1 }
 0x2b6   : > { %v1584_v51 = vmul.f32 %v9660_v63, %v13688_v13  ;;  %13695 = vst [vmem:[#allocation106_spill] sm:$0xff] %v10479_v52  ;;  %13696 = vst [vmem:[#allocation23_spill] sm:$0xff] %v10481_v45  ;;  %v3134_v35 = vpack.c.bf16 %v2886_v54, %v2874_v8  ;;  %v2897_v9 = vmax.f32 %v2513_v61, 0.0  ;;  %v2515_v41 = vadd.f32 %v13691_v62, %v1971_v40  ;;  %v10493_v45 = vpop.f32.mrb[19].mxu0  ;;  %v10495_v8 = vpop.f32.mrb[19].mxu1 }
 0x2b7   : > { %v1596_v49 = vmul.f32 %v9660_v63, %v13689_v47  ;;  %4264 = vmatmul.mubr.bf16.gmra.mrb[120].mxu1 %v6404_v26  ;;  %13697 = vst [vmem:[#allocation121_spill] sm:$0xff] %v10488_v36  ;;  %v2909_v34 = vmax.f32 %v2525_v32, 0.0  ;;  %v2527_v5 = vadd.f32 %v13694_v17, %v1983_v33  ;;  %v966_v52 = vmul.f32 %v9675_v43, %v13684_v4 }
 0x2b8   : > { %v1968_v39 = vadd.f32 %v1584_v51, %v964_v24  ;;  %13698 = vst [vmem:[#allocation126_spill] sm:$0xff] %v10493_v45  ;;  %13699 = vst [vmem:[#allocation148_spill] sm:$0xff] %v10495_v8  ;;  %4273 = vmatprep.mubr.bf16.mxu1 %v6405_v1  ;;  %4504 = vmatpush1.bf16.msra.mxu1 %v3134_v35  ;;  %v2899_v54 = vmax.f32 %v2515_v41, 0.0  ;;  %v978_v26 = vmul.f32 %v9675_v43, %v13685_v38  ;;  %v13700_v1 = vld [vmem:[#allocation164_spill] sm:$0xff]  ;;  %v13701_v35 = vld [vmem:[#allocation165_spill] sm:$0xff]  ;;  %v10509_v38 = vpop.permute.xlu1 %5098 }
 0x2b9   : > { %v1980_v61 = vadd.f32 %v1596_v49, %v976_v19  ;;  %v1586_v40 = vmul.f32 %v9678_v28, %v13688_v13  ;;  %v3145_v32 = vpack.c.bf16 %v2909_v34, %v2897_v9  ;;  %v2911_v33 = vmax.f32 %v2527_v5, 0.0  ;;  %13702 = vst [vmem:[#allocation150_spill] sm:$0xff] %v10509_v38  ;;  %v13703_v49 = vld [vmem:[#allocation133_spill] sm:$0xff] }
 0x2ba   : > { %v2512_v24 = vadd.f32 %v13691_v62, %v1968_v39  ;;  %v1598_v4 = vmul.f32 %v9678_v28, %v13689_v47  ;;  %v989_v41 = vmul.f32 %v9612_v29, %v13700_v1  ;;  %v1001_v19 = vmul.f32 %v9612_v29, %v13701_v35  ;;  %v6406_v47 = vld [vmem:[%s12564_s3 + $0xf0] ss:$8 sps:$4 sm:$0xff]  }
 0x2bb   : > { %v2524_v51 = vadd.f32 %v13694_v17, %v1980_v61  ;;  %v1970_v8 = vadd.f32 %v1586_v40, %v966_v52  ;;  %4312 = vmatprep.subr.bf16.mxu0 %v3145_v32  ;;  %v3147_v13 = vpack.c.bf16 %v2911_v33, %v2899_v54  ;;  %v1609_v39 = vmul.f32 %v9616_v56, %v13703_v49  ;;  %v13704_v61 = vld [vmem:[#allocation145_spill] sm:$0xff]  ;;  %v10521_v54 = vpop.f32.mrb[20].mxu0  ;;  %v6407_v32 = vld [vmem:[%s12564_s3 + $0x4] ss:$8 sps:$4 sm:$0xff]  }
 0x2bc   : > { %v2896_v9 = vmax.f32 %v2512_v24, 0.0  ;;  %v1982_v5 = vadd.f32 %v1598_v4, %v978_v26  ;;  %4081 = vmatmul.mubr.bf16.gmra.mrb[124].mxu0 %v6406_v47  ;;  %v1621_v29 = vmul.f32 %v9616_v56, %v13704_v61  ;;  %v991_v40 = vmul.f32 %v9619_v12, %v13700_v1  ;;  %13705 = vst [vmem:[#allocation128_spill] sm:$0xff] %v10521_v54  ;;  %v10523_v26 = vpop.f32.mrb[20].mxu1 }
 0x2bd   : > { %v2908_v52 = vmax.f32 %v2524_v51, 0.0  ;;  %v2514_v34 = vadd.f32 %v13691_v62, %v1970_v8  ;;  %13706 = vst [vmem:[#allocation28_spill] sm:$0xff] %v10523_v26  ;;  %4316 = vmatprep.mubr.bf16.mxu0 %v6407_v32  ;;  %4505 = vmatprep.subr.bf16.mxu1 %v3147_v13  ;;  %v1993_v24 = vadd.f32 %v1609_v39, %v989_v41  ;;  %v10533_v8 = vpop.f32.mrb[21].mxu0  ;;  %v10535_v4 = vpop.f32.mrb[21].mxu1 }
 0x2be   : > { %v2526_v33 = vadd.f32 %v13694_v17, %v1982_v5  ;;  %v1003_v62 = vmul.f32 %v9619_v12, %v13701_v35  ;;  %v1611_v56 = vmul.f32 %v9636_v53, %v13703_v49  ;;  %13707 = vst [vmem:[#allocation143_spill] sm:$0xff] %v10533_v8  ;;  %v2005_v54 = vadd.f32 %v1621_v29, %v1001_v19  ;;  %v10539_v13 = vpop.f32.mrb[22].mxu0  ;;  %v10541_v17 = vpop.f32.mrb[22].mxu1  ;;  %v13708_v12 = vld [vmem:[#allocation65_spill] sm:$0xff]  ;;  %v13709_v19 = vld [vmem:[#allocation95_spill] sm:$0xff] }
 0x2bf   : > { %v3144_v51 = vpack.c.bf16 %v2908_v52, %v2896_v9  ;;  %v2898_v26 = vmax.f32 %v2514_v34, 0.0  ;;  %v1623_v45 = vmul.f32 %v9636_v53, %v13704_v61  ;;  %4274 = vmatmul.mubr.bf16.gmra.mrb[124].mxu1 %v6406_v47  ;;  %v2537_v5 = vadd.f32 %v13708_v12, %v1993_v24  ;;  %v10546_v36 = vpop.f32.mrb[23].mxu0  ;;  %v10548_v9 = vpop.f32.mrb[23].mxu1 }
 0x2c0   : > { %v2910_v41 = vmax.f32 %v2526_v33, 0.0  ;;  %v1995_v39 = vadd.f32 %v1611_v56, %v991_v40  ;;  %v988_v8 = vmul.f32 %v9653_v3, %v13700_v1  ;;  %4509 = vmatprep.mubr.bf16.mxu1 %v6407_v32  ;;  %v2549_v53 = vadd.f32 %v13709_v19, %v2005_v54  ;;  %v10561_v54 = vpop.permute.xlu1 %5108 }
 0x2c1   : > { %4313 = vmatpush1.bf16.msra.mxu0 %v3144_v51  ;;  %v2007_v47 = vadd.f32 %v1623_v45, %v1003_v62  ;;  %v1000_v52 = vmul.f32 %v9653_v3, %v13701_v35  ;;  %v1608_v34 = vmul.f32 %v9660_v63, %v13703_v49  ;;  %v2921_v40 = vmax.f32 %v2537_v5, 0.0  ;;  %13710 = vst [vmem:[#allocation155_spill] sm:$0xff] %v10561_v54 }
 0x2c2   : > { %v3146_v29 = vpack.c.bf16 %v2910_v41, %v2898_v26  ;;  %v2539_v33 = vadd.f32 %v13708_v12, %v1995_v39  ;;  %v1620_v24 = vmul.f32 %v9660_v63, %v13704_v61  ;;  %v2933_v56 = vmax.f32 %v2549_v53, 0.0 }
 0x2c3   : > { %v2551_v32 = vadd.f32 %v13709_v19, %v2007_v47  ;;  %v1992_v51 = vadd.f32 %v1608_v34, %v988_v8  ;;  %v990_v45 = vmul.f32 %v9675_v43, %v13700_v1  ;;  %v1002_v26 = vmul.f32 %v9675_v43, %v13701_v35  ;;  %v10570_v53 = vpop.f32.mrb[24].mxu0  ;;  %v10572_v1 = vpop.f32.mrb[24].mxu1  ;;  %v13711_v34 = vld [vmem:[#allocation84_spill] sm:$0xff] }
 0x2c4   : > { %4506 = vmatpush1.bf16.msra.mxu1 %v3146_v29  ;;  %v2923_v3 = vmax.f32 %v2539_v33, 0.0  ;;  %v2004_v62 = vadd.f32 %v1620_v24, %v1000_v52  ;;  %v1610_v41 = vmul.f32 %v9678_v28, %v13703_v49  ;;  %v3157_v5 = vpack.c.bf16 %v2933_v56, %v2921_v40  ;;  %v10579_v49 = vpop.f32.mrb[25].mxu0  ;;  %v10581_v29 = vpop.f32.mrb[25].mxu1 }
 0x2c5   : > { %v2935_v63 = vmax.f32 %v2551_v32, 0.0  ;;  %v2536_v39 = vadd.f32 %v13708_v12, %v1992_v51  ;;  %v1622_v8 = vmul.f32 %v9678_v28, %v13704_v61  ;;  %v3547_v43 = vadd.f32 %v10259_v44, %v13711_v34  ;;  %v10585_v24 = vpop.f32.mrb[26].mxu0  ;;  %v10587_v56 = vpop.f32.mrb[26].mxu1 }
 0x2c6   : > { %v2548_v47 = vadd.f32 %v13709_v19, %v2004_v62  ;;  %v1994_v52 = vadd.f32 %v1610_v41, %v990_v45  ;;  %v3740_v35 = vadd.f32 %v10261_v59, %v13711_v34  ;;  %4314 = vmatprep.subr.bf16.mxu0 %v3157_v5  ;;  %v3549_v33 = vadd.f32 %v10266_v20, %v13711_v34  ;;  %v10590_v45 = vpop.f32.mrb[27].mxu0  ;;  %v10592_v62 = vpop.f32.mrb[27].mxu1 }
 0x2c7   : > { %v3159_v40 = vpack.c.bf16 %v2935_v63, %v2923_v3  ;;  %v2920_v28 = vmax.f32 %v2536_v39, 0.0  ;;  %v2006_v61 = vadd.f32 %v1622_v8, %v1002_v26  ;;  %v4670_v51 = vmax.f32 %v3547_v43, 0.0 }
 0x2c8   : > { %v2932_v32 = vmax.f32 %v2548_v47, 0.0  ;;  %v2538_v44 = vadd.f32 %v13708_v12, %v1994_v52  ;;  %v4672_v59 = vmax.f32 %v3740_v35, 0.0  ;;  %v4671_v26 = vmax.f32 %v3549_v33, 0.0  ;;  %v10602_v35 = vpop.permute.xlu1 %5118 }
 0x2c9   : > { %4507 = vmatprep.subr.bf16.mxu1 %v3159_v40  ;;  %v2550_v3 = vadd.f32 %v13709_v19, %v2006_v61  ;;  %v3742_v20 = vadd.f32 %v10268_v23, %v13711_v34  ;;  %v3551_v41 = vadd.f32 %v10273_v22, %v9992_v7  ;;  %v5246_v12 = vmul.f32 %v10457_v31, %v4670_v51  ;;  %v13713_v40 = vld [vmem:[#allocation87_spill] sm:$0xff] }
 0x2ca   : > { %v3156_v5 = vpack.c.bf16 %v2932_v32, %v2920_v28  ;;  %v2922_v63 = vmax.f32 %v2538_v44, 0.0  ;;  %v5248_v39 = vmul.f32 %v10457_v31, %v4672_v59  ;;  %v5247_v47 = vmul.f32 %v10457_v31, %v4671_v26  ;;  %13712 = vst [vmem:[#allocation159_spill] sm:$0xff] %v10602_v35  ;;  %v13714_v32 = vld [vmem:[#allocation21_spill] sm:$0xff] }
 0x2cb   : > { %v2934_v8 = vmax.f32 %v2550_v3, 0.0  ;;  %v4673_v52 = vmax.f32 %v3742_v20, 0.0  ;;  %v4682_v43 = vmax.f32 %v3551_v41, 0.0  ;;  %v3744_v23 = vadd.f32 %v10275_v14, %v9992_v7  ;;  %v10616_v59 = vpop.f32.mrb[28].mxu0  ;;  %v10618_v14 = vpop.f32.mrb[28].mxu1 }
 0x2cc   : > { %4315 = vmatpush1.bf16.msra.mxu0 %v3156_v5  ;;  %v3553_v22 = vadd.f32 %v10281_v60, %v9992_v7  ;;  %v3746_v19 = vadd.f32 %v10283_v11, %v9992_v7  ;;  %v3557_v28 = vadd.f32 %v10313_v55, %v13713_v40  ;;  %v3750_v51 = vadd.f32 %v10315_v48, %v13713_v40  ;;  %v10620_v11 = vpop.f32.mrb[29].mxu0  ;;  %v10622_v41 = vpop.f32.mrb[29].mxu1 }
 0x2cd   : > { %v3158_v61 = vpack.c.bf16 %v2934_v8, %v2922_v63  ;;  %v5249_v33 = vmul.f32 %v10457_v31, %v4673_v52  ;;  %v5258_v44 = vmul.f32 %v13714_v32, %v4682_v43  ;;  %v4684_v3 = vmax.f32 %v3744_v23, 0.0  ;;  %v6408_v8 = vld [vmem:[%s12564_s3] ss:$8 sps:$4 sm:$0xff]   ;;  %v10631_v52 = vpop.f32.mrb[30].mxu0  ;;  %v10633_v43 = vpop.f32.mrb[30].mxu1 }
 0x2ce   : > { %v4683_v60 = vmax.f32 %v3553_v22, 0.0  ;;  %v4685_v26 = vmax.f32 %v3746_v19, 0.0  ;;  %v4694_v20 = vmax.f32 %v3557_v28, 0.0  ;;  %v4696_v5 = vmax.f32 %v3750_v51, 0.0  ;;  %v10642_v19 = vpop.f32.mrb[31].mxu0  ;;  %v10644_v28 = vpop.f32.mrb[31].mxu1 }
 0x2cf   : > { %4508 = vmatpush1.bf16.msra.mxu1 %v3158_v61  ;;  %v5630_v55 = vadd.f32 %v5258_v44, %v5246_v12  ;;  %v3559_v63 = vadd.f32 %v10319_v30, %v13713_v40  ;;  %v3752_v48 = vadd.f32 %v10321_v58, %v13713_v40  ;;  %4317 = vmatmul.mubr.bf16.vlgmr.msra.gmra.mrb[128].mxu0 %v6408_v8  ;;  %v6409_v58 = vld [vmem:[%s12564_s3 + $0x14] ss:$8 sps:$4 sm:$0xff]  }
 0x2d0   : > { %v5260_v23 = vmul.f32 %v13714_v32, %v4684_v3  ;;  %v5259_v12 = vmul.f32 %v13714_v32, %v4683_v60  ;;  %v5261_v22 = vmul.f32 %v13714_v32, %v4685_v26  ;;  %v5270_v30 = vmul.f32 %v10509_v38, %v4694_v20  ;;  %4326 = vmatprep.mubr.bf16.mxu0 %v6409_v58 }
 0x2d1   : > { %v5272_v61 = vmul.f32 %v10509_v38, %v4696_v5  ;;  %v4695_v44 = vmax.f32 %v3559_v63, 0.0  ;;  %v4697_v51 = vmax.f32 %v3752_v48, 0.0  ;;  %v3561_v3 = vadd.f32 %v10326_v10, %v10023_v6  ;;  %v10653_v5 = vpop.permute.xlu1 %5128 }
 0x2d2   : > { %v5704_v60 = vadd.f32 %v5260_v23, %v5248_v39  ;;  %v5667_v26 = vadd.f32 %v5259_v12, %v5247_v47  ;;  %v5741_v40 = vadd.f32 %v5261_v22, %v5249_v33  ;;  %v5631_v20 = vadd.f32 %v5630_v55, %v5270_v30  ;;  %4510 = vmatmul.mubr.bf16.vlgmr.msra.gmra.mrb[128].mxu1 %v6408_v8  ;;  %v13716_v47 = vld [vmem:[#allocation41_spill] sm:$0xff] }
 0x2d3   : > { %v5271_v32 = vmul.f32 %v10509_v38, %v4695_v44  ;;  %v5273_v7 = vmul.f32 %v10509_v38, %v4697_v51  ;;  %v4706_v31 = vmax.f32 %v3561_v3, 0.0  ;;  %v3754_v34 = vadd.f32 %v10328_v16, %v10023_v6  ;;  %4519 = vmatprep.mubr.bf16.mxu1 %v6409_v58  ;;  %13715 = vst [vmem:[#allocation96_spill] sm:$0xff] %v10653_v5  ;;  %v13717_v8 = vld [vmem:[#allocation29_spill] sm:$0xff]  ;;  %v10662_v22 = vpop.f32.mrb[32].mxu0  ;;  %v10664_v16 = vpop.f32.mrb[32].mxu1  ;;  %v13731_v38 = vld [vmem:[#allocation107_spill] sm:$0xff] }
 0x2d4   : > { %v5705_v63 = vadd.f32 %v5704_v60, %v5272_v61  ;;  %v3563_v10 = vadd.f32 %v10335_v27, %v10023_v6  ;;  %v3756_v39 = vadd.f32 %v10337_v21, %v10023_v6  ;;  %v3567_v33 = vadd.f32 %v10365_v15, %v13716_v47  ;;  %v10668_v44 = vpop.f32.mrb[33].mxu0  ;;  %v10670_v21 = vpop.f32.mrb[33].mxu1 }
 0x2d5   : > { %v5668_v55 = vadd.f32 %v5667_v26, %v5271_v32  ;;  %v5742_v48 = vadd.f32 %v5741_v40, %v5273_v7  ;;  %v5282_v23 = vmul.f32 %v13717_v8, %v4706_v31  ;;  %v4708_v12 = vmax.f32 %v3754_v34, 0.0  ;;  %v6410_v40 = vld [vmem:[%s12564_s3 + $0x10] ss:$8 sps:$4 sm:$0xff]   ;;  %v10680_v32 = vpop.f32.mrb[34].mxu0 }
 0x2d6   : > { %v4707_v30 = vmax.f32 %v3563_v10, 0.0  ;;  %v4709_v58 = vmax.f32 %v3756_v39, 0.0  ;;  %v4718_v61 = vmax.f32 %v3567_v33, 0.0  ;;  %v3760_v27 = vadd.f32 %v10367_v42, %v13716_v47  ;;  %v10682_v42 = vpop.f32.mrb[34].mxu1 }
 0x2d7   : > { %v5632_v15 = vadd.f32 %v5631_v20, %v5282_v23  ;;  %v5284_v7 = vmul.f32 %v13717_v8, %v4708_v12  ;;  %v3569_v31 = vadd.f32 %v10371_v2, %v13716_v47  ;;  %v3762_v34 = vadd.f32 %v10373_v0, %v13716_v47  ;;  %4327 = vmatmul.mubr.bf16.gmra.mrb[132].mxu0 %v6410_v40  ;;  %v6411_v2 = vld [vmem:[%s12564_s3 + $0x24] ss:$8 sps:$4 sm:$0xff]   ;;  %v10690_v0 = vpop.f32.mrb[35].mxu0  ;;  %v10692_v20 = vpop.f32.mrb[35].mxu1 }
 0x2d8   : > { %v5283_v51 = vmul.f32 %v13717_v8, %v4707_v30  ;;  %v5285_v3 = vmul.f32 %v13717_v8, %v4709_v58  ;;  %v5294_v60 = vmul.f32 %v10561_v54, %v4718_v61  ;;  %v4720_v26 = vmax.f32 %v3760_v27, 0.0  ;;  %4336 = vmatprep.mubr.bf16.mxu0 %v6411_v2 }
 0x2d9   : > { %v5706_v10 = vadd.f32 %v5705_v63, %v5284_v7  ;;  %v4719_v39 = vmax.f32 %v3569_v31, 0.0  ;;  %v4721_v33 = vmax.f32 %v3762_v34, 0.0  ;;  %v3571_v23 = vadd.f32 %v10380_v37, %v10047_v46  ;;  %v10701_v63 = vpop.permute.xlu1 %5138 }
 0x2da   : > { %v5669_v12 = vadd.f32 %v5668_v55, %v5283_v51  ;;  %v5743_v30 = vadd.f32 %v5742_v48, %v5285_v3  ;;  %v5633_v58 = vadd.f32 %v5632_v15, %v5294_v60  ;;  %v5296_v61 = vmul.f32 %v10561_v54, %v4720_v26  ;;  %4520 = vmatmul.mubr.bf16.gmra.mrb[132].mxu1 %v6410_v40  ;;  %v13719_v48 = vld [vmem:[#allocation88_spill] sm:$0xff]  ;;  %v13721_v51 = vld [vmem:[#allocation114_spill] sm:$0xff] }
 0x2db   : > { %v5295_v27 = vmul.f32 %v10561_v54, %v4719_v39  ;;  %v5297_v47 = vmul.f32 %v10561_v54, %v4721_v33  ;;  %v4730_v8 = vmax.f32 %v3571_v23, 0.0  ;;  %v3764_v6 = vadd.f32 %v10382_v57, %v10047_v46  ;;  %4529 = vmatprep.mubr.bf16.mxu1 %v6411_v2  ;;  %13718 = vst [vmem:[#allocation110_spill] sm:$0xff] %v10701_v63  ;;  %v13720_v15 = vld [vmem:[#allocation92_spill] sm:$0xff]  ;;  %v10710_v26 = vpop.f32.mrb[36].mxu0  ;;  %v10712_v57 = vpop.f32.mrb[36].mxu1  ;;  %v13730_v54 = vld [vmem:[#allocation31_spill] sm:$0xff] }
 0x2dc   : > { %v5707_v7 = vadd.f32 %v5706_v10, %v5296_v61  ;;  %v3573_v37 = vadd.f32 %v10389_v25, %v10047_v46  ;;  %v3766_v55 = vadd.f32 %v10391_v50, %v10047_v46  ;;  %v3577_v31 = vadd.f32 %v13720_v15, %v13719_v48  ;;  %v13722_v25 = vld [vmem:[#allocation59_spill] sm:$0xff]  ;;  %v10716_v23 = vpop.f32.mrb[37].mxu0  ;;  %v10718_v50 = vpop.f32.mrb[37].mxu1 }
 0x2dd   : > { %v5670_v34 = vadd.f32 %v5669_v12, %v5295_v27  ;;  %v5744_v40 = vadd.f32 %v5743_v30, %v5297_v47  ;;  %v5306_v3 = vmul.f32 %v13721_v51, %v4730_v8  ;;  %v4732_v60 = vmax.f32 %v3764_v6, 0.0  ;;  %13723 = vst [vmem:[#allocation137_spill] sm:$0xff] %v10718_v50  ;;  %v13724_v8 = vld [vmem:[#allocation94_spill] sm:$0xff]  ;;  %v13725_v12 = vld [vmem:[#allocation80_spill] sm:$0xff] }
 0x2de   : > { %v4731_v2 = vmax.f32 %v3573_v37, 0.0  ;;  %v4733_v10 = vmax.f32 %v3766_v55, 0.0  ;;  %v4742_v39 = vmax.f32 %v3577_v31, 0.0  ;;  %v3770_v33 = vadd.f32 %v13722_v25, %v13719_v48  ;;  %v6412_v27 = vld [vmem:[%s12564_s3 + $0x20] ss:$8 sps:$4 sm:$0xff]   ;;  %v10728_v37 = vpop.f32.mrb[38].mxu0 }
 0x2df   : > { %v5634_v61 = vadd.f32 %v5633_v58, %v5306_v3  ;;  %v5308_v47 = vmul.f32 %v13721_v51, %v4732_v60  ;;  %v3579_v6 = vadd.f32 %v13724_v8, %v13719_v48  ;;  %v3772_v30 = vadd.f32 %v13725_v12, %v13719_v48  ;;  %4337 = vmatmul.mubr.bf16.gmra.mrb[136].mxu0 %v6412_v27  ;;  %v10730_v55 = vpop.f32.mrb[38].mxu1  ;;  %v6413_v60 = vld [vmem:[%s12564_s3 + $0x34] ss:$8 sps:$4 sm:$0xff]   ;;  %v10738_v25 = vpop.f32.mrb[39].mxu0 }
 0x2e0   : > { %13726 = vst [vmem:[#allocation149_spill] sm:$0xff] %v10728_v37  ;;  %13727 = vst [vmem:[#allocation72_spill] sm:$0xff] %v10730_v55  ;;  %v5307_v15 = vmul.f32 %v13721_v51, %v4731_v2  ;;  %v5309_v58 = vmul.f32 %v13721_v51, %v4733_v10  ;;  %v5318_v31 = vmul.f32 %v10602_v35, %v4742_v39  ;;  %v4744_v3 = vmax.f32 %v3770_v33, 0.0  ;;  %v10740_v8 = vpop.f32.mrb[39].mxu1 }
 0x2e1   : > { %4346 = vmatprep.mubr.bf16.mxu0 %v6413_v60  ;;  %13728 = vst [vmem:[#allocation117_spill] sm:$0xff] %v10738_v25  ;;  %13729 = vst [vmem:[#allocation120_spill] sm:$0xff] %v10740_v8  ;;  %v5708_v12 = vadd.f32 %v5707_v7, %v5308_v47  ;;  %v4743_v48 = vmax.f32 %v3579_v6, 0.0  ;;  %v4745_v46 = vmax.f32 %v3772_v30, 0.0  ;;  %v3581_v2 = vadd.f32 %v13731_v38, %v13730_v54  ;;  %v13732_v25 = vld [vmem:[#allocation108_spill] sm:$0xff]  ;;  %v10749_v7 = vpop.permute.xlu1 %5148  ;;  %v13734_v38 = vld [vmem:[#allocation141_spill] sm:$0xff] }
 0x2e2   : > { %v5671_v55 = vadd.f32 %v5670_v34, %v5307_v15  ;;  %v5745_v10 = vadd.f32 %v5744_v40, %v5309_v58  ;;  %v5635_v51 = vadd.f32 %v5634_v61, %v5318_v31  ;;  %v5320_v39 = vmul.f32 %v10602_v35, %v4744_v3  ;;  %4530 = vmatmul.mubr.bf16.gmra.mrb[136].mxu1 %v6412_v27  ;;  %v13735_v40 = vld [vmem:[#allocation135_spill] sm:$0xff]  ;;  %v13736_v6 = vld [vmem:[#allocation52_spill] sm:$0xff] }
 0x2e3   : > { %v5319_v33 = vmul.f32 %v10602_v35, %v4743_v48  ;;  %v5321_v37 = vmul.f32 %v10602_v35, %v4745_v46  ;;  %v4754_v50 = vmax.f32 %v3581_v2, 0.0  ;;  %v3774_v8 = vadd.f32 %v13732_v25, %v13730_v54  ;;  %4539 = vmatprep.mubr.bf16.mxu1 %v6413_v60  ;;  %13733 = vst [vmem:[#allocation101_spill] sm:$0xff] %v10749_v7  ;;  %v13737_v30 = vld [vmem:[#allocation115_spill] sm:$0xff]  ;;  %v13738_v46 = vld [vmem:[#allocation24_spill] sm:$0xff]  ;;  %v10758_v3 = vpop.f32.mrb[40].mxu0  ;;  %v10760_v60 = vpop.f32.mrb[40].mxu1 }
 0x2e4   : > { %v5709_v47 = vadd.f32 %v5708_v12, %v5320_v39  ;;  %v3583_v34 = vadd.f32 %v13734_v38, %v13730_v54  ;;  %v3776_v61 = vadd.f32 %v13735_v40, %v13730_v54  ;;  %v3587_v27 = vadd.f32 %v13737_v30, %v13736_v6  ;;  %13739 = vst [vmem:[#allocation123_spill] sm:$0xff] %v10760_v60  ;;  %v13740_v39 = vld [vmem:[#allocation116_spill] sm:$0xff]  ;;  %v10764_v35 = vpop.f32.mrb[41].mxu0  ;;  %v10766_v40 = vpop.f32.mrb[41].mxu1 }
 0x2e5   : > { %v5672_v48 = vadd.f32 %v5671_v55, %v5319_v33  ;;  %v5746_v15 = vadd.f32 %v5745_v10, %v5321_v37  ;;  %v5330_v58 = vmul.f32 %v13738_v46, %v4754_v50  ;;  %v4756_v31 = vmax.f32 %v3774_v8, 0.0  ;;  %13741 = vst [vmem:[#allocation156_spill] sm:$0xff] %v10764_v35  ;;  %13742 = vst [vmem:[#allocation74_spill] sm:$0xff] %v10766_v40  ;;  %v13743_v50 = vld [vmem:[#allocation106_spill] sm:$0xff]  ;;  %v13744_v8 = vld [vmem:[#allocation23_spill] sm:$0xff] }
 0x2e6   : > { %v4755_v25 = vmax.f32 %v3583_v34, 0.0  ;;  %v4757_v12 = vmax.f32 %v3776_v61, 0.0  ;;  %v4766_v2 = vmax.f32 %v3587_v27, 0.0  ;;  %v3780_v38 = vadd.f32 %v13740_v39, %v13736_v6  ;;  %v6414_v33 = vld [vmem:[%s12564_s3 + $0x30] ss:$8 sps:$4 sm:$0xff]   ;;  %v10776_v34 = vpop.f32.mrb[42].mxu0 }
 0x2e7   : > { %v5636_v30 = vadd.f32 %v5635_v51, %v5330_v58  ;;  %v5332_v37 = vmul.f32 %v13738_v46, %v4756_v31  ;;  %v3589_v55 = vadd.f32 %v13743_v50, %v13736_v6  ;;  %v3782_v10 = vadd.f32 %v13744_v8, %v13736_v6  ;;  %4347 = vmatmul.mubr.bf16.gmra.mrb[140].mxu0 %v6414_v33  ;;  %v10778_v61 = vpop.f32.mrb[42].mxu1  ;;  %v6415_v39 = vld [vmem:[%s12564_s3 + $0x44] ss:$8 sps:$4 sm:$0xff]   ;;  %v10786_v50 = vpop.f32.mrb[43].mxu0 }
 0x2e8   : > { %13745 = vst [vmem:[#allocation9_spill] sm:$0xff] %v10776_v34  ;;  %13746 = vst [vmem:[#allocation7_spill] sm:$0xff] %v10778_v61  ;;  %v5331_v27 = vmul.f32 %v13738_v46, %v4755_v25  ;;  %v5333_v51 = vmul.f32 %v13738_v46, %v4757_v12  ;;  %v5342_v58 = vmul.f32 %v10653_v5, %v4766_v2  ;;  %v4768_v31 = vmax.f32 %v3780_v38, 0.0  ;;  %v10788_v8 = vpop.f32.mrb[43].mxu1  ;;  %v13749_v61 = vld [vmem:[#allocation103_spill] sm:$0xff] }
 0x2e9   : > { %4356 = vmatprep.mubr.bf16.mxu0 %v6415_v39  ;;  %13747 = vst [vmem:[#allocation11_spill] sm:$0xff] %v10786_v50  ;;  %13748 = vst [vmem:[#allocation10_spill] sm:$0xff] %v10788_v8  ;;  %v5710_v6 = vadd.f32 %v5709_v47, %v5332_v37  ;;  %v4767_v54 = vmax.f32 %v3589_v55, 0.0  ;;  %v4769_v34 = vmax.f32 %v3782_v10, 0.0  ;;  %v3591_v25 = vadd.f32 %v10486_v18, %v13749_v61  ;;  %v13750_v50 = vld [vmem:[#allocation121_spill] sm:$0xff]  ;;  %v10797_v47 = vpop.permute.xlu1 %5158  ;;  %v13752_v18 = vld [vmem:[#allocation126_spill] sm:$0xff] }
 0x2ea   : > { %v5673_v40 = vadd.f32 %v5672_v48, %v5331_v27  ;;  %v5747_v12 = vadd.f32 %v5746_v15, %v5333_v51  ;;  %v5637_v46 = vadd.f32 %v5636_v30, %v5342_v58  ;;  %v5344_v2 = vmul.f32 %v10653_v5, %v4768_v31  ;;  %4540 = vmatmul.mubr.bf16.gmra.mrb[140].mxu1 %v6414_v33  ;;  %v13753_v15 = vld [vmem:[#allocation148_spill] sm:$0xff]  ;;  %v13754_v55 = vld [vmem:[#allocation53_spill] sm:$0xff] }
 0x2eb   : > { %v5343_v38 = vmul.f32 %v10653_v5, %v4767_v54  ;;  %v5345_v35 = vmul.f32 %v10653_v5, %v4769_v34  ;;  %v4778_v60 = vmax.f32 %v3591_v25, 0.0  ;;  %v3784_v8 = vadd.f32 %v13750_v50, %v13749_v61  ;;  %4549 = vmatprep.mubr.bf16.mxu1 %v6415_v39  ;;  %13751 = vst [vmem:[#allocation144_spill] sm:$0xff] %v10797_v47  ;;  %v13755_v10 = vld [vmem:[#allocation128_spill] sm:$0xff]  ;;  %v13756_v34 = vld [vmem:[#allocation119_spill] sm:$0xff]  ;;  %v10806_v31 = vpop.f32.mrb[44].mxu0  ;;  %v10808_v39 = vpop.f32.mrb[44].mxu1 }
 0x2ec   : > { %v5711_v37 = vadd.f32 %v5710_v6, %v5344_v2  ;;  %v3593_v48 = vadd.f32 %v13752_v18, %v13749_v61  ;;  %v3786_v30 = vadd.f32 %v13753_v15, %v13749_v61  ;;  %v3597_v33 = vadd.f32 %v13755_v10, %v13754_v55  ;;  %v13757_v2 = vld [vmem:[#allocation28_spill] sm:$0xff]  ;;  %v10812_v5 = vpop.f32.mrb[45].mxu0  ;;  %v10814_v15 = vpop.f32.mrb[45].mxu1 }
 0x2ed   : > { %v5674_v54 = vadd.f32 %v5673_v40, %v5343_v38  ;;  %v5748_v27 = vadd.f32 %v5747_v12, %v5345_v35  ;;  %v5354_v51 = vmul.f32 %v13756_v34, %v4778_v60  ;;  %v4780_v58 = vmax.f32 %v3784_v8, 0.0  ;;  %13758 = vst [vmem:[#allocation30_spill] sm:$0xff] %v10812_v5  ;;  %13759 = vst [vmem:[#allocation8_spill] sm:$0xff] %v10814_v15  ;;  %v13760_v60 = vld [vmem:[#allocation143_spill] sm:$0xff]  ;;  %v10824_v38 = vpop.f32.mrb[46].mxu0 }
 0x2ee   : > { %v4779_v50 = vmax.f32 %v3593_v48, 0.0  ;;  %v4781_v6 = vmax.f32 %v3786_v30, 0.0  ;;  %v4790_v25 = vmax.f32 %v3597_v33, 0.0  ;;  %v3790_v18 = vadd.f32 %v13757_v2, %v13754_v55  ;;  %v6416_v12 = vld [vmem:[%s12564_s3 + $0x40] ss:$8 sps:$4 sm:$0xff]   ;;  %13761 = vst [vmem:[#allocation5_spill] sm:$0xff] %v10824_v38 }
 0x2ef   : > { %v5638_v10 = vadd.f32 %v5637_v46, %v5354_v51  ;;  %v5356_v35 = vmul.f32 %v13756_v34, %v4780_v58  ;;  %v3599_v40 = vadd.f32 %v13760_v60, %v13754_v55  ;;  %v3792_v8 = vadd.f32 %v10535_v4, %v13754_v55  ;;  %4357 = vmatmul.mubr.bf16.gmra.mrb[144].mxu0 %v6416_v12  ;;  %v10826_v48 = vpop.f32.mrb[46].mxu1  ;;  %v6417_v4 = vld [vmem:[%s12564_s3 + $0x54] ss:$8 sps:$4 sm:$0xff]   ;;  %v10834_v58 = vpop.f32.mrb[47].mxu0 }
 0x2f0   : > { %13762 = vst [vmem:[#allocation15_spill] sm:$0xff] %v10826_v48  ;;  %v5355_v30 = vmul.f32 %v13756_v34, %v4779_v50  ;;  %v5357_v46 = vmul.f32 %v13756_v34, %v4781_v6  ;;  %v5366_v33 = vmul.f32 %v10701_v63, %v4790_v25  ;;  %v4792_v51 = vmax.f32 %v3790_v18, 0.0  ;;  %4366 = vmatprep.mubr.bf16.mxu0 %v6417_v4  ;;  %v10836_v2 = vpop.f32.mrb[47].mxu1  ;;  %v13764_v48 = vld [vmem:[#allocation40_spill] sm:$0xff] }
 0x2f1   : > { %13763 = vst [vmem:[#allocation14_spill] sm:$0xff] %v10836_v2  ;;  %v5712_v60 = vadd.f32 %v5711_v37, %v5356_v35  ;;  %v4791_v55 = vmax.f32 %v3599_v40, 0.0  ;;  %v4793_v61 = vmax.f32 %v3792_v8, 0.0  ;;  %v3601_v50 = vadd.f32 %v10539_v13, %v13764_v48 }
 0x2f2   : > { %v5675_v38 = vadd.f32 %v5674_v54, %v5355_v30  ;;  %v5749_v6 = vadd.f32 %v5748_v27, %v5357_v46  ;;  %v5639_v34 = vadd.f32 %v5638_v10, %v5366_v33  ;;  %v5368_v25 = vmul.f32 %v10701_v63, %v4792_v51  ;;  %4550 = vmatmul.mubr.bf16.gmra.mrb[144].mxu1 %v6416_v12  ;;  %v13765_v54 = vld [vmem:[#allocation93_spill] sm:$0xff]  ;;  %v10851_v10 = vpop.permute.xlu1 %5168 }
 0x2f3   : > { %v5367_v18 = vmul.f32 %v10701_v63, %v4791_v55  ;;  %v5369_v15 = vmul.f32 %v10701_v63, %v4793_v61  ;;  %v4802_v5 = vmax.f32 %v3601_v50, 0.0  ;;  %v3794_v2 = vadd.f32 %v10541_v17, %v13764_v48  ;;  %4559 = vmatprep.mubr.bf16.mxu1 %v6417_v4  ;;  %13766 = vst [vmem:[#allocation50_spill] sm:$0xff] %v10851_v10  ;;  %v13767_v61 = vld [vmem:[#allocation122_spill] sm:$0xff]  ;;  %v10854_v30 = vpop.f32.mrb[48].mxu0 }
 0x2f4   : > { %v5713_v37 = vadd.f32 %v5712_v60, %v5368_v25  ;;  %v3603_v35 = vadd.f32 %v10546_v36, %v13764_v48  ;;  %v3796_v13 = vadd.f32 %v10548_v9, %v13764_v48  ;;  %v3607_v27 = vadd.f32 %v10570_v53, %v13765_v54  ;;  %v10858_v51 = vpop.f32.mrb[48].mxu1  ;;  %v10860_v9 = vpop.f32.mrb[49].mxu0 }
 0x2f5   : > { %v5676_v55 = vadd.f32 %v5675_v38, %v5367_v18  ;;  %v5750_v40 = vadd.f32 %v5749_v6, %v5369_v15  ;;  %v5378_v8 = vmul.f32 %v13767_v61, %v4802_v5  ;;  %v4804_v12 = vmax.f32 %v3794_v2, 0.0  ;;  %v6418_v38 = vld [vmem:[%s12564_s3 + $0x50] ss:$8 sps:$4 sm:$0xff]   ;;  %v10870_v2 = vpop.f32.mrb[49].mxu1 }
 0x2f6   : > { %v4803_v17 = vmax.f32 %v3603_v35, 0.0  ;;  %v4805_v46 = vmax.f32 %v3796_v13, 0.0  ;;  %v4814_v33 = vmax.f32 %v3607_v27, 0.0  ;;  %v3800_v36 = vadd.f32 %v10572_v1, %v13765_v54  ;;  %v10872_v1 = vpop.f32.mrb[50].mxu0  ;;  %v13768_v27 = vld [vmem:[#allocation85_spill] sm:$0xff] }
 0x2f7   : > { %v5640_v53 = vadd.f32 %v5639_v34, %v5378_v8  ;;  %v5380_v4 = vmul.f32 %v13767_v61, %v4804_v12  ;;  %v3609_v15 = vadd.f32 %v10579_v49, %v13765_v54  ;;  %v3802_v5 = vadd.f32 %v10581_v29, %v13765_v54  ;;  %4367 = vmatmul.mubr.bf16.gmra.mrb[148].mxu0 %v6418_v38  ;;  %v6419_v49 = vld [vmem:[%s12564_s3 + $0x64] ss:$8 sps:$4 sm:$0xff]   ;;  %v10880_v29 = vpop.f32.mrb[50].mxu1  ;;  %v10882_v25 = vpop.f32.mrb[51].mxu0 }
 0x2f8   : > { %v5379_v60 = vmul.f32 %v13767_v61, %v4803_v17  ;;  %v5381_v34 = vmul.f32 %v13767_v61, %v4805_v46  ;;  %v5390_v50 = vmul.f32 %v10749_v7, %v4814_v33  ;;  %v4816_v6 = vmax.f32 %v3800_v36, 0.0  ;;  %4376 = vmatprep.mubr.bf16.mxu0 %v6419_v49  ;;  %v10886_v12 = vpop.f32.mrb[51].mxu1 }
 0x2f9   : > { %v5714_v18 = vadd.f32 %v5713_v37, %v5380_v4  ;;  %v4815_v35 = vmax.f32 %v3609_v15, 0.0  ;;  %v4817_v13 = vmax.f32 %v3802_v5, 0.0  ;;  %v3611_v8 = vadd.f32 %v10585_v24, %v13768_v27  ;;  %v10899_v15 = vpop.permute.xlu1 %5178 }
 0x2fa   : > { %v5677_v17 = vadd.f32 %v5676_v55, %v5379_v60  ;;  %v5751_v46 = vadd.f32 %v5750_v40, %v5381_v34  ;;  %v5641_v33 = vadd.f32 %v5640_v53, %v5390_v50  ;;  %v5392_v36 = vmul.f32 %v10749_v7, %v4816_v6  ;;  %4560 = vmatmul.mubr.bf16.gmra.mrb[148].mxu1 %v6418_v38  ;;  %v13769_v40 = vld [vmem:[#allocation79_spill] sm:$0xff]  ;;  %v13771_v60 = vld [vmem:[#allocation124_spill] sm:$0xff] }
 0x2fb   : > { %v5391_v61 = vmul.f32 %v10749_v7, %v4815_v35  ;;  %v5393_v54 = vmul.f32 %v10749_v7, %v4817_v13  ;;  %v4826_v48 = vmax.f32 %v3611_v8, 0.0  ;;  %v3804_v37 = vadd.f32 %v10587_v56, %v13768_v27  ;;  %4569 = vmatprep.mubr.bf16.mxu1 %v6419_v49  ;;  %13770 = vst [vmem:[#allocation35_spill] sm:$0xff] %v10899_v15  ;;  %v10902_v6 = vpop.f32.mrb[52].mxu0 }
 0x2fc   : > { %v5715_v4 = vadd.f32 %v5714_v18, %v5392_v36  ;;  %v3613_v24 = vadd.f32 %v10590_v45, %v13768_v27  ;;  %v3806_v55 = vadd.f32 %v10592_v62, %v13768_v27  ;;  %v3617_v53 = vadd.f32 %v10616_v59, %v13769_v40  ;;  %v10906_v35 = vpop.f32.mrb[52].mxu1  ;;  %v10908_v62 = vpop.f32.mrb[53].mxu0 }
 0x2fd   : > { %v5678_v5 = vadd.f32 %v5677_v17, %v5391_v61  ;;  %v5752_v38 = vadd.f32 %v5751_v46, %v5393_v54  ;;  %v5402_v34 = vmul.f32 %v13771_v60, %v4826_v48  ;;  %v4828_v50 = vmax.f32 %v3804_v37, 0.0  ;;  %v6420_v61 = vld [vmem:[%s12564_s3 + $0x60] ss:$8 sps:$4 sm:$0xff]   ;;  %v10918_v8 = vpop.f32.mrb[53].mxu1 }
 0x2fe   : > { %v4827_v56 = vmax.f32 %v3613_v24, 0.0  ;;  %v4829_v49 = vmax.f32 %v3806_v55, 0.0  ;;  %v4838_v18 = vmax.f32 %v3617_v53, 0.0  ;;  %v3810_v45 = vadd.f32 %v10618_v14, %v13769_v40  ;;  %v10920_v14 = vpop.f32.mrb[54].mxu0 }
 0x2ff   : > { %v5642_v59 = vadd.f32 %v5641_v33, %v5402_v34  ;;  %v5404_v13 = vmul.f32 %v13771_v60, %v4828_v50  ;;  %v3619_v54 = vadd.f32 %v10620_v11, %v13769_v40  ;;  %v3812_v48 = vadd.f32 %v10622_v41, %v13769_v40  ;;  %4377 = vmatmul.mubr.bf16.gmra.mrb[152].mxu0 %v6420_v61  ;;  %v6421_v11 = vld [vmem:[%s12564_s3 + $0x74] ss:$8 sps:$4 sm:$0xff]   ;;  %v10928_v41 = vpop.f32.mrb[54].mxu1  ;;  %v10930_v37 = vpop.f32.mrb[55].mxu0 }
 0x300   : > { %v5403_v17 = vmul.f32 %v13771_v60, %v4827_v56  ;;  %v5405_v46 = vmul.f32 %v13771_v60, %v4829_v49  ;;  %v5414_v33 = vmul.f32 %v10797_v47, %v4838_v18  ;;  %v4840_v36 = vmax.f32 %v3810_v45, 0.0  ;;  %4386 = vmatprep.mubr.bf16.mxu0 %v6421_v11  ;;  %v13772_v34 = vld [vmem:[#allocation86_spill] sm:$0xff]  ;;  %v10934_v56 = vpop.f32.mrb[55].mxu1 }
 0x301   : > { %v5716_v24 = vadd.f32 %v5715_v4, %v5404_v13  ;;  %v4839_v55 = vmax.f32 %v3619_v54, 0.0  ;;  %v4841_v53 = vmax.f32 %v3812_v48, 0.0  ;;  %v3621_v50 = vadd.f32 %v10631_v52, %v13772_v34  ;;  %v10947_v54 = vpop.permute.xlu1 %5188 }
 0x302   : > { %v5679_v49 = vadd.f32 %v5678_v5, %v5403_v17  ;;  %v5753_v18 = vadd.f32 %v5752_v38, %v5405_v46  ;;  %v5643_v45 = vadd.f32 %v5642_v59, %v5414_v33  ;;  %v5416_v60 = vmul.f32 %v10797_v47, %v4840_v36  ;;  %4570 = vmatmul.mubr.bf16.gmra.mrb[152].mxu1 %v6420_v61  ;;  %v13773_v38 = vld [vmem:[#allocation60_spill] sm:$0xff]  ;;  %v13775_v17 = vld [vmem:[#allocation127_spill] sm:$0xff] }
 0x303   : > { %v5415_v40 = vmul.f32 %v10797_v47, %v4839_v55  ;;  %v5417_v27 = vmul.f32 %v10797_v47, %v4841_v53  ;;  %v4850_v7 = vmax.f32 %v3621_v50, 0.0  ;;  %v3814_v4 = vadd.f32 %v10633_v43, %v13772_v34  ;;  %4579 = vmatprep.mubr.bf16.mxu1 %v6421_v11  ;;  %13774 = vst [vmem:[#allocation12_spill] sm:$0xff] %v10947_v54  ;;  %v10950_v36 = vpop.f32.mrb[56].mxu0 }
 0x304   : > { %v5717_v13 = vadd.f32 %v5716_v24, %v5416_v60  ;;  %v3623_v52 = vadd.f32 %v10642_v19, %v13772_v34  ;;  %v3816_v5 = vadd.f32 %v10644_v28, %v13772_v34  ;;  %v3627_v59 = vadd.f32 %v10662_v22, %v13773_v38  ;;  %v10954_v24 = vpop.f32.mrb[56].mxu1  ;;  %v10956_v28 = vpop.f32.mrb[57].mxu0 }
 0x305   : > { %v5680_v48 = vadd.f32 %v5679_v49, %v5415_v40  ;;  %v5754_v61 = vadd.f32 %v5753_v18, %v5417_v27  ;;  %v5426_v46 = vmul.f32 %v13775_v17, %v4850_v7  ;;  %v4852_v33 = vmax.f32 %v3814_v4, 0.0  ;;  %v6422_v40 = vld [vmem:[%s12564_s3 + $0x70] ss:$8 sps:$4 sm:$0xff]   ;;  %v10966_v53 = vpop.f32.mrb[57].mxu1 }
 0x306   : > { %v4851_v43 = vmax.f32 %v3623_v52, 0.0  ;;  %v4853_v60 = vmax.f32 %v3816_v5, 0.0  ;;  %v4862_v11 = vmax.f32 %v3627_v59, 0.0  ;;  %v3820_v19 = vadd.f32 %v10664_v16, %v13773_v38  ;;  %v10968_v16 = vpop.f32.mrb[58].mxu0 }
 0x307   : > { %v5644_v22 = vadd.f32 %v5643_v45, %v5426_v46  ;;  %v5428_v55 = vmul.f32 %v13775_v17, %v4852_v33  ;;  %v3629_v27 = vadd.f32 %v10668_v44, %v13773_v38  ;;  %v3822_v7 = vadd.f32 %v10670_v21, %v13773_v38  ;;  %4387 = vmatmul.mubr.bf16.gmra.mrb[156].mxu0 %v6422_v40  ;;  %v6423_v44 = vld [vmem:[%s12564_s3 + $0x84] ss:$8 sps:$4 sm:$0xff]   ;;  %v10976_v21 = vpop.f32.mrb[58].mxu1  ;;  %v10978_v4 = vpop.f32.mrb[59].mxu0 }
 0x308   : > { %v5427_v50 = vmul.f32 %v13775_v17, %v4851_v43  ;;  %v5429_v49 = vmul.f32 %v13775_v17, %v4853_v60  ;;  %v5438_v18 = vmul.f32 %v10851_v10, %v4862_v11  ;;  %v4864_v45 = vmax.f32 %v3820_v19, 0.0  ;;  %4396 = vmatprep.mubr.bf16.mxu0 %v6423_v44  ;;  %v13776_v46 = vld [vmem:[#allocation51_spill] sm:$0xff]  ;;  %v10982_v43 = vpop.f32.mrb[59].mxu1 }
 0x309   : > { %v5718_v52 = vadd.f32 %v5717_v13, %v5428_v55  ;;  %v4863_v5 = vmax.f32 %v3629_v27, 0.0  ;;  %v4865_v59 = vmax.f32 %v3822_v7, 0.0  ;;  %v3631_v33 = vadd.f32 %v10680_v32, %v13776_v46  ;;  %v10995_v27 = vpop.permute.xlu1 %5198 }
 0x30a   : > { %v5681_v60 = vadd.f32 %v5680_v48, %v5427_v50  ;;  %v5755_v11 = vadd.f32 %v5754_v61, %v5429_v49  ;;  %v5645_v19 = vadd.f32 %v5644_v22, %v5438_v18  ;;  %v5440_v17 = vmul.f32 %v10851_v10, %v4864_v45  ;;  %4580 = vmatmul.mubr.bf16.gmra.mrb[156].mxu1 %v6422_v40  ;;  %v13777_v61 = vld [vmem:[#allocation105_spill] sm:$0xff]  ;;  %v13779_v50 = vld [vmem:[#allocation151_spill] sm:$0xff] }
 0x30b   : > { %v5439_v38 = vmul.f32 %v10851_v10, %v4863_v5  ;;  %v5441_v34 = vmul.f32 %v10851_v10, %v4865_v59  ;;  %v4874_v47 = vmax.f32 %v3631_v33, 0.0  ;;  %v3824_v13 = vadd.f32 %v10682_v42, %v13776_v46  ;;  %4589 = vmatprep.mubr.bf16.mxu1 %v6423_v44  ;;  %13778 = vst [vmem:[#allocation61_spill] sm:$0xff] %v10995_v27  ;;  %v10998_v45 = vpop.f32.mrb[60].mxu0  ;;  %v6424_v59 = vld [vmem:[%s12564_s3 + $0x80] ss:$8 sps:$4 sm:$0xff]  }
 0x30c   : > { %v5719_v55 = vadd.f32 %v5718_v52, %v5440_v17  ;;  %v3633_v32 = vadd.f32 %v10690_v0, %v13776_v46  ;;  %v3826_v48 = vadd.f32 %v10692_v20, %v13776_v46  ;;  %v3637_v22 = vadd.f32 %v10710_v26, %v13777_v61  ;;  %v11002_v52 = vpop.f32.mrb[60].mxu1  ;;  %v11004_v20 = vpop.f32.mrb[61].mxu0 }
 0x30d   : > { %v5682_v7 = vadd.f32 %v5681_v60, %v5439_v38  ;;  %v5756_v40 = vadd.f32 %v5755_v11, %v5441_v34  ;;  %v5450_v49 = vmul.f32 %v13779_v50, %v4874_v47  ;;  %v4876_v18 = vmax.f32 %v3824_v13, 0.0  ;;  %v13780_v47 = vld [vmem:[#allocation137_spill] sm:$0xff]  ;;  %v11014_v33 = vpop.f32.mrb[61].mxu1 }
 0x30e   : > { %v4875_v42 = vmax.f32 %v3633_v32, 0.0  ;;  %v4877_v17 = vmax.f32 %v3826_v48, 0.0  ;;  %v4886_v44 = vmax.f32 %v3637_v22, 0.0  ;;  %v3830_v0 = vadd.f32 %v10712_v57, %v13777_v61  ;;  %v11016_v57 = vpop.f32.mrb[62].mxu0  ;;  %v11024_v32 = vpop.f32.mrb[62].mxu1 }
 0x30f   : > { %v5646_v26 = vadd.f32 %v5645_v19, %v5450_v49  ;;  %v5452_v5 = vmul.f32 %v13779_v50, %v4876_v18  ;;  %v3639_v34 = vadd.f32 %v10716_v23, %v13777_v61  ;;  %v3832_v38 = vadd.f32 %v13780_v47, %v13777_v61  ;;  %4397 = vmatmul.mubr.bf16.gmra.mrb[160].mxu0 %v6424_v59  ;;  %v6425_v23 = vld [vmem:[%s12564_s3 + $0x94] ss:$8 sps:$4 sm:$0xff]   ;;  %v11026_v48 = vpop.f32.mrb[63].mxu0  ;;  %v13782_v47 = vld [vmem:[#allocation32_spill] sm:$0xff]  ;;  %v11030_v46 = vpop.f32.mrb[63].mxu1 }
 0x310   : > { %v5451_v60 = vmul.f32 %v13779_v50, %v4875_v42  ;;  %v5453_v11 = vmul.f32 %v13779_v50, %v4877_v17  ;;  %v5462_v19 = vmul.f32 %v10899_v15, %v4886_v44  ;;  %v4888_v13 = vmax.f32 %v3830_v0, 0.0  ;;  %4406 = vmatprep.mubr.bf16.mxu0 %v6425_v23  ;;  %13781 = vst [vmem:[#allocation18_spill] sm:$0xff] %v11024_v32  ;;  %v13783_v61 = vld [vmem:[#allocation149_spill] sm:$0xff] }
 0x311   : > { %v5720_v22 = vadd.f32 %v5719_v55, %v5452_v5  ;;  %v4887_v49 = vmax.f32 %v3639_v34, 0.0  ;;  %v4889_v18 = vmax.f32 %v3832_v38, 0.0  ;;  %v3641_v42 = vadd.f32 %v13783_v61, %v13782_v47  ;;  %13784 = vst [vmem:[#allocation6_spill] sm:$0xff] %v11030_v46  ;;  %v13785_v55 = vld [vmem:[#allocation72_spill] sm:$0xff]  ;;  %v13786_v61 = vld [vmem:[#allocation117_spill] sm:$0xff] }
 0x312   : > { %v5683_v17 = vadd.f32 %v5682_v7, %v5451_v60  ;;  %v5757_v44 = vadd.f32 %v5756_v40, %v5453_v11  ;;  %v5647_v0 = vadd.f32 %v5646_v26, %v5462_v19  ;;  %v5464_v50 = vmul.f32 %v10899_v15, %v4888_v13  ;;  %4590 = vmatmul.mubr.bf16.gmra.mrb[160].mxu1 %v6424_v59  ;;  %v13787_v7 = vld [vmem:[#allocation120_spill] sm:$0xff]  ;;  %v13788_v26 = vld [vmem:[#allocation109_spill] sm:$0xff]  ;;  %v11043_v59 = vpop.permute.xlu1 %5208 }
 0x313   : > { %v5463_v10 = vmul.f32 %v10899_v15, %v4887_v49  ;;  %v5465_v63 = vmul.f32 %v10899_v15, %v4889_v18  ;;  %v4898_v32 = vmax.f32 %v3641_v42, 0.0  ;;  %v3834_v5 = vadd.f32 %v13785_v55, %v13782_v47  ;;  %4599 = vmatprep.mubr.bf16.mxu1 %v6425_v23  ;;  %13789 = vst [vmem:[#allocation33_spill] sm:$0xff] %v11043_v59  ;;  %v13790_v13 = vld [vmem:[#allocation153_spill] sm:$0xff]  ;;  %v11046_v42 = vpop.f32.mrb[64].mxu0  ;;  %v13792_v55 = vld [vmem:[#allocation123_spill] sm:$0xff] }
 0x314   : > { %v5721_v34 = vadd.f32 %v5720_v22, %v5464_v50  ;;  %v3643_v38 = vadd.f32 %v13786_v61, %v13782_v47  ;;  %v3836_v40 = vadd.f32 %v13787_v7, %v13782_v47  ;;  %v3647_v60 = vadd.f32 %v10758_v3, %v13788_v26  ;;  %13791 = vst [vmem:[#allocation90_spill] sm:$0xff] %v11046_v42  ;;  %v11050_v15 = vpop.f32.mrb[64].mxu1  ;;  %v11052_v7 = vpop.f32.mrb[65].mxu0 }
 0x315   : > { %v5684_v11 = vadd.f32 %v5683_v17, %v5463_v10  ;;  %v5758_v19 = vadd.f32 %v5757_v44, %v5465_v63  ;;  %v5474_v49 = vmul.f32 %v13790_v13, %v4898_v32  ;;  %v4900_v18 = vmax.f32 %v3834_v5, 0.0  ;;  %13793 = vst [vmem:[#allocation63_spill] sm:$0xff] %v11050_v15  ;;  %13794 = vst [vmem:[#allocation56_spill] sm:$0xff] %v11052_v7  ;;  %v13795_v63 = vld [vmem:[#allocation156_spill] sm:$0xff]  ;;  %v13796_v32 = vld [vmem:[#allocation74_spill] sm:$0xff]  ;;  %v11062_v5 = vpop.f32.mrb[65].mxu1 }
 0x316   : > { %v4899_v23 = vmax.f32 %v3643_v38, 0.0  ;;  %v4901_v50 = vmax.f32 %v3836_v40, 0.0  ;;  %v4910_v22 = vmax.f32 %v3647_v60, 0.0  ;;  %v3840_v61 = vadd.f32 %v13792_v55, %v13788_v26  ;;  %v6426_v44 = vld [vmem:[%s12564_s3 + $0x90] ss:$8 sps:$4 sm:$0xff]   ;;  %13797 = vst [vmem:[#allocation64_spill] sm:$0xff] %v11062_v5 }
 0x317   : > { %v5648_v3 = vadd.f32 %v5647_v0, %v5474_v49  ;;  %v5476_v47 = vmul.f32 %v13790_v13, %v4900_v18  ;;  %v3649_v10 = vadd.f32 %v13795_v63, %v13788_v26  ;;  %v3842_v17 = vadd.f32 %v13796_v32, %v13788_v26  ;;  %4407 = vmatmul.mubr.bf16.gmra.mrb[164].mxu0 %v6426_v44  ;;  %v11064_v38 = vpop.f32.mrb[66].mxu0  ;;  %v6427_v18 = vld [vmem:[%s12564_s3 + $0xa4] ss:$8 sps:$4 sm:$0xff]   ;;  %v11072_v55 = vpop.f32.mrb[66].mxu1  ;;  %v13801_v7 = vld [vmem:[#allocation9_spill] sm:$0xff] }
 0x318   : > { %13798 = vst [vmem:[#allocation16_spill] sm:$0xff] %v11064_v38  ;;  %v5475_v40 = vmul.f32 %v13790_v13, %v4899_v23  ;;  %v5477_v0 = vmul.f32 %v13790_v13, %v4901_v50  ;;  %v5486_v60 = vmul.f32 %v10947_v54, %v4910_v22  ;;  %v4912_v49 = vmax.f32 %v3840_v61, 0.0  ;;  %4416 = vmatprep.mubr.bf16.mxu0 %v6427_v18  ;;  %v11074_v63 = vpop.f32.mrb[67].mxu0  ;;  %v13800_v38 = vld [vmem:[#allocation75_spill] sm:$0xff]  ;;  %v11078_v15 = vpop.f32.mrb[67].mxu1 }
 0x319   : > { %13799 = vst [vmem:[#allocation76_spill] sm:$0xff] %v11072_v55  ;;  %v5722_v32 = vadd.f32 %v5721_v34, %v5476_v47  ;;  %v4911_v26 = vmax.f32 %v3649_v10, 0.0  ;;  %v4913_v5 = vmax.f32 %v3842_v17, 0.0  ;;  %v3651_v23 = vadd.f32 %v13801_v7, %v13800_v38  ;;  %v13802_v47 = vld [vmem:[#allocation7_spill] sm:$0xff] }
 0x31a   : > { %v5685_v50 = vadd.f32 %v5684_v11, %v5475_v40  ;;  %v5759_v22 = vadd.f32 %v5758_v19, %v5477_v0  ;;  %v5649_v61 = vadd.f32 %v5648_v3, %v5486_v60  ;;  %v5488_v13 = vmul.f32 %v10947_v54, %v4912_v49  ;;  %4600 = vmatmul.mubr.bf16.gmra.mrb[164].mxu1 %v6426_v44  ;;  %v13803_v7 = vld [vmem:[#allocation11_spill] sm:$0xff]  ;;  %v13804_v11 = vld [vmem:[#allocation10_spill] sm:$0xff]  ;;  %v11091_v44 = vpop.permute.xlu1 %5213 }
 0x31b   : > { %v5487_v42 = vmul.f32 %v10947_v54, %v4911_v26  ;;  %v5489_v55 = vmul.f32 %v10947_v54, %v4913_v5  ;;  %v4922_v46 = vmax.f32 %v3651_v23, 0.0  ;;  %v3844_v34 = vadd.f32 %v13802_v47, %v13800_v38  ;;  %4609 = vmatprep.mubr.bf16.mxu1 %v6427_v18  ;;  %v13805_v3 = vld [vmem:[#allocation134_spill] sm:$0xff]  ;;  %13806 = vst [vmem:[#allocation131_spill] sm:$0xff] %v11091_v44  ;;  %v13807_v5 = vld [vmem:[#allocation129_spill] sm:$0xff]  ;;  %v11094_v23 = vpop.f32.mrb[68].mxu0 }
 0x31c   : > { %v5723_v10 = vadd.f32 %v5722_v32, %v5488_v13  ;;  %v3653_v17 = vadd.f32 %v13803_v7, %v13800_v38  ;;  %v3846_v19 = vadd.f32 %v13804_v11, %v13800_v38  ;;  %v3657_v40 = vadd.f32 %v10806_v31, %v13805_v3  ;;  %13808 = vst [vmem:[#allocation44_spill] sm:$0xff] %v11094_v23  ;;  %v11098_v7 = vpop.f32.mrb[68].mxu1  ;;  %v11100_v11 = vpop.f32.mrb[69].mxu0 }
 0x31d   : > { %v5686_v26 = vadd.f32 %v5685_v50, %v5487_v42  ;;  %v5760_v0 = vadd.f32 %v5759_v22, %v5489_v55  ;;  %v5498_v60 = vmul.f32 %v13807_v5, %v4922_v46  ;;  %v4924_v49 = vmax.f32 %v3844_v34, 0.0  ;;  %13809 = vst [vmem:[#allocation98_spill] sm:$0xff] %v11098_v7  ;;  %13810 = vst [vmem:[#allocation102_spill] sm:$0xff] %v11100_v11  ;;  %v13811_v42 = vld [vmem:[#allocation30_spill] sm:$0xff]  ;;  %v13812_v46 = vld [vmem:[#allocation8_spill] sm:$0xff]  ;;  %v11110_v34 = vpop.f32.mrb[69].mxu1 }
 0x31e   : > { %v4923_v18 = vmax.f32 %v3653_v17, 0.0  ;;  %v4925_v13 = vmax.f32 %v3846_v19, 0.0  ;;  %v4934_v32 = vmax.f32 %v3657_v40, 0.0  ;;  %v3850_v47 = vadd.f32 %v10808_v39, %v13805_v3  ;;  %v6428_v22 = vld [vmem:[%s12564_s3 + $0xa0] ss:$8 sps:$4 sm:$0xff]   ;;  %13813 = vst [vmem:[#allocation17_spill] sm:$0xff] %v11110_v34 }
 0x31f   : > { %v5650_v31 = vadd.f32 %v5649_v61, %v5498_v60  ;;  %v5500_v38 = vmul.f32 %v13807_v5, %v4924_v49  ;;  %v3659_v55 = vadd.f32 %v13811_v42, %v13805_v3  ;;  %v3852_v50 = vadd.f32 %v13812_v46, %v13805_v3  ;;  %4417 = vmatmul.mubr.bf16.gmra.mrb[168].mxu0 %v6428_v22  ;;  %v11112_v39 = vpop.f32.mrb[70].mxu0  ;;  %v6429_v60 = vld [vmem:[%s12564_s3 + $0xb4] ss:$8 sps:$4 sm:$0xff]   ;;  %v11120_v49 = vpop.f32.mrb[70].mxu1 }
 0x320   : > { %13814 = vst [vmem:[#allocation118_spill] sm:$0xff] %v11112_v39  ;;  %v5499_v17 = vmul.f32 %v13807_v5, %v4923_v18  ;;  %v5501_v61 = vmul.f32 %v13807_v5, %v4925_v13  ;;  %v5510_v19 = vmul.f32 %v10995_v27, %v4934_v32  ;;  %v4936_v40 = vmax.f32 %v3850_v47, 0.0  ;;  %4426 = vmatprep.mubr.bf16.mxu0 %v6429_v60  ;;  %v11122_v42 = vpop.f32.mrb[71].mxu0  ;;  %v13816_v39 = vld [vmem:[#allocation91_spill] sm:$0xff]  ;;  %v13817_v34 = vld [vmem:[#allocation5_spill] sm:$0xff]  ;;  %v11126_v11 = vpop.f32.mrb[71].mxu1 }
 0x321   : > { %13815 = vst [vmem:[#allocation62_spill] sm:$0xff] %v11120_v49  ;;  %v5724_v46 = vadd.f32 %v5723_v10, %v5500_v38  ;;  %v4935_v3 = vmax.f32 %v3659_v55, 0.0  ;;  %v4937_v54 = vmax.f32 %v3852_v50, 0.0  ;;  %v3661_v18 = vadd.f32 %v13817_v34, %v13816_v39  ;;  %v13818_v38 = vld [vmem:[#allocation15_spill] sm:$0xff] }
 0x322   : > { %v5687_v13 = vadd.f32 %v5686_v26, %v5499_v17  ;;  %v5761_v32 = vadd.f32 %v5760_v0, %v5501_v61  ;;  %v5651_v47 = vadd.f32 %v5650_v31, %v5510_v19  ;;  %v5512_v5 = vmul.f32 %v10995_v27, %v4936_v40  ;;  %4610 = vmatmul.mubr.bf16.gmra.mrb[168].mxu1 %v6428_v22  ;;  %v13819_v26 = vld [vmem:[#allocation14_spill] sm:$0xff]  ;;  %v11139_v22 = vpop.permute.xlu1 %5218 }
 0x323   : > { %v5511_v7 = vmul.f32 %v10995_v27, %v4935_v3  ;;  %v5513_v49 = vmul.f32 %v10995_v27, %v4937_v54  ;;  %v4946_v23 = vmax.f32 %v3661_v18, 0.0  ;;  %v3854_v10 = vadd.f32 %v13818_v38, %v13816_v39  ;;  %4619 = vmatprep.mubr.bf16.mxu1 %v6429_v60  ;;  %v13820_v31 = vld [vmem:[#allocation142_spill] sm:$0xff]  ;;  %13821 = vst [vmem:[#allocation48_spill] sm:$0xff] %v11139_v22  ;;  %v13822_v54 = vld [vmem:[#allocation132_spill] sm:$0xff]  ;;  %v11142_v40 = vpop.f32.mrb[72].mxu0 }
 0x324   : > { %v5725_v55 = vadd.f32 %v5724_v46, %v5512_v5  ;;  %v3663_v50 = vadd.f32 %v10834_v58, %v13816_v39  ;;  %v3856_v0 = vadd.f32 %v13819_v26, %v13816_v39  ;;  %v3667_v34 = vadd.f32 %v10854_v30, %v13820_v31  ;;  %v11146_v18 = vpop.f32.mrb[72].mxu1  ;;  %v11148_v38 = vpop.f32.mrb[73].mxu0 }
 0x325   : > { %v5688_v3 = vadd.f32 %v5687_v13, %v5511_v7  ;;  %v5762_v17 = vadd.f32 %v5761_v32, %v5513_v49  ;;  %v5522_v61 = vmul.f32 %v13822_v54, %v4946_v23  ;;  %v4948_v19 = vmax.f32 %v3854_v10, 0.0  ;;  %v6430_v49 = vld [vmem:[%s12564_s3 + $0xb0] ss:$8 sps:$4 sm:$0xff]   ;;  %v11158_v13 = vpop.f32.mrb[73].mxu1 }
 0x326   : > { %v4947_v60 = vmax.f32 %v3663_v50, 0.0  ;;  %v4949_v5 = vmax.f32 %v3856_v0, 0.0  ;;  %v4958_v46 = vmax.f32 %v3667_v34, 0.0  ;;  %v3860_v58 = vadd.f32 %v10858_v51, %v13820_v31  ;;  %v11160_v51 = vpop.f32.mrb[74].mxu0 }
 0x327   : > { %v5652_v30 = vadd.f32 %v5651_v47, %v5522_v61  ;;  %v5524_v26 = vmul.f32 %v13822_v54, %v4948_v19  ;;  %v3669_v7 = vadd.f32 %v10860_v9, %v13820_v31  ;;  %v3862_v23 = vadd.f32 %v10870_v2, %v13820_v31  ;;  %4427 = vmatmul.mubr.bf16.gmra.mrb[172].mxu0 %v6430_v49  ;;  %v6431_v9 = vld [vmem:[%s12564_s3 + $0xc4] ss:$8 sps:$4 sm:$0xff]   ;;  %v11168_v2 = vpop.f32.mrb[74].mxu1  ;;  %v11170_v0 = vpop.f32.mrb[75].mxu0  ;;  %v13825_v31 = vld [vmem:[#allocation78_spill] sm:$0xff] }
 0x328   : > { %13823 = vst [vmem:[#allocation140_spill] sm:$0xff] %v11160_v51  ;;  %v5523_v32 = vmul.f32 %v13822_v54, %v4947_v60  ;;  %v5525_v47 = vmul.f32 %v13822_v54, %v4949_v5  ;;  %v5534_v10 = vmul.f32 %v11043_v59, %v4958_v46  ;;  %v4960_v50 = vmax.f32 %v3860_v58, 0.0  ;;  %4436 = vmatprep.mubr.bf16.mxu0 %v6431_v9  ;;  %v11174_v39 = vpop.f32.mrb[75].mxu1 }
 0x329   : > { %13824 = vst [vmem:[#allocation147_spill] sm:$0xff] %v11168_v2  ;;  %v5726_v34 = vadd.f32 %v5725_v55, %v5524_v26  ;;  %v4959_v61 = vmax.f32 %v3669_v7, 0.0  ;;  %v4961_v19 = vmax.f32 %v3862_v23, 0.0  ;;  %v3671_v60 = vadd.f32 %v10872_v1, %v13825_v31 }
 0x32a   : > { %v5689_v5 = vadd.f32 %v5688_v3, %v5523_v32  ;;  %v5763_v46 = vadd.f32 %v5762_v17, %v5525_v47  ;;  %v5653_v58 = vadd.f32 %v5652_v30, %v5534_v10  ;;  %v5536_v54 = vmul.f32 %v11043_v59, %v4960_v50  ;;  %4620 = vmatmul.mubr.bf16.gmra.mrb[172].mxu1 %v6430_v49  ;;  %v13826_v17 = vld [vmem:[#allocation97_spill] sm:$0xff]  ;;  %v11190_v10 = vpop.permute.xlu1 %5223 }
 0x32b   : > { %v5535_v27 = vmul.f32 %v11043_v59, %v4959_v61  ;;  %v5537_v2 = vmul.f32 %v11043_v59, %v4961_v19  ;;  %v4970_v51 = vmax.f32 %v3671_v60, 0.0  ;;  %v3864_v55 = vadd.f32 %v10880_v29, %v13825_v31  ;;  %4629 = vmatprep.mubr.bf16.mxu1 %v6431_v9  ;;  %v11188_v47 = vpop.f32.mrb[76].mxu0  ;;  %13827 = vst [vmem:[#allocation25_spill] sm:$0xff] %v11190_v10  ;;  %v13852_v59 = vld [vmem:[#allocation4_spill] sm:$0xff] }
 0x32c   : > { %v5727_v26 = vadd.f32 %v5726_v34, %v5536_v54  ;;  %v3673_v1 = vadd.f32 %v10882_v25, %v13825_v31  ;;  %v3866_v3 = vadd.f32 %v10886_v12, %v13825_v31  ;;  %v3677_v30 = vadd.f32 %v10902_v6, %v13826_v17  ;;  %v11194_v9 = vpop.f32.mrb[77].mxu0 }
 0x32d   : > { %v5690_v7 = vadd.f32 %v5689_v5, %v5535_v27  ;;  %v5764_v23 = vadd.f32 %v5763_v46, %v5537_v2  ;;  %v5546_v49 = vmul.f32 %v11091_v44, %v4970_v51  ;;  %v4972_v32 = vmax.f32 %v3864_v55, 0.0  ;;  %v6432_v2 = vld [vmem:[%s12564_s3 + $0xc0] ss:$8 sps:$4 sm:$0xff]   ;;  %v11204_v34 = vpop.f32.mrb[76].mxu1  ;;  %v11206_v61 = vpop.f32.mrb[78].mxu0 }
 0x32e   : > { %v4971_v29 = vmax.f32 %v3673_v1, 0.0  ;;  %v4973_v54 = vmax.f32 %v3866_v3, 0.0  ;;  %v4982_v50 = vmax.f32 %v3677_v30, 0.0  ;;  %v3870_v25 = vadd.f32 %v10906_v35, %v13826_v17  ;;  %v11216_v46 = vpop.f32.mrb[79].mxu0  ;;  %v13828_v3 = vld [vmem:[#allocation157_spill] sm:$0xff] }
 0x32f   : > { %v5654_v12 = vadd.f32 %v5653_v58, %v5546_v49  ;;  %v5548_v6 = vmul.f32 %v11091_v44, %v4972_v32  ;;  %v3679_v27 = vadd.f32 %v10908_v62, %v13826_v17  ;;  %v3872_v51 = vadd.f32 %v10918_v8, %v13826_v17  ;;  %4437 = vmatmul.mubr.bf16.gmra.mrb[176].mxu0 %v6432_v2  ;;  %v6433_v62 = vld [vmem:[%s12564_s3 + $0xd4] ss:$8 sps:$4 sm:$0xff]   ;;  %v11214_v8 = vpop.f32.mrb[77].mxu1 }
 0x330   : > { %v5547_v35 = vmul.f32 %v11091_v44, %v4971_v29  ;;  %v5549_v19 = vmul.f32 %v11091_v44, %v4973_v54  ;;  %v5558_v60 = vmul.f32 %v11139_v22, %v4982_v50  ;;  %v4984_v5 = vmax.f32 %v3870_v25, 0.0  ;;  %4446 = vmatprep.mubr.bf16.mxu0 %v6433_v62  ;;  %v11220_v49 = vpop.f32.mrb[78].mxu1 }
 0x331   : > { %v5728_v58 = vadd.f32 %v5727_v26, %v5548_v6  ;;  %v4983_v55 = vmax.f32 %v3679_v27, 0.0  ;;  %v4985_v1 = vmax.f32 %v3872_v51, 0.0  ;;  %v3681_v30 = vadd.f32 %v10920_v14, %v13828_v3  ;;  %v11223_v25 = vpop.f32.mrb[79].mxu1 }
 0x332   : > { %v5691_v32 = vadd.f32 %v5690_v7, %v5547_v35  ;;  %v5765_v29 = vadd.f32 %v5764_v23, %v5549_v19  ;;  %v5655_v54 = vadd.f32 %v5654_v12, %v5558_v60  ;;  %v5560_v50 = vmul.f32 %v11139_v22, %v4984_v5  ;;  %4630 = vmatmul.mubr.bf16.gmra.mrb[176].mxu1 %v6432_v2  ;;  %v13829_v12 = vld [vmem:[#allocation160_spill] sm:$0xff]  ;;  %v11238_v5 = vpop.permute.xlu1 %5228 }
 0x333   : > { %v5559_v44 = vmul.f32 %v11139_v22, %v4983_v55  ;;  %v5561_v17 = vmul.f32 %v11139_v22, %v4985_v1  ;;  %v4994_v26 = vmax.f32 %v3681_v30, 0.0  ;;  %v3874_v6 = vadd.f32 %v10928_v41, %v13828_v3  ;;  %4639 = vmatprep.mubr.bf16.mxu1 %v6433_v62  ;;  %v11236_v60 = vpop.f32.mrb[80].mxu0  ;;  %13830 = vst [vmem:[#allocation34_spill] sm:$0xff] %v11238_v5  ;;  %v6434_v1 = vld [vmem:[%s12564_s3 + $0xd0] ss:$8 sps:$4 sm:$0xff]  }
 0x334   : > { %v5729_v14 = vadd.f32 %v5728_v58, %v5560_v50  ;;  %v3683_v7 = vadd.f32 %v10930_v37, %v13828_v3  ;;  %v3876_v23 = vadd.f32 %v10934_v56, %v13828_v3  ;;  %v3687_v27 = vadd.f32 %v10950_v36, %v13829_v12  ;;  %v11242_v55 = vpop.f32.mrb[81].mxu0 }
 0x335   : > { %v5692_v51 = vadd.f32 %v5691_v32, %v5559_v44  ;;  %v5766_v2 = vadd.f32 %v5765_v29, %v5561_v17  ;;  %v5570_v35 = vmul.f32 %v11190_v10, %v4994_v26  ;;  %v4996_v19 = vmax.f32 %v3874_v6, 0.0  ;;  %v11254_v32 = vpop.f32.mrb[82].mxu0 }
 0x336   : > { %v4995_v41 = vmax.f32 %v3683_v7, 0.0  ;;  %v4997_v62 = vmax.f32 %v3876_v23, 0.0  ;;  %v5006_v58 = vmax.f32 %v3687_v27, 0.0  ;;  %v3880_v37 = vadd.f32 %v10954_v24, %v13829_v12  ;;  %v11252_v30 = vpop.f32.mrb[80].mxu1  ;;  %v11264_v26 = vpop.f32.mrb[83].mxu0  ;;  %v13831_v27 = vld [vmem:[#allocation136_spill] sm:$0xff] }
 0x337   : > { %v5656_v56 = vadd.f32 %v5655_v54, %v5570_v35  ;;  %v5572_v36 = vmul.f32 %v11190_v10, %v4996_v19  ;;  %v3689_v44 = vadd.f32 %v10956_v28, %v13829_v12  ;;  %v3882_v17 = vadd.f32 %v10966_v53, %v13829_v12  ;;  %4447 = vmatmul.mubr.bf16.gmra.mrb[180].mxu0 %v6434_v1  ;;  %v6435_v28 = vld [vmem:[%s12564_s3 + $0xe4] ss:$8 sps:$4 sm:$0xff]   ;;  %v11262_v53 = vpop.f32.mrb[81].mxu1 }
 0x338   : > { %v5571_v24 = vmul.f32 %v11190_v10, %v4995_v41  ;;  %v5573_v29 = vmul.f32 %v11190_v10, %v4997_v62  ;;  %v5582_v54 = vmul.f32 %v11238_v5, %v5006_v58  ;;  %v5008_v50 = vmax.f32 %v3880_v37, 0.0  ;;  %4456 = vmatprep.mubr.bf16.mxu0 %v6435_v28  ;;  %v11268_v19 = vpop.f32.mrb[82].mxu1 }
 0x339   : > { %v5730_v6 = vadd.f32 %v5729_v14, %v5572_v36  ;;  %v5007_v7 = vmax.f32 %v3689_v44, 0.0  ;;  %v5009_v23 = vmax.f32 %v3882_v17, 0.0  ;;  %v3691_v35 = vadd.f32 %v10968_v16, %v13831_v27  ;;  %v11271_v10 = vpop.f32.mrb[83].mxu1  ;;  %v11277_v16 = vpop.permute.xlu1 %5233 }
 0x33a   : > { %v5693_v41 = vadd.f32 %v5692_v51, %v5571_v24  ;;  %v5767_v62 = vadd.f32 %v5766_v2, %v5573_v29  ;;  %v5657_v58 = vadd.f32 %v5656_v56, %v5582_v54  ;;  %v5584_v37 = vmul.f32 %v11238_v5, %v5008_v50  ;;  %4640 = vmatmul.mubr.bf16.gmra.mrb[180].mxu1 %v6434_v1  ;;  %v13833_v56 = vld [vmem:[#allocation139_spill] sm:$0xff] }
 0x33b   : > { %v5583_v12 = vmul.f32 %v11238_v5, %v5007_v7  ;;  %v5585_v3 = vmul.f32 %v11238_v5, %v5009_v23  ;;  %v5018_v14 = vmax.f32 %v3691_v35, 0.0  ;;  %v3884_v36 = vadd.f32 %v10976_v21, %v13831_v27  ;;  %4649 = vmatprep.mubr.bf16.mxu1 %v6435_v28  ;;  %13832 = vst [vmem:[#allocation38_spill] sm:$0xff] %v11277_v16  ;;  %v11286_v50 = vpop.f32.mrb[84].mxu0  ;;  %v13844_v5 = vld [vmem:[#allocation90_spill] sm:$0xff] }
 0x33c   : > { %v5731_v44 = vadd.f32 %v5730_v6, %v5584_v37  ;;  %v3693_v51 = vadd.f32 %v10978_v4, %v13831_v27  ;;  %v3886_v2 = vadd.f32 %v10982_v43, %v13831_v27  ;;  %v3697_v17 = vadd.f32 %v10998_v45, %v13833_v56  ;;  %v11290_v4 = vpop.f32.mrb[85].mxu0 }
 0x33d   : > { %v5694_v1 = vadd.f32 %v5693_v41, %v5583_v12  ;;  %v5768_v24 = vadd.f32 %v5767_v62, %v5585_v3  ;;  %v5594_v29 = vmul.f32 %v11277_v16, %v5018_v14  ;;  %v5020_v54 = vmax.f32 %v3884_v36, 0.0  ;;  %v6436_v12 = vld [vmem:[%s12564_s3 + $0xe0] ss:$8 sps:$4 sm:$0xff]   ;;  %v11300_v35 = vpop.f32.mrb[86].mxu0 }
 0x33e   : > { %v5019_v21 = vmax.f32 %v3693_v51, 0.0  ;;  %v5021_v28 = vmax.f32 %v3886_v2, 0.0  ;;  %v5030_v7 = vmax.f32 %v3697_v17, 0.0  ;;  %v3890_v6 = vadd.f32 %v11002_v52, %v13833_v56  ;;  %v13834_v62 = vld [vmem:[#allocation163_spill] sm:$0xff]  ;;  %v11310_v14 = vpop.f32.mrb[87].mxu0  ;;  %v13836_v17 = vld [vmem:[#allocation45_spill] sm:$0xff] }
 0x33f   : > { %v5658_v23 = vadd.f32 %v5657_v58, %v5594_v29  ;;  %v5596_v43 = vmul.f32 %v11277_v16, %v5020_v54  ;;  %v3699_v45 = vadd.f32 %v11004_v20, %v13833_v56  ;;  %v3892_v3 = vadd.f32 %v11014_v33, %v13833_v56  ;;  %4457 = vmatmul.mubr.bf16.gmra.mrb[184].mxu0 %v6436_v12  ;;  %v6437_v20 = vld [vmem:[%s12564_s3 + $0xf4] ss:$8 sps:$4 sm:$0xff]   ;;  %v11308_v33 = vpop.f32.mrb[84].mxu1 }
 0x340   : > { %v5595_v52 = vmul.f32 %v11277_v16, %v5019_v21  ;;  %v5597_v41 = vmul.f32 %v11277_v16, %v5021_v28  ;;  %v5606_v58 = vmul.f32 %v13834_v62, %v5030_v7  ;;  %v5032_v37 = vmax.f32 %v3890_v6, 0.0  ;;  %4466 = vmatprep.mubr.bf16.mxu0 %v6437_v20  ;;  %13835 = vst [vmem:[#allocation37_spill] sm:$0xff] %v11310_v14  ;;  %v11314_v54 = vpop.f32.mrb[85].mxu1  ;;  %v13863_v14 = vld [vmem:[#allocation21_spill] sm:$0xff] }
 0x341   : > { %v5732_v36 = vadd.f32 %v5731_v44, %v5596_v43  ;;  %v5031_v51 = vmax.f32 %v3699_v45, 0.0  ;;  %v5033_v2 = vmax.f32 %v3892_v3, 0.0  ;;  %v3701_v29 = vadd.f32 %v11016_v57, %v13836_v17  ;;  %v11317_v16 = vpop.f32.mrb[86].mxu1  ;;  %v13838_v43 = vld [vmem:[#allocation18_spill] sm:$0xff]  ;;  %v11325_v3 = vpop.permute.xlu1 %5243 }
 0x342   : > { %v5695_v21 = vadd.f32 %v5694_v1, %v5595_v52  ;;  %v5769_v28 = vadd.f32 %v5768_v24, %v5597_v41  ;;  %v5659_v7 = vadd.f32 %v5658_v23, %v5606_v58  ;;  %v5608_v6 = vmul.f32 %v13834_v62, %v5032_v37  ;;  %4650 = vmatmul.mubr.bf16.gmra.mrb[184].mxu1 %v6436_v12  ;;  %v11323_v57 = vpop.f32.mrb[87].mxu1  ;;  %v13841_v23 = vld [vmem:[#allocation6_spill] sm:$0xff] }
 0x343   : > { %13837 = vst [vmem:[#allocation43_spill] sm:$0xff] %v11317_v16  ;;  %v5607_v56 = vmul.f32 %v13834_v62, %v5031_v51  ;;  %v5609_v27 = vmul.f32 %v13834_v62, %v5033_v2  ;;  %v5042_v44 = vmax.f32 %v3701_v29, 0.0  ;;  %v3894_v45 = vadd.f32 %v13838_v43, %v13836_v17  ;;  %4659 = vmatprep.mubr.bf16.mxu1 %v6437_v20  ;;  %v11332_v51 = vpop.f32.mrb[88].mxu0  ;;  %v13843_v62 = vld [vmem:[#allocation84_spill] sm:$0xff] }
 0x344   : > { %13839 = vst [vmem:[#allocation47_spill] sm:$0xff] %v11323_v57  ;;  %13840 = vst [vmem:[#allocation42_spill] sm:$0xff] %v11325_v3  ;;  %v5733_v1 = vadd.f32 %v5732_v36, %v5608_v6  ;;  %v3703_v24 = vadd.f32 %v11026_v48, %v13836_v17  ;;  %v3896_v12 = vadd.f32 %v13841_v23, %v13836_v17  ;;  %v6449_v20 = vmov 1966171168   ;;  %v11336_v6 = vpop.f32.mrb[89].mxu0 }
 0x345   : > { %v5696_v52 = vadd.f32 %v5695_v21, %v5607_v56  ;;  %v5770_v41 = vadd.f32 %v5769_v28, %v5609_v27  ;;  %v5618_v58 = vmul.f32 %v11325_v3, %v5042_v44  ;;  %v5044_v37 = vmax.f32 %v3894_v45, 0.0  ;;  %13842 = vst [vmem:[#allocation36_spill] sm:$0xff] %v11332_v51  ;;  %13845 = vst [vmem:[#allocation22_spill] sm:$0xff] %v11336_v6  ;;  %v13846_v56 = vld [vmem:[#allocation63_spill] sm:$0xff]  ;;  %v13847_v21 = vld [vmem:[#allocation56_spill] sm:$0xff]  ;;  %v11346_v45 = vpop.f32.mrb[90].mxu0 }
 0x346   : > { %v5043_v2 = vmax.f32 %v3703_v24, 0.0  ;;  %v6113_v29 = vunpack.c.l.s4 %v6449_v20  ;;  %v5045_v43 = vmax.f32 %v3896_v12, 0.0  ;;  %v3933_v36 = vadd.f32 %v13844_v5, %v13843_v62  ;;  %v6438_v44 = vld [vmem:[%s12564_s3 + $0xf0] ss:$8 sps:$4 sm:$0xff]   ;;  %13848 = vst [vmem:[#allocation39_spill] sm:$0xff] %v11346_v45  ;;  %v11350_v12 = vpop.f32.mrb[88].mxu1 }
 0x347   : > { %v5660_v48 = vadd.f32 %v5659_v7, %v5618_v58  ;;  %v5620_v22 = vmul.f32 %v11325_v3, %v5044_v37  ;;  %v4126_v27 = vadd.f32 %v13846_v56, %v13843_v62  ;;  %v3935_v28 = vadd.f32 %v13847_v21, %v13843_v62  ;;  %4467 = vmatmul.mubr.bf16.gmra.mrb[188].mxu0 %v6438_v44  ;;  %v11352_v58 = vpop.f32.mrb[91].mxu0  ;;  %v11354_v17 = vpop.f32.mrb[89].mxu1 }
 0x348   : > { %v5619_v5 = vmul.f32 %v11325_v3, %v5043_v2  ;;  %v6114_v24 = vunpack.c.0.s8 %v6113_v29  ;;  %v5621_v7 = vmul.f32 %v11325_v3, %v5045_v43  ;;  %v4674_v23 = vmax.f32 %v3933_v36, 0.0  ;;  %13849 = vst [vmem:[#allocation3_spill] sm:$0xff] %v11350_v12  ;;  %13850 = vst [vmem:[#allocation69_spill] sm:$0xff] %v11352_v58  ;;  %v13854_v2 = vld [vmem:[#allocation100_spill] sm:$0xff]  ;;  %v11360_v43 = vpop.f32.mrb[90].mxu1 }
 0x349   : > { %v5661_v37 = vrot.slane %v5660_v48, 4  ;;  %v5734_v20 = vadd.f32 %v5733_v1, %v5620_v22  ;;  %v4676_v56 = vmax.f32 %v4126_v27, 0.0  ;;  %v4675_v21 = vmax.f32 %v3935_v28, 0.0  ;;  %13851 = vst [vmem:[#allocation55_spill] sm:$0xff] %v11354_v17  ;;  %13855 = vst [vmem:[#allocation81_spill] sm:$0xff] %v11360_v43  ;;  %v11364_v1 = vpop.f32.mrb[91].mxu1 }
 0x34a   : > { %v5697_v31 = vadd.f32 %v5696_v52, %v5619_v5  ;;  %v11357_v6 = vsub.s32 %v6114_v24, %v13852_v59  ;;  %v5771_v45 = vadd.f32 %v5770_v41, %v5621_v7  ;;  %v5250_v29 = vmul.f32 %v13854_v2, %v4674_v23  ;;  %4660 = vmatmul.mubr.bf16.gmra.mrb[188].mxu1 %v6438_v44  ;;  %v13857_v52 = vld [vmem:[#allocation64_spill] sm:$0xff]  ;;  %v13858_v5 = vld [vmem:[#allocation83_spill] sm:$0xff] }
 0x34b   : > { %v5662_v36 = vadd.f32 %v5661_v37, %v5660_v48  ;;  %v5735_v3 = vrot.slane %v5734_v20, 4  ;;  %v5252_v58 = vmul.f32 %v13854_v2, %v4676_v56  ;;  %v5251_v22 = vmul.f32 %v13854_v2, %v4675_v21  ;;  %13856 = vst [vmem:[#allocation67_spill] sm:$0xff] %v11364_v1  ;;  %v13859_v41 = vld [vmem:[#allocation16_spill] sm:$0xff]  ;;  %v11374_v56 = vpop.f32.mrb[92].mxu0 }
 0x34c   : > { %13853 = vst [vmem:[#allocation19_spill] sm:$0xff] %v11357_v6  ;;  %v5698_v27 = vrot.slane %v5697_v31, 4  ;;  %v5772_v28 = vrot.slane %v5771_v45, 4  ;;  %v4128_v59 = vadd.f32 %v13857_v52, %v13843_v62  ;;  %v3937_v24 = vadd.f32 %v13859_v41, %v13858_v5  ;;  %v13860_v23 = vld [vmem:[#allocation76_spill] sm:$0xff]  ;;  %v11376_v12 = vpop.f32.mrb[93].mxu0 }
 0x34d   : > { %v5663_v7 = vrot.slane %v5662_v36, 2  ;;  %v5736_v44 = vadd.f32 %v5735_v3, %v5734_v20  ;;  %v4130_v48 = vadd.f32 %v13860_v23, %v13858_v5  ;;  %v3939_v37 = vadd.f32 %v11074_v63, %v13858_v5  ;;  %13861 = vst [vmem:[#allocation71_spill] sm:$0xff] %v11376_v12  ;;  %v11378_v57 = vpop.f32.mrb[94].mxu0 }
 0x34e   : > { %v5699_v21 = vadd.f32 %v5698_v27, %v5697_v31  ;;  %v5773_v1 = vadd.f32 %v5772_v28, %v5771_v45  ;;  %v4677_v43 = vmax.f32 %v4128_v59, 0.0  ;;  %v4686_v17 = vmax.f32 %v3937_v24, 0.0  ;;  %13862 = vst [vmem:[#allocation73_spill] sm:$0xff] %v11378_v57  ;;  %v11382_v16 = vpop.f32.mrb[92].mxu1  ;;  %v11384_v31 = vpop.f32.mrb[95].mxu0 }
 0x34f   : > { %v5664_v52 = vadd.f32 %v5663_v7, %v5662_v36  ;;  %v5737_v62 = vrot.slane %v5736_v44, 2  ;;  %v4688_v51 = vmax.f32 %v4130_v48, 0.0  ;;  %v4687_v41 = vmax.f32 %v3939_v37, 0.0  ;;  %13864 = vst [vmem:[#allocation58_spill] sm:$0xff] %v11382_v16  ;;  %13865 = vst [vmem:[#allocation26_spill] sm:$0xff] %v11384_v31  ;;  %v11388_v59 = vpop.f32.mrb[93].mxu1 }
 0x350   : > { %v5700_v3 = vrot.slane %v5699_v21, 2  ;;  %v5774_v20 = vrot.slane %v5773_v1, 2  ;;  %v5253_v23 = vmul.f32 %v13854_v2, %v4677_v43  ;;  %v5262_v63 = vmul.f32 %v13863_v14, %v4686_v17  ;;  %13866 = vst [vmem:[#allocation70_spill] sm:$0xff] %v11388_v59  ;;  %v11392_v37 = vpop.f32.mrb[94].mxu1  ;;  %v13868_v16 = vld [vmem:[#allocation44_spill] sm:$0xff] }
 0x351   : > { %v5665_v45 = vrot.slane %v5664_v52, 1  ;;  %v5738_v27 = vadd.f32 %v5737_v62, %v5736_v44  ;;  %v5264_v28 = vmul.f32 %v13863_v14, %v4688_v51  ;;  %v5263_v36 = vmul.f32 %v13863_v14, %v4687_v41  ;;  %v11394_v12 = vpop.f32.mrb[95].mxu1  ;;  %v13867_v41 = vld [vmem:[#allocation87_spill] sm:$0xff] }
 0x352   : > { %v5701_v24 = vadd.f32 %v5700_v3, %v5699_v21  ;;  %v5775_v7 = vadd.f32 %v5774_v20, %v5773_v1  ;;  %v5778_v48 = vadd.f32 %v5262_v63, %v5250_v29  ;;  %v4132_v43 = vadd.f32 %v11078_v15, %v13858_v5  ;;  %v13869_v21 = vld [vmem:[#allocation13_spill] sm:$0xff]  ;;  %v13870_v3 = vld [vmem:[#allocation98_spill] sm:$0xff] }
 0x353   : > { %v5666_v17 = vadd.f32 %v5665_v45, %v5664_v52  ;;  %v5739_v2 = vrot.slane %v5738_v27, 1  ;;  %v5852_v57 = vadd.f32 %v5264_v28, %v5252_v58  ;;  %v5815_v31 = vadd.f32 %v5263_v36, %v5251_v22  ;;  %v13871_v20 = vld [vmem:[#allocation102_spill] sm:$0xff] }
 0x354   : > { %v5702_v62 = vrot.slane %v5701_v24, 1  ;;  %v5776_v51 = vrot.slane %v5775_v7, 1  ;;  %v4689_v44 = vmax.f32 %v4132_v43, 0.0  ;;  %v3943_v59 = vadd.f32 %v13868_v16, %v13867_v41  ;;  %v11403_v63 = vpop.f32.mrb[96].mxu0 }
 0x355   : > { %v6084_v1 = vadd.f32 %v13869_v21, %v5666_v17  ;;  %v5740_v29 = vadd.f32 %v5739_v2, %v5738_v27  ;;  %v4136_v15 = vadd.f32 %v13870_v3, %v13867_v41  ;;  %v3945_v52 = vadd.f32 %v13871_v20, %v13867_v41  ;;  %v11406_v36 = vpop.f32.mrb[97].mxu0  ;;  %v13873_v2 = vld [vmem:[#allocation17_spill] sm:$0xff] }
 0x356   : > { %v5703_v58 = vadd.f32 %v5702_v62, %v5701_v24  ;;  %v5777_v22 = vadd.f32 %v5776_v51, %v5775_v7  ;;  %v5265_v45 = vmul.f32 %v13863_v14, %v4689_v44  ;;  %v4698_v28 = vmax.f32 %v3943_v59, 0.0  ;;  %13872 = vst [vmem:[#allocation20_spill] sm:$0xff] %v11406_v36  ;;  %v11411_v3 = vpop.f32.mrb[98].mxu0  ;;  %v13875_v7 = vld [vmem:[#allocation150_spill] sm:$0xff]  ;;  %v11416_v51 = vpop.f32.mrb[96].mxu1 }
 0x357   : > { %v6086_v16 = vadd.f32 %v13869_v21, %v5740_v29  ;;  %v4700_v43 = vmax.f32 %v4136_v15, 0.0  ;;  %v4699_v17 = vmax.f32 %v3945_v52, 0.0  ;;  %v4138_v27 = vadd.f32 %v13873_v2, %v13867_v41  ;;  %13874 = vst [vmem:[#allocation46_spill] sm:$0xff] %v11411_v3  ;;  %v11418_v59 = vpop.f32.mrb[99].mxu0  ;;  %v13877_v52 = vld [vmem:[#allocation27_spill] sm:$0xff]  ;;  %v13878_v2 = vld [vmem:[#allocation118_spill] sm:$0xff] }
 0x358   : > { %v6085_v20 = vadd.f32 %v13869_v21, %v5703_v58  ;;  %v6087_v5 = vadd.f32 %v13869_v21, %v5777_v22  ;;  %v5889_v24 = vadd.f32 %v5265_v45, %v5253_v23  ;;  %v5274_v62 = vmul.f32 %v13875_v7, %v4698_v28  ;;  %13876 = vst [vmem:[#allocation54_spill] sm:$0xff] %v11418_v59  ;;  %v11424_v14 = vpop.f32.mrb[97].mxu1  ;;  %v13880_v23 = vld [vmem:[#allocation62_spill] sm:$0xff] }
 0x359   : > { %v5276_v44 = vmul.f32 %v13875_v7, %v4700_v43  ;;  %v5275_v29 = vmul.f32 %v13875_v7, %v4699_v17  ;;  %v4701_v15 = vmax.f32 %v4138_v27, 0.0  ;;  %v3947_v41 = vadd.f32 %v13878_v2, %v13877_v52  ;;  %13879 = vst [vmem:[#allocation77_spill] sm:$0xff] %v11424_v14  ;;  %v11428_v28 = vpop.f32.mrb[98].mxu1 }
 0x35a   : > { %v6108_v58 = vcombine.low %v6084_v1, %v6085_v20  ;;  %v6109_v3 = vcombine.low %v6086_v16, %v6087_v5  ;;  %v5779_v22 = vadd.f32 %v5778_v48, %v5274_v62  ;;  %v4140_v45 = vadd.f32 %v13880_v23, %v13877_v52  ;;  %v11431_v17 = vpop.f32.mrb[99].mxu1  ;;  %v13881_v1 = vld [vmem:[#allocation29_spill] sm:$0xff] }
 0x35b   : > { %v5853_v21 = vadd.f32 %v5852_v57, %v5276_v44  ;;  %v5816_v59 = vadd.f32 %v5815_v31, %v5275_v29  ;;  %v5277_v43 = vmul.f32 %v13875_v7, %v4701_v15  ;;  %v4710_v36 = vmax.f32 %v3947_v41, 0.0  ;;  %v13882_v31 = vld [vmem:[#allocation41_spill] sm:$0xff]  ;;  %v13905_v7 = vld [vmem:[#allocation47_spill] sm:$0xff] }
 0x35c   : > { %v6118_v27 = vrot.slane %v6108_v58, %v11357_v6  ;;  %v6125_v2 = vrot.slane %v6109_v3, %v11357_v6  ;;  %v4712_v14 = vmax.f32 %v4140_v45, 0.0  ;;  %v3949_v5 = vadd.f32 %v11122_v42, %v13877_v52  ;;  %v11445_v29 = vpop.f32.mrb[100].mxu0 }
 0x35d   : > { %v5890_v48 = vadd.f32 %v5889_v24, %v5277_v43  ;;  %v5286_v16 = vmul.f32 %v13881_v1, %v4710_v36  ;;  %v4142_v57 = vadd.f32 %v11126_v11, %v13877_v52  ;;  %v3953_v20 = vadd.f32 %v11142_v40, %v13882_v31  ;;  %v11449_v58 = vpop.f32.mrb[101].mxu0  ;;  %v13884_v43 = vld [vmem:[#allocation155_spill] sm:$0xff] }
 0x35e   : > { %v6140_v41 = vcombine.low %v6118_v27, %v6125_v2  ;;  %v5288_v62 = vmul.f32 %v13881_v1, %v4712_v14  ;;  %v4711_v44 = vmax.f32 %v3949_v5, 0.0  ;;  %v4146_v3 = vadd.f32 %v11146_v18, %v13882_v31  ;;  %v11455_v45 = vpop.f32.mrb[102].mxu0 }
 0x35f   : > { %v5780_v15 = vadd.f32 %v5779_v22, %v5286_v16  ;;  %v4713_v42 = vmax.f32 %v4142_v57, 0.0  ;;  %v4722_v24 = vmax.f32 %v3953_v20, 0.0  ;;  %v3955_v36 = vadd.f32 %v11148_v38, %v13882_v31  ;;  %v11461_v38 = vpop.f32.mrb[100].mxu1  ;;  %v11463_v5 = vpop.f32.mrb[103].mxu0  ;;  %v13885_v57 = vld [vmem:[#allocation66_spill] sm:$0xff]  ;;  %v13886_v20 = vld [vmem:[#allocation140_spill] sm:$0xff] }
 0x360   : > { %v11452_v11 = vrot.slane %v6140_v41, %v11357_v6  ;;  %v5854_v40 = vadd.f32 %v5853_v21, %v5288_v62  ;;  %v5287_v14 = vmul.f32 %v13881_v1, %v4711_v44  ;;  %v4724_v23 = vmax.f32 %v4146_v3, 0.0  ;;  %v13887_v62 = vld [vmem:[#allocation147_spill] sm:$0xff]  ;;  %v11470_v3 = vpop.f32.mrb[101].mxu1 }
 0x361   : > { %v5289_v18 = vmul.f32 %v13881_v1, %v4713_v42  ;;  %v5298_v22 = vmul.f32 %v13884_v43, %v4722_v24  ;;  %v4723_v27 = vmax.f32 %v3955_v36, 0.0  ;;  %v4148_v2 = vadd.f32 %v11158_v13, %v13882_v31 }
 0x362   : > { %13883 = vst [vmem:[#allocation57_spill] sm:$0xff] %v11452_v11  ;;  %v5817_v16 = vadd.f32 %v5816_v59, %v5287_v14  ;;  %v5300_v21 = vmul.f32 %v13884_v43, %v4724_v23  ;;  %v3957_v41 = vadd.f32 %v13886_v20, %v13885_v57  ;;  %v4150_v44 = vadd.f32 %v13887_v62, %v13885_v57  ;;  %v11473_v11 = vpop.f32.mrb[102].mxu1 }
 0x363   : > { %v5891_v42 = vadd.f32 %v5890_v48, %v5289_v18  ;;  %v5781_v24 = vadd.f32 %v5780_v15, %v5298_v22  ;;  %v5299_v36 = vmul.f32 %v13884_v43, %v4723_v27  ;;  %v4725_v13 = vmax.f32 %v4148_v2, 0.0  ;;  %v11477_v23 = vpop.f32.mrb[103].mxu1  ;;  %v13888_v15 = vld [vmem:[#allocation88_spill] sm:$0xff]  ;;  %v13889_v22 = vld [vmem:[#allocation114_spill] sm:$0xff] }
 0x364   : > { %v5855_v31 = vadd.f32 %v5854_v40, %v5300_v21  ;;  %v4734_v1 = vmax.f32 %v3957_v41, 0.0  ;;  %v4736_v59 = vmax.f32 %v4150_v44, 0.0  ;;  %v3959_v14 = vadd.f32 %v11170_v0, %v13885_v57  ;;  %v11488_v0 = vpop.f32.mrb[104].mxu0 }
 0x365   : > { %v5818_v20 = vadd.f32 %v5817_v16, %v5299_v36  ;;  %v5301_v62 = vmul.f32 %v13884_v43, %v4725_v13  ;;  %v4152_v48 = vadd.f32 %v11174_v39, %v13885_v57  ;;  %v3963_v18 = vadd.f32 %v11188_v47, %v13888_v15  ;;  %v11492_v39 = vpop.f32.mrb[105].mxu0 }
 0x366   : > { %v5310_v27 = vmul.f32 %v13889_v22, %v4734_v1  ;;  %v5312_v40 = vmul.f32 %v13889_v22, %v4736_v59  ;;  %v4735_v2 = vmax.f32 %v3959_v14, 0.0  ;;  %v4156_v21 = vadd.f32 %v11204_v34, %v13888_v15  ;;  %v11495_v59 = vpop.f32.mrb[106].mxu0  ;;  %v13890_v34 = vld [vmem:[#allocation159_spill] sm:$0xff] }
 0x367   : > { %v5892_v41 = vadd.f32 %v5891_v42, %v5301_v62  ;;  %v4737_v16 = vmax.f32 %v4152_v48, 0.0  ;;  %v4746_v44 = vmax.f32 %v3963_v18, 0.0  ;;  %v3965_v36 = vadd.f32 %v11194_v9, %v13888_v15  ;;  %v11501_v62 = vpop.f32.mrb[104].mxu1  ;;  %v11503_v9 = vpop.f32.mrb[107].mxu0 }
 0x368   : > { %v5782_v13 = vadd.f32 %v5781_v24, %v5310_v27  ;;  %v5856_v47 = vadd.f32 %v5855_v31, %v5312_v40  ;;  %v5311_v1 = vmul.f32 %v13889_v22, %v4735_v2  ;;  %v4748_v43 = vmax.f32 %v4156_v21, 0.0  ;;  %v13891_v24 = vld [vmem:[#allocation31_spill] sm:$0xff]  ;;  %v11510_v40 = vpop.f32.mrb[105].mxu1 }
 0x369   : > { %v5313_v14 = vmul.f32 %v13889_v22, %v4737_v16  ;;  %v5322_v57 = vmul.f32 %v13890_v34, %v4746_v44  ;;  %v4747_v6 = vmax.f32 %v3965_v36, 0.0  ;;  %v4158_v42 = vadd.f32 %v11214_v8, %v13888_v15  ;;  %v11513_v44 = vpop.f32.mrb[106].mxu1 }
 0x36a   : > { %v5819_v48 = vadd.f32 %v5818_v20, %v5311_v1  ;;  %v5324_v31 = vmul.f32 %v13890_v34, %v4748_v43  ;;  %v3967_v18 = vadd.f32 %v11206_v61, %v13891_v24  ;;  %v4160_v27 = vadd.f32 %v11220_v49, %v13891_v24  ;;  %v11517_v1 = vpop.f32.mrb[107].mxu1 }
 0x36b   : > { %v5893_v2 = vadd.f32 %v5892_v41, %v5313_v14  ;;  %v5783_v21 = vadd.f32 %v5782_v13, %v5322_v57  ;;  %v5323_v16 = vmul.f32 %v13890_v34, %v4747_v6  ;;  %v4749_v8 = vmax.f32 %v4158_v42, 0.0  ;;  %v13892_v57 = vld [vmem:[#allocation52_spill] sm:$0xff] }
 0x36c   : > { %v5857_v36 = vadd.f32 %v5856_v47, %v5324_v31  ;;  %v4758_v15 = vmax.f32 %v3967_v18, 0.0  ;;  %v4760_v20 = vmax.f32 %v4160_v27, 0.0  ;;  %v3969_v43 = vadd.f32 %v11216_v46, %v13891_v24  ;;  %v13893_v13 = vld [vmem:[#allocation24_spill] sm:$0xff]  ;;  %v11528_v46 = vpop.f32.mrb[108].mxu0 }
 0x36d   : > { %v5820_v61 = vadd.f32 %v5819_v48, %v5323_v16  ;;  %v5325_v49 = vmul.f32 %v13890_v34, %v4749_v8  ;;  %v4162_v41 = vadd.f32 %v11223_v25, %v13891_v24  ;;  %v3973_v6 = vadd.f32 %v11236_v60, %v13892_v57  ;;  %v11532_v25 = vpop.f32.mrb[109].mxu0 }
 0x36e   : > { %v5334_v14 = vmul.f32 %v13893_v13, %v4758_v15  ;;  %v5336_v47 = vmul.f32 %v13893_v13, %v4760_v20  ;;  %v4759_v42 = vmax.f32 %v3969_v43, 0.0  ;;  %v4166_v31 = vadd.f32 %v11252_v30, %v13892_v57  ;;  %v11535_v20 = vpop.f32.mrb[110].mxu0  ;;  %v13894_v30 = vld [vmem:[#allocation96_spill] sm:$0xff] }
 0x36f   : > { %v5894_v18 = vadd.f32 %v5893_v2, %v5325_v49  ;;  %v4761_v48 = vmax.f32 %v4162_v41, 0.0  ;;  %v4770_v27 = vmax.f32 %v3973_v6, 0.0  ;;  %v3975_v16 = vadd.f32 %v11242_v55, %v13892_v57  ;;  %v11541_v49 = vpop.f32.mrb[108].mxu1  ;;  %v11543_v55 = vpop.f32.mrb[111].mxu0 }
 0x370   : > { %v5784_v8 = vadd.f32 %v5783_v21, %v5334_v14  ;;  %v5858_v60 = vadd.f32 %v5857_v36, %v5336_v47  ;;  %v5335_v15 = vmul.f32 %v13893_v13, %v4759_v42  ;;  %v4772_v34 = vmax.f32 %v4166_v31, 0.0  ;;  %v13895_v36 = vld [vmem:[#allocation103_spill] sm:$0xff]  ;;  %v11550_v47 = vpop.f32.mrb[109].mxu1 }
 0x371   : > { %v5337_v43 = vmul.f32 %v13893_v13, %v4761_v48  ;;  %v5346_v24 = vmul.f32 %v13894_v30, %v4770_v27  ;;  %v4771_v22 = vmax.f32 %v3975_v16, 0.0  ;;  %v4168_v2 = vadd.f32 %v11262_v53, %v13892_v57  ;;  %v11553_v27 = vpop.f32.mrb[110].mxu1 }
 0x372   : > { %v5821_v41 = vadd.f32 %v5820_v61, %v5335_v15  ;;  %v5348_v21 = vmul.f32 %v13894_v30, %v4772_v34  ;;  %v3977_v6 = vadd.f32 %v11254_v32, %v13895_v36  ;;  %v4170_v14 = vadd.f32 %v11268_v19, %v13895_v36  ;;  %v11557_v15 = vpop.f32.mrb[111].mxu1 }
 0x373   : > { %v5895_v42 = vadd.f32 %v5894_v18, %v5337_v43  ;;  %v5785_v31 = vadd.f32 %v5784_v8, %v5346_v24  ;;  %v5347_v48 = vmul.f32 %v13894_v30, %v4771_v22  ;;  %v4773_v53 = vmax.f32 %v4168_v2, 0.0  ;;  %v13896_v24 = vld [vmem:[#allocation53_spill] sm:$0xff]  ;;  %v13897_v8 = vld [vmem:[#allocation119_spill] sm:$0xff] }
 0x374   : > { %v5859_v16 = vadd.f32 %v5858_v60, %v5348_v21  ;;  %v4782_v57 = vmax.f32 %v3977_v6, 0.0  ;;  %v4784_v61 = vmax.f32 %v4170_v14, 0.0  ;;  %v3979_v34 = vadd.f32 %v11264_v26, %v13895_v36 }
 0x375   : > { %v5822_v32 = vadd.f32 %v5821_v41, %v5347_v48  ;;  %v5349_v19 = vmul.f32 %v13894_v30, %v4773_v53  ;;  %v4172_v18 = vadd.f32 %v11271_v10, %v13895_v36  ;;  %v3983_v22 = vadd.f32 %v11286_v50, %v13896_v24  ;;  %v11568_v26 = vpop.f32.mrb[112].mxu0 }
 0x376   : > { %v5358_v43 = vmul.f32 %v13897_v8, %v4782_v57  ;;  %v5360_v60 = vmul.f32 %v13897_v8, %v4784_v61  ;;  %v4783_v2 = vmax.f32 %v3979_v34, 0.0  ;;  %v4176_v21 = vadd.f32 %v11308_v33, %v13896_v24  ;;  %v11572_v10 = vpop.f32.mrb[113].mxu0  ;;  %v13898_v33 = vld [vmem:[#allocation110_spill] sm:$0xff] }
 0x377   : > { %v5896_v6 = vadd.f32 %v5895_v42, %v5349_v19  ;;  %v4785_v41 = vmax.f32 %v4172_v18, 0.0  ;;  %v4794_v14 = vmax.f32 %v3983_v22, 0.0  ;;  %v3985_v48 = vadd.f32 %v11290_v4, %v13896_v24  ;;  %v11575_v61 = vpop.f32.mrb[114].mxu0  ;;  %v11581_v19 = vpop.f32.mrb[112].mxu1 }
 0x378   : > { %v5786_v53 = vadd.f32 %v5785_v31, %v5358_v43  ;;  %v5860_v50 = vadd.f32 %v5859_v16, %v5360_v60  ;;  %v5359_v57 = vmul.f32 %v13897_v8, %v4783_v2  ;;  %v4796_v30 = vmax.f32 %v4176_v21, 0.0  ;;  %v11583_v4 = vpop.f32.mrb[115].mxu0  ;;  %v13900_v16 = vld [vmem:[#allocation40_spill] sm:$0xff]  ;;  %v13901_v43 = vld [vmem:[#allocation43_spill] sm:$0xff]  ;;  %v11590_v2 = vpop.f32.mrb[113].mxu1 }
 0x379   : > { %v5361_v34 = vmul.f32 %v13897_v8, %v4785_v41  ;;  %v5370_v36 = vmul.f32 %v13898_v33, %v4794_v14  ;;  %v4795_v13 = vmax.f32 %v3985_v48, 0.0  ;;  %v4178_v42 = vadd.f32 %v11314_v54, %v13896_v24  ;;  %13899 = vst [vmem:[#allocation68_spill] sm:$0xff] %v11583_v4  ;;  %v11593_v48 = vpop.f32.mrb[114].mxu1 }
 0x37a   : > { %v5823_v18 = vadd.f32 %v5822_v32, %v5359_v57  ;;  %v5372_v31 = vmul.f32 %v13898_v33, %v4796_v30  ;;  %v3987_v22 = vadd.f32 %v11300_v35, %v13900_v16  ;;  %v4180_v60 = vadd.f32 %v13901_v43, %v13900_v16  ;;  %13902 = vst [vmem:[#allocation99_spill] sm:$0xff] %v11593_v48  ;;  %v13903_v30 = vld [vmem:[#allocation37_spill] sm:$0xff]  ;;  %v11597_v52 = vpop.f32.mrb[115].mxu1 }
 0x37b   : > { %v5897_v21 = vadd.f32 %v5896_v6, %v5361_v34  ;;  %v5787_v41 = vadd.f32 %v5786_v53, %v5370_v36  ;;  %v5371_v14 = vmul.f32 %v13898_v33, %v4795_v13  ;;  %v4797_v54 = vmax.f32 %v4178_v42, 0.0  ;;  %13904 = vst [vmem:[#allocation104_spill] sm:$0xff] %v11597_v52  ;;  %v13906_v36 = vld [vmem:[#allocation93_spill] sm:$0xff]  ;;  %v13907_v53 = vld [vmem:[#allocation36_spill] sm:$0xff]  ;;  %v13908_v34 = vld [vmem:[#allocation122_spill] sm:$0xff] }
 0x37c   : > { %v5861_v24 = vadd.f32 %v5860_v50, %v5372_v31  ;;  %v4806_v8 = vmax.f32 %v3987_v22, 0.0  ;;  %v4808_v32 = vmax.f32 %v4180_v60, 0.0  ;;  %v3989_v57 = vadd.f32 %v13903_v30, %v13900_v16  ;;  %v13909_v22 = vld [vmem:[#allocation3_spill] sm:$0xff] }
 0x37d   : > { %v5824_v35 = vadd.f32 %v5823_v18, %v5371_v14  ;;  %v5373_v43 = vmul.f32 %v13898_v33, %v4797_v54  ;;  %v4182_v6 = vadd.f32 %v13905_v7, %v13900_v16  ;;  %v3993_v13 = vadd.f32 %v13907_v53, %v13906_v36  ;;  %v13910_v18 = vld [vmem:[#allocation22_spill] sm:$0xff]  ;;  %v11610_v54 = vpop.f32.mrb[116].mxu0 }
 0x37e   : > { %v5382_v42 = vmul.f32 %v13908_v34, %v4806_v8  ;;  %v5384_v50 = vmul.f32 %v13908_v34, %v4808_v32  ;;  %v4807_v31 = vmax.f32 %v3989_v57, 0.0  ;;  %v4186_v60 = vadd.f32 %v13909_v22, %v13906_v36  ;;  %v11613_v8 = vpop.f32.mrb[117].mxu0  ;;  %v13912_v57 = vld [vmem:[#allocation101_spill] sm:$0xff] }
 0x37f   : > { %v5898_v30 = vadd.f32 %v5897_v21, %v5373_v43  ;;  %v4809_v4 = vmax.f32 %v4182_v6, 0.0  ;;  %v4818_v52 = vmax.f32 %v3993_v13, 0.0  ;;  %v3995_v14 = vadd.f32 %v13910_v18, %v13906_v36  ;;  %13911 = vst [vmem:[#allocation111_spill] sm:$0xff] %v11613_v8  ;;  %v13913_v21 = vld [vmem:[#allocation55_spill] sm:$0xff]  ;;  %v11619_v6 = vpop.f32.mrb[118].mxu0 }
 0x380   : > { %v5788_v7 = vadd.f32 %v5787_v41, %v5382_v42  ;;  %v5862_v33 = vadd.f32 %v5861_v24, %v5384_v50  ;;  %v5383_v53 = vmul.f32 %v13908_v34, %v4807_v31  ;;  %v4820_v16 = vmax.f32 %v4186_v60, 0.0  ;;  %13914 = vst [vmem:[#allocation89_spill] sm:$0xff] %v11619_v6  ;;  %v13915_v41 = vld [vmem:[#allocation85_spill] sm:$0xff]  ;;  %v13916_v24 = vld [vmem:[#allocation39_spill] sm:$0xff] }
 0x381   : > { %v5385_v32 = vmul.f32 %v13908_v34, %v4809_v4  ;;  %v5394_v48 = vmul.f32 %v13912_v57, %v4818_v52  ;;  %v4819_v22 = vmax.f32 %v3995_v14, 0.0  ;;  %v4188_v43 = vadd.f32 %v13913_v21, %v13906_v36  ;;  %v13917_v50 = vld [vmem:[#allocation81_spill] sm:$0xff]  ;;  %v11626_v60 = vpop.f32.mrb[116].mxu1  ;;  %v11628_v4 = vpop.f32.mrb[119].mxu0 }
 0x382   : > { %v5825_v13 = vadd.f32 %v5824_v35, %v5383_v53  ;;  %v5396_v18 = vmul.f32 %v13912_v57, %v4820_v16  ;;  %v3997_v42 = vadd.f32 %v13916_v24, %v13915_v41  ;;  %v4190_v31 = vadd.f32 %v13917_v50, %v13915_v41  ;;  %13918 = vst [vmem:[#allocation112_spill] sm:$0xff] %v11626_v60  ;;  %v11631_v36 = vpop.f32.mrb[117].mxu1  ;;  %v13921_v6 = vld [vmem:[#allocation69_spill] sm:$0xff] }
 0x383   : > { %13919 = vst [vmem:[#allocation152_spill] sm:$0xff] %v11628_v4  ;;  %v5899_v52 = vadd.f32 %v5898_v30, %v5385_v32  ;;  %v5789_v14 = vadd.f32 %v5788_v7, %v5394_v48  ;;  %v5395_v34 = vmul.f32 %v13912_v57, %v4819_v22  ;;  %v4821_v21 = vmax.f32 %v4188_v43, 0.0  ;;  %13920 = vst [vmem:[#allocation154_spill] sm:$0xff] %v11631_v36  ;;  %v11635_v8 = vpop.f32.mrb[118].mxu1  ;;  %v13923_v4 = vld [vmem:[#allocation67_spill] sm:$0xff]  ;;  %v13926_v22 = vld [vmem:[#allocation124_spill] sm:$0xff] }
 0x384   : > { %v5863_v35 = vadd.f32 %v5862_v33, %v5396_v18  ;;  %v4830_v53 = vmax.f32 %v3997_v42, 0.0  ;;  %v4832_v16 = vmax.f32 %v4190_v31, 0.0  ;;  %v3999_v24 = vadd.f32 %v13921_v6, %v13915_v41  ;;  %13922 = vst [vmem:[#allocation113_spill] sm:$0xff] %v11635_v8  ;;  %v13924_v48 = vld [vmem:[#allocation79_spill] sm:$0xff]  ;;  %v11642_v32 = vpop.f32.mrb[119].mxu1  ;;  %v13927_v6 = vld [vmem:[#allocation58_spill] sm:$0xff] }
 0x385   : > { %v5826_v50 = vadd.f32 %v5825_v13, %v5395_v34  ;;  %v5397_v60 = vmul.f32 %v13912_v57, %v4821_v21  ;;  %v4192_v30 = vadd.f32 %v13923_v4, %v13915_v41  ;;  %v4003_v7 = vadd.f32 %v11374_v56, %v13924_v48  ;;  %13925 = vst [vmem:[#allocation130_spill] sm:$0xff] %v11642_v32  ;;  %v13928_v21 = vld [vmem:[#allocation71_spill] sm:$0xff] }
 0x386   : > { %v5406_v33 = vmul.f32 %v13926_v22, %v4830_v53  ;;  %v5408_v43 = vmul.f32 %v13926_v22, %v4832_v16  ;;  %v4831_v18 = vmax.f32 %v3999_v24, 0.0  ;;  %v4196_v42 = vadd.f32 %v13927_v6, %v13924_v48  ;;  %v11650_v4 = vpop.f32.mrb[120].mxu0  ;;  %v13930_v24 = vld [vmem:[#allocation144_spill] sm:$0xff] }
 0x387   : > { %v5900_v31 = vadd.f32 %v5899_v52, %v5397_v60  ;;  %v4833_v34 = vmax.f32 %v4192_v30, 0.0  ;;  %v4842_v13 = vmax.f32 %v4003_v7, 0.0  ;;  %v4005_v57 = vadd.f32 %v13928_v21, %v13924_v48  ;;  %v11653_v53 = vpop.f32.mrb[121].mxu0  ;;  %v13931_v60 = vld [vmem:[#allocation70_spill] sm:$0xff] }
 0x388   : > { %v5790_v41 = vadd.f32 %v5789_v14, %v5406_v33  ;;  %v5864_v56 = vadd.f32 %v5863_v35, %v5408_v43  ;;  %v5407_v32 = vmul.f32 %v13926_v22, %v4831_v18  ;;  %v4844_v8 = vmax.f32 %v4196_v42, 0.0  ;;  %13929 = vst [vmem:[#allocation162_spill] sm:$0xff] %v11653_v53  ;;  %v11659_v30 = vpop.f32.mrb[122].mxu0  ;;  %v13933_v14 = vld [vmem:[#allocation86_spill] sm:$0xff]  ;;  %v13934_v35 = vld [vmem:[#allocation73_spill] sm:$0xff] }
 0x389   : > { %v5409_v16 = vmul.f32 %v13926_v22, %v4833_v34  ;;  %v5418_v36 = vmul.f32 %v13930_v24, %v4842_v13  ;;  %v4843_v6 = vmax.f32 %v4005_v57, 0.0  ;;  %v4198_v52 = vadd.f32 %v13931_v60, %v13924_v48  ;;  %13932 = vst [vmem:[#allocation49_spill] sm:$0xff] %v11659_v30  ;;  %v11668_v42 = vpop.f32.mrb[123].mxu0  ;;  %v13936_v22 = vld [vmem:[#allocation26_spill] sm:$0xff] }
 0x38a   : > { %v5827_v7 = vadd.f32 %v5826_v50, %v5407_v32  ;;  %v5420_v21 = vmul.f32 %v13930_v24, %v4844_v8  ;;  %v4007_v33 = vadd.f32 %v13934_v35, %v13933_v14  ;;  %v4200_v43 = vadd.f32 %v11392_v37, %v13933_v14  ;;  %v11666_v18 = vpop.f32.mrb[120].mxu1  ;;  %13935 = vst [vmem:[#allocation158_spill] sm:$0xff] %v11668_v42 }
 0x38b   : > { %v5901_v34 = vadd.f32 %v5900_v31, %v5409_v16  ;;  %v5791_v57 = vadd.f32 %v5790_v41, %v5418_v36  ;;  %v5419_v13 = vmul.f32 %v13930_v24, %v4843_v6  ;;  %v4845_v60 = vmax.f32 %v4198_v52, 0.0  ;;  %v11671_v48 = vpop.f32.mrb[121].mxu1  ;;  %v13937_v36 = vld [vmem:[#allocation60_spill] sm:$0xff]  ;;  %v13939_v6 = vld [vmem:[#allocation127_spill] sm:$0xff] }
 0x38c   : > { %v5865_v50 = vadd.f32 %v5864_v56, %v5420_v21  ;;  %v4854_v32 = vmax.f32 %v4007_v33, 0.0  ;;  %v4856_v8 = vmax.f32 %v4200_v43, 0.0  ;;  %v4009_v35 = vadd.f32 %v13936_v22, %v13933_v14  ;;  %v11675_v30 = vpop.f32.mrb[122].mxu1 }
 0x38d   : > { %v5828_v37 = vadd.f32 %v5827_v7, %v5419_v13  ;;  %v5421_v53 = vmul.f32 %v13930_v24, %v4845_v60  ;;  %v4202_v31 = vadd.f32 %v11394_v12, %v13933_v14  ;;  %v4013_v41 = vadd.f32 %v11403_v63, %v13937_v36  ;;  %v11682_v16 = vpop.f32.mrb[123].mxu1  ;;  %v13940_v13 = vld [vmem:[#allocation20_spill] sm:$0xff] }
 0x38e   : > { %13938 = vst [vmem:[#allocation161_spill] sm:$0xff] %v11682_v16  ;;  %v5430_v56 = vmul.f32 %v13939_v6, %v4854_v32  ;;  %v5432_v52 = vmul.f32 %v13939_v6, %v4856_v8  ;;  %v4855_v21 = vmax.f32 %v4009_v35, 0.0  ;;  %v4206_v22 = vadd.f32 %v11416_v51, %v13937_v36  ;;  %v13942_v35 = vld [vmem:[#allocation50_spill] sm:$0xff] }
 0x38f   : > { %v5902_v33 = vadd.f32 %v5901_v34, %v5421_v53  ;;  %v4857_v7 = vmax.f32 %v4202_v31, 0.0  ;;  %v4866_v43 = vmax.f32 %v4013_v41, 0.0  ;;  %v4015_v60 = vadd.f32 %v13940_v13, %v13937_v36  ;;  %v11690_v12 = vpop.f32.mrb[124].mxu0  ;;  %v13943_v53 = vld [vmem:[#allocation77_spill] sm:$0xff] }
 0x390   : > { %v5792_v24 = vadd.f32 %v5791_v57, %v5430_v56  ;;  %v5866_v63 = vadd.f32 %v5865_v50, %v5432_v52  ;;  %v5431_v14 = vmul.f32 %v13939_v6, %v4855_v21  ;;  %v4868_v16 = vmax.f32 %v4206_v22, 0.0  ;;  %v11693_v32 = vpop.f32.mrb[125].mxu0  ;;  %v13945_v57 = vld [vmem:[#allocation51_spill] sm:$0xff]  ;;  %v13946_v50 = vld [vmem:[#allocation46_spill] sm:$0xff] }
 0x391   : > { %13941 = vst [vmem:[#allocation125_spill] sm:$0xff] %v11693_v32  ;;  %v5433_v8 = vmul.f32 %v13939_v6, %v4857_v7  ;;  %v5442_v42 = vmul.f32 %v13942_v35, %v4866_v43  ;;  %v4867_v51 = vmax.f32 %v4015_v60, 0.0  ;;  %v4208_v34 = vadd.f32 %v13943_v53, %v13937_v36  ;;  %v11699_v31 = vpop.f32.mrb[126].mxu0  ;;  %v13947_v6 = vld [vmem:[#allocation54_spill] sm:$0xff] }
 0x392   : > { %13944 = vst [vmem:[#allocation138_spill] sm:$0xff] %v11699_v31  ;;  %v5829_v41 = vadd.f32 %v5828_v37, %v5431_v14  ;;  %v5444_v13 = vmul.f32 %v13942_v35, %v4868_v16  ;;  %v4017_v56 = vadd.f32 %v13946_v50, %v13945_v57  ;;  %v4210_v52 = vadd.f32 %v11428_v28, %v13945_v57  ;;  %v11706_v21 = vpop.f32.mrb[124].mxu1  ;;  %v11708_v22 = vpop.f32.mrb[127].mxu0 }
 0x393   : > { %v5903_v7 = vadd.f32 %v5902_v33, %v5433_v8  ;;  %v5793_v43 = vadd.f32 %v5792_v24, %v5442_v42  ;;  %v5443_v60 = vmul.f32 %v13942_v35, %v4867_v51  ;;  %v4869_v53 = vmax.f32 %v4208_v34, 0.0  ;;  %v11711_v36 = vpop.f32.mrb[125].mxu1  ;;  %v13948_v24 = vld [vmem:[#allocation105_spill] sm:$0xff]  ;;  %v13950_v51 = vld [vmem:[#allocation151_spill] sm:$0xff] }
 0x394   : > { %v5867_v14 = vadd.f32 %v5866_v63, %v5444_v13  ;;  %v4878_v37 = vmax.f32 %v4017_v56, 0.0  ;;  %v4880_v16 = vmax.f32 %v4210_v52, 0.0  ;;  %v4019_v50 = vadd.f32 %v13947_v6, %v13945_v57  ;;  %v11715_v31 = vpop.f32.mrb[126].mxu1 }
 0x395   : > { %v5830_v28 = vadd.f32 %v5829_v41, %v5443_v60  ;;  %v5445_v32 = vmul.f32 %v13942_v35, %v4869_v53  ;;  %v4212_v33 = vadd.f32 %v11431_v17, %v13945_v57  ;;  %v4023_v42 = vadd.f32 %v11445_v29, %v13948_v24  ;;  %v11722_v8 = vpop.f32.mrb[127].mxu1 }
 0x396   : > { %13949 = vst [vmem:[#allocation146_spill] sm:$0xff] %v11722_v8  ;;  %v5454_v63 = vmul.f32 %v13950_v51, %v4878_v37  ;;  %v5456_v34 = vmul.f32 %v13950_v51, %v4880_v16  ;;  %v4879_v13 = vmax.f32 %v4019_v50, 0.0  ;;  %v4216_v6 = vadd.f32 %v11461_v38, %v13948_v24  ;;  %v13951_v37 = vld [vmem:[#allocation35_spill] sm:$0xff] }
 0x397   : > { %v5904_v56 = vadd.f32 %v5903_v7, %v5445_v32  ;;  %v4881_v41 = vmax.f32 %v4212_v33, 0.0  ;;  %v4890_v52 = vmax.f32 %v4023_v42, 0.0  ;;  %v4025_v60 = vadd.f32 %v11449_v58, %v13948_v24  ;;  %v13952_v7 = vld [vmem:[#allocation32_spill] sm:$0xff] }
 0x398   : > { %v5794_v17 = vadd.f32 %v5793_v43, %v5454_v63  ;;  %v5868_v53 = vadd.f32 %v5867_v14, %v5456_v34  ;;  %v5455_v29 = vmul.f32 %v13950_v51, %v4879_v13  ;;  %v4892_v35 = vmax.f32 %v4216_v6, 0.0 }
 0x399   : > { %v5457_v57 = vmul.f32 %v13950_v51, %v4881_v41  ;;  %v5466_v8 = vmul.f32 %v13951_v37, %v4890_v52  ;;  %v4891_v16 = vmax.f32 %v4025_v60, 0.0  ;;  %v4218_v50 = vadd.f32 %v11470_v3, %v13948_v24  ;;  %v13953_v41 = vld [vmem:[#allocation109_spill] sm:$0xff] }
 0x39a   : > { %v5831_v38 = vadd.f32 %v5830_v28, %v5455_v29  ;;  %v5468_v32 = vmul.f32 %v13951_v37, %v4892_v35  ;;  %v4027_v33 = vadd.f32 %v11455_v45, %v13952_v7  ;;  %v4220_v58 = vadd.f32 %v11473_v11, %v13952_v7 }
 0x39b   : > { %v5905_v43 = vadd.f32 %v5904_v56, %v5457_v57  ;;  %v5795_v14 = vadd.f32 %v5794_v17, %v5466_v8  ;;  %v5467_v42 = vmul.f32 %v13951_v37, %v4891_v16  ;;  %v4893_v63 = vmax.f32 %v4218_v50, 0.0  ;;  %v13954_v57 = vld [vmem:[#allocation153_spill] sm:$0xff] }
 0x39c   : > { %v5869_v34 = vadd.f32 %v5868_v53, %v5468_v32  ;;  %v4902_v13 = vmax.f32 %v4027_v33, 0.0  ;;  %v4904_v6 = vmax.f32 %v4220_v58, 0.0  ;;  %v4029_v3 = vadd.f32 %v11463_v5, %v13952_v7  ;;  %v13955_v32 = vld [vmem:[#allocation12_spill] sm:$0xff] }
 0x39d   : > { %v5832_v28 = vadd.f32 %v5831_v38, %v5467_v42  ;;  %v5469_v35 = vmul.f32 %v13951_v37, %v4893_v63  ;;  %v4222_v45 = vadd.f32 %v11477_v23, %v13952_v7  ;;  %v4033_v11 = vadd.f32 %v11488_v0, %v13953_v41  ;;  %v13956_v63 = vld [vmem:[#allocation75_spill] sm:$0xff]  ;;  %v13978_v37 = vld [vmem:[#allocation130_spill] sm:$0xff] }
 0x39e   : > { %v5478_v8 = vmul.f32 %v13954_v57, %v4902_v13  ;;  %v5480_v56 = vmul.f32 %v13954_v57, %v4904_v6  ;;  %v4903_v52 = vmax.f32 %v4029_v3, 0.0  ;;  %v4226_v60 = vadd.f32 %v11501_v62, %v13953_v41 }
 0x39f   : > { %v5906_v17 = vadd.f32 %v5905_v43, %v5469_v35  ;;  %v4905_v53 = vmax.f32 %v4222_v45, 0.0  ;;  %v4914_v5 = vmax.f32 %v4033_v11, 0.0  ;;  %v4035_v29 = vadd.f32 %v11492_v39, %v13953_v41 }
 0x3a0   : > { %v5796_v16 = vadd.f32 %v5795_v14, %v5478_v8  ;;  %v5870_v50 = vadd.f32 %v5869_v34, %v5480_v56  ;;  %v5479_v23 = vmul.f32 %v13954_v57, %v4903_v52  ;;  %v4916_v38 = vmax.f32 %v4226_v60, 0.0  ;;  %v13957_v60 = vld [vmem:[#allocation134_spill] sm:$0xff] }
 0x3a1   : > { %v5481_v0 = vmul.f32 %v13954_v57, %v4905_v53  ;;  %v5490_v33 = vmul.f32 %v13955_v32, %v4914_v5  ;;  %v4915_v58 = vmax.f32 %v4035_v29, 0.0  ;;  %v4228_v42 = vadd.f32 %v11510_v40, %v13953_v41  ;;  %v13958_v29 = vld [vmem:[#allocation129_spill] sm:$0xff] }
 0x3a2   : > { %v5833_v62 = vadd.f32 %v5832_v28, %v5479_v23  ;;  %v5492_v43 = vmul.f32 %v13955_v32, %v4916_v38  ;;  %v4037_v13 = vadd.f32 %v11495_v59, %v13956_v63  ;;  %v4230_v39 = vadd.f32 %v11513_v44, %v13956_v63  ;;  %v11764_v14 = vpop.f32.mrb[128].mxu0  ;;  %v13975_v57 = vld [vmem:[#allocation89_spill] sm:$0xff] }
 0x3a3   : > { %v5907_v34 = vadd.f32 %v5906_v17, %v5481_v0  ;;  %v5797_v6 = vadd.f32 %v5796_v16, %v5490_v33  ;;  %v5491_v3 = vmul.f32 %v13955_v32, %v4915_v58  ;;  %v4917_v35 = vmax.f32 %v4228_v42, 0.0  ;;  %v11767_v45 = vpop.f32.mrb[129].mxu0 }
 0x3a4   : > { %v5871_v11 = vadd.f32 %v5870_v50, %v5492_v43  ;;  %v4926_v40 = vmax.f32 %v4037_v13, 0.0  ;;  %v4928_v28 = vmax.f32 %v4230_v39, 0.0  ;;  %v4039_v8 = vadd.f32 %v11503_v9, %v13956_v63  ;;  %v11771_v56 = vpop.f32.mrb[130].mxu0 }
 0x3a5   : > { %v5834_v59 = vadd.f32 %v5833_v62, %v5491_v3  ;;  %v5493_v44 = vmul.f32 %v13955_v32, %v4917_v35  ;;  %v4232_v52 = vadd.f32 %v11517_v1, %v13956_v63  ;;  %v4043_v17 = vadd.f32 %v11528_v46, %v13957_v60  ;;  %v11778_v53 = vpop.f32.mrb[128].mxu1  ;;  %v11780_v5 = vpop.f32.mrb[131].mxu0 }
 0x3a6   : > { %v5502_v16 = vmul.f32 %v13958_v29, %v4926_v40  ;;  %v5504_v50 = vmul.f32 %v13958_v29, %v4928_v28  ;;  %v4927_v9 = vmax.f32 %v4039_v8, 0.0  ;;  %v4236_v23 = vadd.f32 %v11541_v49, %v13957_v60  ;;  %v11786_v38 = vpop.f32.mrb[129].mxu1  ;;  %v13959_v49 = vld [vmem:[#allocation61_spill] sm:$0xff]  ;;  %v13960_v8 = vld [vmem:[#allocation91_spill] sm:$0xff] }
 0x3a7   : > { %v5908_v0 = vadd.f32 %v5907_v34, %v5493_v44  ;;  %v4929_v33 = vmax.f32 %v4232_v52, 0.0  ;;  %v4938_v1 = vmax.f32 %v4043_v17, 0.0  ;;  %v4045_v46 = vadd.f32 %v11532_v25, %v13957_v60  ;;  %v11790_v58 = vpop.f32.mrb[130].mxu1 }
 0x3a8   : > { %v5798_v42 = vadd.f32 %v5797_v6, %v5502_v16  ;;  %v5872_v62 = vadd.f32 %v5871_v11, %v5504_v50  ;;  %v5503_v43 = vmul.f32 %v13958_v29, %v4927_v9  ;;  %v4940_v13 = vmax.f32 %v4236_v23, 0.0  ;;  %v11793_v39 = vpop.f32.mrb[131].mxu1 }
 0x3a9   : > { %v5505_v3 = vmul.f32 %v13958_v29, %v4929_v33  ;;  %v5514_v35 = vmul.f32 %v13959_v49, %v4938_v1  ;;  %v4939_v40 = vmax.f32 %v4045_v46, 0.0  ;;  %v4238_v34 = vadd.f32 %v11550_v47, %v13957_v60  ;;  %v13961_v46 = vld [vmem:[#allocation142_spill] sm:$0xff] }
 0x3aa   : > { %v5835_v28 = vadd.f32 %v5834_v59, %v5503_v43  ;;  %v5516_v25 = vmul.f32 %v13959_v49, %v4940_v13  ;;  %v4047_v6 = vadd.f32 %v11535_v20, %v13960_v8  ;;  %v4240_v11 = vadd.f32 %v11553_v27, %v13960_v8  ;;  %v11804_v44 = vpop.f32.mrb[132].mxu0 }
 0x3ab   : > { %v5909_v52 = vadd.f32 %v5908_v0, %v5505_v3  ;;  %v5799_v17 = vadd.f32 %v5798_v42, %v5514_v35  ;;  %v5515_v16 = vmul.f32 %v13959_v49, %v4939_v40  ;;  %v4941_v50 = vmax.f32 %v4238_v34, 0.0  ;;  %v11807_v9 = vpop.f32.mrb[133].mxu0 }
 0x3ac   : > { %v5873_v23 = vadd.f32 %v5872_v62, %v5516_v25  ;;  %v4950_v47 = vmax.f32 %v4047_v6, 0.0  ;;  %v4952_v59 = vmax.f32 %v4240_v11, 0.0  ;;  %v4049_v33 = vadd.f32 %v11543_v55, %v13960_v8  ;;  %v11811_v1 = vpop.f32.mrb[134].mxu0  ;;  %v13962_v62 = vld [vmem:[#allocation132_spill] sm:$0xff] }
 0x3ad   : > { %v5836_v20 = vadd.f32 %v5835_v28, %v5515_v16  ;;  %v5517_v27 = vmul.f32 %v13959_v49, %v4941_v50  ;;  %v4242_v0 = vadd.f32 %v11557_v15, %v13960_v8  ;;  %v4053_v42 = vadd.f32 %v11568_v26, %v13961_v46  ;;  %v11818_v43 = vpop.f32.mrb[132].mxu1  ;;  %v11820_v13 = vpop.f32.mrb[135].mxu0 }
 0x3ae   : > { %v5526_v3 = vmul.f32 %v13962_v62, %v4950_v47  ;;  %v5528_v35 = vmul.f32 %v13962_v62, %v4952_v59  ;;  %v4951_v55 = vmax.f32 %v4049_v33, 0.0  ;;  %v4246_v40 = vadd.f32 %v11581_v19, %v13961_v46  ;;  %v11826_v34 = vpop.f32.mrb[133].mxu1  ;;  %v13963_v19 = vld [vmem:[#allocation33_spill] sm:$0xff] }
 0x3af   : > { %v5910_v28 = vadd.f32 %v5909_v52, %v5517_v27  ;;  %v4953_v25 = vmax.f32 %v4242_v0, 0.0  ;;  %v4962_v15 = vmax.f32 %v4053_v42, 0.0  ;;  %v4055_v26 = vadd.f32 %v11572_v10, %v13961_v46  ;;  %v11830_v6 = vpop.f32.mrb[134].mxu1  ;;  %v13964_v0 = vld [vmem:[#allocation78_spill] sm:$0xff] }
 0x3b0   : > { %v5800_v11 = vadd.f32 %v5799_v17, %v5526_v3  ;;  %v5874_v16 = vadd.f32 %v5873_v23, %v5528_v35  ;;  %v5527_v50 = vmul.f32 %v13962_v62, %v4951_v55  ;;  %v4964_v47 = vmax.f32 %v4246_v40, 0.0  ;;  %v11833_v59 = vpop.f32.mrb[135].mxu1  ;;  %v13965_v23 = vld [vmem:[#allocation99_spill] sm:$0xff] }
 0x3b1   : > { %v5529_v33 = vmul.f32 %v13962_v62, %v4953_v25  ;;  %v5538_v49 = vmul.f32 %v13963_v19, %v4962_v15  ;;  %v4963_v8 = vmax.f32 %v4055_v26, 0.0  ;;  %v4248_v52 = vadd.f32 %v11590_v2, %v13961_v46  ;;  %v13967_v62 = vld [vmem:[#allocation104_spill] sm:$0xff] }
 0x3b2   : > { %v5837_v27 = vadd.f32 %v5836_v20, %v5527_v50  ;;  %v5540_v10 = vmul.f32 %v13963_v19, %v4964_v47  ;;  %v4057_v17 = vadd.f32 %v11575_v61, %v13964_v0  ;;  %v4250_v42 = vadd.f32 %v13965_v23, %v13964_v0  ;;  %v11844_v3 = vpop.f32.mrb[136].mxu0  ;;  %v13966_v50 = vld [vmem:[#allocation68_spill] sm:$0xff] }
 0x3b3   : > { %v5911_v35 = vadd.f32 %v5910_v28, %v5529_v33  ;;  %v5801_v55 = vadd.f32 %v5800_v11, %v5538_v49  ;;  %v5539_v40 = vmul.f32 %v13963_v19, %v4963_v8  ;;  %v4965_v25 = vmax.f32 %v4248_v52, 0.0  ;;  %v11847_v15 = vpop.f32.mrb[137].mxu0  ;;  %v13968_v49 = vld [vmem:[#allocation97_spill] sm:$0xff] }
 0x3b4   : > { %v5875_v26 = vadd.f32 %v5874_v16, %v5540_v10  ;;  %v4974_v2 = vmax.f32 %v4057_v17, 0.0  ;;  %v4976_v20 = vmax.f32 %v4250_v42, 0.0  ;;  %v4059_v47 = vadd.f32 %v13966_v50, %v13964_v0  ;;  %v11851_v46 = vpop.f32.mrb[138].mxu0  ;;  %v13969_v16 = vld [vmem:[#allocation131_spill] sm:$0xff]  ;;  %v13970_v42 = vld [vmem:[#allocation112_spill] sm:$0xff] }
 0x3b5   : > { %v5838_v61 = vadd.f32 %v5837_v27, %v5539_v40  ;;  %v5541_v23 = vmul.f32 %v13963_v19, %v4965_v25  ;;  %v4252_v28 = vadd.f32 %v13967_v62, %v13964_v0  ;;  %v4063_v8 = vadd.f32 %v11610_v54, %v13968_v49  ;;  %v11858_v11 = vpop.f32.mrb[136].mxu1  ;;  %v11860_v33 = vpop.f32.mrb[139].mxu0  ;;  %v13971_v19 = vld [vmem:[#allocation111_spill] sm:$0xff] }
 0x3b6   : > { %v5550_v52 = vmul.f32 %v13969_v16, %v4974_v2  ;;  %v5552_v10 = vmul.f32 %v13969_v16, %v4976_v20  ;;  %v4975_v17 = vmax.f32 %v4059_v47, 0.0  ;;  %v4256_v27 = vadd.f32 %v13970_v42, %v13968_v49  ;;  %v11866_v40 = vpop.f32.mrb[137].mxu1  ;;  %v13972_v42 = vld [vmem:[#allocation48_spill] sm:$0xff] }
 0x3b7   : > { %v5912_v25 = vadd.f32 %v5911_v35, %v5541_v23  ;;  %v4977_v50 = vmax.f32 %v4252_v28, 0.0  ;;  %v4986_v62 = vmax.f32 %v4063_v8, 0.0  ;;  %v4065_v54 = vadd.f32 %v13971_v19, %v13968_v49  ;;  %v11870_v0 = vpop.f32.mrb[138].mxu1  ;;  %v13973_v35 = vld [vmem:[#allocation154_spill] sm:$0xff]  ;;  %v13974_v8 = vld [vmem:[#allocation157_spill] sm:$0xff] }
 0x3b8   : > { %v5802_v60 = vadd.f32 %v5801_v55, %v5550_v52  ;;  %v5876_v29 = vadd.f32 %v5875_v26, %v5552_v10  ;;  %v5551_v2 = vmul.f32 %v13969_v16, %v4975_v17  ;;  %v4988_v32 = vmax.f32 %v4256_v27, 0.0  ;;  %v11873_v20 = vpop.f32.mrb[139].mxu1  ;;  %v13976_v26 = vld [vmem:[#allocation113_spill] sm:$0xff] }
 0x3b9   : > { %v5553_v47 = vmul.f32 %v13969_v16, %v4977_v50  ;;  %v5562_v63 = vmul.f32 %v13972_v42, %v4986_v62  ;;  %v4987_v41 = vmax.f32 %v4065_v54, 0.0  ;;  %v4258_v23 = vadd.f32 %v13973_v35, %v13968_v49 }
 0x3ba   : > { %v5839_v28 = vadd.f32 %v5838_v61, %v5551_v2  ;;  %v5564_v19 = vmul.f32 %v13972_v42, %v4988_v32  ;;  %v4067_v55 = vadd.f32 %v13975_v57, %v13974_v8  ;;  %v4260_v52 = vadd.f32 %v13976_v26, %v13974_v8  ;;  %v11884_v10 = vpop.f32.mrb[140].mxu0  ;;  %v13977_v32 = vld [vmem:[#allocation152_spill] sm:$0xff] }
 0x3bb   : > { %v5913_v17 = vadd.f32 %v5912_v25, %v5553_v47  ;;  %v5803_v27 = vadd.f32 %v5802_v60, %v5562_v63  ;;  %v5563_v50 = vmul.f32 %v13972_v42, %v4987_v41  ;;  %v4989_v62 = vmax.f32 %v4258_v23, 0.0  ;;  %v11887_v54 = vpop.f32.mrb[141].mxu0  ;;  %v13979_v63 = vld [vmem:[#allocation160_spill] sm:$0xff] }
 0x3bc   : > { %v5877_v16 = vadd.f32 %v5876_v29, %v5564_v19  ;;  %v4998_v35 = vmax.f32 %v4067_v55, 0.0  ;;  %v5000_v61 = vmax.f32 %v4260_v52, 0.0  ;;  %v4069_v2 = vadd.f32 %v13977_v32, %v13974_v8  ;;  %v11891_v49 = vpop.f32.mrb[142].mxu0  ;;  %v13981_v29 = vld [vmem:[#allocation25_spill] sm:$0xff]  ;;  %v13982_v32 = vld [vmem:[#allocation162_spill] sm:$0xff] }
 0x3bd   : > { %v5840_v57 = vadd.f32 %v5839_v28, %v5563_v50  ;;  %v5565_v26 = vmul.f32 %v13972_v42, %v4989_v62  ;;  %v4262_v25 = vadd.f32 %v13978_v37, %v13974_v8  ;;  %v4073_v41 = vadd.f32 %v11650_v4, %v13979_v63  ;;  %v11898_v60 = vpop.f32.mrb[140].mxu1  ;;  %v11900_v47 = vpop.f32.mrb[143].mxu0 }
 0x3be   : > { %13980 = vst [vmem:[#allocation82_spill] sm:$0xff] %v11900_v47  ;;  %v5574_v23 = vmul.f32 %v13981_v29, %v4998_v35  ;;  %v5576_v19 = vmul.f32 %v13981_v29, %v5000_v61  ;;  %v4999_v55 = vmax.f32 %v4069_v2, 0.0  ;;  %v4266_v28 = vadd.f32 %v11666_v18, %v13979_v63  ;;  %v11906_v52 = vpop.f32.mrb[141].mxu1  ;;  %v13983_v18 = vld [vmem:[#allocation34_spill] sm:$0xff] }
 0x3bf   : > { %v5914_v50 = vadd.f32 %v5913_v17, %v5565_v26  ;;  %v5001_v62 = vmax.f32 %v4262_v25, 0.0  ;;  %v5010_v37 = vmax.f32 %v4073_v41, 0.0  ;;  %v4075_v4 = vadd.f32 %v13982_v32, %v13979_v63  ;;  %v11910_v42 = vpop.f32.mrb[142].mxu1  ;;  %v13984_v41 = vld [vmem:[#allocation136_spill] sm:$0xff]  ;;  %v13985_v32 = vld [vmem:[#allocation49_spill] sm:$0xff] }
 0x3c0   : > { %v5804_v8 = vadd.f32 %v5803_v27, %v5574_v23  ;;  %v5878_v7 = vadd.f32 %v5877_v16, %v5576_v19  ;;  %v5575_v35 = vmul.f32 %v13981_v29, %v4999_v55  ;;  %v5012_v24 = vmax.f32 %v4266_v28, 0.0  ;;  %v11913_v61 = vpop.f32.mrb[143].mxu1 }
 0x3c1   : > { %v5577_v2 = vmul.f32 %v13981_v29, %v5001_v62  ;;  %v5586_v51 = vmul.f32 %v13983_v18, %v5010_v37  ;;  %v5011_v47 = vmax.f32 %v4075_v4, 0.0  ;;  %v4268_v17 = vadd.f32 %v11671_v48, %v13979_v63  ;;  %v13989_v29 = vld [vmem:[#allocation161_spill] sm:$0xff] }
 0x3c2   : > { %v5841_v26 = vadd.f32 %v5840_v57, %v5575_v35  ;;  %v5588_v25 = vmul.f32 %v13983_v18, %v5012_v24  ;;  %v4077_v27 = vadd.f32 %v13985_v32, %v13984_v41  ;;  %v4270_v16 = vadd.f32 %v11675_v30, %v13984_v41  ;;  %v11924_v23 = vpop.f32.mrb[144].mxu0  ;;  %v13987_v24 = vld [vmem:[#allocation158_spill] sm:$0xff] }
 0x3c3   : > { %v5915_v19 = vadd.f32 %v5914_v50, %v5577_v2  ;;  %v5805_v55 = vadd.f32 %v5804_v8, %v5586_v51  ;;  %v5587_v28 = vmul.f32 %v13983_v18, %v5011_v47  ;;  %v5013_v62 = vmax.f32 %v4268_v17, 0.0  ;;  %v11927_v37 = vpop.f32.mrb[145].mxu0  ;;  %v13990_v51 = vld [vmem:[#allocation139_spill] sm:$0xff] }
 0x3c4   : > { %13986 = vst [vmem:[#allocation164_spill] sm:$0xff] %v11927_v37  ;;  %v5879_v4 = vadd.f32 %v5878_v7, %v5588_v25  ;;  %v5022_v48 = vmax.f32 %v4077_v27, 0.0  ;;  %v5024_v57 = vmax.f32 %v4270_v16, 0.0  ;;  %v4079_v35 = vadd.f32 %v13987_v24, %v13984_v41  ;;  %v11931_v63 = vpop.f32.mrb[146].mxu0  ;;  %v13992_v7 = vld [vmem:[#allocation38_spill] sm:$0xff]  ;;  %v13994_v24 = vld [vmem:[#allocation125_spill] sm:$0xff] }
 0x3c5   : > { %13988 = vst [vmem:[#allocation165_spill] sm:$0xff] %v11931_v63  ;;  %v5842_v32 = vadd.f32 %v5841_v26, %v5587_v28  ;;  %v5589_v30 = vmul.f32 %v13983_v18, %v5013_v62  ;;  %v4272_v50 = vadd.f32 %v13989_v29, %v13984_v41  ;;  %v4083_v8 = vadd.f32 %v11690_v12, %v13990_v51  ;;  %v11938_v47 = vpop.f32.mrb[144].mxu1  ;;  %v11940_v2 = vpop.f32.mrb[147].mxu0 }
 0x3c6   : > { %13991 = vst [vmem:[#allocation133_spill] sm:$0xff] %v11940_v2  ;;  %v5598_v17 = vmul.f32 %v13992_v7, %v5022_v48  ;;  %v5600_v25 = vmul.f32 %v13992_v7, %v5024_v57  ;;  %v5023_v27 = vmax.f32 %v4079_v35, 0.0  ;;  %v4276_v26 = vadd.f32 %v11706_v21, %v13990_v51  ;;  %v11946_v16 = vpop.f32.mrb[145].mxu1  ;;  %v13995_v21 = vld [vmem:[#allocation163_spill] sm:$0xff] }
 0x3c7   : > { %13993 = vst [vmem:[#allocation145_spill] sm:$0xff] %v11946_v16  ;;  %v5916_v28 = vadd.f32 %v5915_v19, %v5589_v30  ;;  %v5025_v62 = vmax.f32 %v4272_v50, 0.0  ;;  %v5034_v29 = vmax.f32 %v4083_v8, 0.0  ;;  %v4085_v12 = vadd.f32 %v13994_v24, %v13990_v51  ;;  %v11950_v18 = vpop.f32.mrb[146].mxu1  ;;  %v13996_v8 = vld [vmem:[#allocation45_spill] sm:$0xff]  ;;  %v13997_v24 = vld [vmem:[#allocation138_spill] sm:$0xff] }
 0x3c8   : > { %v5806_v41 = vadd.f32 %v5805_v55, %v5598_v17  ;;  %v5880_v2 = vadd.f32 %v5879_v4, %v5600_v25  ;;  %v5599_v48 = vmul.f32 %v13992_v7, %v5023_v27  ;;  %v5036_v63 = vmax.f32 %v4276_v26, 0.0  ;;  %v11953_v57 = vpop.f32.mrb[147].mxu1 }
 0x3c9   : > { %v5601_v35 = vmul.f32 %v13992_v7, %v5025_v62  ;;  %v5610_v37 = vmul.f32 %v13995_v21, %v5034_v29  ;;  %v5035_v16 = vmax.f32 %v4085_v12, 0.0  ;;  %v4278_v19 = vadd.f32 %v11711_v36, %v13990_v51  ;;  %v13999_v51 = vld [vmem:[#allocation146_spill] sm:$0xff] }
 0x3ca   : > { %v5843_v30 = vadd.f32 %v5842_v32, %v5599_v48  ;;  %v5612_v50 = vmul.f32 %v13995_v21, %v5036_v63  ;;  %v4087_v55 = vadd.f32 %v13997_v24, %v13996_v8  ;;  %v4280_v4 = vadd.f32 %v11715_v31, %v13996_v8  ;;  %v11964_v17 = vpop.f32.mrb[148].mxu0 }
 0x3cb   : > { %v5917_v25 = vadd.f32 %v5916_v28, %v5601_v35  ;;  %v5807_v27 = vadd.f32 %v5806_v41, %v5610_v37  ;;  %v5611_v26 = vmul.f32 %v13995_v21, %v5035_v16  ;;  %v5037_v62 = vmax.f32 %v4278_v19, 0.0  ;;  %v11967_v29 = vpop.f32.mrb[149].mxu0  ;;  %v14000_v41 = vld [vmem:[#allocation84_spill] sm:$0xff] }
 0x3cc   : > { %v5881_v12 = vadd.f32 %v5880_v2, %v5612_v50  ;;  %v5046_v36 = vmax.f32 %v4087_v55, 0.0  ;;  %v5048_v32 = vmax.f32 %v4280_v4, 0.0  ;;  %v4089_v63 = vadd.f32 %v11708_v22, %v13996_v8  ;;  %v11971_v48 = vpop.f32.mrb[150].mxu0  ;;  %v14002_v2 = vld [vmem:[#allocation42_spill] sm:$0xff] }
 0x3cd   : > { %13998 = vst [vmem:[#allocation65_spill] sm:$0xff] %v11971_v48  ;;  %v5844_v24 = vadd.f32 %v5843_v30, %v5611_v26  ;;  %v5613_v31 = vmul.f32 %v13995_v21, %v5037_v62  ;;  %v4282_v28 = vadd.f32 %v13999_v51, %v13996_v8  ;;  %v4319_v37 = vadd.f32 %v11764_v14, %v14000_v41  ;;  %v11978_v16 = vpop.f32.mrb[148].mxu1  ;;  %v11980_v35 = vpop.f32.mrb[151].mxu0 }
 0x3ce   : > { %14001 = vst [vmem:[#allocation95_spill] sm:$0xff] %v11980_v35  ;;  %v5622_v19 = vmul.f32 %v14002_v2, %v5046_v36  ;;  %v5624_v50 = vmul.f32 %v14002_v2, %v5048_v32  ;;  %v5047_v22 = vmax.f32 %v4089_v63, 0.0  ;;  %v4512_v30 = vadd.f32 %v11778_v53, %v14000_v41  ;;  %v11986_v55 = vpop.f32.mrb[149].mxu1  ;;  %v14004_v53 = vld [vmem:[#allocation100_spill] sm:$0xff] }
 0x3cf   : > { %v5918_v4 = vadd.f32 %v5917_v25, %v5613_v31  ;;  %v5049_v26 = vmax.f32 %v4282_v28, 0.0  ;;  %v4678_v51 = vmax.f32 %v4319_v37, 0.0  ;;  %v4321_v14 = vadd.f32 %v11767_v45, %v14000_v41  ;;  %v11990_v62 = vpop.f32.mrb[150].mxu1 }
 0x3d0   : > { %v5808_v21 = vadd.f32 %v5807_v27, %v5622_v19  ;;  %v5882_v8 = vadd.f32 %v5881_v12, %v5624_v50  ;;  %v5623_v36 = vmul.f32 %v14002_v2, %v5047_v22  ;;  %v4680_v7 = vmax.f32 %v4512_v30, 0.0  ;;  %v11993_v32 = vpop.f32.mrb[151].mxu1  ;;  %v14006_v22 = vld [vmem:[#allocation83_spill] sm:$0xff] }
 0x3d1   : > { %14003 = vst [vmem:[#allocation92_spill] sm:$0xff] %v11993_v32  ;;  %v5625_v63 = vmul.f32 %v14002_v2, %v5049_v26  ;;  %v5254_v35 = vmul.f32 %v14004_v53, %v4678_v51  ;;  %v4679_v48 = vmax.f32 %v4321_v14, 0.0  ;;  %v4514_v25 = vadd.f32 %v11786_v38, %v14000_v41 }
 0x3d2   : > { %v5809_v31 = vrot.slane %v5808_v21, 4  ;;  %v5883_v28 = vrot.slane %v5882_v8, 4  ;;  %v5845_v45 = vadd.f32 %v5844_v24, %v5623_v36  ;;  %v5256_v37 = vmul.f32 %v14004_v53, %v4680_v7  ;;  %v12000_v27 = vpop.f32.mrb[152].mxu0 }
 0x3d3   : > { %14005 = vst [vmem:[#allocation59_spill] sm:$0xff] %v12000_v27  ;;  %v5919_v12 = vadd.f32 %v5918_v4, %v5625_v63  ;;  %v5255_v19 = vmul.f32 %v14004_v53, %v4679_v48  ;;  %v4681_v50 = vmax.f32 %v4514_v25, 0.0  ;;  %v4323_v30 = vadd.f32 %v11771_v56, %v14006_v22  ;;  %v12005_v26 = vpop.f32.mrb[153].mxu0 }
 0x3d4   : > { %14007 = vst [vmem:[#allocation94_spill] sm:$0xff] %v12005_v26  ;;  %v5810_v51 = vadd.f32 %v5809_v31, %v5808_v21  ;;  %v5884_v14 = vadd.f32 %v5883_v28, %v5882_v8  ;;  %v5846_v2 = vrot.slane %v5845_v45, 4  ;;  %v4516_v38 = vadd.f32 %v11790_v58, %v14006_v22  ;;  %v12009_v24 = vpop.f32.mrb[154].mxu0  ;;  %v14012_v28 = vld [vmem:[#allocation21_spill] sm:$0xff] }
 0x3d5   : > { %14008 = vst [vmem:[#allocation80_spill] sm:$0xff] %v12009_v24  ;;  %v5920_v7 = vrot.slane %v5919_v12, 4  ;;  %v5257_v41 = vmul.f32 %v14004_v53, %v4681_v50  ;;  %v4690_v4 = vmax.f32 %v4323_v30, 0.0  ;;  %v4325_v48 = vadd.f32 %v11780_v5, %v14006_v22  ;;  %v12014_v36 = vpop.f32.mrb[152].mxu1  ;;  %v12016_v56 = vpop.f32.mrb[155].mxu0 }
 0x3d6   : > { %14009 = vst [vmem:[#allocation107_spill] sm:$0xff] %v12014_v36  ;;  %14010 = vst [vmem:[#allocation108_spill] sm:$0xff] %v12016_v56  ;;  %v5811_v63 = vrot.slane %v5810_v51, 2  ;;  %v5885_v21 = vrot.slane %v5884_v14, 2  ;;  %v5847_v8 = vadd.f32 %v5846_v2, %v5845_v45  ;;  %v4692_v25 = vmax.f32 %v4516_v38, 0.0  ;;  %v12018_v31 = vpop.f32.mrb[153].mxu1 }
 0x3d7   : > { %14011 = vst [vmem:[#allocation141_spill] sm:$0xff] %v12018_v31  ;;  %v5921_v58 = vadd.f32 %v5920_v7, %v5919_v12  ;;  %v5266_v24 = vmul.f32 %v14012_v28, %v4690_v4  ;;  %v4691_v26 = vmax.f32 %v4325_v48, 0.0  ;;  %v4518_v53 = vadd.f32 %v11793_v39, %v14006_v22  ;;  %v12023_v50 = vpop.f32.mrb[154].mxu1 }
 0x3d8   : > { %v5812_v5 = vadd.f32 %v5811_v63, %v5810_v51  ;;  %v5886_v30 = vadd.f32 %v5885_v21, %v5884_v14  ;;  %v5848_v36 = vrot.slane %v5847_v8, 2  ;;  %v5268_v56 = vmul.f32 %v14012_v28, %v4692_v25  ;;  %v12026_v27 = vpop.f32.mrb[155].mxu1  ;;  %v14013_v14 = vld [vmem:[#allocation87_spill] sm:$0xff] }
 0x3d9   : > { %v5922_v2 = vrot.slane %v5921_v58, 2  ;;  %v5926_v45 = vadd.f32 %v5266_v24, %v5254_v35  ;;  %v5267_v38 = vmul.f32 %v14012_v28, %v4691_v26  ;;  %v4693_v12 = vmax.f32 %v4518_v53, 0.0 }
 0x3da   : > { %v5813_v7 = vrot.slane %v5812_v5, 1  ;;  %v5887_v4 = vrot.slane %v5886_v30, 1  ;;  %v5849_v48 = vadd.f32 %v5848_v36, %v5847_v8  ;;  %v6000_v31 = vadd.f32 %v5268_v56, %v5256_v37  ;;  %v12029_v32 = vpop.f32.mrb[156].mxu0 }
 0x3db   : > { %v5923_v39 = vadd.f32 %v5922_v2, %v5921_v58  ;;  %v5963_v22 = vadd.f32 %v5267_v38, %v5255_v19  ;;  %v5269_v51 = vmul.f32 %v14012_v28, %v4693_v12  ;;  %v4329_v63 = vadd.f32 %v11804_v44, %v14013_v14  ;;  %v12034_v21 = vpop.f32.mrb[157].mxu0  ;;  %v14015_v44 = vld [vmem:[#allocation13_spill] sm:$0xff]  ;;  %v14016_v12 = vld [vmem:[#allocation150_spill] sm:$0xff] }
 0x3dc   : > { %v5814_v25 = vadd.f32 %v5813_v7, %v5812_v5  ;;  %v5888_v35 = vadd.f32 %v5887_v4, %v5886_v30  ;;  %v5850_v24 = vrot.slane %v5849_v48, 1  ;;  %v4522_v26 = vadd.f32 %v11818_v43, %v14013_v14  ;;  %v12038_v53 = vpop.f32.mrb[158].mxu0 }
 0x3dd   : > { %v5924_v37 = vrot.slane %v5923_v39, 1  ;;  %v6037_v36 = vadd.f32 %v5269_v51, %v5257_v41  ;;  %v4702_v56 = vmax.f32 %v4329_v63, 0.0  ;;  %v4331_v19 = vadd.f32 %v11807_v9, %v14013_v14  ;;  %v12042_v8 = vpop.f32.mrb[156].mxu1  ;;  %v12044_v58 = vpop.f32.mrb[159].mxu0 }
 0x3de   : > { %14014 = vst [vmem:[#allocation135_spill] sm:$0xff] %v12044_v58  ;;  %v6088_v28 = vadd.f32 %v14015_v44, %v5814_v25  ;;  %v6090_v5 = vadd.f32 %v14015_v44, %v5888_v35  ;;  %v5851_v30 = vadd.f32 %v5850_v24, %v5849_v48  ;;  %v4704_v2 = vmax.f32 %v4522_v26, 0.0  ;;  %v12048_v38 = vpop.f32.mrb[157].mxu1  ;;  %v14018_v25 = vld [vmem:[#allocation27_spill] sm:$0xff] }
 0x3df   : > { %v5925_v43 = vadd.f32 %v5924_v37, %v5923_v39  ;;  %v5278_v7 = vmul.f32 %v14016_v12, %v4702_v56  ;;  %v4703_v41 = vmax.f32 %v4331_v19, 0.0  ;;  %v4524_v4 = vadd.f32 %v11826_v34, %v14013_v14  ;;  %v12053_v9 = vpop.f32.mrb[158].mxu1 }
 0x3e0   : > { %14017 = vst [vmem:[#allocation115_spill] sm:$0xff] %v12053_v9  ;;  %v6089_v51 = vadd.f32 %v14015_v44, %v5851_v30  ;;  %v5280_v63 = vmul.f32 %v14016_v12, %v4704_v2  ;;  %v4333_v35 = vadd.f32 %v11811_v1, %v14018_v25  ;;  %v4526_v48 = vadd.f32 %v11830_v6, %v14018_v25  ;;  %v12061_v24 = vpop.f32.mrb[159].mxu1 }
 0x3e1   : > { %14019 = vst [vmem:[#allocation116_spill] sm:$0xff] %v12061_v24  ;;  %v6091_v39 = vadd.f32 %v14015_v44, %v5925_v43  ;;  %v5927_v26 = vadd.f32 %v5926_v45, %v5278_v7  ;;  %v5279_v37 = vmul.f32 %v14016_v12, %v4703_v41  ;;  %v4705_v34 = vmax.f32 %v4524_v4, 0.0  ;;  %v14020_v43 = vld [vmem:[#allocation19_spill] sm:$0xff]  ;;  %v14021_v7 = vld [vmem:[#allocation29_spill] sm:$0xff] }
 0x3e2   : > { %v6110_v14 = vcombine.low %v6088_v28, %v6089_v51  ;;  %v6001_v56 = vadd.f32 %v6000_v31, %v5280_v63  ;;  %v4714_v19 = vmax.f32 %v4333_v35, 0.0  ;;  %v4716_v30 = vmax.f32 %v4526_v48, 0.0  ;;  %v12065_v58 = vpop.f32.mrb[160].mxu0  ;;  %v14022_v51 = vld [vmem:[#allocation41_spill] sm:$0xff] }
 0x3e3   : > { %v6111_v2 = vcombine.low %v6090_v5, %v6091_v39  ;;  %v5964_v9 = vadd.f32 %v5963_v22, %v5279_v37  ;;  %v5281_v1 = vmul.f32 %v14016_v12, %v4705_v34  ;;  %v4335_v6 = vadd.f32 %v11820_v13, %v14018_v25  ;;  %v12070_v24 = vpop.f32.mrb[161].mxu0 }
 0x3e4   : > { %v6132_v45 = vrot.slane %v6110_v14, %v14020_v43  ;;  %v5290_v41 = vmul.f32 %v14021_v7, %v4714_v19  ;;  %v5292_v28 = vmul.f32 %v14021_v7, %v4716_v30  ;;  %v4528_v31 = vadd.f32 %v11833_v59, %v14018_v25  ;;  %v12077_v4 = vpop.f32.mrb[162].mxu0 }
 0x3e5   : > { %v6139_v22 = vrot.slane %v6111_v2, %v14020_v43  ;;  %v6038_v5 = vadd.f32 %v6037_v36, %v5281_v1  ;;  %v4715_v12 = vmax.f32 %v4335_v6, 0.0  ;;  %v4339_v13 = vadd.f32 %v11844_v3, %v14022_v51  ;;  %v12082_v63 = vpop.f32.mrb[160].mxu1  ;;  %v12084_v35 = vpop.f32.mrb[163].mxu0  ;;  %v14023_v2 = vld [vmem:[#allocation66_spill] sm:$0xff] }
 0x3e6   : > { %v5928_v48 = vadd.f32 %v5927_v26, %v5290_v41  ;;  %v6002_v39 = vadd.f32 %v6001_v56, %v5292_v28  ;;  %v4717_v37 = vmax.f32 %v4528_v31, 0.0  ;;  %v4532_v34 = vadd.f32 %v11858_v11, %v14022_v51  ;;  %v12088_v59 = vpop.f32.mrb[161].mxu1  ;;  %v14024_v41 = vld [vmem:[#allocation155_spill] sm:$0xff] }
 0x3e7   : > { %v6141_v25 = vcombine.low %v6132_v45, %v6139_v22  ;;  %v5291_v36 = vmul.f32 %v14021_v7, %v4715_v12  ;;  %v4726_v14 = vmax.f32 %v4339_v13, 0.0  ;;  %v4341_v3 = vadd.f32 %v11847_v15, %v14022_v51  ;;  %v12093_v19 = vpop.f32.mrb[162].mxu1  ;;  %v14025_v12 = vld [vmem:[#allocation57_spill] sm:$0xff] }
 0x3e8   : > { %v5293_v30 = vmul.f32 %v14021_v7, %v4717_v37  ;;  %v4728_v26 = vmax.f32 %v4532_v34, 0.0  ;;  %v4534_v56 = vadd.f32 %v11866_v40, %v14022_v51  ;;  %v4343_v11 = vadd.f32 %v11851_v46, %v14023_v2  ;;  %v12100_v1 = vpop.f32.mrb[163].mxu1 }
 0x3e9   : > { %v6155_v6 = vrot.slane %v6141_v25, %v14020_v43  ;;  %v5965_v45 = vadd.f32 %v5964_v9, %v5291_v36  ;;  %v5302_v28 = vmul.f32 %v14024_v41, %v4726_v14  ;;  %v4727_v31 = vmax.f32 %v4341_v3, 0.0 }
 0x3ea   : > { %v6039_v15 = vadd.f32 %v6038_v5, %v5293_v30  ;;  %v5304_v40 = vmul.f32 %v14024_v41, %v4728_v26  ;;  %v4729_v7 = vmax.f32 %v4534_v56, 0.0  ;;  %v4738_v22 = vmax.f32 %v4343_v11, 0.0  ;;  %v12111_v46 = vpop.f32.mrb[164].mxu0  ;;  %v14026_v5 = vld [vmem:[#allocation114_spill] sm:$0xff]  ;;  %v14027_v11 = vld [vmem:[#allocation88_spill] sm:$0xff] }
 0x3eb   : > { %v6156_v51 = vcombine.low %v14025_v12, %v6155_v6  ;;  %v5929_v13 = vadd.f32 %v5928_v48, %v5302_v28  ;;  %v5303_v9 = vmul.f32 %v14024_v41, %v4727_v31  ;;  %v4536_v37 = vadd.f32 %v11870_v0, %v14023_v2  ;;  %v12117_v34 = vpop.f32.mrb[165].mxu0 }
 0x3ec   : > { %v6003_v25 = vadd.f32 %v6002_v39, %v5304_v40  ;;  %v5305_v36 = vmul.f32 %v14024_v41, %v4729_v7  ;;  %v5314_v14 = vmul.f32 %v14026_v5, %v4738_v22  ;;  %v4345_v3 = vadd.f32 %v11860_v33, %v14023_v2  ;;  %v12123_v30 = vpop.f32.mrb[166].mxu0 }
 0x3ed   : > { %6183 = vst [vmem:[%s12108_s12] sm:$0xff] %v6156_v51  ;;  %v5966_v26 = vadd.f32 %v5965_v45, %v5303_v9  ;;  %v4740_v48 = vmax.f32 %v4536_v37, 0.0  ;;  %v4538_v56 = vadd.f32 %v11873_v20, %v14023_v2  ;;  %v4349_v0 = vadd.f32 %v11884_v10, %v14027_v11  ;;  %v12130_v6 = vpop.f32.mrb[164].mxu1  ;;  %v12132_v39 = vpop.f32.mrb[167].mxu0  ;;  %v14028_v51 = vld [vmem:[#allocation31_spill] sm:$0xff] }
 0x3ee   : > { %v6040_v41 = vadd.f32 %v6039_v15, %v5305_v36  ;;  %v5930_v28 = vadd.f32 %v5929_v13, %v5314_v14  ;;  %v4739_v31 = vmax.f32 %v4345_v3, 0.0  ;;  %v4542_v33 = vadd.f32 %v11898_v60, %v14027_v11  ;;  %v12136_v40 = vpop.f32.mrb[165].mxu1  ;;  %v14029_v36 = vld [vmem:[#allocation159_spill] sm:$0xff] }
 0x3ef   : > { %v5316_v45 = vmul.f32 %v14026_v5, %v4740_v48  ;;  %v4741_v7 = vmax.f32 %v4538_v56, 0.0  ;;  %v4750_v22 = vmax.f32 %v4349_v0, 0.0  ;;  %v4351_v20 = vadd.f32 %v11887_v54, %v14027_v11  ;;  %v12141_v10 = vpop.f32.mrb[166].mxu1 }
 0x3f0   : > { %v5315_v2 = vmul.f32 %v14026_v5, %v4739_v31  ;;  %v4752_v12 = vmax.f32 %v4542_v33, 0.0  ;;  %v4544_v15 = vadd.f32 %v11906_v52, %v14027_v11  ;;  %v4353_v60 = vadd.f32 %v11891_v49, %v14028_v51  ;;  %v12148_v13 = vpop.f32.mrb[167].mxu1 }
 0x3f1   : > { %v6004_v9 = vadd.f32 %v6003_v25, %v5316_v45  ;;  %v5317_v37 = vmul.f32 %v14026_v5, %v4741_v7  ;;  %v5326_v14 = vmul.f32 %v14029_v36, %v4750_v22  ;;  %v4751_v3 = vmax.f32 %v4351_v20, 0.0  ;;  %v14030_v7 = vld [vmem:[#allocation24_spill] sm:$0xff]  ;;  %v14031_v22 = vld [vmem:[#allocation82_spill] sm:$0xff] }
 0x3f2   : > { %v5967_v54 = vadd.f32 %v5966_v26, %v5315_v2  ;;  %v5328_v48 = vmul.f32 %v14029_v36, %v4752_v12  ;;  %v4753_v56 = vmax.f32 %v4544_v15, 0.0  ;;  %v4762_v0 = vmax.f32 %v4353_v60, 0.0  ;;  %v12153_v31 = vpop.f32.mrb[168].mxu0  ;;  %v14032_v15 = vld [vmem:[#allocation52_spill] sm:$0xff] }
 0x3f3   : > { %v6041_v33 = vadd.f32 %v6040_v41, %v5317_v37  ;;  %v5931_v52 = vadd.f32 %v5930_v28, %v5326_v14  ;;  %v5327_v11 = vmul.f32 %v14029_v36, %v4751_v3  ;;  %v4546_v49 = vadd.f32 %v11910_v42, %v14028_v51  ;;  %v12158_v25 = vpop.f32.mrb[169].mxu0 }
 0x3f4   : > { %v6005_v5 = vadd.f32 %v6004_v9, %v5328_v48  ;;  %v5329_v45 = vmul.f32 %v14029_v36, %v4753_v56  ;;  %v5338_v26 = vmul.f32 %v14030_v7, %v4762_v0  ;;  %v4355_v20 = vadd.f32 %v14031_v22, %v14028_v51  ;;  %v12164_v2 = vpop.f32.mrb[170].mxu0 }
 0x3f5   : > { %v5968_v12 = vadd.f32 %v5967_v54, %v5327_v11  ;;  %v4764_v41 = vmax.f32 %v4546_v49, 0.0  ;;  %v4548_v28 = vadd.f32 %v11913_v61, %v14028_v51  ;;  %v4359_v42 = vadd.f32 %v11924_v23, %v14032_v15  ;;  %v12170_v60 = vpop.f32.mrb[168].mxu1  ;;  %v12172_v9 = vpop.f32.mrb[171].mxu0  ;;  %v14034_v61 = vld [vmem:[#allocation164_spill] sm:$0xff] }
 0x3f6   : > { %14033 = vst [vmem:[#allocation106_spill] sm:$0xff] %v12172_v9  ;;  %v6042_v37 = vadd.f32 %v6041_v33, %v5329_v45  ;;  %v5932_v36 = vadd.f32 %v5931_v52, %v5338_v26  ;;  %v4763_v14 = vmax.f32 %v4355_v20, 0.0  ;;  %v4552_v3 = vadd.f32 %v11938_v47, %v14032_v15  ;;  %v12176_v48 = vpop.f32.mrb[169].mxu1  ;;  %v14036_v33 = vld [vmem:[#allocation145_spill] sm:$0xff]  ;;  %v14037_v45 = vld [vmem:[#allocation103_spill] sm:$0xff] }
 0x3f7   : > { %v5340_v54 = vmul.f32 %v14030_v7, %v4764_v41  ;;  %v4765_v56 = vmax.f32 %v4548_v28, 0.0  ;;  %v4774_v0 = vmax.f32 %v4359_v42, 0.0  ;;  %v4361_v51 = vadd.f32 %v14034_v61, %v14032_v15  ;;  %v12181_v23 = vpop.f32.mrb[170].mxu1  ;;  %v14038_v26 = vld [vmem:[#allocation165_spill] sm:$0xff]  ;;  %v14039_v28 = vld [vmem:[#allocation96_spill] sm:$0xff] }
 0x3f8   : > { %14035 = vst [vmem:[#allocation23_spill] sm:$0xff] %v12181_v23  ;;  %v5339_v11 = vmul.f32 %v14030_v7, %v4763_v14  ;;  %v4776_v49 = vmax.f32 %v4552_v3, 0.0  ;;  %v4554_v52 = vadd.f32 %v14036_v33, %v14032_v15  ;;  %v4363_v47 = vadd.f32 %v14038_v26, %v14037_v45  ;;  %v12188_v22 = vpop.f32.mrb[171].mxu1 }
 0x3f9   : > { %v6006_v20 = vadd.f32 %v6005_v5, %v5340_v54  ;;  %v5341_v41 = vmul.f32 %v14030_v7, %v4765_v56  ;;  %v5350_v42 = vmul.f32 %v14039_v28, %v4774_v0  ;;  %v4775_v43 = vmax.f32 %v4361_v51, 0.0  ;;  %v14040_v56 = vld [vmem:[#allocation119_spill] sm:$0xff]  ;;  %v14041_v0 = vld [vmem:[#allocation133_spill] sm:$0xff] }
 0x3fa   : > { %v5969_v61 = vadd.f32 %v5968_v12, %v5339_v11  ;;  %v5352_v44 = vmul.f32 %v14039_v28, %v4776_v49  ;;  %v4777_v9 = vmax.f32 %v4554_v52, 0.0  ;;  %v4786_v14 = vmax.f32 %v4363_v47, 0.0  ;;  %v12193_v3 = vpop.f32.mrb[172].mxu0 }
 0x3fb   : > { %v6043_v23 = vadd.f32 %v6042_v37, %v5341_v41  ;;  %v5933_v15 = vadd.f32 %v5932_v36, %v5350_v42  ;;  %v5351_v33 = vmul.f32 %v14039_v28, %v4775_v43  ;;  %v4556_v26 = vadd.f32 %v11950_v18, %v14037_v45  ;;  %v12198_v5 = vpop.f32.mrb[173].mxu0  ;;  %v14042_v36 = vld [vmem:[#allocation53_spill] sm:$0xff] }
 0x3fc   : > { %v6007_v7 = vadd.f32 %v6006_v20, %v5352_v44  ;;  %v5353_v54 = vmul.f32 %v14039_v28, %v4777_v9  ;;  %v5362_v12 = vmul.f32 %v14040_v56, %v4786_v14  ;;  %v4365_v51 = vadd.f32 %v14041_v0, %v14037_v45  ;;  %v12204_v11 = vpop.f32.mrb[174].mxu0 }
 0x3fd   : > { %v5970_v49 = vadd.f32 %v5969_v61, %v5351_v33  ;;  %v4788_v37 = vmax.f32 %v4556_v26, 0.0  ;;  %v4558_v43 = vadd.f32 %v11953_v57, %v14037_v45  ;;  %v4369_v18 = vadd.f32 %v11964_v17, %v14042_v36  ;;  %v12210_v52 = vpop.f32.mrb[172].mxu1  ;;  %v12212_v44 = vpop.f32.mrb[175].mxu0  ;;  %v14046_v26 = vld [vmem:[#allocation65_spill] sm:$0xff] }
 0x3fe   : > { %14043 = vst [vmem:[#allocation121_spill] sm:$0xff] %v12212_v44  ;;  %v6044_v9 = vadd.f32 %v6043_v23, %v5353_v54  ;;  %v5934_v47 = vadd.f32 %v5933_v15, %v5362_v12  ;;  %v4787_v20 = vmax.f32 %v4365_v51, 0.0  ;;  %v4562_v41 = vadd.f32 %v11978_v16, %v14042_v36  ;;  %v12216_v28 = vpop.f32.mrb[173].mxu1  ;;  %v14045_v15 = vld [vmem:[#allocation40_spill] sm:$0xff]  ;;  %v14047_v51 = vld [vmem:[#allocation110_spill] sm:$0xff] }
 0x3ff   : > { %v5364_v42 = vmul.f32 %v14040_v56, %v4788_v37  ;;  %v4789_v61 = vmax.f32 %v4558_v43, 0.0  ;;  %v4798_v14 = vmax.f32 %v4369_v18, 0.0  ;;  %v4371_v57 = vadd.f32 %v11967_v29, %v14042_v36  ;;  %v12221_v17 = vpop.f32.mrb[174].mxu1 }
 0x400   : > { %14044 = vst [vmem:[#allocation126_spill] sm:$0xff] %v12221_v17  ;;  %v5363_v45 = vmul.f32 %v14040_v56, %v4787_v20  ;;  %v4800_v33 = vmax.f32 %v4562_v41, 0.0  ;;  %v4564_v23 = vadd.f32 %v11986_v55, %v14042_v36  ;;  %v4373_v16 = vadd.f32 %v14046_v26, %v14045_v15  ;;  %v12228_v54 = vpop.f32.mrb[175].mxu1 }
 0x401   : > { %v6008_v12 = vadd.f32 %v6007_v7, %v5364_v42  ;;  %v5365_v0 = vmul.f32 %v14040_v56, %v4789_v61  ;;  %v5374_v37 = vmul.f32 %v14047_v51, %v4798_v14  ;;  %v4799_v43 = vmax.f32 %v4371_v57, 0.0  ;;  %v14050_v61 = vld [vmem:[#allocation122_spill] sm:$0xff]  ;;  %v14051_v14 = vld [vmem:[#allocation95_spill] sm:$0xff] }
 0x402   : > { %v5971_v29 = vadd.f32 %v5970_v49, %v5363_v45  ;;  %v5376_v18 = vmul.f32 %v14047_v51, %v4800_v33  ;;  %v4801_v44 = vmax.f32 %v4564_v23, 0.0  ;;  %v4810_v20 = vmax.f32 %v4373_v16, 0.0  ;;  %v12233_v41 = vpop.f32.mrb[176].mxu0  ;;  %v14054_v16 = vld [vmem:[#allocation93_spill] sm:$0xff] }
 0x403   : > { %14048 = vst [vmem:[#allocation148_spill] sm:$0xff] %v12233_v41  ;;  %v6045_v17 = vadd.f32 %v6044_v9, %v5365_v0  ;;  %v5935_v55 = vadd.f32 %v5934_v47, %v5374_v37  ;;  %v5375_v36 = vmul.f32 %v14047_v51, %v4799_v43  ;;  %v4566_v26 = vadd.f32 %v11990_v62, %v14045_v15  ;;  %v12238_v7 = vpop.f32.mrb[177].mxu0  ;;  %v14053_v47 = vld [vmem:[#allocation92_spill] sm:$0xff]  ;;  %v14055_v0 = vld [vmem:[#allocation59_spill] sm:$0xff] }
 0x404   : > { %14049 = vst [vmem:[#allocation128_spill] sm:$0xff] %v12238_v7  ;;  %v6009_v56 = vadd.f32 %v6008_v12, %v5376_v18  ;;  %v5377_v42 = vmul.f32 %v14047_v51, %v4801_v44  ;;  %v5386_v49 = vmul.f32 %v14050_v61, %v4810_v20  ;;  %v4375_v57 = vadd.f32 %v14051_v14, %v14045_v15  ;;  %v12244_v45 = vpop.f32.mrb[178].mxu0  ;;  %v14058_v18 = vld [vmem:[#allocation107_spill] sm:$0xff] }
 0x405   : > { %14052 = vst [vmem:[#allocation28_spill] sm:$0xff] %v12244_v45  ;;  %v5972_v33 = vadd.f32 %v5971_v29, %v5375_v36  ;;  %v4812_v9 = vmax.f32 %v4566_v26, 0.0  ;;  %v4568_v23 = vadd.f32 %v14053_v47, %v14045_v15  ;;  %v4379_v62 = vadd.f32 %v14055_v0, %v14054_v16  ;;  %v12250_v37 = vpop.f32.mrb[176].mxu1  ;;  %v12252_v12 = vpop.f32.mrb[179].mxu0  ;;  %v14060_v15 = vld [vmem:[#allocation94_spill] sm:$0xff] }
 0x406   : > { %14056 = vst [vmem:[#allocation143_spill] sm:$0xff] %v12250_v37  ;;  %14057 = vst [vmem:[#allocation137_spill] sm:$0xff] %v12252_v12  ;;  %v6046_v44 = vadd.f32 %v6045_v17, %v5377_v42  ;;  %v5936_v51 = vadd.f32 %v5935_v55, %v5386_v49  ;;  %v4811_v43 = vmax.f32 %v4375_v57, 0.0  ;;  %v4572_v20 = vadd.f32 %v14058_v18, %v14054_v16  ;;  %v12256_v14 = vpop.f32.mrb[177].mxu1  ;;  %v14062_v17 = vld [vmem:[#allocation141_spill] sm:$0xff]  ;;  %v14064_v49 = vld [vmem:[#allocation80_spill] sm:$0xff] }
 0x407   : > { %14059 = vst [vmem:[#allocation149_spill] sm:$0xff] %v12256_v14  ;;  %v5388_v29 = vmul.f32 %v14050_v61, %v4812_v9  ;;  %v4813_v36 = vmax.f32 %v4568_v23, 0.0  ;;  %v4822_v26 = vmax.f32 %v4379_v62, 0.0  ;;  %v4381_v47 = vadd.f32 %v14060_v15, %v14054_v16  ;;  %v12261_v0 = vpop.f32.mrb[178].mxu1  ;;  %v14063_v42 = vld [vmem:[#allocation85_spill] sm:$0xff] }
 0x408   : > { %14061 = vst [vmem:[#allocation72_spill] sm:$0xff] %v12261_v0  ;;  %v5387_v45 = vmul.f32 %v14050_v61, %v4811_v43  ;;  %v4824_v12 = vmax.f32 %v4572_v20, 0.0  ;;  %v4574_v55 = vadd.f32 %v14062_v17, %v14054_v16  ;;  %v4383_v57 = vadd.f32 %v14064_v49, %v14063_v42  ;;  %v12268_v18 = vpop.f32.mrb[179].mxu1  ;;  %v14065_v23 = vld [vmem:[#allocation101_spill] sm:$0xff] }
 0x409   : > { %v6010_v14 = vadd.f32 %v6009_v56, %v5388_v29  ;;  %v5389_v9 = vmul.f32 %v14050_v61, %v4813_v36  ;;  %v5398_v62 = vmul.f32 %v14065_v23, %v4822_v26  ;;  %v4823_v7 = vmax.f32 %v4381_v47, 0.0  ;;  %v14066_v36 = vld [vmem:[#allocation124_spill] sm:$0xff] }
 0x40a   : > { %v5973_v15 = vadd.f32 %v5972_v33, %v5387_v45  ;;  %v5400_v0 = vmul.f32 %v14065_v23, %v4824_v12  ;;  %v4825_v37 = vmax.f32 %v4574_v55, 0.0  ;;  %v4834_v43 = vmax.f32 %v4383_v57, 0.0  ;;  %v12273_v20 = vpop.f32.mrb[180].mxu0  ;;  %v14067_v33 = vld [vmem:[#allocation108_spill] sm:$0xff] }
 0x40b   : > { %v6047_v41 = vadd.f32 %v6046_v44, %v5389_v9  ;;  %v5937_v16 = vadd.f32 %v5936_v51, %v5398_v62  ;;  %v5399_v17 = vmul.f32 %v14065_v23, %v4823_v7  ;;  %v4576_v49 = vadd.f32 %v12023_v50, %v14063_v42  ;;  %v12278_v56 = vpop.f32.mrb[181].mxu0  ;;  %v14068_v51 = vld [vmem:[#allocation79_spill] sm:$0xff] }
 0x40c   : > { %v6011_v61 = vadd.f32 %v6010_v14, %v5400_v0  ;;  %v5401_v29 = vmul.f32 %v14065_v23, %v4825_v37  ;;  %v5410_v45 = vmul.f32 %v14066_v36, %v4834_v43  ;;  %v4385_v12 = vadd.f32 %v14067_v33, %v14063_v42  ;;  %v12284_v26 = vpop.f32.mrb[182].mxu0  ;;  %v14072_v33 = vld [vmem:[#allocation144_spill] sm:$0xff] }
 0x40d   : > { %v5974_v47 = vadd.f32 %v5973_v15, %v5399_v17  ;;  %v4836_v44 = vmax.f32 %v4576_v49, 0.0  ;;  %v4578_v7 = vadd.f32 %v12026_v27, %v14063_v42  ;;  %v4389_v50 = vadd.f32 %v12029_v32, %v14068_v51  ;;  %v12290_v55 = vpop.f32.mrb[180].mxu1  ;;  %v12292_v14 = vpop.f32.mrb[183].mxu0 }
 0x40e   : > { %14069 = vst [vmem:[#allocation117_spill] sm:$0xff] %v12292_v14  ;;  %v6048_v37 = vadd.f32 %v6047_v41, %v5401_v29  ;;  %v5938_v0 = vadd.f32 %v5937_v16, %v5410_v45  ;;  %v4835_v57 = vmax.f32 %v4385_v12, 0.0  ;;  %v4582_v9 = vadd.f32 %v12042_v8, %v14068_v51  ;;  %v12296_v23 = vpop.f32.mrb[181].mxu1  ;;  %v14070_v16 = vld [vmem:[#allocation86_spill] sm:$0xff] }
 0x40f   : > { %v5412_v62 = vmul.f32 %v14066_v36, %v4836_v44  ;;  %v4837_v15 = vmax.f32 %v4578_v7, 0.0  ;;  %v4846_v43 = vmax.f32 %v4389_v50, 0.0  ;;  %v4391_v27 = vadd.f32 %v12034_v21, %v14068_v51  ;;  %v12301_v32 = vpop.f32.mrb[182].mxu1 }
 0x410   : > { %v5411_v42 = vmul.f32 %v14066_v36, %v4835_v57  ;;  %v4848_v17 = vmax.f32 %v4582_v9, 0.0  ;;  %v4584_v41 = vadd.f32 %v12048_v38, %v14068_v51  ;;  %v4393_v8 = vadd.f32 %v12038_v53, %v14070_v16  ;;  %v12308_v49 = vpop.f32.mrb[183].mxu1  ;;  %v14073_v53 = vld [vmem:[#allocation115_spill] sm:$0xff] }
 0x411   : > { %14071 = vst [vmem:[#allocation120_spill] sm:$0xff] %v12308_v49  ;;  %v6012_v29 = vadd.f32 %v6011_v61, %v5412_v62  ;;  %v5413_v45 = vmul.f32 %v14066_v36, %v4837_v15  ;;  %v5422_v12 = vmul.f32 %v14072_v33, %v4846_v43  ;;  %v4847_v44 = vmax.f32 %v4391_v27, 0.0  ;;  %v14074_v15 = vld [vmem:[#allocation127_spill] sm:$0xff] }
 0x412   : > { %v5975_v21 = vadd.f32 %v5974_v47, %v5411_v42  ;;  %v5424_v7 = vmul.f32 %v14072_v33, %v4848_v17  ;;  %v4849_v50 = vmax.f32 %v4584_v41, 0.0  ;;  %v4858_v57 = vmax.f32 %v4393_v8, 0.0  ;;  %v12313_v9 = vpop.f32.mrb[184].mxu0  ;;  %v14075_v43 = vld [vmem:[#allocation135_spill] sm:$0xff]  ;;  %v14077_v8 = vld [vmem:[#allocation60_spill] sm:$0xff] }
 0x413   : > { %v6049_v14 = vadd.f32 %v6048_v37, %v5413_v45  ;;  %v5939_v38 = vadd.f32 %v5938_v0, %v5422_v12  ;;  %v5423_v51 = vmul.f32 %v14072_v33, %v4847_v44  ;;  %v4586_v49 = vadd.f32 %v14073_v53, %v14070_v16  ;;  %v12318_v61 = vpop.f32.mrb[185].mxu0  ;;  %v14076_v0 = vld [vmem:[#allocation116_spill] sm:$0xff] }
 0x414   : > { %v6013_v36 = vadd.f32 %v6012_v29, %v5424_v7  ;;  %v5425_v62 = vmul.f32 %v14072_v33, %v4849_v50  ;;  %v5434_v47 = vmul.f32 %v14074_v15, %v4858_v57  ;;  %v4395_v27 = vadd.f32 %v14075_v43, %v14070_v16  ;;  %v12324_v42 = vpop.f32.mrb[186].mxu0 }
 0x415   : > { %v5976_v17 = vadd.f32 %v5975_v21, %v5423_v51  ;;  %v4860_v37 = vmax.f32 %v4586_v49, 0.0  ;;  %v4588_v41 = vadd.f32 %v14076_v0, %v14070_v16  ;;  %v4399_v45 = vadd.f32 %v12065_v58, %v14077_v8  ;;  %v12330_v12 = vpop.f32.mrb[184].mxu1  ;;  %v12332_v29 = vpop.f32.mrb[187].mxu0 }
 0x416   : > { %14078 = vst [vmem:[#allocation123_spill] sm:$0xff] %v12332_v29  ;;  %v6050_v33 = vadd.f32 %v6049_v14, %v5425_v62  ;;  %v5940_v44 = vadd.f32 %v5939_v38, %v5434_v47  ;;  %v4859_v7 = vmax.f32 %v4395_v27, 0.0  ;;  %v4592_v50 = vadd.f32 %v12082_v63, %v14077_v8  ;;  %v12336_v57 = vpop.f32.mrb[185].mxu1  ;;  %v14080_v38 = vld [vmem:[#allocation51_spill] sm:$0xff] }
 0x417   : > { %v5436_v49 = vmul.f32 %v14074_v15, %v4860_v37  ;;  %v4861_v21 = vmax.f32 %v4588_v41, 0.0  ;;  %v4870_v51 = vmax.f32 %v4399_v45, 0.0  ;;  %v4401_v16 = vadd.f32 %v12070_v24, %v14077_v8  ;;  %v12341_v58 = vpop.f32.mrb[186].mxu1  ;;  %v14081_v37 = vld [vmem:[#allocation50_spill] sm:$0xff] }
 0x418   : > { %14079 = vst [vmem:[#allocation156_spill] sm:$0xff] %v12341_v58  ;;  %v5435_v53 = vmul.f32 %v14074_v15, %v4859_v7  ;;  %v4872_v43 = vmax.f32 %v4592_v50, 0.0  ;;  %v4594_v14 = vadd.f32 %v12088_v59, %v14077_v8  ;;  %v4403_v63 = vadd.f32 %v12077_v4, %v14080_v38  ;;  %v12348_v62 = vpop.f32.mrb[187].mxu1 }
 0x419   : > { %v6014_v47 = vadd.f32 %v6013_v36, %v5436_v49  ;;  %v5437_v27 = vmul.f32 %v14074_v15, %v4861_v21  ;;  %v5446_v0 = vmul.f32 %v14081_v37, %v4870_v51  ;;  %v4871_v41 = vmax.f32 %v4401_v16, 0.0  ;;  %v14082_v21 = vld [vmem:[#allocation151_spill] sm:$0xff] }
 0x41a   : > { %v5977_v24 = vadd.f32 %v5976_v17, %v5435_v53  ;;  %v5448_v45 = vmul.f32 %v14081_v37, %v4872_v43  ;;  %v4873_v29 = vmax.f32 %v4594_v14, 0.0  ;;  %v4882_v7 = vmax.f32 %v4403_v63, 0.0  ;;  %v12353_v50 = vpop.f32.mrb[188].mxu0  ;;  %v14083_v43 = vld [vmem:[#allocation105_spill] sm:$0xff] }
 0x41b   : > { %v6051_v58 = vadd.f32 %v6050_v33, %v5437_v27  ;;  %v5941_v59 = vadd.f32 %v5940_v44, %v5446_v0  ;;  %v5447_v8 = vmul.f32 %v14081_v37, %v4871_v41  ;;  %v4596_v4 = vadd.f32 %v12093_v19, %v14080_v38  ;;  %v12358_v36 = vpop.f32.mrb[189].mxu0 }
 0x41c   : > { %v6015_v15 = vadd.f32 %v6014_v47, %v5448_v45  ;;  %v5449_v49 = vmul.f32 %v14081_v37, %v4873_v29  ;;  %v5458_v17 = vmul.f32 %v14082_v21, %v4882_v7  ;;  %v4405_v51 = vadd.f32 %v12084_v35, %v14080_v38  ;;  %v12364_v16 = vpop.f32.mrb[190].mxu0  ;;  %v14084_v7 = vld [vmem:[#allocation32_spill] sm:$0xff] }
 0x41d   : > { %v5978_v53 = vadd.f32 %v5977_v24, %v5447_v8  ;;  %v4884_v33 = vmax.f32 %v4596_v4, 0.0  ;;  %v4598_v44 = vadd.f32 %v12100_v1, %v14080_v38  ;;  %v4409_v19 = vadd.f32 %v12111_v46, %v14083_v43  ;;  %v12370_v14 = vpop.f32.mrb[188].mxu1  ;;  %v12372_v63 = vpop.f32.mrb[191].mxu0 }
 0x41e   : > { %v6052_v29 = vadd.f32 %v6051_v58, %v5449_v49  ;;  %v5942_v47 = vadd.f32 %v5941_v59, %v5458_v17  ;;  %v4883_v27 = vmax.f32 %v4405_v51, 0.0  ;;  %v4602_v35 = vadd.f32 %v12130_v6, %v14083_v43  ;;  %v12376_v37 = vpop.f32.mrb[189].mxu1  ;;  %v14085_v49 = vld [vmem:[#allocation35_spill] sm:$0xff] }
 0x41f   : > { %v5460_v0 = vmul.f32 %v14082_v21, %v4884_v33  ;;  %v4885_v41 = vmax.f32 %v4598_v44, 0.0  ;;  %v4894_v24 = vmax.f32 %v4409_v19, 0.0  ;;  %v4411_v1 = vadd.f32 %v12117_v34, %v14083_v43  ;;  %v12381_v46 = vpop.f32.mrb[190].mxu1 }
 0x420   : > { %v5459_v38 = vmul.f32 %v14082_v21, %v4883_v27  ;;  %v4896_v45 = vmax.f32 %v4602_v35, 0.0  ;;  %v4604_v58 = vadd.f32 %v12136_v40, %v14083_v43  ;;  %v4413_v6 = vadd.f32 %v12123_v30, %v14084_v7  ;;  %v12388_v59 = vpop.f32.mrb[191].mxu1 }
 0x421   : > { %v6016_v8 = vadd.f32 %v6015_v15, %v5460_v0  ;;  %v5461_v4 = vmul.f32 %v14082_v21, %v4885_v41  ;;  %v5470_v17 = vmul.f32 %v14085_v49, %v4894_v24  ;;  %v4895_v51 = vmax.f32 %v4411_v1, 0.0  ;;  %v14086_v0 = vld [vmem:[#allocation153_spill] sm:$0xff] }
 0x422   : > { %v5979_v34 = vadd.f32 %v5978_v53, %v5459_v38  ;;  %v5472_v33 = vmul.f32 %v14085_v49, %v4896_v45  ;;  %v4897_v44 = vmax.f32 %v4604_v58, 0.0  ;;  %v4906_v19 = vmax.f32 %v4413_v6, 0.0 }
 0x423   : > { %v6053_v27 = vadd.f32 %v6052_v29, %v5461_v4  ;;  %v5943_v35 = vadd.f32 %v5942_v47, %v5470_v17  ;;  %v5471_v40 = vmul.f32 %v14085_v49, %v4895_v51  ;;  %v4606_v30 = vadd.f32 %v12141_v10, %v14084_v7  ;;  %v14087_v29 = vld [vmem:[#allocation109_spill] sm:$0xff] }
 0x424   : > { %v6017_v43 = vadd.f32 %v6016_v8, %v5472_v33  ;;  %v5473_v15 = vmul.f32 %v14085_v49, %v4897_v44  ;;  %v5482_v21 = vmul.f32 %v14086_v0, %v4906_v19  ;;  %v4415_v41 = vadd.f32 %v12132_v39, %v14084_v7 }
 0x425   : > { %v5980_v53 = vadd.f32 %v5979_v34, %v5471_v40  ;;  %v4908_v24 = vmax.f32 %v4606_v30, 0.0  ;;  %v4608_v1 = vadd.f32 %v12148_v13, %v14084_v7  ;;  %v4419_v47 = vadd.f32 %v12153_v31, %v14087_v29  ;;  %v14088_v31 = vld [vmem:[#allocation75_spill] sm:$0xff] }
 0x426   : > { %v6054_v38 = vadd.f32 %v6053_v27, %v5473_v15  ;;  %v5944_v45 = vadd.f32 %v5943_v35, %v5482_v21  ;;  %v4907_v58 = vmax.f32 %v4415_v41, 0.0  ;;  %v4612_v10 = vadd.f32 %v12170_v60, %v14087_v29  ;;  %v14089_v60 = vld [vmem:[#allocation12_spill] sm:$0xff] }
 0x427   : > { %v5484_v6 = vmul.f32 %v14086_v0, %v4908_v24  ;;  %v4909_v8 = vmax.f32 %v4608_v1, 0.0  ;;  %v4918_v4 = vmax.f32 %v4419_v47, 0.0  ;;  %v4421_v39 = vadd.f32 %v12158_v25, %v14087_v29  ;;  %v14092_v24 = vld [vmem:[#allocation106_spill] sm:$0xff] }
 0x428   : > { %v5483_v49 = vmul.f32 %v14086_v0, %v4907_v58  ;;  %v4920_v17 = vmax.f32 %v4612_v10, 0.0  ;;  %v4614_v13 = vadd.f32 %v12176_v48, %v14087_v29  ;;  %v4423_v7 = vadd.f32 %v12164_v2, %v14088_v31  ;;  %v14090_v48 = vld [vmem:[#allocation23_spill] sm:$0xff] }
 0x429   : > { %v6018_v51 = vadd.f32 %v6017_v43, %v5484_v6  ;;  %v5485_v34 = vmul.f32 %v14086_v0, %v4909_v8  ;;  %v5494_v33 = vmul.f32 %v14089_v60, %v4918_v4  ;;  %v4919_v44 = vmax.f32 %v4421_v39, 0.0  ;;  %v14091_v43 = vld [vmem:[#allocation129_spill] sm:$0xff] }
 0x42a   : > { %v5981_v19 = vadd.f32 %v5980_v53, %v5483_v49  ;;  %v5496_v27 = vmul.f32 %v14089_v60, %v4920_v17  ;;  %v4921_v35 = vmax.f32 %v4614_v13, 0.0  ;;  %v4930_v25 = vmax.f32 %v4423_v7, 0.0 }
 0x42b   : > { %v6055_v40 = vadd.f32 %v6054_v38, %v5485_v34  ;;  %v5945_v30 = vadd.f32 %v5944_v45, %v5494_v33  ;;  %v5495_v15 = vmul.f32 %v14089_v60, %v4919_v44  ;;  %v4616_v21 = vadd.f32 %v14090_v48, %v14088_v31  ;;  %v14093_v38 = vld [vmem:[#allocation134_spill] sm:$0xff]  ;;  %v14097_v48 = vld [vmem:[#allocation132_spill] sm:$0xff] }
 0x42c   : > { %v6019_v41 = vadd.f32 %v6018_v51, %v5496_v27  ;;  %v5497_v2 = vmul.f32 %v14089_v60, %v4921_v35  ;;  %v5506_v0 = vmul.f32 %v14091_v43, %v4930_v25  ;;  %v4425_v1 = vadd.f32 %v14092_v24, %v14088_v31 }
 0x42d   : > { %v5982_v53 = vadd.f32 %v5981_v19, %v5495_v15  ;;  %v4932_v29 = vmax.f32 %v4616_v21, 0.0  ;;  %v4618_v47 = vadd.f32 %v12188_v22, %v14088_v31  ;;  %v4429_v45 = vadd.f32 %v12193_v3, %v14093_v38  ;;  %v14094_v3 = vld [vmem:[#allocation91_spill] sm:$0xff] }
 0x42e   : > { %v6056_v58 = vadd.f32 %v6055_v40, %v5497_v2  ;;  %v5946_v10 = vadd.f32 %v5945_v30, %v5506_v0  ;;  %v4931_v6 = vmax.f32 %v4425_v1, 0.0  ;;  %v4622_v8 = vadd.f32 %v12210_v52, %v14093_v38  ;;  %v14095_v52 = vld [vmem:[#allocation61_spill] sm:$0xff]  ;;  %v14099_v1 = vld [vmem:[#allocation142_spill] sm:$0xff] }
 0x42f   : > { %v5508_v4 = vmul.f32 %v14091_v43, %v4932_v29  ;;  %v4933_v39 = vmax.f32 %v4618_v47, 0.0  ;;  %v4942_v49 = vmax.f32 %v4429_v45, 0.0  ;;  %v4431_v17 = vadd.f32 %v12198_v5, %v14093_v38 }
 0x430   : > { %v5507_v13 = vmul.f32 %v14091_v43, %v4931_v6  ;;  %v4944_v7 = vmax.f32 %v4622_v8, 0.0  ;;  %v4624_v22 = vadd.f32 %v12216_v28, %v14093_v38  ;;  %v4433_v31 = vadd.f32 %v12204_v11, %v14094_v3  ;;  %v14096_v28 = vld [vmem:[#allocation126_spill] sm:$0xff] }
 0x431   : > { %v6020_v51 = vadd.f32 %v6019_v41, %v5508_v4  ;;  %v5509_v34 = vmul.f32 %v14091_v43, %v4933_v39  ;;  %v5518_v60 = vmul.f32 %v14095_v52, %v4942_v49  ;;  %v4943_v33 = vmax.f32 %v4431_v17, 0.0  ;;  %v14098_v41 = vld [vmem:[#allocation121_spill] sm:$0xff]  ;;  %v14102_v39 = vld [vmem:[#allocation128_spill] sm:$0xff] }
 0x432   : > { %v5983_v44 = vadd.f32 %v5982_v53, %v5507_v13  ;;  %v5520_v19 = vmul.f32 %v14095_v52, %v4944_v7  ;;  %v4945_v27 = vmax.f32 %v4624_v22, 0.0  ;;  %v4954_v5 = vmax.f32 %v4433_v31, 0.0  ;;  %v14100_v53 = vld [vmem:[#allocation148_spill] sm:$0xff]  ;;  %v14104_v22 = vld [vmem:[#allocation78_spill] sm:$0xff] }
 0x433   : > { %v6057_v35 = vadd.f32 %v6056_v58, %v5509_v34  ;;  %v5947_v25 = vadd.f32 %v5946_v10, %v5518_v60  ;;  %v5519_v40 = vmul.f32 %v14095_v52, %v4943_v33  ;;  %v4626_v30 = vadd.f32 %v14096_v28, %v14094_v3  ;;  %v14101_v58 = vld [vmem:[#allocation143_spill] sm:$0xff]  ;;  %v14107_v28 = vld [vmem:[#allocation72_spill] sm:$0xff] }
 0x434   : > { %v6021_v15 = vadd.f32 %v6020_v51, %v5520_v19  ;;  %v5521_v11 = vmul.f32 %v14095_v52, %v4945_v27  ;;  %v5530_v21 = vmul.f32 %v14097_v48, %v4954_v5  ;;  %v4435_v2 = vadd.f32 %v14098_v41, %v14094_v3  ;;  %v14106_v52 = vld [vmem:[#allocation33_spill] sm:$0xff] }
 0x435   : > { %v5984_v43 = vadd.f32 %v5983_v44, %v5519_v40  ;;  %v4956_v0 = vmax.f32 %v4626_v30, 0.0  ;;  %v4628_v24 = vadd.f32 %v12228_v54, %v14094_v3  ;;  %v4439_v29 = vadd.f32 %v14100_v53, %v14099_v1  ;;  %v14103_v54 = vld [vmem:[#allocation149_spill] sm:$0xff]  ;;  %v14105_v3 = vld [vmem:[#allocation28_spill] sm:$0xff] }
 0x436   : > { %v6058_v47 = vadd.f32 %v6057_v35, %v5521_v11  ;;  %v5948_v38 = vadd.f32 %v5947_v25, %v5530_v21  ;;  %v4955_v45 = vmax.f32 %v4435_v2, 0.0  ;;  %v4632_v10 = vadd.f32 %v14101_v58, %v14099_v1  ;;  %v14108_v21 = vld [vmem:[#allocation131_spill] sm:$0xff]  ;;  %v14109_v41 = vld [vmem:[#allocation137_spill] sm:$0xff] }
 0x437   : > { %v5532_v6 = vmul.f32 %v14097_v48, %v4956_v0  ;;  %v4957_v8 = vmax.f32 %v4628_v24, 0.0  ;;  %v4966_v4 = vmax.f32 %v4439_v29, 0.0  ;;  %v4441_v49 = vadd.f32 %v14102_v39, %v14099_v1 }
 0x438   : > { %v5531_v17 = vmul.f32 %v14097_v48, %v4955_v45  ;;  %v4968_v13 = vmax.f32 %v4632_v10, 0.0  ;;  %v4634_v7 = vadd.f32 %v14103_v54, %v14099_v1  ;;  %v4443_v31 = vadd.f32 %v14105_v3, %v14104_v22  ;;  %v14110_v1 = vld [vmem:[#allocation97_spill] sm:$0xff] }
 0x439   : > { %v6022_v51 = vadd.f32 %v6021_v15, %v5532_v6  ;;  %v5533_v34 = vmul.f32 %v14097_v48, %v4957_v8  ;;  %v5542_v60 = vmul.f32 %v14106_v52, %v4966_v4  ;;  %v4967_v33 = vmax.f32 %v4441_v49, 0.0 }
 0x43a   : > { %v5985_v44 = vadd.f32 %v5984_v43, %v5531_v17  ;;  %v5544_v19 = vmul.f32 %v14106_v52, %v4968_v13  ;;  %v4969_v27 = vmax.f32 %v4634_v7, 0.0  ;;  %v4978_v5 = vmax.f32 %v4443_v31, 0.0 }
 0x43b   : > { %v6059_v35 = vadd.f32 %v6058_v47, %v5533_v34  ;;  %v5949_v25 = vadd.f32 %v5948_v38, %v5542_v60  ;;  %v5543_v40 = vmul.f32 %v14106_v52, %v4967_v33  ;;  %v4636_v30 = vadd.f32 %v14107_v28, %v14104_v22  ;;  %v14113_v33 = vld [vmem:[#allocation25_spill] sm:$0xff]  ;;  %v14116_v28 = vld [vmem:[#allocation160_spill] sm:$0xff] }
 0x43c   : > { %v6023_v11 = vadd.f32 %v6022_v51, %v5544_v19  ;;  %v5545_v15 = vmul.f32 %v14106_v52, %v4969_v27  ;;  %v5554_v48 = vmul.f32 %v14108_v21, %v4978_v5  ;;  %v4445_v2 = vadd.f32 %v14109_v41, %v14104_v22  ;;  %v14114_v19 = vld [vmem:[#allocation117_spill] sm:$0xff] }
 0x43d   : > { %v5986_v43 = vadd.f32 %v5985_v44, %v5543_v40  ;;  %v4980_v0 = vmax.f32 %v4636_v30, 0.0  ;;  %v4638_v24 = vadd.f32 %v12268_v18, %v14104_v22  ;;  %v4449_v53 = vadd.f32 %v12273_v20, %v14110_v1  ;;  %v14111_v20 = vld [vmem:[#allocation157_spill] sm:$0xff] }
 0x43e   : > { %v6060_v29 = vadd.f32 %v6059_v35, %v5545_v15  ;;  %v5950_v47 = vadd.f32 %v5949_v25, %v5554_v48  ;;  %v4979_v38 = vmax.f32 %v4445_v2, 0.0  ;;  %v4642_v45 = vadd.f32 %v12290_v55, %v14110_v1  ;;  %v14112_v55 = vld [vmem:[#allocation48_spill] sm:$0xff] }
 0x43f   : > { %v5556_v58 = vmul.f32 %v14108_v21, %v4980_v0  ;;  %v4981_v10 = vmax.f32 %v4638_v24, 0.0  ;;  %v4990_v6 = vmax.f32 %v4449_v53, 0.0  ;;  %v4451_v8 = vadd.f32 %v12278_v56, %v14110_v1  ;;  %v14115_v25 = vld [vmem:[#allocation120_spill] sm:$0xff] }
 0x440   : > { %v5555_v4 = vmul.f32 %v14108_v21, %v4979_v38  ;;  %v4992_v39 = vmax.f32 %v4642_v45, 0.0  ;;  %v4644_v18 = vadd.f32 %v12296_v23, %v14110_v1  ;;  %v4453_v49 = vadd.f32 %v12284_v26, %v14111_v20 }
 0x441   : > { %v6024_v17 = vadd.f32 %v6023_v11, %v5556_v58  ;;  %v5557_v13 = vmul.f32 %v14108_v21, %v4981_v10  ;;  %v5566_v54 = vmul.f32 %v14112_v55, %v4990_v6  ;;  %v4991_v7 = vmax.f32 %v4451_v8, 0.0 }
 0x442   : > { %v5987_v22 = vadd.f32 %v5986_v43, %v5555_v4  ;;  %v5568_v3 = vmul.f32 %v14112_v55, %v4992_v39  ;;  %v4993_v31 = vmax.f32 %v4644_v18, 0.0  ;;  %v5002_v56 = vmax.f32 %v4453_v49, 0.0  ;;  %v14120_v49 = vld [vmem:[#allocation38_spill] sm:$0xff] }
 0x443   : > { %v6061_v51 = vadd.f32 %v6060_v29, %v5557_v13  ;;  %v5951_v34 = vadd.f32 %v5950_v47, %v5566_v54  ;;  %v5567_v52 = vmul.f32 %v14112_v55, %v4991_v7  ;;  %v4646_v23 = vadd.f32 %v12301_v32, %v14111_v20  ;;  %v14121_v13 = vld [vmem:[#allocation123_spill] sm:$0xff] }
 0x444   : > { %v6025_v60 = vadd.f32 %v6024_v17, %v5568_v3  ;;  %v5569_v26 = vmul.f32 %v14112_v55, %v4993_v31  ;;  %v5578_v44 = vmul.f32 %v14113_v33, %v5002_v56  ;;  %v4455_v27 = vadd.f32 %v14114_v19, %v14111_v20  ;;  %v14122_v3 = vld [vmem:[#allocation139_spill] sm:$0xff] }
 0x445   : > { %v5988_v5 = vadd.f32 %v5987_v22, %v5567_v52  ;;  %v5004_v35 = vmax.f32 %v4646_v23, 0.0  ;;  %v4648_v40 = vadd.f32 %v14115_v25, %v14111_v20  ;;  %v4459_v30 = vadd.f32 %v12313_v9, %v14116_v28  ;;  %v14117_v9 = vld [vmem:[#allocation136_spill] sm:$0xff] }
 0x446   : > { %v6062_v11 = vadd.f32 %v6061_v51, %v5569_v26  ;;  %v5952_v15 = vadd.f32 %v5951_v34, %v5578_v44  ;;  %v5003_v21 = vmax.f32 %v4455_v27, 0.0  ;;  %v4652_v32 = vadd.f32 %v12330_v12, %v14116_v28  ;;  %v14118_v12 = vld [vmem:[#allocation34_spill] sm:$0xff] }
 0x447   : > { %v5580_v48 = vmul.f32 %v14113_v33, %v5004_v35  ;;  %v5005_v41 = vmax.f32 %v4648_v40, 0.0  ;;  %v5014_v2 = vmax.f32 %v4459_v30, 0.0  ;;  %v4461_v43 = vadd.f32 %v12318_v61, %v14116_v28 }
 0x448   : > { %v5579_v0 = vmul.f32 %v14113_v33, %v5003_v21  ;;  %v5016_v24 = vmax.f32 %v4652_v32, 0.0  ;;  %v4654_v1 = vadd.f32 %v12336_v57, %v14116_v28  ;;  %v4463_v53 = vadd.f32 %v12324_v42, %v14117_v9  ;;  %v14119_v57 = vld [vmem:[#allocation156_spill] sm:$0xff] }
 0x449   : > { %v6026_v29 = vadd.f32 %v6025_v60, %v5580_v48  ;;  %v5581_v47 = vmul.f32 %v14113_v33, %v5005_v41  ;;  %v5590_v38 = vmul.f32 %v14118_v12, %v5014_v2  ;;  %v5015_v45 = vmax.f32 %v4461_v43, 0.0  ;;  %v14125_v41 = vld [vmem:[#allocation42_spill] sm:$0xff] }
 0x44a   : > { %v5989_v58 = vadd.f32 %v5988_v5, %v5579_v0  ;;  %v5592_v10 = vmul.f32 %v14118_v12, %v5016_v24  ;;  %v5017_v6 = vmax.f32 %v4654_v1, 0.0  ;;  %v5026_v61 = vmax.f32 %v4463_v53, 0.0 }
 0x44b   : > { %v6063_v8 = vadd.f32 %v6062_v11, %v5581_v47  ;;  %v5953_v4 = vadd.f32 %v5952_v15, %v5590_v38  ;;  %v5591_v39 = vmul.f32 %v14118_v12, %v5015_v45  ;;  %v4656_v18 = vadd.f32 %v14119_v57, %v14117_v9 }
 0x44c   : > { %v6027_v20 = vadd.f32 %v6026_v29, %v5592_v10  ;;  %v5593_v42 = vmul.f32 %v14118_v12, %v5017_v6  ;;  %v5602_v17 = vmul.f32 %v14120_v49, %v5026_v61  ;;  %v4465_v55 = vadd.f32 %v14121_v13, %v14117_v9 }
 0x44d   : > { %v5990_v54 = vadd.f32 %v5989_v58, %v5591_v39  ;;  %v5028_v7 = vmax.f32 %v4656_v18, 0.0  ;;  %v4658_v22 = vadd.f32 %v12348_v62, %v14117_v9  ;;  %v4469_v31 = vadd.f32 %v12353_v50, %v14122_v3  ;;  %v14123_v50 = vld [vmem:[#allocation45_spill] sm:$0xff] }
 0x44e   : > { %v6064_v56 = vadd.f32 %v6063_v8, %v5593_v42  ;;  %v5954_v51 = vadd.f32 %v5953_v4, %v5602_v17  ;;  %v5027_v34 = vmax.f32 %v4465_v55, 0.0  ;;  %v4662_v52 = vadd.f32 %v12370_v14, %v14122_v3  ;;  %v14124_v14 = vld [vmem:[#allocation163_spill] sm:$0xff] }
 0x44f   : > { %v5604_v23 = vmul.f32 %v14120_v49, %v5028_v7  ;;  %v5029_v60 = vmax.f32 %v4658_v22, 0.0  ;;  %v5038_v26 = vmax.f32 %v4469_v31, 0.0  ;;  %v4471_v33 = vadd.f32 %v12358_v36, %v14122_v3 }
 0x450   : > { %v5603_v44 = vmul.f32 %v14120_v49, %v5027_v34  ;;  %v5040_v19 = vmax.f32 %v4662_v52, 0.0  ;;  %v4664_v62 = vadd.f32 %v12376_v37, %v14122_v3  ;;  %v4473_v27 = vadd.f32 %v12364_v16, %v14123_v50  ;;  %v14126_v34 = vld [vmem:[#allocation13_spill] sm:$0xff] }
 0x451   : > { %v6028_v5 = vadd.f32 %v6027_v20, %v5604_v23  ;;  %v5605_v35 = vmul.f32 %v14120_v49, %v5029_v60  ;;  %v5614_v25 = vmul.f32 %v14124_v14, %v5038_v26  ;;  %v5039_v40 = vmax.f32 %v4471_v33, 0.0 }
 0x452   : > { %v5991_v28 = vadd.f32 %v5990_v54, %v5603_v44  ;;  %v5616_v30 = vmul.f32 %v14124_v14, %v5040_v19  ;;  %v5041_v11 = vmax.f32 %v4664_v62, 0.0  ;;  %v5050_v36 = vmax.f32 %v4473_v27, 0.0 }
 0x453   : > { %v6065_v15 = vadd.f32 %v6064_v56, %v5605_v35  ;;  %v5955_v21 = vadd.f32 %v5954_v51, %v5614_v25  ;;  %v5615_v32 = vmul.f32 %v14124_v14, %v5039_v40  ;;  %v4666_v37 = vadd.f32 %v12381_v46, %v14123_v50 }
 0x454   : > { %v6029_v48 = vadd.f32 %v6028_v5, %v5616_v30  ;;  %v5617_v16 = vmul.f32 %v14124_v14, %v5041_v11  ;;  %v5626_v2 = vmul.f32 %v14125_v41, %v5050_v36  ;;  %v4475_v43 = vadd.f32 %v12372_v63, %v14123_v50 }
 0x455   : > { %v5992_v0 = vadd.f32 %v5991_v28, %v5615_v32  ;;  %v5052_v24 = vmax.f32 %v4666_v37, 0.0  ;;  %v4668_v1 = vadd.f32 %v12388_v59, %v14123_v50  ;;  %v14127_v50 = vld [vmem:[#allocation19_spill] sm:$0xff]  ;;  %v14128_v14 = vlaneseq }
 0x456   : > { %v6066_v9 = vadd.f32 %v6065_v15, %v5617_v16  ;;  %v5956_v53 = vadd.f32 %v5955_v21, %v5626_v2  ;;  %v5051_v29 = vmax.f32 %v4475_v43, 0.0 }
 0x457   : > { %v5628_v47 = vmul.f32 %v14125_v41, %v5052_v24  ;;  %v5053_v12 = vmax.f32 %v4668_v1, 0.0  ;;  %vm6186_vm0 = vcmp.lt.s32.totalorder %v14128_v14, 512 }
 0x458   : > { %v5957_v46 = vrot.slane %v5956_v53, 4  ;;  %v5627_v38 = vmul.f32 %v14125_v41, %v5051_v29 }
 0x459   : > { %v6030_v45 = vadd.f32 %v6029_v48, %v5628_v47  ;;  %v5629_v58 = vmul.f32 %v14125_v41, %v5053_v12 }
 0x45a   : > { %v5958_v10 = vadd.f32 %v5957_v46, %v5956_v53  ;;  %v5993_v6 = vadd.f32 %v5992_v0, %v5627_v38 }
 0x45b   : > { %v6031_v63 = vrot.slane %v6030_v45, 4  ;;  %v6067_v61 = vadd.f32 %v6066_v9, %v5629_v58 }
 0x45c   : > { %v5959_v8 = vrot.slane %v5958_v10, 2  ;;  %v5994_v4 = vrot.slane %v5993_v6, 4 }
 0x45d   : > { %v6032_v39 = vadd.f32 %v6031_v63, %v6030_v45  ;;  %v6068_v59 = vrot.slane %v6067_v61, 4 }
 0x45e   : > { %v5960_v57 = vadd.f32 %v5959_v8, %v5958_v10  ;;  %v5995_v18 = vadd.f32 %v5994_v4, %v5993_v6 }
 0x45f   : > { %v6033_v20 = vrot.slane %v6032_v39, 2  ;;  %v6069_v42 = vadd.f32 %v6068_v59, %v6067_v61 }
 0x460   : > { %v5961_v49 = vrot.slane %v5960_v57, 1  ;;  %v5996_v17 = vrot.slane %v5995_v18, 2 }
 0x461   : > { %v6034_v13 = vadd.f32 %v6033_v20, %v6032_v39  ;;  %v6070_v55 = vrot.slane %v6069_v42, 2 }
 0x462   : > { %v5962_v54 = vadd.f32 %v5961_v49, %v5960_v57  ;;  %v5997_v7 = vadd.f32 %v5996_v17, %v5995_v18 }
 0x463   : > { %v6035_v22 = vrot.slane %v6034_v13, 1  ;;  %v6071_v3 = vadd.f32 %v6070_v55, %v6069_v42 }
 0x464   : > { %v5998_v31 = vrot.slane %v5997_v7, 1  ;;  %v6092_v52 = vadd.f32 %v14126_v34, %v5962_v54 }
 0x465   : > { %v6036_v56 = vadd.f32 %v6035_v22, %v6034_v13  ;;  %v6072_v51 = vrot.slane %v6071_v3, 1 }
 0x466   : > { %v5999_v23 = vadd.f32 %v5998_v31, %v5997_v7 }
 0x467   : > { %v6094_v60 = vadd.f32 %v14126_v34, %v6036_v56  ;;  %v6073_v26 = vadd.f32 %v6072_v51, %v6071_v3 }
 0x468   : > { %v6093_v33 = vadd.f32 %v14126_v34, %v5999_v23 }
 0x469   : > { %v6095_v44 = vadd.f32 %v14126_v34, %v6073_v26 }
 0x46a   : > { %v6157_v19 = vcombine.low %v6092_v52, %v6093_v33 }
 0x46b   : > { %v6158_v62 = vcombine.low %v6094_v60, %v6095_v44 }
 0x46c   : > { %v6165_v27 = vrot.slane %v6157_v19, %v14127_v50 }
 0x46d   : > { %v6172_v5 = vrot.slane %v6158_v62, %v14127_v50 }
 0x46f   : > { %v6173_v35 = vcombine.low %v6165_v27, %v6172_v5 }
 0x471   : > { %v6180_v25 = vrot.slane %v6173_v35, %v14127_v50 }
 0x473   : > { %6188 = vst.msk [vmem:[%s12108_s12 + $0x8] sm:$0xf] %vm6186_vm0, %v6180_v25 }
 0x474 PF: > { %s19_s26 = sadd.s32 1, %s6445_s26  }
 0x475   : > { %p16_p4 = scmp.ge.s32.totalorder %s19_s26, 4  }
 0x477   :  { %18 = sbr.rel (!%p16_p4) target bundleno = 3 (0x3), region = 78 }

</bundles_post_ra>
